<compile_context>
chip_gen: v6e
topology: v6e:2x2x1
jax: 0.10.0
libtpu: 0.0.40
codegen_flags: <defaults>
</compile_context>

<pallas_src>
import jax
import jax.numpy as jnp
from jax.experimental import pallas as pl
from jax.experimental.pallas import tpu as pltpu

EPS = 1e-5
LANES = 128


def _basic_block_kernel(x_ref, w1_ref, s1_ref, b1_ref,
                        w2_ref, s2_ref, b2_ref,
                        out_ref, xpad_ref, mid_ref):
    """One batch element per grid step.

    x_ref    : (1, H, W, Cp)   bf16  channel-padded NHWC input (also identity)
    w1_ref   : (3, 3*Cp, Cp)   bf16  conv1 taps grouped per row offset dy
    s1/b1    : (1, Cp)         f32   folded BN1 scale / bias
    w2_ref   : (3, 3*Cp, Cp)   bf16  conv2 taps
    s2/b2    : (1, Cp)         f32   folded BN2 scale / bias
    out_ref  : (1, H, W, Cp)   f32
    xpad_ref : (H+2, W+2, Cp)  bf16  scratch: zero-halo padded input
    mid_ref  : (H+2, W+2, Cp)  bf16  scratch: zero-halo padded conv1 activation
    """
    _, H, W, Cp = x_ref.shape
    Hp, Wp = H + 2, W + 2
    M = H * W

    # Zero only the 1-pixel halo of the padded scratch buffers (interiors are
    # fully overwritten below).  Done every step so it is correct regardless
    # of how the "parallel" batch axis is split across TensorCores.
    zrow = jnp.zeros((1, Wp, Cp), dtype=jnp.bfloat16)
    zcol = jnp.zeros((Hp, 1, Cp), dtype=jnp.bfloat16)
    for buf in (xpad_ref, mid_ref):
        buf[0:1, :, :] = zrow
        buf[Hp - 1:Hp, :, :] = zrow
        buf[:, 0:1, :] = zcol
        buf[:, Wp - 1:Wp, :] = zcol

    # In-kernel spatial padding: place the unpadded input in the interior.
    x = x_ref[0]                                      # (H, W, Cp) bf16
    xpad_ref[1:1 + H, 1:1 + W, :] = x

    def conv3x3(src_ref, w_ref):
        # 3x3 / stride-1 conv as 3 MXU matmuls, each with K = 3*Cp:
        # the three dx taps are concatenated along the lane axis to match
        # the (3, 3*Cp, Cp) weight layout.  f32 accumulation.
        acc = jnp.zeros((M, Cp), dtype=jnp.float32)
        for dy in range(3):                           # short static loop
            slab = jnp.concatenate(
                [src_ref[dy:dy + H, 0:W, :],
                 src_ref[dy:dy + H, 1:1 + W, :],
                 src_ref[dy:dy + H, 2:2 + W, :]],
                axis=-1).reshape(M, 3 * Cp)
            acc = acc + jnp.dot(slab, w_ref[dy],
                                preferred_element_type=jnp.float32)
        return acc

    # conv1 -> BN1 (folded) -> ReLU
    acc1 = conv3x3(xpad_ref, w1_ref)
    y1 = jnp.maximum(acc1 * s1_ref[...] + b1_ref[...], 0.0)
    mid_ref[1:1 + H, 1:1 + W, :] = y1.astype(jnp.bfloat16).reshape(H, W, Cp)

    # conv2 -> BN2 (folded) -> +identity -> ReLU
    acc2 = conv3x3(mid_ref, w2_ref)
    y2 = acc2 * s2_ref[...] + b2_ref[...]
    res = x.astype(jnp.float32).reshape(M, Cp)
    out_ref[0] = jnp.maximum(y2 + res, 0.0).reshape(H, W, Cp)


def _fold_bn(gamma, beta, mean, var, cp):
    scale = gamma / jnp.sqrt(var + EPS)
    bias = beta - mean * scale
    c = gamma.shape[0]
    pad = (0, cp - c)
    return (jnp.pad(scale, pad).reshape(1, cp).astype(jnp.float32),
            jnp.pad(bias, pad).reshape(1, cp).astype(jnp.float32))


def _group_taps(w_oihw, cp):
    # (Cout, Cin, 3, 3) -> (3 dy, 3 dx, Cin, Cout), zero-pad channels to cp,
    # merge (dx, Cin) into one K = 3*cp contraction axis, cast to bf16.
    cout, cin = w_oihw.shape[0], w_oihw.shape[1]
    w = jnp.transpose(w_oihw, (2, 3, 1, 0))
    w = jnp.pad(w, ((0, 0), (0, 0), (0, cp - cin), (0, cp - cout)))
    return w.reshape(3, 3 * cp, cp).astype(jnp.bfloat16)


def basic_block(x_nchw, w1, bn1, w2, bn2):
    """x_nchw: (N, C, H, W) f32. w*: (C, C, 3, 3) OIHW. bn*: (gamma, beta, mean, var)."""
    N, C, H, W = x_nchw.shape
    Cp = max(LANES, ((C + LANES - 1) // LANES) * LANES)   # lane-dense channels

    # NCHW -> NHWC, channel-pad, bf16 for the MXU (accumulation stays f32).
    x = jnp.transpose(x_nchw, (0, 2, 3, 1))
    x = jnp.pad(x, ((0, 0), (0, 0), (0, 0), (0, Cp - C))).astype(jnp.bfloat16)

    s1, b1 = _fold_bn(*bn1, Cp)
    s2, b2 = _fold_bn(*bn2, Cp)
    w1g = _group_taps(w1, Cp)
    w2g = _group_taps(w2, Cp)

    flops = 4 * N * H * W * 9 * Cp * Cp            # 2 convs * 2 flops/MAC
    bytes_accessed = (x.size * 2 + (w1g.size + w2g.size) * 2
                      + (s1.size + b1.size + s2.size + b2.size) * 4
                      + N * H * W * Cp * 4)

    out = pl.pallas_call(
        _basic_block_kernel,
        out_shape=jax.ShapeDtypeStruct((N, H, W, Cp), jnp.float32),
        grid_spec=pltpu.PrefetchScalarGridSpec(
            num_scalar_prefetch=0,
            grid=(N,),
            in_specs=[
                pl.BlockSpec((1, H, W, Cp), lambda n: (n, 0, 0, 0)),
                pl.BlockSpec((3, 3 * Cp, Cp), lambda n: (0, 0, 0)),
                pl.BlockSpec((1, Cp), lambda n: (0, 0)),
                pl.BlockSpec((1, Cp), lambda n: (0, 0)),
                pl.BlockSpec((3, 3 * Cp, Cp), lambda n: (0, 0, 0)),
                pl.BlockSpec((1, Cp), lambda n: (0, 0)),
                pl.BlockSpec((1, Cp), lambda n: (0, 0)),
            ],
            out_specs=pl.BlockSpec((1, H, W, Cp), lambda n: (n, 0, 0, 0)),
            scratch_shapes=[
                pltpu.VMEM((H + 2, W + 2, Cp), jnp.bfloat16),   # padded input
                pltpu.VMEM((H + 2, W + 2, Cp), jnp.bfloat16),   # padded conv1 act
            ]),
        compiler_params=pltpu.CompilerParams(
            dimension_semantics=("parallel",),        # batch across TCs (v7x)
            vmem_limit_bytes=64 * 1024 * 1024),
        cost_estimate=pl.CostEstimate(
            flops=flops, transcendentals=0, bytes_accessed=bytes_accessed),
    )(x, w1g, s1, b1, w2g, s2, b2)

    out = out[..., :C]                                # drop channel padding
    return jnp.transpose(out, (0, 3, 1, 2))


# ---------------- pure-JAX reference (sanity check) ----------------
def _ref_forward(x_nchw, w1, bn1, w2, bn2, conv_dtype=jnp.float32):
    x = jnp.transpose(x_nchw, (0, 2, 3, 1)).astype(jnp.float32)

    def conv(a, w_oihw):
        w_hwio = jnp.transpose(w_oihw, (2, 3, 1, 0))
        return jax.lax.conv_general_dilated(
            a.astype(conv_dtype), w_hwio.astype(conv_dtype),
            window_strides=(1, 1), padding="SAME",
            dimension_numbers=("NHWC", "HWIO", "NHWC"),
            preferred_element_type=jnp.float32)

    def bn(a, p):
        g, be, m, v = p
        return (a - m) / jnp.sqrt(v + EPS) * g + be

    ident = x.astype(conv_dtype).astype(jnp.float32)
    y = jnp.maximum(bn(conv(x, w1), bn1), 0.0)
    y = bn(conv(y, w2), bn2)
    y = jnp.maximum(y + ident, 0.0)
    return jnp.transpose(y, (0, 3, 1, 2))


if __name__ == "__main__":
    key = jax.random.PRNGKey(0)
    N, C, H, W = 2, 4, 16, 16   # input=output=4 channels, stride=1, no downsample
    ks = jax.random.split(key, 11)

    x = jax.random.normal(ks[0], (N, C, H, W), jnp.float32)
    w1 = jax.random.normal(ks[1], (C, C, 3, 3), jnp.float32) * 0.2
    w2 = jax.random.normal(ks[2], (C, C, 3, 3), jnp.float32) * 0.2
    bn1 = (1.0 + 0.1 * jax.random.normal(ks[3], (C,), jnp.float32),
           0.1 * jax.random.normal(ks[4], (C,), jnp.float32),
           0.1 * jax.random.normal(ks[5], (C,), jnp.float32),
           1.0 + 0.1 * jax.nn.softplus(jax.random.normal(ks[6], (C,), jnp.float32)))
    bn2 = (1.0 + 0.1 * jax.random.normal(ks[7], (C,), jnp.float32),
           0.1 * jax.random.normal(ks[8], (C,), jnp.float32),
           0.1 * jax.random.normal(ks[9], (C,), jnp.float32),
           1.0 + 0.1 * jax.nn.softplus(jax.random.normal(ks[10], (C,), jnp.float32)))

    out = jax.block_until_ready(basic_block(x, w1, bn1, w2, bn2))
    assert out.shape == (N, C, H, W)

    # Tight check vs a reference that mirrors the kernel's bf16-input /
    # f32-accumulate MXU precision (checks indexing/layout correctness).
    ref_bf16 = jax.block_until_ready(
        _ref_forward(x, w1, bn1, w2, bn2, conv_dtype=jnp.bfloat16))
    assert jnp.allclose(out, ref_bf16, rtol=1e-2, atol=1e-2), \
        float(jnp.max(jnp.abs(out - ref_bf16)))

    # Looser check vs the full-f32 module semantics (bf16 matmul rounding).
    ref_f32 = jax.block_until_ready(_ref_forward(x, w1, bn1, w2, bn2))
    assert jnp.allclose(out, ref_f32, rtol=1e-1, atol=1e-1), \
        float(jnp.max(jnp.abs(out - ref_f32)))

    print("KERNEL_OK")
</pallas_src>

<mosaic_0001>
module attributes {stable_mosaic.version = 11 : i64} {
  func.func @_basic_block_kernel(%arg0: i32, %arg1: memref<1x16x16x128xbf16, #tpu.memory_space<vmem>>, %arg2: memref<3x384x128xbf16, #tpu.memory_space<vmem>>, %arg3: memref<1x128xf32, #tpu.memory_space<vmem>>, %arg4: memref<1x128xf32, #tpu.memory_space<vmem>>, %arg5: memref<3x384x128xbf16, #tpu.memory_space<vmem>>, %arg6: memref<1x128xf32, #tpu.memory_space<vmem>>, %arg7: memref<1x128xf32, #tpu.memory_space<vmem>>, %arg8: memref<1x16x16x128xf32, #tpu.memory_space<vmem>>, %arg9: memref<18x18x128xbf16, #tpu.memory_space<vmem>>, %arg10: memref<18x18x128xbf16, #tpu.memory_space<vmem>>) attributes {dimension_semantics = [#tpu.dimension_semantics<parallel>], iteration_bounds = array<i64: 2>, scalar_prefetch = 0 : i64, scratch_operands = 2 : i64, tpu.core_type = #tpu.core_type<tc>, window_params = [{transform_indices = @transform_0, window_bounds = array<i64: 1, 16, 16, 128>}, {pipeline_mode = #tpu.pipeline_mode<synchronous>, transform_indices = @transform_1, window_bounds = array<i64: 3, 384, 128>}, {pipeline_mode = #tpu.pipeline_mode<synchronous>, transform_indices = @transform_2, window_bounds = array<i64: 1, 128>}, {pipeline_mode = #tpu.pipeline_mode<synchronous>, transform_indices = @transform_3, window_bounds = array<i64: 1, 128>}, {pipeline_mode = #tpu.pipeline_mode<synchronous>, transform_indices = @transform_4, window_bounds = array<i64: 3, 384, 128>}, {pipeline_mode = #tpu.pipeline_mode<synchronous>, transform_indices = @transform_5, window_bounds = array<i64: 1, 128>}, {pipeline_mode = #tpu.pipeline_mode<synchronous>, transform_indices = @transform_6, window_bounds = array<i64: 1, 128>}, {transform_indices = @transform_7, window_bounds = array<i64: 1, 16, 16, 128>}]} {
    %cst = arith.constant 0.000000e+00 : bf16
    %0 = vector.broadcast %cst : bf16 to vector<1x18x128xbf16>
    %cst_0 = arith.constant 0.000000e+00 : bf16
    %1 = vector.broadcast %cst_0 : bf16 to vector<18x1x128xbf16>
    %c0 = arith.constant 0 : index
    %c0_1 = arith.constant 0 : index
    %c0_2 = arith.constant 0 : index
    %2 = vector.load %arg9[%c0, %c0_1, %c0_2] : memref<18x18x128xbf16, #tpu.memory_space<vmem>>, vector<1x18x128xbf16>
    tpu.vector_store %arg9[%c0, %c0_1, %c0_2], %0 {strides = array<i32>} : memref<18x18x128xbf16, #tpu.memory_space<vmem>>, vector<1x18x128xbf16>,
    %c17 = arith.constant 17 : index
    %c0_3 = arith.constant 0 : index
    %c0_4 = arith.constant 0 : index
    %3 = vector.load %arg9[%c17, %c0_3, %c0_4] : memref<18x18x128xbf16, #tpu.memory_space<vmem>>, vector<1x18x128xbf16>
    tpu.vector_store %arg9[%c17, %c0_3, %c0_4], %0 {strides = array<i32>} : memref<18x18x128xbf16, #tpu.memory_space<vmem>>, vector<1x18x128xbf16>,
    %c0_5 = arith.constant 0 : index
    %c0_6 = arith.constant 0 : index
    %c0_7 = arith.constant 0 : index
    %4 = vector.load %arg9[%c0_5, %c0_6, %c0_7] : memref<18x18x128xbf16, #tpu.memory_space<vmem>>, vector<18x1x128xbf16>
    tpu.vector_store %arg9[%c0_5, %c0_6, %c0_7], %1 {strides = array<i32>} : memref<18x18x128xbf16, #tpu.memory_space<vmem>>, vector<18x1x128xbf16>,
    %c0_8 = arith.constant 0 : index
    %c17_9 = arith.constant 17 : index
    %c0_10 = arith.constant 0 : index
    %5 = vector.load %arg9[%c0_8, %c17_9, %c0_10] : memref<18x18x128xbf16, #tpu.memory_space<vmem>>, vector<18x1x128xbf16>
    tpu.vector_store %arg9[%c0_8, %c17_9, %c0_10], %1 {strides = array<i32>} : memref<18x18x128xbf16, #tpu.memory_space<vmem>>, vector<18x1x128xbf16>,
    %c0_11 = arith.constant 0 : index
    %c0_12 = arith.constant 0 : index
    %c0_13 = arith.constant 0 : index
    %6 = vector.load %arg10[%c0_11, %c0_12, %c0_13] : memref<18x18x128xbf16, #tpu.memory_space<vmem>>, vector<1x18x128xbf16>
    tpu.vector_store %arg10[%c0_11, %c0_12, %c0_13], %0 {strides = array<i32>} : memref<18x18x128xbf16, #tpu.memory_space<vmem>>, vector<1x18x128xbf16>,
    %c17_14 = arith.constant 17 : index
    %c0_15 = arith.constant 0 : index
    %c0_16 = arith.constant 0 : index
    %7 = vector.load %arg10[%c17_14, %c0_15, %c0_16] : memref<18x18x128xbf16, #tpu.memory_space<vmem>>, vector<1x18x128xbf16>
    tpu.vector_store %arg10[%c17_14, %c0_15, %c0_16], %0 {strides = array<i32>} : memref<18x18x128xbf16, #tpu.memory_space<vmem>>, vector<1x18x128xbf16>,
    %c0_17 = arith.constant 0 : index
    %c0_18 = arith.constant 0 : index
    %c0_19 = arith.constant 0 : index
    %8 = vector.load %arg10[%c0_17, %c0_18, %c0_19] : memref<18x18x128xbf16, #tpu.memory_space<vmem>>, vector<18x1x128xbf16>
    tpu.vector_store %arg10[%c0_17, %c0_18, %c0_19], %1 {strides = array<i32>} : memref<18x18x128xbf16, #tpu.memory_space<vmem>>, vector<18x1x128xbf16>,
    %c0_20 = arith.constant 0 : index
    %c17_21 = arith.constant 17 : index
    %c0_22 = arith.constant 0 : index
    %9 = vector.load %arg10[%c0_20, %c17_21, %c0_22] : memref<18x18x128xbf16, #tpu.memory_space<vmem>>, vector<18x1x128xbf16>
    tpu.vector_store %arg10[%c0_20, %c17_21, %c0_22], %1 {strides = array<i32>} : memref<18x18x128xbf16, #tpu.memory_space<vmem>>, vector<18x1x128xbf16>,
    %c0_23 = arith.constant 0 : index
    %c0_24 = arith.constant 0 : index
    %c0_25 = arith.constant 0 : index
    %c0_26 = arith.constant 0 : index
    %10 = vector.load %arg1[%c0_23, %c0_24, %c0_25, %c0_26] : memref<1x16x16x128xbf16, #tpu.memory_space<vmem>>, vector<1x16x16x128xbf16>
    %11 = vector.shape_cast %10 : vector<1x16x16x128xbf16> to vector<16x16x128xbf16>
    %c1 = arith.constant 1 : index
    %c1_27 = arith.constant 1 : index
    %c0_28 = arith.constant 0 : index
    %12 = vector.load %arg9[%c1, %c1_27, %c0_28] : memref<18x18x128xbf16, #tpu.memory_space<vmem>>, vector<16x16x128xbf16>
    tpu.vector_store %arg9[%c1, %c1_27, %c0_28], %11 {strides = array<i32>} : memref<18x18x128xbf16, #tpu.memory_space<vmem>>, vector<16x16x128xbf16>,
    %cst_29 = arith.constant 0.000000e+00 : f32
    %13 = vector.broadcast %cst_29 : f32 to vector<256x128xf32>
    %c0_30 = arith.constant 0 : index
    %c0_31 = arith.constant 0 : index
    %c0_32 = arith.constant 0 : index
    %14 = vector.load %arg9[%c0_30, %c0_31, %c0_32] : memref<18x18x128xbf16, #tpu.memory_space<vmem>>, vector<16x16x128xbf16>
    %c0_33 = arith.constant 0 : index
    %c1_34 = arith.constant 1 : index
    %c0_35 = arith.constant 0 : index
    %15 = vector.load %arg9[%c0_33, %c1_34, %c0_35] : memref<18x18x128xbf16, #tpu.memory_space<vmem>>, vector<16x16x128xbf16>
    %c0_36 = arith.constant 0 : index
    %c2 = arith.constant 2 : index
    %c0_37 = arith.constant 0 : index
    %16 = vector.load %arg9[%c0_36, %c2, %c0_37] : memref<18x18x128xbf16, #tpu.memory_space<vmem>>, vector<16x16x128xbf16>
    %17 = tpu.concatenate %14, %15, %16 in 2 : vector<16x16x128xbf16>, vector<16x16x128xbf16>, vector<16x16x128xbf16> -> vector<16x16x384xbf16>
    %18 = vector.shape_cast %17 : vector<16x16x384xbf16> to vector<256x384xbf16>
    %c0_38 = arith.constant 0 : index
    %c0_39 = arith.constant 0 : index
    %c0_40 = arith.constant 0 : index
    %19 = vector.load %arg2[%c0_38, %c0_39, %c0_40] : memref<3x384x128xbf16, #tpu.memory_space<vmem>>, vector<1x384x128xbf16>
    %20 = vector.shape_cast %19 : vector<1x384x128xbf16> to vector<384x128xbf16>
    %cst_41 = arith.constant dense<0.000000e+00> : vector<256x128xf32>
    %21 = tpu.matmul %18, %20, %cst_41 {dimension_numbers = #tpu.dot_dimension_numbers<[1], [0], [0], [1], [0, 0, 1, 1], [], []>} : vector<256x384xbf16>, vector<384x128xbf16>, vector<256x128xf32> -> vector<256x128xf32>
    %22 = arith.addf %13, %21 : vector<256x128xf32>
    %c1_42 = arith.constant 1 : index
    %c0_43 = arith.constant 0 : index
    %c0_44 = arith.constant 0 : index
    %23 = vector.load %arg9[%c1_42, %c0_43, %c0_44] : memref<18x18x128xbf16, #tpu.memory_space<vmem>>, vector<16x16x128xbf16>
    %c1_45 = arith.constant 1 : index
    %c1_46 = arith.constant 1 : index
    %c0_47 = arith.constant 0 : index
    %24 = vector.load %arg9[%c1_45, %c1_46, %c0_47] : memref<18x18x128xbf16, #tpu.memory_space<vmem>>, vector<16x16x128xbf16>
    %c1_48 = arith.constant 1 : index
    %c2_49 = arith.constant 2 : index
    %c0_50 = arith.constant 0 : index
    %25 = vector.load %arg9[%c1_48, %c2_49, %c0_50] : memref<18x18x128xbf16, #tpu.memory_space<vmem>>, vector<16x16x128xbf16>
    %26 = tpu.concatenate %23, %24, %25 in 2 : vector<16x16x128xbf16>, vector<16x16x128xbf16>, vector<16x16x128xbf16> -> vector<16x16x384xbf16>
    %27 = vector.shape_cast %26 : vector<16x16x384xbf16> to vector<256x384xbf16>
    %c1_51 = arith.constant 1 : index
    %c0_52 = arith.constant 0 : index
    %c0_53 = arith.constant 0 : index
    %28 = vector.load %arg2[%c1_51, %c0_52, %c0_53] : memref<3x384x128xbf16, #tpu.memory_space<vmem>>, vector<1x384x128xbf16>
    %29 = vector.shape_cast %28 : vector<1x384x128xbf16> to vector<384x128xbf16>
    %cst_54 = arith.constant dense<0.000000e+00> : vector<256x128xf32>
    %30 = tpu.matmul %27, %29, %cst_54 {dimension_numbers = #tpu.dot_dimension_numbers<[1], [0], [0], [1], [0, 0, 1, 1], [], []>} : vector<256x384xbf16>, vector<384x128xbf16>, vector<256x128xf32> -> vector<256x128xf32>
    %31 = arith.addf %22, %30 : vector<256x128xf32>
    %c2_55 = arith.constant 2 : index
    %c0_56 = arith.constant 0 : index
    %c0_57 = arith.constant 0 : index
    %32 = vector.load %arg9[%c2_55, %c0_56, %c0_57] : memref<18x18x128xbf16, #tpu.memory_space<vmem>>, vector<16x16x128xbf16>
    %c2_58 = arith.constant 2 : index
    %c1_59 = arith.constant 1 : index
    %c0_60 = arith.constant 0 : index
    %33 = vector.load %arg9[%c2_58, %c1_59, %c0_60] : memref<18x18x128xbf16, #tpu.memory_space<vmem>>, vector<16x16x128xbf16>
    %c2_61 = arith.constant 2 : index
    %c2_62 = arith.constant 2 : index
    %c0_63 = arith.constant 0 : index
    %34 = vector.load %arg9[%c2_61, %c2_62, %c0_63] : memref<18x18x128xbf16, #tpu.memory_space<vmem>>, vector<16x16x128xbf16>
    %35 = tpu.concatenate %32, %33, %34 in 2 : vector<16x16x128xbf16>, vector<16x16x128xbf16>, vector<16x16x128xbf16> -> vector<16x16x384xbf16>
    %36 = vector.shape_cast %35 : vector<16x16x384xbf16> to vector<256x384xbf16>
    %c2_64 = arith.constant 2 : index
    %c0_65 = arith.constant 0 : index
    %c0_66 = arith.constant 0 : index
    %37 = vector.load %arg2[%c2_64, %c0_65, %c0_66] : memref<3x384x128xbf16, #tpu.memory_space<vmem>>, vector<1x384x128xbf16>
    %38 = vector.shape_cast %37 : vector<1x384x128xbf16> to vector<384x128xbf16>
    %cst_67 = arith.constant dense<0.000000e+00> : vector<256x128xf32>
    %39 = tpu.matmul %36, %38, %cst_67 {dimension_numbers = #tpu.dot_dimension_numbers<[1], [0], [0], [1], [0, 0, 1, 1], [], []>} : vector<256x384xbf16>, vector<384x128xbf16>, vector<256x128xf32> -> vector<256x128xf32>
    %40 = arith.addf %31, %39 : vector<256x128xf32>
    %c0_68 = arith.constant 0 : index
    %c0_69 = arith.constant 0 : index
    %41 = vector.load %arg3[%c0_68, %c0_69] : memref<1x128xf32, #tpu.memory_space<vmem>>, vector<1x128xf32>
    %42 = vector.broadcast %41 : vector<1x128xf32> to vector<256x128xf32>
    %43 = arith.mulf %40, %42 : vector<256x128xf32>
    %c0_70 = arith.constant 0 : index
    %c0_71 = arith.constant 0 : index
    %44 = vector.load %arg4[%c0_70, %c0_71] : memref<1x128xf32, #tpu.memory_space<vmem>>, vector<1x128xf32>
    %45 = vector.broadcast %44 : vector<1x128xf32> to vector<256x128xf32>
    %46 = arith.addf %43, %45 : vector<256x128xf32>
    %cst_72 = arith.constant 0.000000e+00 : f32
    %47 = vector.broadcast %cst_72 : f32 to vector<256x128xf32>
    %48 = arith.maximumf %46, %47 : vector<256x128xf32>
    %49 = arith.truncf %48 : vector<256x128xf32> to vector<256x128xbf16>
    %50 = vector.shape_cast %49 : vector<256x128xbf16> to vector<16x16x128xbf16>
    %c1_73 = arith.constant 1 : index
    %c1_74 = arith.constant 1 : index
    %c0_75 = arith.constant 0 : index
    %51 = vector.load %arg10[%c1_73, %c1_74, %c0_75] : memref<18x18x128xbf16, #tpu.memory_space<vmem>>, vector<16x16x128xbf16>
    tpu.vector_store %arg10[%c1_73, %c1_74, %c0_75], %50 {strides = array<i32>} : memref<18x18x128xbf16, #tpu.memory_space<vmem>>, vector<16x16x128xbf16>,
    %cst_76 = arith.constant 0.000000e+00 : f32
    %52 = vector.broadcast %cst_76 : f32 to vector<256x128xf32>
    %c0_77 = arith.constant 0 : index
    %c0_78 = arith.constant 0 : index
    %c0_79 = arith.constant 0 : index
    %53 = vector.load %arg10[%c0_77, %c0_78, %c0_79] : memref<18x18x128xbf16, #tpu.memory_space<vmem>>, vector<16x16x128xbf16>
    %c0_80 = arith.constant 0 : index
    %c1_81 = arith.constant 1 : index
    %c0_82 = arith.constant 0 : index
    %54 = vector.load %arg10[%c0_80, %c1_81, %c0_82] : memref<18x18x128xbf16, #tpu.memory_space<vmem>>, vector<16x16x128xbf16>
    %c0_83 = arith.constant 0 : index
    %c2_84 = arith.constant 2 : index
    %c0_85 = arith.constant 0 : index
    %55 = vector.load %arg10[%c0_83, %c2_84, %c0_85] : memref<18x18x128xbf16, #tpu.memory_space<vmem>>, vector<16x16x128xbf16>
    %56 = tpu.concatenate %53, %54, %55 in 2 : vector<16x16x128xbf16>, vector<16x16x128xbf16>, vector<16x16x128xbf16> -> vector<16x16x384xbf16>
    %57 = vector.shape_cast %56 : vector<16x16x384xbf16> to vector<256x384xbf16>
    %c0_86 = arith.constant 0 : index
    %c0_87 = arith.constant 0 : index
    %c0_88 = arith.constant 0 : index
    %58 = vector.load %arg5[%c0_86, %c0_87, %c0_88] : memref<3x384x128xbf16, #tpu.memory_space<vmem>>, vector<1x384x128xbf16>
    %59 = vector.shape_cast %58 : vector<1x384x128xbf16> to vector<384x128xbf16>
    %cst_89 = arith.constant dense<0.000000e+00> : vector<256x128xf32>
    %60 = tpu.matmul %57, %59, %cst_89 {dimension_numbers = #tpu.dot_dimension_numbers<[1], [0], [0], [1], [0, 0, 1, 1], [], []>} : vector<256x384xbf16>, vector<384x128xbf16>, vector<256x128xf32> -> vector<256x128xf32>
    %61 = arith.addf %52, %60 : vector<256x128xf32>
    %c1_90 = arith.constant 1 : index
    %c0_91 = arith.constant 0 : index
    %c0_92 = arith.constant 0 : index
    %62 = vector.load %arg10[%c1_90, %c0_91, %c0_92] : memref<18x18x128xbf16, #tpu.memory_space<vmem>>, vector<16x16x128xbf16>
    %c1_93 = arith.constant 1 : index
    %c1_94 = arith.constant 1 : index
    %c0_95 = arith.constant 0 : index
    %63 = vector.load %arg10[%c1_93, %c1_94, %c0_95] : memref<18x18x128xbf16, #tpu.memory_space<vmem>>, vector<16x16x128xbf16>
    %c1_96 = arith.constant 1 : index
    %c2_97 = arith.constant 2 : index
    %c0_98 = arith.constant 0 : index
    %64 = vector.load %arg10[%c1_96, %c2_97, %c0_98] : memref<18x18x128xbf16, #tpu.memory_space<vmem>>, vector<16x16x128xbf16>
    %65 = tpu.concatenate %62, %63, %64 in 2 : vector<16x16x128xbf16>, vector<16x16x128xbf16>, vector<16x16x128xbf16> -> vector<16x16x384xbf16>
    %66 = vector.shape_cast %65 : vector<16x16x384xbf16> to vector<256x384xbf16>
    %c1_99 = arith.constant 1 : index
    %c0_100 = arith.constant 0 : index
    %c0_101 = arith.constant 0 : index
    %67 = vector.load %arg5[%c1_99, %c0_100, %c0_101] : memref<3x384x128xbf16, #tpu.memory_space<vmem>>, vector<1x384x128xbf16>
    %68 = vector.shape_cast %67 : vector<1x384x128xbf16> to vector<384x128xbf16>
    %cst_102 = arith.constant dense<0.000000e+00> : vector<256x128xf32>
    %69 = tpu.matmul %66, %68, %cst_102 {dimension_numbers = #tpu.dot_dimension_numbers<[1], [0], [0], [1], [0, 0, 1, 1], [], []>} : vector<256x384xbf16>, vector<384x128xbf16>, vector<256x128xf32> -> vector<256x128xf32>
    %70 = arith.addf %61, %69 : vector<256x128xf32>
    %c2_103 = arith.constant 2 : index
    %c0_104 = arith.constant 0 : index
    %c0_105 = arith.constant 0 : index
    %71 = vector.load %arg10[%c2_103, %c0_104, %c0_105] : memref<18x18x128xbf16, #tpu.memory_space<vmem>>, vector<16x16x128xbf16>
    %c2_106 = arith.constant 2 : index
    %c1_107 = arith.constant 1 : index
    %c0_108 = arith.constant 0 : index
    %72 = vector.load %arg10[%c2_106, %c1_107, %c0_108] : memref<18x18x128xbf16, #tpu.memory_space<vmem>>, vector<16x16x128xbf16>
    %c2_109 = arith.constant 2 : index
    %c2_110 = arith.constant 2 : index
    %c0_111 = arith.constant 0 : index
    %73 = vector.load %arg10[%c2_109, %c2_110, %c0_111] : memref<18x18x128xbf16, #tpu.memory_space<vmem>>, vector<16x16x128xbf16>
    %74 = tpu.concatenate %71, %72, %73 in 2 : vector<16x16x128xbf16>, vector<16x16x128xbf16>, vector<16x16x128xbf16> -> vector<16x16x384xbf16>
    %75 = vector.shape_cast %74 : vector<16x16x384xbf16> to vector<256x384xbf16>
    %c2_112 = arith.constant 2 : index
    %c0_113 = arith.constant 0 : index
    %c0_114 = arith.constant 0 : index
    %76 = vector.load %arg5[%c2_112, %c0_113, %c0_114] : memref<3x384x128xbf16, #tpu.memory_space<vmem>>, vector<1x384x128xbf16>
    %77 = vector.shape_cast %76 : vector<1x384x128xbf16> to vector<384x128xbf16>
    %cst_115 = arith.constant dense<0.000000e+00> : vector<256x128xf32>
    %78 = tpu.matmul %75, %77, %cst_115 {dimension_numbers = #tpu.dot_dimension_numbers<[1], [0], [0], [1], [0, 0, 1, 1], [], []>} : vector<256x384xbf16>, vector<384x128xbf16>, vector<256x128xf32> -> vector<256x128xf32>
    %79 = arith.addf %70, %78 : vector<256x128xf32>
    %c0_116 = arith.constant 0 : index
    %c0_117 = arith.constant 0 : index
    %80 = vector.load %arg6[%c0_116, %c0_117] : memref<1x128xf32, #tpu.memory_space<vmem>>, vector<1x128xf32>
    %81 = vector.broadcast %80 : vector<1x128xf32> to vector<256x128xf32>
    %82 = arith.mulf %79, %81 : vector<256x128xf32>
    %c0_118 = arith.constant 0 : index
    %c0_119 = arith.constant 0 : index
    %83 = vector.load %arg7[%c0_118, %c0_119] : memref<1x128xf32, #tpu.memory_space<vmem>>, vector<1x128xf32>
    %84 = vector.broadcast %83 : vector<1x128xf32> to vector<256x128xf32>
    %85 = arith.addf %82, %84 : vector<256x128xf32>
    %86 = arith.extf %11 : vector<16x16x128xbf16> to vector<16x16x128xf32>
    %87 = vector.shape_cast %86 : vector<16x16x128xf32> to vector<256x128xf32>
    %88 = arith.addf %85, %87 : vector<256x128xf32>
    %cst_120 = arith.constant 0.000000e+00 : f32
    %89 = vector.broadcast %cst_120 : f32 to vector<256x128xf32>
    %90 = arith.maximumf %88, %89 : vector<256x128xf32>
    %91 = vector.shape_cast %90 : vector<256x128xf32> to vector<16x16x128xf32>
    %c0_121 = arith.constant 0 : index
    %c0_122 = arith.constant 0 : index
    %c0_123 = arith.constant 0 : index
    %c0_124 = arith.constant 0 : index
    %92 = vector.load %arg8[%c0_121, %c0_122, %c0_123, %c0_124] : memref<1x16x16x128xf32, #tpu.memory_space<vmem>>, vector<1x16x16x128xf32>
    %93 = vector.shape_cast %92 : vector<1x16x16x128xf32> to vector<16x16x128xf32>
    %94 = vector.shape_cast %91 : vector<16x16x128xf32> to vector<1x16x16x128xf32>
    tpu.vector_store %arg8[%c0_121, %c0_122, %c0_123, %c0_124], %94 {strides = array<i32>} : memref<1x16x16x128xf32, #tpu.memory_space<vmem>>, vector<1x16x16x128xf32>,
    return
  }
  func.func @transform_0(%arg0: i32) -> (i32, i32, i32, i32) {
    %c0_i32 = arith.constant 0 : i32
    %c0_i32_0 = arith.constant 0 : i32
    %c0_i32_1 = arith.constant 0 : i32
    %c0_i32_2 = arith.constant 0 : i32
    return %arg0, %c0_i32, %c0_i32_0, %c0_i32_1 : i32, i32, i32, i32
  }
  func.func @transform_1(%arg0: i32) -> (i32, i32, i32) {
    %c0_i32 = arith.constant 0 : i32
    %c0_i32_0 = arith.constant 0 : i32
    %c0_i32_1 = arith.constant 0 : i32
    %c0_i32_2 = arith.constant 0 : i32
    return %c0_i32, %c0_i32_0, %c0_i32_1 : i32, i32, i32
  }
  func.func @transform_2(%arg0: i32) -> (i32, i32) {
    %c0_i32 = arith.constant 0 : i32
    %c0_i32_0 = arith.constant 0 : i32
    %c0_i32_1 = arith.constant 0 : i32
    return %c0_i32, %c0_i32_0 : i32, i32
  }
  func.func @transform_3(%arg0: i32) -> (i32, i32) {
    %c0_i32 = arith.constant 0 : i32
    %c0_i32_0 = arith.constant 0 : i32
    %c0_i32_1 = arith.constant 0 : i32
    return %c0_i32, %c0_i32_0 : i32, i32
  }
  func.func @transform_4(%arg0: i32) -> (i32, i32, i32) {
    %c0_i32 = arith.constant 0 : i32
    %c0_i32_0 = arith.constant 0 : i32
    %c0_i32_1 = arith.constant 0 : i32
    %c0_i32_2 = arith.constant 0 : i32
    return %c0_i32, %c0_i32_0, %c0_i32_1 : i32, i32, i32
  }
  func.func @transform_5(%arg0: i32) -> (i32, i32) {
    %c0_i32 = arith.constant 0 : i32
    %c0_i32_0 = arith.constant 0 : i32
    %c0_i32_1 = arith.constant 0 : i32
    return %c0_i32, %c0_i32_0 : i32, i32
  }
  func.func @transform_6(%arg0: i32) -> (i32, i32) {
    %c0_i32 = arith.constant 0 : i32
    %c0_i32_0 = arith.constant 0 : i32
    %c0_i32_1 = arith.constant 0 : i32
    return %c0_i32, %c0_i32_0 : i32, i32
  }
  func.func @transform_7(%arg0: i32) -> (i32, i32, i32, i32) {
    %c0_i32 = arith.constant 0 : i32
    %c0_i32_0 = arith.constant 0 : i32
    %c0_i32_1 = arith.constant 0 : i32
    %c0_i32_2 = arith.constant 0 : i32
    return %arg0, %c0_i32, %c0_i32_0, %c0_i32_1 : i32, i32, i32, i32
  }
}

</mosaic_0001>

<bundles_post_ra>
// kernel: tpu_custom_call.1
= control target key start
LH: loop header
LB: loop body
LE: loop exit
PB: predicated region body
PF: predicated region fallthrough
CT: control target
= control target key end

     0   :  { %s13719_s0 = inlined_call_operand.hbm [shape: bf16[2,16,16,128], index: 0, kind: input, shape index: {}]   ;;  %s13720_s1 = inlined_call_operand.hbm [shape: bf16[3,384,128], index: 1, kind: input, shape index: {}]   ;;  %s13721_s2 = inlined_call_operand.vmem [shape: f32[1,128], index: 2, kind: input, shape index: {}]   ;;  %s13722_s3 = inlined_call_operand.vmem [shape: f32[1,128], index: 3, kind: input, shape index: {}]   ;;  %s13723_s4 = inlined_call_operand.hbm [shape: bf16[3,384,128], index: 4, kind: input, shape index: {}]   ;;  %s13724_s5 = inlined_call_operand.vmem [shape: f32[1,128], index: 5, kind: input, shape index: {}]   ;;  %s13725_s6 = inlined_call_operand.vmem [shape: f32[1,128], index: 6, kind: input, shape index: {}]   ;;  %s13726_s7 = inlined_call_operand.hbm [shape: f32[2,16,16,128], index: 7, kind: output, shape index: {}]  }
   0x1   :  { %13737 = sst [smem:[#allocation23_spill]] %s13720_s1 }
   0x2   :  { %12 = vsyncpa [#allocation5], 0 }
   0x3   :  { %14 = vsyncpa [#allocation5 + $0x1], 0 }
   0x4   :  { %15 = vsyncpa [#allocation8], 0 }
   0x5   :  { %16 = vsyncpa [#allocation6], 0 }
   0x6   :  { %18 = vsyncpa [#allocation6 + $0x1], 0  ;;  %s10668_s24 = smov 0   ;;  %s10670_s25 = smov 0  }
   0x7   :  { %s10672_s26 = smov 0   ;;  %s10674_s27 = smov 0  }
   0x8 LB: > { %s10689_s28 = sadd.s32 4294967295, %s10617_s27   ;;  %s8306_s29 = sadd.s32 4294967294, %s10617_s27   ;;  %s10617_s27 = sphi %s10674_s27, %s13837_s27   ;;  %s10613_s26 = sphi %s10672_s26, %s13836_s26   ;;  %s10609_s25 = sphi %s10670_s25, %s13835_s25   ;;  %s10605_s24 = sphi %s10668_s24, %s13834_s24  }
   0x9   : > { %p44_p0 = scmp.ne.s32.totalorder %s10609_s25, %s10605_s24  ;;  %p13728_p1 = scmp.eq.s32.totalorder %s10689_s28, 0 }
   0xa   : > { %p194_p2 = scmp.eq.s32.totalorder %s10689_s28, 1  ;;  %p200_p3 = scmp.eq.s32.totalorder %s8306_s29, 1 }
   0xb   : > { %p10698_p4 = por %p13728_p1, %p44_p0  ;;  %p8307_p5 = scmp.ge.s32.totalorder %s10617_s27, 1 }
   0xc   : > { %p10703_p6 = por %p200_p3, %p44_p0  ;;  %p207_p7 = scmp.lt.s32.totalorder %s10617_s27, 3 }
   0xd   : > { %s13738_s30 = scalar_select %p10698_p4, 1, 0 }
   0xe   : > { %s13739_s8 = scalar_select %p10703_p6, 1, 0 }
   0xf   : > { %p10708_p8 = pnand %p8307_p5, %p207_p7  ;;  %s10619_s10 = smov [#allocation7]  }
  0x10   : > { %s219_s11 = sshll.u32 %s10619_s10, 4  ;;  %s10620_s13 = smov [#allocation9]   ;;  %s220_s11 = int_to_ptr.vmem [resolvable:$true] %s219_s11 }
  0x11   : > { %s13740_s9 = scalar_select %p10708_p8, 1, 0 }
  0x12   : > { %p9942_p9 = pneg %p10708_p8  ;;  %s238_s14 = sshll.u32 %s10620_s13, 4  ;;  %s239_s14 = int_to_ptr.vmem [resolvable:$true] %s238_s14 }
  0x13   : > { %s10480_s15 = scalar_lea.vmem %s220_s11, 9216  ;;  %p10488_p5 = scmp.lt.s32.totalorder %s220_s11, %s220_s11 }
  0x14   : > { %p10717_p11 = pnand %p9942_p9, %p13728_p1  ;;  %p10481_p13 = scmp.ne.s32.totalorder %s220_s11, %s10480_s15 }
  0x15   : > { %p10489_p7 = scmp.lt.s32.totalorder %s10480_s15, %s10480_s15 }
  0x16   : > { %p10471_p12 = pneg %p10717_p11 }
  0x17   : > { %p10490_p10 = por %p10489_p7, %p10488_p5 }
  0x18   : > { %p10483_p0 = pnand %p10481_p13, %p10471_p12 }
  0x1a   : > { %p10484_p3 = pneg %p10483_p0 }
  0x1c   : > { %p10491_p9 = pnand %p10490_p10, %p10484_p3 }
  0x1e   : > { %10494 = shalt.err (!%p10491_p9)
}
  0x1f   : > { %s13727_s16 = smov 64   ;;  %s13729_s17 = smov 4  }
  0x20   : > { %s13742_s1 = sld [smem:[#allocation23_spill]]  ;;  %s10506_s20 = scalar_lea.vmem %s239_s14, 9216 }
  0x21   : > { %p10507_p13 = scmp.ne.s32.totalorder %s239_s14, %s10506_s20  ;;  %p10514_p10 = scmp.lt.s32.totalorder %s239_s14, %s239_s14 }
  0x22   : > { %p10515_p3 = scmp.lt.s32.totalorder %s10506_s20, %s10506_s20 }
  0x23   : > { %p10509_p0 = pnand %p10507_p13, %p10471_p12 }
  0x24   : > { %p10516_p7 = por %p10515_p3, %p10514_p10 }
  0x25   : > { %p10510_p5 = pneg %p10509_p0 }
  0x26   : > { %9945 = dma.hbm_to_vmem [thread:$0]  (!%p10717_p11), %s13742_s1, 9216, %s220_s11, [#allocation8], %s13727_s16, %s13727_s16, %s13729_s17  }
  0x27   : > { %p10517_p9 = pnand %p10516_p7, %p10510_p5 }
  0x29   : > { %10520 = shalt.err (!%p10517_p9)
}
  0x2a   : > { %9948 = dma.hbm_to_vmem [thread:$0]  (!%p10717_p11), %s13723_s4, 9216, %s239_s14, [#allocation8], %s13727_s16, %s13727_s16, %s13729_s17  }
  0x2b   : > { %s10746_s23 = sadd.s32 1, %s10617_s27   ;;  %s31_s29 = sadd.s32 1, %s10613_s26 }
  0x2c   : > { %s28_s10 = ssub.s32 %s10617_s27, %s10746_s23  ;;  %p38_p12 = scmp.ne.s32.totalorder %s10613_s26, %s10609_s25 }
  0x2d   : > { %p29_p13 = scmp.eq.s32.totalorder %s28_s10, 0  ;;  %p39_p0 = scmp.eq.s32.totalorder %s10617_s27, 0 }
  0x2e   : > { %p10756_p5 = por %p194_p2, %p38_p12  ;;  %p9959_p10 = scmp.lt.s32.totalorder %s10617_s27, 2 }
  0x2f   : > { %s10762_s12 = scalar_select %p29_p13, %s10613_s26, %s31_s29  }
  0x30   : > { %s13743_s11 = scalar_select %p10756_p5, 1, 0 }
  0x31   : > { %p40_p3 = por %p39_p0, %p38_p12  ;;  %s258_s13 = sand.u32 1, %s10613_s26  }
  0x32   : > { %s8311_s15 = sshll.u32 %s258_s13, 7  ;;  %s8792_s14 = sshll.u32 %s10617_s27, 11 }
  0x33   : > { %s10769_s20 = scalar_lea.hbm %s13719_s0, %s8792_s14  ;;  %s262_s21 = scalar_lea.vmem [#allocation4], %s8311_s15 }
  0x34   : > { %s269_s22 = sshll.u32 %s262_s21, 4  ;;  %p10773_p2 = pnand %p9959_p10, %p40_p3  ;;  %s10771_s22 = int_to_ptr.vmem [resolvable:$true] %s269_s22 }
  0x35   : > { %s10777_s29 = scalar_lea.sflag [#allocation5], %s258_s13  ;;  %s10521_s16 = scalar_lea.hbm %s10769_s20, 2048 }
  0x36   : > { %p10522_p11 = scmp.ne.s32.totalorder %s10769_s20, %s10521_s16  ;;  %p10523_p7 = pneg %p10773_p2 }
  0x37   : > { %s10526_s15 = scalar_lea.hbm %s13719_s0, 4096  ;;  %p10527_p13 = scmp.lt.s32.totalorder %s10769_s20, %s13719_s0 }
  0x38   : > { %p10524_p9 = pnand %p10523_p7, %p10522_p11  ;;  %p10528_p0 = scmp.lt.s32.totalorder %s10526_s15, %s10521_s16 }
  0x3a   : > { %p10525_p12 = pneg %p10524_p9  ;;  %p10529_p10 = por %p10528_p0, %p10527_p13 }
  0x3c   : > { %p10530_p3 = pnand %p10529_p10, %p10525_p12 }
  0x3e   : > { %10533 = shalt.err (!%p10530_p3)
}
  0x3f   : > { %s10534_s13 = scalar_lea.vmem %s10771_s22, 2048  ;;  %s10623_s17 = smov [#allocation4]  }
  0x40   : > { %p10535_p1 = scmp.ne.s32.totalorder %s10771_s22, %s10534_s13  ;;  %s10539_s1 = sshll.u32 %s10623_s17, 4  ;;  %s10540_s1 = int_to_ptr.vmem [resolvable:$false] %s10539_s1 }
  0x41   : > { %s10541_s14 = scalar_lea.vmem %s10540_s1, 4096  ;;  %p10542_p9 = scmp.lt.s32.totalorder %s10771_s22, %s10540_s1 }
  0x42   : > { %p10537_p6 = pnand %p10535_p1, %p10523_p7  ;;  %p10543_p5 = scmp.lt.s32.totalorder %s10541_s14, %s10534_s13 }
  0x44   : > { %p10538_p11 = pneg %p10537_p6  ;;  %p10544_p4 = por %p10543_p5, %p10542_p9 }
  0x46   : > { %p10545_p8 = pnand %p10544_p4, %p10538_p11 }
  0x48   : > { %10548 = shalt.err (!%p10545_p8)
}
  0x49   : > { %s13745_s16 = smov 4   ;;  %s13746_s18 = smov 64  }
  0x4a   : > { %9952 = dma.hbm_to_vmem [thread:$0]  (!%p10773_p2), %s10769_s20, 2048, %s10771_s22, %s10777_s29, %s13746_s18, %s13746_s18, %s13745_s16  }
  0x4b   : > { %p13747_p1 = scmp.ne.s32.totalorder %s13740_s9, 0 }
  0x4d   : > { %281 = sbr.rel (%p13747_p1) target bundleno = 1170 (0x492), region = 48 }
  0x52   : > { %s10804_s17 = sand.u32 1, %s10609_s25   ;;  %p13748_p4 = scmp.ne.s32.totalorder %s13738_s30, 0 }
  0x53   : > { %s8315_s1 = sshll.u32 %s10804_s17, 7  ;;  %s284_s15 = scalar_lea.sflag [#allocation5], %s10804_s17 }
  0x54   : > { %s10808_s19 = scalar_lea.vmem [#allocation4], %s8315_s1 }
  0x55   : > { %10592 = dma.done.wait (%p13748_p4), %s284_s15, 2048  }
  0x56   : > { %10594 = vsyncadd (%p13748_p4), %s284_s15, 4294965248  ;;  %p13749_p6 = scmp.eq.s32.totalorder %s10689_s28, 0 }
  0x58   : > { %10596 = dma.done.wait (%p13749_p6), [#allocation8], 18432   ;;  %p13750_p8 = pmov %p13749_p6 }
  0x59   : > { %v10002_v0 = vld [vmem:[#allocation7 + $0x138] sm:$0xff]   ;;  %v10005_v3 = vld [vmem:[#allocation7 + $0x130] sm:$0xff]   ;;  %vm335_vm0 = vsmask.f32 256  ;;  %v10008_v6 = vld [vmem:[#allocation7 + $0x128] sm:$0xff]   ;;  %v10624_v10 = vmov 0  }
  0x5a   : > { %10598 = vsyncadd (%p13750_p8), [#allocation8], 4294948864  ;;  %v10003_v1 = vld [vmem:[#allocation7 + $0x178] sm:$0xff]   ;;  %8826 = vmatprep.subr.bf16.mxu0 %v10002_v0  ;;  %v10006_v4 = vld [vmem:[#allocation7 + $0x170] sm:$0xff]   ;;  %327 = vst [vmem:[#allocation2] sm:$0xf] %v10624_v10 }
  0x5b   : > { %v10004_v2 = vld [vmem:[#allocation7 + $0xf8] sm:$0xff]   ;;  %9642 = vmatprep.subr.bf16.mxu1 %v10003_v1  ;;  %v10007_v5 = vld [vmem:[#allocation7 + $0xf0] sm:$0xff]   ;;  %v10009_v7 = vld [vmem:[#allocation7 + $0x168] sm:$0xff]   ;;  %328 = vst [vmem:[#allocation2 + $0x4] sm:$0xf] %v10624_v10  ;;  %vm334_vm1 = vcmask 1040384  }
  0x5c   : > { %8827 = vmatpush3.bf16.msra.mxu0 %v10004_v2  ;;  %9643 = vmatpush3.bf16.msra.mxu1 %v10003_v1  ;;  %v10010_v8 = vld [vmem:[#allocation7 + $0xe8] sm:$0xff]   ;;  %v10011_v9 = vld [vmem:[#allocation7 + $0x120] sm:$0xff]   ;;  %329 = vst [vmem:[#allocation2 + $0x8] sm:$0x1] %v10624_v10  ;;  %331 = vst [vmem:[#allocation2 + $0xcc] sm:$0xf] %v10624_v10 }
  0x5d   : > { %8828 = vmatprep.subr.bf16.mxu0 %v10005_v3  ;;  %9644 = vmatprep.subr.bf16.mxu1 %v10006_v4  ;;  %332 = vst [vmem:[#allocation2 + $0xd0] sm:$0xf] %v10624_v10  ;;  %333 = vst [vmem:[#allocation2 + $0xd4] sm:$0x1] %v10624_v10  ;;  %v10012_v11 = vld [vmem:[#allocation7 + $0x160] sm:$0xff]   ;;  %v10014_v13 = vld [vmem:[#allocation7 + $0x118] sm:$0xff]  }
  0x5e   : > { %447 = vst [vmem:[#allocation3] sm:$0xf] %v10624_v10  ;;  %448 = vst [vmem:[#allocation3 + $0x4] sm:$0xf] %v10624_v10  ;;  %v10013_v12 = vld [vmem:[#allocation7 + $0xe0] sm:$0xff]   ;;  %v10015_v14 = vld [vmem:[#allocation7 + $0x158] sm:$0xff]  }
  0x5f   : > { %449 = vst [vmem:[#allocation3 + $0x8] sm:$0x1] %v10624_v10  ;;  %451 = vst [vmem:[#allocation3 + $0xcc] sm:$0xf] %v10624_v10  ;;  %vm391_vm3 = vsmask.f32 7938 }
  0x60   : > { %8829 = vmatpush3.bf16.msra.mxu0 %v10007_v5  ;;  %9645 = vmatpush3.bf16.msra.mxu1 %v10006_v4  ;;  %452 = vst [vmem:[#allocation3 + $0xd0] sm:$0xf] %v10624_v10  ;;  %453 = vst [vmem:[#allocation3 + $0xd4] sm:$0x1] %v10624_v10  ;;  %v10016_v16 = vld [vmem:[#allocation7 + $0xd8] sm:$0xff]   ;;  %v10017_v17 = vld [vmem:[#allocation7 + $0x110] sm:$0xff]  }
  0x61   : > { %8830 = vmatprep.subr.bf16.mxu0 %v10008_v6  ;;  %9646 = vmatprep.subr.bf16.mxu1 %v10009_v7  ;;  %vm10820_vm2 = vmand %vm334_vm1, %vm335_vm0  ;;  %v10018_v18 = vld [vmem:[#allocation7 + $0x150] sm:$0xff]   ;;  %vm594_vm5 = vsmask.f32 4368  ;;  %v10020_v21 = vld [vmem:[#allocation7 + $0x108] sm:$0xff]   ;;  %vm917_vm6 = vcmask 1043456   ;;  %v13755_v48 = vmov 0 }
  0x62   : > { %vm10826_vm4 = vmand %vm334_vm1, %vm391_vm3  ;;  %v10019_v20 = vld [vmem:[#allocation7 + $0xd0] sm:$0xff]   ;;  %v10021_v22 = vld [vmem:[#allocation7 + $0x148] sm:$0xff]   ;;  %v13758_v57 = vmov 0  ;;  %vm1496_vm9 = vcmask 1046528   ;;  %vm1239_vm10 = vsmask.f32 7424 }
  0x63   : > { %v10022_v23 = vld [vmem:[#allocation7 + $0xc8] sm:$0xff]   ;;  %v10023_v24 = vld [vmem:[#allocation7 + $0x100] sm:$0xff]   ;;  %v340_v26 = vld [vmem:[#allocation2 + $0xc] sm:$0x1]  ;;  %s8318_s15 = sshll.u32 %s10804_s17, 8  ;;  %s8825_s9 = sshll.u32 %s10689_s28, 12 }
  0x64   : > { %8831 = vmatpush3.bf16.msra.mxu0 %v10010_v8  ;;  %9647 = vmatpush3.bf16.msra.mxu1 %v10009_v7  ;;  %v10024_v25 = vld [vmem:[#allocation7 + $0x140] sm:$0xff]   ;;  %v341_v29 = vsel %vm10820_vm2, 0, %v340_v26  ;;  %v343_v36 = vld [vmem:[#allocation2 + $0x18] sm:$0x1]  ;;  %v399_v37 = vld [vmem:[#allocation2 + $0x20] sm:$0x1]  ;;  %s13673_s29 = scalar_lea.hbm %s13726_s7, %s8825_s9 }
  0x65   : > { %8832 = vmatprep.subr.bf16.mxu0 %v10011_v9  ;;  %9648 = vmatprep.subr.bf16.mxu1 %v10012_v11  ;;  %v396_v27 = vld [vmem:[#allocation2 + $0x14] sm:$0x1]  ;;  %v562_v28 = vld [vmem:[%s10808_s19] sm:$0xf]  ;;  %342 = vst [vmem:[#allocation2 + $0xc] sm:$0x1] %v341_v29  ;;  %vm10846_vm7 = vmor %vm335_vm0, %vm594_vm5 }
  0x66   : > { %v397_v30 = vsel %vm10826_vm4, 0, %v396_v27  ;;  %v563_v31 = vld [vmem:[%s10808_s19 + $0x4] sm:$0xf]  ;;  %v597_v32 = vshrl.u32 %v562_v28, 16  ;;  %v600_v33 = vshll.u32 %v562_v28, 16  ;;  %v344_v40 = vsel %vm10820_vm2, 0, %v343_v36  ;;  %vm10852_vm8 = vmand %vm917_vm6, %vm391_vm3 }
  0x67   : > { %398 = vst [vmem:[#allocation2 + $0x14] sm:$0x1] %v397_v30  ;;  %v605_v34 = vshrl.u32 %v563_v31, 16  ;;  %v608_v35 = vshll.u32 %v563_v31, 16  ;;  %v10025_v38 = vld [vmem:[#allocation7 + $0xc0] sm:$0xff]   ;;  %v400_v41 = vsel %vm10826_vm4, 0, %v399_v37 }
  0x68   : > { %8833 = vmatpush3.bf16.msra.mxu0 %v10013_v12  ;;  %9649 = vmatpush3.bf16.msra.mxu1 %v10012_v11  ;;  %v599_v39 = vrot.slane %v597_v32, 7  ;;  %v564_v42 = vld [vmem:[%s10808_s19 + $0x8] sm:$0xf]  ;;  %345 = vst [vmem:[#allocation2 + $0x18] sm:$0x1] %v344_v40  ;;  %v10842_v47 = vld [vmem:[#allocation7 + $0xb8] sm:$0xff]  }
  0x69   : > { %8834 = vmatprep.subr.bf16.mxu0 %v10014_v13  ;;  %9650 = vmatprep.subr.bf16.mxu1 %v10015_v14  ;;  %v607_v43 = vrot.slane %v605_v34, 7  ;;  %401 = vst [vmem:[#allocation2 + $0x20] sm:$0x1] %v400_v41  ;;  %v565_v44 = vld [vmem:[%s10808_s19 + $0xc] sm:$0xf]  ;;  %v614_v45 = vshrl.u32 %v564_v42, 16 }
  0x6a   : > { %v617_v46 = vshll.u32 %v564_v42, 16  ;;  %v13756_v48 = vsel %vm10846_vm7, 4294967295, %v13755_v48  ;;  %v603_v49 = vrot.slane %v599_v39, 4  ;;  %v622_v50 = vshrl.u32 %v565_v44, 16  ;;  %v10033_v52 = vld [vmem:[#allocation7 + $0x78] sm:$0xff]   ;;  %s13487_s30 = scalar_lea.vmem [#allocation10], %s8318_s15 }
  0x6b   : > { %13757 = vst [vmem:[#allocation14_spill] sm:$0xff] %v13756_v48  ;;  %v625_v51 = vshll.u32 %v565_v44, 16  ;;  %v602_v53 = vor.u32 %v600_v33, %v599_v39  ;;  %v610_v54 = vor.u32 %v608_v35, %v607_v43  ;;  %v612_v55 = vrot.slane %v607_v43, 4  ;;  %v346_v62 = vld [vmem:[#allocation2 + $0x24] sm:$0x1]  ;;  %s8214_s20 = sshll.u32 %s13487_s30, 4  ;;  %s13675_s20 = int_to_ptr.vmem [resolvable:$true] %s8214_s20 }
  0x6c   : > { %8835 = vmatpush3.bf16.msra.mxu0 %v10016_v16  ;;  %9651 = vmatpush3.bf16.msra.mxu1 %v10015_v14  ;;  %v616_v56 = vrot.slane %v614_v45, 7  ;;  %v13759_v57 = vsel %vm10852_vm8, 4294967295, %v13758_v57  ;;  %v624_v58 = vrot.slane %v622_v50, 7  ;;  %v919_v63 = vld [vmem:[#allocation2 + $0xc] sm:$0xf]  ;;  %v347_v3 = vsel %vm10820_vm2, 0, %v346_v62 }
  0x6d   : > { %8836 = vmatprep.subr.bf16.mxu0 %v10017_v17  ;;  %9652 = vmatprep.subr.bf16.mxu1 %v10018_v18  ;;  %13760 = vst [vmem:[#allocation15_spill] sm:$0xff] %v13759_v57  ;;  %v611_v59 = vsel %vm10846_vm7, %v603_v49, %v610_v54  ;;  %v920_v4 = vsel %vm10852_vm8, %v602_v53, %v919_v63  ;;  %348 = vst [vmem:[#allocation2 + $0x24] sm:$0x1] %v347_v3  ;;  %v402_v6 = vld [vmem:[#allocation2 + $0x2c] sm:$0x1]  ;;  %s10549_s21 = scalar_lea.vmem %s13675_s20, 4096 }
  0x6e   : > { %v619_v60 = vor.u32 %v617_v46, %v616_v56  ;;  %v620_v61 = vrot.slane %v616_v56, 4  ;;  %922 = vst [vmem:[#allocation2 + $0x10] sm:$0xf] %v611_v59  ;;  %v923_v0 = vld [vmem:[#allocation2 + $0x14] sm:$0x1]  ;;  %v627_v1 = vor.u32 %v625_v51, %v624_v58  ;;  %v629_v2 = vrot.slane %v624_v58, 4  ;;  %p10550_p5 = scmp.ne.s32.totalorder %s13675_s20, %s10549_s21 }
  0x6f   : > { %v924_v5 = vsel %vm10820_vm2, %v612_v55, %v923_v0  ;;  %v566_v7 = vld [vmem:[%s10808_s19 + $0x10] sm:$0xf]  ;;  %v567_v8 = vld [vmem:[%s10808_s19 + $0x14] sm:$0xf]  ;;  %921 = vst [vmem:[#allocation2 + $0xc] sm:$0xf] %v920_v4 }
  0x70   : > { %8837 = vmatpush3.bf16.msra.mxu0 %v10019_v20  ;;  %9653 = vmatpush3.bf16.msra.mxu1 %v10018_v18  ;;  %925 = vst [vmem:[#allocation2 + $0x14] sm:$0x1] %v924_v5  ;;  %v628_v9 = vsel %vm10846_vm7, %v620_v61, %v627_v1  ;;  %v926_v10 = vld [vmem:[#allocation2 + $0x18] sm:$0xf]  ;;  %v930_v11 = vld [vmem:[#allocation2 + $0x20] sm:$0x1] }
  0x71   : > { %8838 = vmatprep.subr.bf16.mxu0 %v10020_v21  ;;  %9654 = vmatprep.subr.bf16.mxu1 %v10021_v22  ;;  %v403_v12 = vsel %vm10826_vm4, 0, %v402_v6  ;;  %v631_v13 = vshrl.u32 %v566_v7, 16  ;;  %v927_v14 = vsel %vm10852_vm8, %v619_v60, %v926_v10  ;;  %929 = vst [vmem:[#allocation2 + $0x1c] sm:$0xf] %v628_v9  ;;  %v931_v16 = vsel %vm10820_vm2, %v629_v2, %v930_v11  ;;  %v349_v20 = vld [vmem:[#allocation2 + $0x30] sm:$0x1] }
  0x72   : > { %404 = vst [vmem:[#allocation2 + $0x2c] sm:$0x1] %v403_v12  ;;  %v634_v17 = vshll.u32 %v566_v7, 16  ;;  %v639_v18 = vshrl.u32 %v567_v8, 16  ;;  %v405_v21 = vld [vmem:[#allocation2 + $0x38] sm:$0x1] }
  0x73   : > { %928 = vst [vmem:[#allocation2 + $0x18] sm:$0xf] %v927_v14  ;;  %932 = vst [vmem:[#allocation2 + $0x20] sm:$0x1] %v931_v16  ;;  %v568_v26 = vld [vmem:[%s10808_s19 + $0x18] sm:$0xf] }
  0x74   : > { %8839 = vmatpush3.bf16.msra.mxu0 %v10022_v23  ;;  %9655 = vmatpush3.bf16.msra.mxu1 %v10021_v22  ;;  %v633_v22 = vrot.slane %v631_v13, 7  ;;  %v642_v23 = vshll.u32 %v567_v8, 16  ;;  %v641_v27 = vrot.slane %v639_v18, 7  ;;  %v569_v28 = vld [vmem:[%s10808_s19 + $0x1c] sm:$0xf]  ;;  %v648_v29 = vshrl.u32 %v568_v26, 16 }
  0x75   : > { %8840 = vmatprep.subr.bf16.mxu0 %v10023_v24  ;;  %9656 = vmatprep.subr.bf16.mxu1 %v10024_v25  ;;  %v350_v24 = vsel %vm10820_vm2, 0, %v349_v20  ;;  %v656_v32 = vshrl.u32 %v569_v28, 16  ;;  %v659_v33 = vshll.u32 %v569_v28, 16  ;;  %v1610_v34 = vld [vmem:[#allocation2 + $0x10] sm:$0xf]  ;;  %v651_v37 = vshll.u32 %v568_v26, 16 }
  0x76   : > { %351 = vst [vmem:[#allocation2 + $0x30] sm:$0x1] %v350_v24  ;;  %v636_v30 = vor.u32 %v634_v17, %v633_v22  ;;  %v637_v31 = vrot.slane %v633_v22, 4  ;;  %v644_v35 = vor.u32 %v642_v23, %v641_v27  ;;  %v650_v36 = vrot.slane %v648_v29, 7  ;;  %v933_v39 = vld [vmem:[#allocation2 + $0x24] sm:$0xf] }
  0x77   : > { %v658_v40 = vrot.slane %v656_v32, 7  ;;  %v1609_v41 = vld [vmem:[#allocation2 + $0xc] sm:$0xf]  ;;  %v10027_v46 = vld [vmem:[#allocation2 + $0x14] ss:$0 sps:$4 sm:$0x11]  }
  0x78   : > { %8841 = vmatpush3.bf16.msra.mxu0 %v10025_v38  ;;  %9657 = vmatpush3.bf16.msra.mxu1 %v10024_v25  ;;  %v406_v25 = vsel %vm10826_vm4, 0, %v405_v21  ;;  %v646_v38 = vrot.slane %v641_v27, 4  ;;  %v1657_v42 = vld [vmem:[#allocation2 + $0xc] sm:$0xe]  ;;  %v645_v43 = vsel %vm10846_vm7, %v637_v31, %v644_v35  ;;  %v934_v44 = vsel %vm10852_vm8, %v636_v30, %v933_v39  ;;  %v1612_v50 = vld [vmem:[#allocation2 + $0x1c] sm:$0xf] }
  0x79   : > { %9690 = vmatprep.subr.bf16.mxu0 %v10842_v47  ;;  %8962 = vmatprep.subr.bf16.mxu1 %v10033_v52  ;;  %407 = vst [vmem:[#allocation2 + $0x38] sm:$0x1] %v406_v25  ;;  %v10885_v45 = vcombine.low %v1609_v41, %v1610_v34  ;;  %v8399_v49 = vcombine.low %v1657_v42, %v1610_v34  ;;  %935 = vst [vmem:[#allocation2 + $0x24] sm:$0xf] %v934_v44  ;;  %v654_v51 = vrot.slane %v650_v36, 4  ;;  %v10034_v6 = vld [vmem:[#allocation7 + $0x38] sm:$0xff]  }
  0x7a   : > { %936 = vst [vmem:[#allocation2 + $0x28] sm:$0xf] %v645_v43  ;;  %v661_v52 = vor.u32 %v659_v33, %v658_v40  ;;  %v1611_v53 = vld [vmem:[#allocation2 + $0x18] sm:$0xf]  ;;  %v653_v55 = vor.u32 %v651_v37, %v650_v36  ;;  %v1825_v59 = vshll.u32 %v10027_v46, 16  ;;  %v2074_v62 = vrot.slane %v10027_v46, 1 }
  0x7b   : > { %v1658_v54 = vld [vmem:[#allocation2 + $0x18] sm:$0xe]  ;;  %v1818_v56 = vshrl.u32 %v10885_v45, 16  ;;  %v1820_v58 = vshll.u32 %v10885_v45, 16  ;;  %v2073_v60 = vrot.slane %v8399_v49, 1  ;;  %v10889_v63 = vcombine.low %v1611_v53, %v1612_v50  ;;  %v10041_v14 = vld [vmem:[#allocation7 + $0x70] sm:$0xff]  }
  0x7c   : > { %v937_v61 = vld [vmem:[#allocation2 + $0x2c] sm:$0x1]  ;;  %v10030_v0 = vld [vmem:[#allocation2 + $0x20] ss:$0 sps:$4 sm:$0x11]   ;;  %v8400_v1 = vcombine.low %v1658_v54, %v1612_v50  ;;  %v1827_v5 = vrot.slane %v1825_v59, 1  ;;  %v662_v7 = vsel %vm10846_vm7, %v654_v51, %v661_v52 }
  0x7d   : > { %v938_v2 = vsel %vm10820_vm2, %v646_v38, %v937_v61  ;;  %v940_v3 = vld [vmem:[#allocation2 + $0x30] sm:$0xf]  ;;  %v1822_v4 = vrot.slane %v1820_v58, 1  ;;  %v663_v8 = vrot.slane %v658_v40, 4  ;;  %v2075_v10 = vsel %vm1496_vm9, %v2073_v60, %v2074_v62  ;;  %943 = vst [vmem:[#allocation2 + $0x34] sm:$0xf] %v662_v7 }
  0x7e   : > { %939 = vst [vmem:[#allocation2 + $0x2c] sm:$0x1] %v938_v2  ;;  %v2076_v11 = vrot.slane %v8400_v1, 1  ;;  %v2077_v12 = vrot.slane %v10030_v0, 1  ;;  %v1830_v13 = vshrl.u32 %v10889_v63, 16  ;;  %9658 = vmatprep.mubr.bf16.mxu1 %v2075_v10  ;;  %v1832_v17 = vshll.u32 %v10889_v63, 16 }
  0x7f   : > { %v1823_v16 = vor.u32 %v1822_v4, %v1818_v56  ;;  %v1837_v18 = vshll.u32 %v10030_v0, 16  ;;  %v941_v20 = vsel %vm10852_vm8, %v653_v55, %v940_v3  ;;  %v352_v21 = vld [vmem:[#allocation2 + $0x3c] sm:$0x1]  ;;  %v408_v22 = vld [vmem:[#allocation2 + $0x44] sm:$0x1]  ;;  %v10058_v58 = vld [vmem:[#allocation7 + $0x60] sm:$0xff]  }
  0x80   : > { %v944_v9 = vld [vmem:[#allocation2 + $0x38] sm:$0x1]  ;;  %v2078_v23 = vsel %vm1496_vm9, %v2076_v11, %v2077_v12  ;;  %v1613_v24 = vld [vmem:[#allocation2 + $0x24] sm:$0xf]  ;;  %942 = vst [vmem:[#allocation2 + $0x30] sm:$0xf] %v941_v20 }
  0x81   : > { %v1614_v25 = vld [vmem:[#allocation2 + $0x28] sm:$0xf]  ;;  %v1659_v26 = vld [vmem:[#allocation2 + $0x24] sm:$0xe]  ;;  %v945_v27 = vsel %vm10820_vm2, %v663_v8, %v944_v9  ;;  %v1828_v28 = vsel %vm1239_vm10, %v1823_v16, %v1827_v5  ;;  %9659 = vmatmul.mubr.bf16.vlgmr.msra.gmra.mxu1 %v2078_v23  ;;  %v1834_v29 = vrot.slane %v1832_v17, 1  ;;  %v1839_v30 = vrot.slane %v1837_v18, 1 }
  0x82   : > { %v10904_v31 = vcombine.low %v1613_v24, %v1614_v25  ;;  %946 = vst [vmem:[#allocation2 + $0x38] sm:$0x1] %v945_v27  ;;  %v570_v32 = vld [vmem:[%s10808_s19 + $0x20] sm:$0xf]  ;;  %v10049_v33 = vld [vmem:[#allocation7 + $0xb0] sm:$0xff]   ;;  %2362 = vmatprep.mubr.bf16.mxu0 %v1828_v28  ;;  %8963 = vmatpush3.bf16.msra.mxu1 %v10034_v6  ;;  %v8401_v34 = vcombine.low %v1659_v26, %v1614_v25  ;;  %v353_v36 = vsel %vm10820_vm2, 0, %v352_v21 }
  0x83   : > { %v10042_v35 = vld [vmem:[#allocation7 + $0x30] sm:$0xff]   ;;  %v409_v37 = vsel %vm10826_vm4, 0, %v408_v22  ;;  %v571_v38 = vld [vmem:[%s10808_s19 + $0x24] sm:$0xf]  ;;  %v665_v39 = vshrl.u32 %v570_v32, 16  ;;  %2363 = vmatmul.mubr.bf16.vlgmr.msra.gmra.mxu0 %v10885_v45  ;;  %v1835_v40 = vor.u32 %v1834_v29, %v1830_v13  ;;  %8964 = vmatprep.subr.bf16.mxu1 %v10041_v14  ;;  %v668_v43 = vshll.u32 %v570_v32, 16 }
  0x84   : > { %v1842_v41 = vshrl.u32 %v10904_v31, 16  ;;  %v1844_v42 = vshll.u32 %v10904_v31, 16  ;;  %354 = vst [vmem:[#allocation2 + $0x3c] sm:$0x1] %v353_v36  ;;  %410 = vst [vmem:[#allocation2 + $0x44] sm:$0x1] %v409_v37  ;;  %9691 = vmatpush3.bf16.msra.mxu0 %v10842_v47 }
  0x85   : > { %v355_v44 = vld [vmem:[#allocation2 + $0x48] sm:$0x1]  ;;  %v10050_v46 = vld [vmem:[#allocation7 + $0x68] sm:$0xff]   ;;  %v10036_v49 = vld [vmem:[#allocation2 + $0x2c] ss:$0 sps:$4 sm:$0x11]   ;;  %v1840_v45 = vsel %vm1239_vm10, %v1835_v40, %v1839_v30  ;;  %9692 = vmatprep.subr.bf16.mxu0 %v10049_v33 }
  0x86   : > { %v2079_v50 = vrot.slane %v8401_v34, 1  ;;  %v411_v51 = vld [vmem:[#allocation2 + $0x50] sm:$0x1]  ;;  %v10051_v52 = vld [vmem:[#allocation7 + $0x28] sm:$0xff]   ;;  %v1616_v53 = vld [vmem:[#allocation2 + $0x34] sm:$0xf]  ;;  %2370 = vmatprep.mubr.bf16.mxu0 %v1840_v45  ;;  %8965 = vmatpush3.bf16.msra.mxu1 %v10042_v35 }
  0x87   : > { %v1846_v54 = vrot.slane %v1844_v42, 1  ;;  %v667_v55 = vrot.slane %v665_v39, 7  ;;  %v673_v56 = vshrl.u32 %v571_v38, 16  ;;  %v10066_v59 = vld [vmem:[#allocation7 + $0xa8] sm:$0xff]   ;;  %v2080_v60 = vrot.slane %v10036_v49, 1  ;;  %8966 = vmatprep.subr.bf16.mxu1 %v10050_v46  ;;  %v10059_v17 = vld [vmem:[#allocation7 + $0x20] sm:$0xff]  }
  0x88   : > { %v1849_v61 = vshll.u32 %v10036_v49, 16  ;;  %v676_v62 = vshll.u32 %v571_v38, 16  ;;  %v356_v47 = vsel %vm10820_vm2, 0, %v355_v44  ;;  %v572_v0 = vld [vmem:[%s10808_s19 + $0x28] sm:$0xf]  ;;  %9693 = vmatpush3.bf16.msra.mxu0 %v10049_v33  ;;  %v412_v13 = vsel %vm10826_vm4, 0, %v411_v51 }
  0x89   : > { %v1615_v1 = vld [vmem:[#allocation2 + $0x30] sm:$0xf]  ;;  %v1847_v3 = vor.u32 %v1846_v54, %v1842_v41  ;;  %v670_v4 = vor.u32 %v668_v43, %v667_v55  ;;  %v671_v5 = vrot.slane %v667_v55, 4  ;;  %v675_v6 = vrot.slane %v673_v56, 7  ;;  %357 = vst [vmem:[#allocation2 + $0x48] sm:$0x1] %v356_v47  ;;  %9694 = vmatprep.subr.bf16.mxu0 %v10066_v59 }
  0x8a   : > { %v1660_v2 = vld [vmem:[#allocation2 + $0x30] sm:$0xe]  ;;  %v2081_v7 = vsel %vm1496_vm9, %v2079_v50, %v2080_v60  ;;  %v10039_v8 = vld [vmem:[#allocation2 + $0x38] ss:$0 sps:$4 sm:$0x11]   ;;  %v1851_v10 = vrot.slane %v1849_v61, 1  ;;  %v10924_v18 = vcombine.low %v1615_v1, %v1616_v53  ;;  %8967 = vmatpush3.bf16.msra.mxu1 %v10051_v52 }
  0x8b   : > { %v8402_v9 = vcombine.low %v1660_v2, %v1616_v53  ;;  %9662 = vmatprep.mubr.bf16.mxu1 %v2081_v7  ;;  %v678_v11 = vor.u32 %v676_v62, %v675_v6  ;;  %v680_v12 = vrot.slane %v675_v6, 4  ;;  %v573_v14 = vld [vmem:[%s10808_s19 + $0x2c] sm:$0xf]  ;;  %v682_v16 = vshrl.u32 %v572_v0, 16  ;;  %v951_v24 = vld [vmem:[#allocation2 + $0x44] sm:$0x1]  ;;  %2371 = vmatmul.mubr.bf16.gmra.mxu0 %v10889_v63 }
  0x8c   : > { %v2083_v21 = vrot.slane %v10039_v8, 1  ;;  %v1852_v22 = vsel %vm1239_vm10, %v1847_v3, %v1851_v10  ;;  %v947_v23 = vld [vmem:[#allocation2 + $0x3c] sm:$0xf]  ;;  %413 = vst [vmem:[#allocation2 + $0x50] sm:$0x1] %v412_v13  ;;  %8968 = vmatprep.subr.bf16.mxu1 %v10058_v58  ;;  %v10067_v29 = vld [vmem:[#allocation7 + $0x58] sm:$0xff]   ;;  %9695 = vmatpush3.bf16.msra.mxu0 %v10066_v59 }
  0x8d   : > { %v2082_v20 = vrot.slane %v8402_v9, 1  ;;  %v679_v25 = vsel %vm10846_vm7, %v671_v5, %v678_v11  ;;  %v948_v26 = vsel %vm10852_vm8, %v670_v4, %v947_v23  ;;  %v952_v27 = vsel %vm10820_vm2, %v680_v12, %v951_v24  ;;  %2378 = vmatprep.mubr.bf16.mxu0 %v1852_v22  ;;  %v10068_v34 = vld [vmem:[#allocation7 + $0x18] sm:$0xff]   ;;  %v10083_v35 = vld [vmem:[#allocation7 + $0xa0] sm:$0xff]   ;;  %v414_v44 = vld [vmem:[#allocation2 + $0x5c] sm:$0x1]  ;;  %p13831_p2 = scmp.ne.s32.totalorder %s13743_s11, 0 }
  0x8e   : > { %v684_v28 = vrot.slane %v682_v16, 7  ;;  %949 = vst [vmem:[#allocation2 + $0x3c] sm:$0xf] %v948_v26  ;;  %950 = vst [vmem:[#allocation2 + $0x40] sm:$0xf] %v679_v25  ;;  %v685_v32 = vshll.u32 %v572_v0, 16  ;;  %8969 = vmatpush3.bf16.msra.mxu1 %v10059_v17  ;;  %9696 = vmatprep.subr.bf16.mxu0 %v10083_v35 }
  0x8f   : > { %v2084_v30 = vsel %vm1496_vm9, %v2082_v20, %v2083_v21  ;;  %953 = vst [vmem:[#allocation2 + $0x44] sm:$0x1] %v952_v27  ;;  %v690_v63 = vshrl.u32 %v573_v14, 16  ;;  %v693_v33 = vshll.u32 %v573_v14, 16  ;;  %v1854_v37 = vshrl.u32 %v10924_v18, 16  ;;  %8970 = vmatprep.subr.bf16.mxu1 %v10067_v29  ;;  %v10075_v46 = vld [vmem:[#allocation7 + $0x50] sm:$0xff]   ;;  %p10551_p7 = pnand %p10550_p5, %p13831_p2 }
  0x90   : > { %9663 = vmatmul.mubr.bf16.gmra.mxu1 %v2084_v30  ;;  %v688_v36 = vrot.slane %v684_v28, 4  ;;  %v687_v38 = vor.u32 %v685_v32, %v684_v28  ;;  %v954_v40 = vld [vmem:[#allocation2 + $0x48] sm:$0xf]  ;;  %v1856_v41 = vshll.u32 %v10924_v18, 16  ;;  %v1861_v42 = vshll.u32 %v10039_v8, 16  ;;  %v10076_v54 = vld [vmem:[#allocation7 + $0x10] sm:$0xff]   ;;  %9697 = vmatpush3.bf16.msra.mxu0 %v10083_v35 }
  0x91   : > { %v692_v39 = vrot.slane %v690_v63, 7  ;;  %v358_v43 = vld [vmem:[#allocation2 + $0x54] sm:$0x1]  ;;  %v574_v45 = vld [vmem:[%s10808_s19 + $0x30] sm:$0xf]  ;;  %v415_v59 = vsel %vm10826_vm4, 0, %v414_v44  ;;  %p10552_p12 = pneg %p10551_p7 }
  0x92   : > { %v955_v51 = vsel %vm10852_vm8, %v687_v38, %v954_v40  ;;  %v1858_v52 = vrot.slane %v1856_v41, 1  ;;  %v575_v53 = vld [vmem:[%s10808_s19 + $0x34] sm:$0xf]  ;;  %v1863_v56 = vrot.slane %v1861_v42, 1  ;;  %v359_v58 = vsel %vm10820_vm2, 0, %v358_v43  ;;  %8971 = vmatpush3.bf16.msra.mxu1 %v10068_v34  ;;  %v10084_v3 = vld [vmem:[#allocation7 + $0x48] sm:$0xff]  }
  0x93   : > { %v695_v49 = vor.u32 %v693_v33, %v692_v39  ;;  %v697_v50 = vrot.slane %v692_v39, 4  ;;  %956 = vst [vmem:[#allocation2 + $0x48] sm:$0xf] %v955_v51  ;;  %v958_v55 = vld [vmem:[#allocation2 + $0x50] sm:$0x1]  ;;  %v699_v60 = vshrl.u32 %v574_v45, 16  ;;  %2379 = vmatmul.mubr.bf16.gmra.mxu0 %v10904_v31  ;;  %8972 = vmatprep.subr.bf16.mxu1 %v10075_v46 }
  0x94   : > { %v1859_v47 = vor.u32 %v1858_v52, %v1854_v37  ;;  %360 = vst [vmem:[#allocation2 + $0x54] sm:$0x1] %v359_v58  ;;  %416 = vst [vmem:[#allocation2 + $0x5c] sm:$0x1] %v415_v59  ;;  %v702_v0 = vshll.u32 %v574_v45, 16  ;;  %v707_v11 = vshrl.u32 %v575_v53, 16 }
  0x95   : > { %v696_v61 = vsel %vm10846_vm7, %v688_v36, %v695_v49  ;;  %v959_v62 = vsel %vm10820_vm2, %v697_v50, %v958_v55  ;;  %v361_v1 = vld [vmem:[#allocation2 + $0x60] sm:$0x1]  ;;  %v417_v2 = vld [vmem:[#allocation2 + $0x68] sm:$0x1]  ;;  %v1617_v4 = vld [vmem:[#allocation2 + $0x3c] sm:$0xf] }
  0x96   : > { %v1618_v5 = vld [vmem:[#allocation2 + $0x40] sm:$0xf]  ;;  %957 = vst [vmem:[#allocation2 + $0x4c] sm:$0xf] %v696_v61  ;;  %960 = vst [vmem:[#allocation2 + $0x50] sm:$0x1] %v959_v62  ;;  %v1864_v8 = vsel %vm1239_vm10, %v1859_v47, %v1863_v56  ;;  %8973 = vmatpush3.bf16.msra.mxu1 %v10076_v54 }
  0x97   : > { %v1661_v6 = vld [vmem:[#allocation2 + $0x3c] sm:$0xe]  ;;  %v10950_v7 = vld [vmem:[#allocation2 + $0x44] ss:$0 sps:$4 sm:$0x11]   ;;  %v701_v9 = vrot.slane %v699_v60, 7  ;;  %2386 = vmatprep.mubr.bf16.mxu0 %v1864_v8  ;;  %8974 = vmatprep.subr.bf16.mxu1 %v10084_v3  ;;  %v10960_v27 = vcombine.low %v1617_v4, %v1618_v5 }
  0x98   : > { %v8403_v10 = vcombine.low %v1661_v6, %v1618_v5  ;;  %v710_v12 = vshll.u32 %v575_v53, 16  ;;  %v362_v13 = vsel %vm10820_vm2, 0, %v361_v1  ;;  %v576_v14 = vld [vmem:[%s10808_s19 + $0x38] sm:$0xf]  ;;  %v2086_v31 = vrot.slane %v10950_v7, 1  ;;  %v10085_v21 = vld [vmem:[#allocation7 + $0x8] sm:$0xff]  }
  0x99   : > { %v704_v16 = vor.u32 %v702_v0, %v701_v9  ;;  %363 = vst [vmem:[#allocation2 + $0x60] sm:$0x1] %v362_v13  ;;  %v418_v17 = vsel %vm10826_vm4, 0, %v417_v2  ;;  %v577_v20 = vld [vmem:[%s10808_s19 + $0x3c] sm:$0xf]  ;;  %v10092_v22 = vld [vmem:[#allocation7 + $0x40] sm:$0xff]  }
  0x9a   : > { %v2085_v23 = vrot.slane %v8403_v10, 1  ;;  %v705_v24 = vrot.slane %v701_v9, 4  ;;  %v709_v25 = vrot.slane %v707_v11, 7  ;;  %419 = vst [vmem:[#allocation2 + $0x68] sm:$0x1] %v418_v17  ;;  %v716_v26 = vshrl.u32 %v576_v14, 16  ;;  %8975 = vmatpush3.bf16.msra.mxu1 %v10085_v21 }
  0x9b   : > { %v1662_v28 = vld [vmem:[#allocation2 + $0x48] sm:$0xe]  ;;  %v719_v29 = vshll.u32 %v576_v14, 16  ;;  %v724_v30 = vshrl.u32 %v577_v20, 16  ;;  %v727_v32 = vshll.u32 %v577_v20, 16  ;;  %v10093_v63 = vld [vmem:[#allocation7] sm:$0xff]   ;;  %2387 = vmatmul.mubr.bf16.gmra.mxu0 %v10924_v18  ;;  %8976 = vmatprep.subr.bf16.mxu1 %v10092_v22 }
  0x9c   : > { %v2087_v33 = vsel %vm1496_vm9, %v2085_v23, %v2086_v31  ;;  %v712_v34 = vor.u32 %v710_v12, %v709_v25  ;;  %v714_v35 = vrot.slane %v709_v25, 4  ;;  %v961_v36 = vld [vmem:[#allocation2 + $0x54] sm:$0xf]  ;;  %v965_v37 = vld [vmem:[#allocation2 + $0x5c] sm:$0x1]  ;;  %v718_v38 = vrot.slane %v716_v26, 7 }
  0x9d   : > { %9666 = vmatprep.mubr.bf16.mxu1 %v2087_v33  ;;  %v10963_v39 = vld [vmem:[#allocation2 + $0x4c] sm:$0xf]  ;;  %v962_v40 = vsel %vm10852_vm8, %v704_v16, %v961_v36  ;;  %v726_v41 = vrot.slane %v724_v30, 7  ;;  %v1866_v42 = vshrl.u32 %v10960_v27, 16  ;;  %v1868_v58 = vshll.u32 %v10960_v27, 16  ;;  %s10625_s28 = smov [#allocation10]  }
  0x9e   : > { %v10968_v43 = vld [vmem:[#allocation2 + $0x50] ss:$0 sps:$4 sm:$0x11]   ;;  %v8404_v44 = vcombine.low %v1662_v28, %v10963_v39  ;;  %v713_v46 = vsel %vm10846_vm7, %v705_v24, %v712_v34  ;;  %963 = vst [vmem:[#allocation2 + $0x54] sm:$0xf] %v962_v40  ;;  %v966_v49 = vsel %vm10820_vm2, %v714_v35, %v965_v37  ;;  %v10096_v50 = vld [vmem:[#allocation7 + $0x98] sm:$0xff]   ;;  %v721_v51 = vor.u32 %v719_v29, %v718_v38 }
  0x9f   : > { %964 = vst [vmem:[#allocation2 + $0x58] sm:$0xf] %v713_v46  ;;  %967 = vst [vmem:[#allocation2 + $0x5c] sm:$0x1] %v966_v49  ;;  %v722_v52 = vrot.slane %v718_v38, 4  ;;  %v729_v45 = vor.u32 %v727_v32, %v726_v41  ;;  %v731_v53 = vrot.slane %v726_v41, 4  ;;  %9698 = vmatprep.subr.bf16.mxu0 %v10096_v50  ;;  %8977 = vmatpush3.bf16.msra.mxu1 %v10093_v63 }
  0xa0   : > { %v2088_v54 = vrot.slane %v8404_v44, 1  ;;  %v2089_v55 = vrot.slane %v10968_v43, 1  ;;  %v968_v56 = vld [vmem:[#allocation2 + $0x60] sm:$0xf]  ;;  %v1873_v59 = vshll.u32 %v10950_v7, 16  ;;  %9699 = vmatpush3.bf16.msra.mxu0 %v10096_v50  ;;  %v1870_v3 = vrot.slane %v1868_v58, 1 }
  0xa1   : > { %v730_v18 = vsel %vm10846_vm7, %v722_v52, %v729_v45  ;;  %v969_v60 = vsel %vm10852_vm8, %v721_v51, %v968_v56  ;;  %v972_v61 = vld [vmem:[#allocation2 + $0x68] sm:$0x1]  ;;  %v364_v62 = vld [vmem:[#allocation2 + $0x6c] sm:$0x1]  ;;  %v420_v47 = vld [vmem:[#allocation2 + $0x74] sm:$0x1] }
  0xa2   : > { %v1619_v0 = vld [vmem:[#allocation2 + $0x48] sm:$0xf]  ;;  %v2090_v1 = vsel %vm1496_vm9, %v2088_v54, %v2089_v55  ;;  %970 = vst [vmem:[#allocation2 + $0x60] sm:$0xf] %v969_v60  ;;  %971 = vst [vmem:[#allocation2 + $0x64] sm:$0xf] %v730_v18  ;;  %v973_v2 = vsel %vm10820_vm2, %v731_v53, %v972_v61  ;;  %v1871_v12 = vor.u32 %v1870_v3, %v1866_v42 }
  0xa3   : > { %v1875_v4 = vrot.slane %v1873_v59, 1  ;;  %v578_v5 = vld [vmem:[%s10808_s19 + $0x40] sm:$0xf]  ;;  %v579_v6 = vld [vmem:[%s10808_s19 + $0x44] sm:$0xf]  ;;  %9667 = vmatmul.mubr.bf16.gmra.mxu1 %v2090_v1  ;;  %v365_v7 = vsel %vm10820_vm2, 0, %v364_v62  ;;  %v11003_v26 = vcombine.low %v1619_v0, %v10963_v39 }
  0xa4   : > { %974 = vst [vmem:[#allocation2 + $0x68] sm:$0x1] %v973_v2  ;;  %v421_v8 = vsel %vm10826_vm4, 0, %v420_v47  ;;  %v733_v9 = vshrl.u32 %v578_v5, 16  ;;  %v736_v10 = vshll.u32 %v578_v5, 16  ;;  %v741_v13 = vshrl.u32 %v579_v6, 16 }
  0xa5   : > { %v367_v11 = vld [vmem:[#allocation2 + $0x78] sm:$0x1]  ;;  %366 = vst [vmem:[#allocation2 + $0x6c] sm:$0x1] %v365_v7  ;;  %422 = vst [vmem:[#allocation2 + $0x74] sm:$0x1] %v421_v8  ;;  %v1876_v24 = vsel %vm1239_vm10, %v1871_v12, %v1875_v4 }
  0xa6   : > { %v744_v14 = vshll.u32 %v579_v6, 16  ;;  %v368_v31 = vsel %vm10820_vm2, 0, %v367_v11  ;;  %v423_v16 = vld [vmem:[#allocation2 + $0x80] sm:$0x1]  ;;  %v10994_v17 = vld [vmem:[#allocation7 + $0x238] sm:$0xff]   ;;  %v735_v21 = vrot.slane %v733_v9, 7  ;;  %2394 = vmatprep.mubr.bf16.mxu0 %v1876_v24 }
  0xa7   : > { %v1663_v20 = vld [vmem:[#allocation2 + $0x54] sm:$0xe]  ;;  %369 = vst [vmem:[#allocation2 + $0x78] sm:$0x1] %v368_v31  ;;  %v424_v22 = vsel %vm10826_vm4, 0, %v423_v16  ;;  %v743_v25 = vrot.slane %v741_v13, 7  ;;  %9738 = vmatprep.subr.bf16.mxu1 %v10994_v17  ;;  %2395 = vmatmul.mubr.bf16.gmra.mxu0 %v10960_v27 }
  0xa8   : > { %v10998_v23 = vld [vmem:[#allocation2 + $0x58] sm:$0xf]  ;;  %425 = vst [vmem:[#allocation2 + $0x80] sm:$0x1] %v424_v22  ;;  %v739_v30 = vrot.slane %v735_v21, 4  ;;  %v738_v63 = vor.u32 %v736_v10, %v735_v21  ;;  %v10102_v37 = vld [vmem:[#allocation7 + $0x90] sm:$0xff]  }
  0xa9   : > { %v11005_v28 = vld [vmem:[#allocation2 + $0x5c] ss:$0 sps:$4 sm:$0x11]   ;;  %v8405_v29 = vcombine.low %v1663_v20, %v10998_v23  ;;  %v580_v32 = vld [vmem:[%s10808_s19 + $0x48] sm:$0xf]  ;;  %v746_v33 = vor.u32 %v744_v14, %v743_v25  ;;  %v748_v41 = vrot.slane %v743_v25, 4  ;;  %9700 = vmatprep.subr.bf16.mxu0 %v10102_v37 }
  0xaa   : > { %v581_v34 = vld [vmem:[%s10808_s19 + $0x4c] sm:$0xf]  ;;  %v750_v35 = vshrl.u32 %v580_v32, 16  ;;  %v753_v36 = vshll.u32 %v580_v32, 16  ;;  %v2092_v40 = vrot.slane %v11005_v28, 1  ;;  %v1878_v42 = vshrl.u32 %v11003_v26, 16  ;;  %9701 = vmatpush3.bf16.msra.mxu0 %v10102_v37 }
  0xab   : > { %v2091_v38 = vrot.slane %v8405_v29, 1  ;;  %v11012_v39 = vld [vmem:[#allocation2 + $0x64] sm:$0xf]  ;;  %v1664_v44 = vld [vmem:[#allocation2 + $0x60] sm:$0xe]  ;;  %v747_v46 = vsel %vm10846_vm7, %v739_v30, %v746_v33  ;;  %v758_v50 = vshrl.u32 %v581_v34, 16 }
  0xac   : > { %v752_v49 = vrot.slane %v750_v35, 7  ;;  %v11018_v51 = vld [vmem:[#allocation2 + $0x68] ss:$0 sps:$4 sm:$0x11]   ;;  %v8406_v52 = vcombine.low %v1664_v44, %v11012_v39  ;;  %v975_v45 = vld [vmem:[#allocation2 + $0x6c] sm:$0xf] }
  0xad   : > { %v2093_v27 = vsel %vm1496_vm9, %v2091_v38, %v2092_v40  ;;  %978 = vst [vmem:[#allocation2 + $0x70] sm:$0xf] %v747_v46  ;;  %v761_v53 = vshll.u32 %v581_v34, 16  ;;  %v976_v54 = vsel %vm10852_vm8, %v738_v63, %v975_v45  ;;  %v979_v55 = vld [vmem:[#allocation2 + $0x74] sm:$0x1]  ;;  %v760_v59 = vrot.slane %v758_v50, 7 }
  0xae   : > { %9670 = vmatprep.mubr.bf16.mxu1 %v2093_v27  ;;  %v755_v56 = vor.u32 %v753_v36, %v752_v49  ;;  %v756_v58 = vrot.slane %v752_v49, 4  ;;  %v982_v18 = vld [vmem:[#allocation2 + $0x78] sm:$0xf]  ;;  %v2094_v60 = vrot.slane %v8406_v52, 1  ;;  %v2095_v61 = vrot.slane %v11018_v51, 1  ;;  %s10553_s13 = sshll.u32 %s10625_s28, 4  ;;  %s10554_s13 = int_to_ptr.vmem [resolvable:$false] %s10553_s13 }
  0xaf   : > { %977 = vst [vmem:[#allocation2 + $0x6c] sm:$0xf] %v976_v54  ;;  %v980_v62 = vsel %vm10820_vm2, %v748_v41, %v979_v55  ;;  %v986_v47 = vld [vmem:[#allocation2 + $0x80] sm:$0x1]  ;;  %v763_v0 = vor.u32 %v761_v53, %v760_v59  ;;  %v765_v1 = vrot.slane %v760_v59, 4  ;;  %v1880_v3 = vshll.u32 %v11003_v26, 16  ;;  %p10556_p13 = scmp.lt.s32.totalorder %s13675_s20, %s10554_s13 }
  0xb0   : > { %981 = vst [vmem:[#allocation2 + $0x74] sm:$0x1] %v980_v62  ;;  %v983_v2 = vsel %vm10852_vm8, %v755_v56, %v982_v18  ;;  %v2096_v4 = vsel %vm1496_vm9, %v2094_v60, %v2095_v61  ;;  %v1885_v8 = vshll.u32 %v10968_v43, 16  ;;  %v370_v9 = vld [vmem:[#allocation2 + $0x84] sm:$0x1]  ;;  %v10108_v52 = vld [vmem:[#allocation7 + $0x88] sm:$0xff]  }
  0xb1   : > { %984 = vst [vmem:[#allocation2 + $0x78] sm:$0xf] %v983_v2  ;;  %9671 = vmatmul.mubr.bf16.gmra.mxu1 %v2096_v4  ;;  %v764_v5 = vsel %vm10846_vm7, %v756_v58, %v763_v0  ;;  %v987_v6 = vsel %vm10820_vm2, %v765_v1, %v986_v47  ;;  %v1882_v7 = vrot.slane %v1880_v3, 1  ;;  %v426_v10 = vld [vmem:[#allocation2 + $0x8c] sm:$0x1]  ;;  %v371_v11 = vsel %vm10820_vm2, 0, %v370_v9  ;;  %9702 = vmatprep.subr.bf16.mxu0 %v10108_v52 }
  0xb2   : > { %985 = vst [vmem:[#allocation2 + $0x7c] sm:$0xf] %v764_v5  ;;  %988 = vst [vmem:[#allocation2 + $0x80] sm:$0x1] %v987_v6  ;;  %v427_v12 = vsel %vm10826_vm4, 0, %v426_v10  ;;  %v1887_v20 = vrot.slane %v1885_v8, 1  ;;  %9703 = vmatpush3.bf16.msra.mxu0 %v10108_v52 }
  0xb3   : > { %v582_v13 = vld [vmem:[%s10808_s19 + $0x50] sm:$0xf]  ;;  %v583_v14 = vld [vmem:[%s10808_s19 + $0x54] sm:$0xf]  ;;  %v1883_v16 = vor.u32 %v1882_v7, %v1878_v42  ;;  %372 = vst [vmem:[#allocation2 + $0x84] sm:$0x1] %v371_v11 }
  0xb4   : > { %v11041_v31 = vld [vmem:[#allocation2 + $0x70] sm:$0xf]  ;;  %428 = vst [vmem:[#allocation2 + $0x8c] sm:$0x1] %v427_v12  ;;  %v767_v21 = vshrl.u32 %v582_v13, 16  ;;  %v770_v43 = vshll.u32 %v582_v13, 16 }
  0xb5   : > { %v775_v22 = vshrl.u32 %v583_v14, 16  ;;  %v778_v24 = vshll.u32 %v583_v14, 16  ;;  %v373_v25 = vld [vmem:[#allocation2 + $0x90] sm:$0x1]  ;;  %v429_v29 = vld [vmem:[#allocation2 + $0x98] sm:$0x1]  ;;  %v1888_v32 = vsel %vm1239_vm10, %v1883_v16, %v1887_v20 }
  0xb6   : > { %v1665_v30 = vld [vmem:[#allocation2 + $0x6c] sm:$0xe]  ;;  %v769_v63 = vrot.slane %v767_v21, 7  ;;  %v374_v33 = vsel %vm10820_vm2, 0, %v373_v25  ;;  %2402 = vmatprep.mubr.bf16.mxu0 %v1888_v32  ;;  %v1621_v37 = vld [vmem:[#allocation2 + $0x54] sm:$0xf] }
  0xb7   : > { %v11046_v34 = vld [vmem:[#allocation2 + $0x74] ss:$0 sps:$4 sm:$0x11]   ;;  %v8407_v35 = vcombine.low %v1665_v30, %v11041_v31  ;;  %v777_v36 = vrot.slane %v775_v22, 7  ;;  %375 = vst [vmem:[#allocation2 + $0x90] sm:$0x1] %v374_v33  ;;  %2403 = vmatmul.mubr.bf16.gmra.mxu0 %v11003_v26  ;;  %v11058_v54 = vcombine.low %v1621_v37, %v10998_v23 }
  0xb8   : > { %v1666_v38 = vld [vmem:[#allocation2 + $0x78] sm:$0xe]  ;;  %v772_v40 = vor.u32 %v770_v43, %v769_v63  ;;  %v773_v41 = vrot.slane %v769_v63, 4  ;;  %v430_v42 = vsel %vm10826_vm4, 0, %v429_v29  ;;  %v2098_v46 = vrot.slane %v11046_v34, 1  ;;  %v10114_v47 = vld [vmem:[#allocation7 + $0x80] sm:$0xff]  }
  0xb9   : > { %v2097_v44 = vrot.slane %v8407_v35, 1  ;;  %v780_v49 = vor.u32 %v778_v24, %v777_v36  ;;  %v782_v50 = vrot.slane %v777_v36, 4  ;;  %431 = vst [vmem:[#allocation2 + $0x98] sm:$0x1] %v430_v42  ;;  %v584_v27 = vld [vmem:[%s10808_s19 + $0x58] sm:$0xf]  ;;  %9704 = vmatprep.subr.bf16.mxu0 %v10114_v47 }
  0xba   : > { %v11054_v45 = vld [vmem:[#allocation2 + $0x7c] sm:$0xf]  ;;  %v585_v53 = vld [vmem:[%s10808_s19 + $0x5c] sm:$0xf]  ;;  %v989_v59 = vld [vmem:[#allocation2 + $0x84] sm:$0xf]  ;;  %9705 = vmatpush3.bf16.msra.mxu0 %v10114_v47 }
  0xbb   : > { %v2099_v55 = vsel %vm1496_vm9, %v2097_v44, %v2098_v46  ;;  %v11061_v26 = vld [vmem:[#allocation2 + $0x80] ss:$0 sps:$4 sm:$0x11]   ;;  %v8408_v56 = vcombine.low %v1666_v38, %v11054_v45  ;;  %v781_v58 = vsel %vm10846_vm7, %v773_v41, %v780_v49  ;;  %v990_v18 = vsel %vm10852_vm8, %v772_v40, %v989_v59  ;;  %v993_v60 = vld [vmem:[#allocation2 + $0x8c] sm:$0x1]  ;;  %s10555_s14 = scalar_lea.vmem %s10554_s13, 8192 }
  0xbc   : > { %9674 = vmatprep.mubr.bf16.mxu1 %v2099_v55  ;;  %992 = vst [vmem:[#allocation2 + $0x88] sm:$0xf] %v781_v58  ;;  %v784_v61 = vshrl.u32 %v584_v27, 16  ;;  %v787_v23 = vshll.u32 %v584_v27, 16  ;;  %v792_v62 = vshrl.u32 %v585_v53, 16  ;;  %v2101_v1 = vrot.slane %v11061_v26, 1  ;;  %p10557_p0 = scmp.lt.s32.totalorder %s10555_s14, %s10549_s21 }
  0xbd   : > { %v2100_v0 = vrot.slane %v8408_v56, 1  ;;  %991 = vst [vmem:[#allocation2 + $0x84] sm:$0xf] %v990_v18  ;;  %v994_v2 = vsel %vm10820_vm2, %v782_v50, %v993_v60  ;;  %v795_v3 = vshll.u32 %v585_v53, 16  ;;  %v1890_v8 = vshrl.u32 %v11058_v54, 16 }
  0xbe   : > { %995 = vst [vmem:[#allocation2 + $0x8c] sm:$0x1] %v994_v2  ;;  %v786_v4 = vrot.slane %v784_v61, 7  ;;  %v794_v5 = vrot.slane %v792_v62, 7  ;;  %v996_v6 = vld [vmem:[#allocation2 + $0x90] sm:$0xf]  ;;  %p10558_p10 = por %p10557_p0, %p10556_p13 }
  0xbf   : > { %v2102_v7 = vsel %vm1496_vm9, %v2100_v0, %v2101_v1  ;;  %v1892_v9 = vshll.u32 %v11058_v54, 16  ;;  %v376_v16 = vld [vmem:[#allocation2 + $0x9c] sm:$0x1]  ;;  %v1623_v20 = vld [vmem:[#allocation2 + $0x60] sm:$0xf]  ;;  %v1897_v43 = vshll.u32 %v11005_v28, 16 }
  0xc0   : > { %9675 = vmatmul.mubr.bf16.gmra.mxu1 %v2102_v7  ;;  %v789_v10 = vor.u32 %v787_v23, %v786_v4  ;;  %v790_v11 = vrot.slane %v786_v4, 4  ;;  %v797_v12 = vor.u32 %v795_v3, %v794_v5  ;;  %v799_v13 = vrot.slane %v794_v5, 4  ;;  %v1000_v14 = vld [vmem:[#allocation2 + $0x98] sm:$0x1]  ;;  %v432_v24 = vld [vmem:[#allocation2 + $0xa4] sm:$0x1]  ;;  %p10559_p3 = pnand %p10558_p10, %p10552_p12 }
  0xc1   : > { %v1894_v21 = vrot.slane %v1892_v9, 1  ;;  %v377_v22 = vsel %vm10820_vm2, 0, %v376_v16  ;;  %v433_v32 = vsel %vm10826_vm4, 0, %v432_v24  ;;  %v586_v63 = vld [vmem:[%s10808_s19 + $0x60] sm:$0xf]  ;;  %v10122_v28 = vld [vmem:[#allocation7 + $0x1f8] sm:$0xff]   ;;  %v11094_v52 = vcombine.low %v1623_v20, %v11012_v39 }
  0xc2   : > { %v798_v25 = vsel %vm10846_vm7, %v790_v11, %v797_v12  ;;  %v997_v29 = vsel %vm10852_vm8, %v789_v10, %v996_v6  ;;  %v1001_v30 = vsel %vm10820_vm2, %v799_v13, %v1000_v14  ;;  %378 = vst [vmem:[#allocation2 + $0x9c] sm:$0x1] %v377_v22  ;;  %v587_v33 = vld [vmem:[%s10808_s19 + $0x64] sm:$0xf]  ;;  %v1899_v37 = vrot.slane %v1897_v43, 1  ;;  %9098 = vmatprep.subr.bf16.mxu0 %v10122_v28 }
  0xc3   : > { %v11087_v35 = vld [vmem:[#allocation2 + $0x88] sm:$0xf]  ;;  %998 = vst [vmem:[#allocation2 + $0x90] sm:$0xf] %v997_v29  ;;  %999 = vst [vmem:[#allocation2 + $0x94] sm:$0xf] %v798_v25  ;;  %v1895_v36 = vor.u32 %v1894_v21, %v1890_v8 }
  0xc4   : > { %1002 = vst [vmem:[#allocation2 + $0x98] sm:$0x1] %v1001_v30  ;;  %434 = vst [vmem:[#allocation2 + $0xa4] sm:$0x1] %v433_v32  ;;  %v801_v38 = vshrl.u32 %v586_v63, 16  ;;  %v804_v40 = vshll.u32 %v586_v63, 16 }
  0xc5   : > { %v1667_v41 = vld [vmem:[#allocation2 + $0x84] sm:$0xe]  ;;  %v809_v42 = vshrl.u32 %v587_v33, 16  ;;  %v812_v44 = vshll.u32 %v587_v33, 16  ;;  %v1900_v50 = vsel %vm1239_vm10, %v1895_v36, %v1899_v37  ;;  %v379_v55 = vld [vmem:[#allocation2 + $0xa8] sm:$0x1] }
  0xc6   : > { %v11089_v46 = vld [vmem:[#allocation2 + $0x8c] ss:$0 sps:$4 sm:$0x11]   ;;  %v8409_v49 = vcombine.low %v1667_v41, %v11087_v35  ;;  %v803_v27 = vrot.slane %v801_v38, 7  ;;  %2410 = vmatprep.mubr.bf16.mxu0 %v1900_v50  ;;  %v435_v56 = vld [vmem:[#allocation2 + $0xb0] sm:$0x1] }
  0xc7   : > { %v811_v53 = vrot.slane %v809_v42, 7  ;;  %v2104_v59 = vrot.slane %v11089_v46, 1  ;;  %2411 = vmatmul.mubr.bf16.gmra.mxu0 %v11058_v54  ;;  %v588_v61 = vld [vmem:[%s10808_s19 + $0x68] sm:$0xf]  ;;  %v380_v47 = vsel %vm10820_vm2, 0, %v379_v55  ;;  %v436_v39 = vsel %vm10826_vm4, 0, %v435_v56 }
  0xc8   : > { %v2103_v58 = vrot.slane %v8409_v49, 1  ;;  %v806_v18 = vor.u32 %v804_v40, %v803_v27  ;;  %v807_v60 = vrot.slane %v803_v27, 4  ;;  %v589_v0 = vld [vmem:[%s10808_s19 + $0x6c] sm:$0xf]  ;;  %381 = vst [vmem:[#allocation2 + $0xa8] sm:$0x1] %v380_v47 }
  0xc9   : > { %v814_v23 = vor.u32 %v812_v44, %v811_v53  ;;  %v816_v62 = vrot.slane %v811_v53, 4  ;;  %v1003_v2 = vld [vmem:[#allocation2 + $0x9c] sm:$0xf]  ;;  %437 = vst [vmem:[#allocation2 + $0xb0] sm:$0x1] %v436_v39  ;;  %v818_v3 = vshrl.u32 %v588_v61, 16 }
  0xca   : > { %v2105_v1 = vsel %vm1496_vm9, %v2103_v58, %v2104_v59  ;;  %v821_v4 = vshll.u32 %v588_v61, 16  ;;  %v826_v5 = vshrl.u32 %v589_v0, 16  ;;  %v11105_v54 = vld [vmem:[#allocation2 + $0x94] sm:$0xf]  ;;  %v1004_v7 = vsel %vm10852_vm8, %v806_v18, %v1003_v2  ;;  %v1668_v10 = vld [vmem:[#allocation2 + $0x90] sm:$0xe] }
  0xcb   : > { %9678 = vmatprep.mubr.bf16.mxu1 %v2105_v1  ;;  %v815_v6 = vsel %vm10846_vm7, %v807_v60, %v814_v23  ;;  %v1902_v8 = vshrl.u32 %v11094_v52, 16  ;;  %v1904_v9 = vshll.u32 %v11094_v52, 16  ;;  %v11113_v11 = vld [vmem:[#allocation2 + $0x98] ss:$0 sps:$4 sm:$0x11]   ;;  %v820_v12 = vrot.slane %v818_v3, 7 }
  0xcc   : > { %1005 = vst [vmem:[#allocation2 + $0x9c] sm:$0xf] %v1004_v7  ;;  %1006 = vst [vmem:[#allocation2 + $0xa0] sm:$0xf] %v815_v6  ;;  %v8410_v13 = vcombine.low %v1668_v10, %v11105_v54  ;;  %v1007_v14 = vld [vmem:[#allocation2 + $0xa4] sm:$0x1] }
  0xcd   : > { %v828_v16 = vrot.slane %v826_v5, 7  ;;  %v829_v20 = vshll.u32 %v589_v0, 16  ;;  %v2107_v21 = vrot.slane %v11113_v11, 1  ;;  %v1008_v43 = vsel %vm10820_vm2, %v816_v62, %v1007_v14  ;;  %v1625_v25 = vld [vmem:[#allocation2 + $0x6c] sm:$0xf] }
  0xce   : > { %v823_v22 = vor.u32 %v821_v4, %v820_v12  ;;  %v824_v24 = vrot.slane %v820_v12, 4  ;;  %v2106_v29 = vrot.slane %v8410_v13, 1  ;;  %1009 = vst [vmem:[#allocation2 + $0xa4] sm:$0x1] %v1008_v43  ;;  %v1906_v63 = vrot.slane %v1904_v9, 1 }
  0xcf   : > { %v831_v30 = vor.u32 %v829_v20, %v828_v16  ;;  %v833_v32 = vrot.slane %v828_v16, 4  ;;  %v1909_v33 = vshll.u32 %v11018_v51, 16  ;;  %v382_v28 = vld [vmem:[#allocation2 + $0xb4] sm:$0x1]  ;;  %v1010_v38 = vld [vmem:[#allocation2 + $0xa8] sm:$0xf]  ;;  %v11133_v56 = vcombine.low %v1625_v25, %v11041_v31 }
  0xd0   : > { %v2108_v36 = vsel %vm1496_vm9, %v2106_v29, %v2107_v21  ;;  %v1014_v40 = vld [vmem:[#allocation2 + $0xb0] sm:$0x1]  ;;  %v383_v41 = vsel %vm10820_vm2, 0, %v382_v28  ;;  %v1011_v42 = vsel %vm10852_vm8, %v823_v22, %v1010_v38  ;;  %v1907_v44 = vor.u32 %v1906_v63, %v1902_v8  ;;  %v438_v50 = vld [vmem:[#allocation2 + $0xbc] sm:$0x1] }
  0xd1   : > { %v832_v37 = vsel %vm10846_vm7, %v824_v24, %v831_v30  ;;  %9679 = vmatmul.mubr.bf16.gmra.mxu1 %v2108_v36  ;;  %v1015_v51 = vsel %vm10820_vm2, %v833_v32, %v1014_v40  ;;  %v1911_v49 = vrot.slane %v1909_v33, 1  ;;  %384 = vst [vmem:[#allocation2 + $0xb4] sm:$0x1] %v383_v41  ;;  %v590_v27 = vld [vmem:[%s10808_s19 + $0x70] sm:$0xf]  ;;  %v439_v18 = vsel %vm10826_vm4, 0, %v438_v50 }
  0xd2   : > { %1013 = vst [vmem:[#allocation2 + $0xac] sm:$0xf] %v832_v37  ;;  %1012 = vst [vmem:[#allocation2 + $0xa8] sm:$0xf] %v1011_v42  ;;  %v591_v60 = vld [vmem:[%s10808_s19 + $0x74] sm:$0xf] }
  0xd3   : > { %v11130_v53 = vld [vmem:[#allocation2 + $0xa0] sm:$0xf]  ;;  %v1669_v55 = vld [vmem:[#allocation2 + $0x9c] sm:$0xe]  ;;  %1016 = vst [vmem:[#allocation2 + $0xb0] sm:$0x1] %v1015_v51  ;;  %v1912_v59 = vsel %vm1239_vm10, %v1907_v44, %v1911_v49 }
  0xd4   : > { %v8411_v58 = vcombine.low %v1669_v55, %v11130_v53  ;;  %v385_v61 = vld [vmem:[#allocation2 + $0xc0] sm:$0x1]  ;;  %2418 = vmatprep.mubr.bf16.mxu0 %v1912_v59  ;;  %440 = vst [vmem:[#allocation2 + $0xbc] sm:$0x1] %v439_v18  ;;  %v835_v23 = vshrl.u32 %v590_v27, 16  ;;  %v838_v62 = vshll.u32 %v590_v27, 16 }
  0xd5   : > { %v843_v47 = vshrl.u32 %v591_v60, 16  ;;  %v846_v39 = vshll.u32 %v591_v60, 16  ;;  %v441_v0 = vld [vmem:[#allocation2 + $0xc8] sm:$0x1]  ;;  %2419 = vmatmul.mubr.bf16.gmra.mxu0 %v11094_v52  ;;  %v386_v4 = vsel %vm10820_vm2, 0, %v385_v61  ;;  %v1916_v10 = vshll.u32 %v11133_v56, 16 }
  0xd6   : > { %v11140_v31 = vld [vmem:[#allocation2 + $0xa4] ss:$0 sps:$4 sm:$0x11]   ;;  %v2109_v1 = vrot.slane %v8411_v58, 1  ;;  %v837_v2 = vrot.slane %v835_v23, 7  ;;  %v442_v5 = vsel %vm10826_vm4, 0, %v441_v0 }
  0xd7   : > { %v845_v3 = vrot.slane %v843_v47, 7  ;;  %v592_v6 = vld [vmem:[%s10808_s19 + $0x78] sm:$0xf]  ;;  %v2110_v7 = vrot.slane %v11140_v31, 1  ;;  %387 = vst [vmem:[#allocation2 + $0xc0] sm:$0x1] %v386_v4 }
  0xd8   : > { %443 = vst [vmem:[#allocation2 + $0xc8] sm:$0x1] %v442_v5  ;;  %v593_v8 = vld [vmem:[%s10808_s19 + $0x7c] sm:$0xf]  ;;  %v852_v9 = vshrl.u32 %v592_v6, 16  ;;  %v840_v52 = vor.u32 %v838_v62, %v837_v2  ;;  %v841_v14 = vrot.slane %v837_v2, 4 }
  0xd9   : > { %v1627_v12 = vld [vmem:[#allocation2 + $0x78] sm:$0xf]  ;;  %v11151_v13 = vld [vmem:[#allocation2 + $0xac] sm:$0xf]  ;;  %v848_v16 = vor.u32 %v846_v39, %v845_v3  ;;  %v850_v20 = vrot.slane %v845_v3, 4  ;;  %v2111_v43 = vsel %vm1496_vm9, %v2109_v1, %v2110_v7  ;;  %v855_v24 = vshll.u32 %v592_v6, 16 }
  0xda   : > { %v1017_v21 = vld [vmem:[#allocation2 + $0xb4] sm:$0xf]  ;;  %v1670_v22 = vld [vmem:[#allocation2 + $0xa8] sm:$0xe]  ;;  %9682 = vmatprep.mubr.bf16.mxu1 %v2111_v43  ;;  %v1914_v63 = vshrl.u32 %v11133_v56, 16  ;;  %v854_v28 = vrot.slane %v852_v9, 7  ;;  %v11166_v51 = vcombine.low %v1627_v12, %v11054_v45 }
  0xdb   : > { %v11154_v25 = vld [vmem:[#allocation2 + $0xb0] ss:$0 sps:$4 sm:$0x11]   ;;  %v8412_v29 = vcombine.low %v1670_v22, %v11151_v13  ;;  %v849_v30 = vsel %vm10846_vm7, %v841_v14, %v848_v16  ;;  %v1018_v32 = vsel %vm10852_vm8, %v840_v52, %v1017_v21  ;;  %v1021_v33 = vld [vmem:[#allocation2 + $0xbc] sm:$0x1]  ;;  %v860_v36 = vshrl.u32 %v593_v8, 16 }
  0xdc   : > { %1019 = vst [vmem:[#allocation2 + $0xb4] sm:$0xf] %v1018_v32  ;;  %1020 = vst [vmem:[#allocation2 + $0xb8] sm:$0xf] %v849_v30  ;;  %v863_v37 = vshll.u32 %v593_v8, 16  ;;  %v1918_v38 = vrot.slane %v1916_v10, 1  ;;  %v1022_v42 = vsel %vm10820_vm2, %v850_v20, %v1021_v33  ;;  %v857_v44 = vor.u32 %v855_v24, %v854_v28 }
  0xdd   : > { %v2112_v40 = vrot.slane %v8412_v29, 1  ;;  %v2113_v41 = vrot.slane %v11154_v25, 1  ;;  %1023 = vst [vmem:[#allocation2 + $0xbc] sm:$0x1] %v1022_v42  ;;  %v858_v49 = vrot.slane %v854_v28, 4  ;;  %v862_v50 = vrot.slane %v860_v36, 7 }
  0xde   : > { %v337_v27 = vld [vmem:[#allocation2] sm:$0x1]  ;;  %v1919_v18 = vor.u32 %v1918_v38, %v1914_v63  ;;  %v1921_v60 = vshll.u32 %v11046_v34, 16  ;;  %v1629_v23 = vld [vmem:[#allocation2 + $0x84] sm:$0xf]  ;;  %v1926_v0 = vshrl.u32 %v11166_v51, 16 }
  0xdf   : > { %v2114_v55 = vsel %vm1496_vm9, %v2112_v40, %v2113_v41  ;;  %v1024_v58 = vld [vmem:[#allocation2 + $0xc0] sm:$0xf]  ;;  %v1028_v59 = vld [vmem:[#allocation2 + $0xc8] sm:$0x1]  ;;  %v338_v61 = vsel %vm10820_vm2, 0, %v337_v27  ;;  %v865_v62 = vor.u32 %v863_v37, %v862_v50  ;;  %v867_v45 = vrot.slane %v862_v50, 4 }
  0xe0   : > { %9683 = vmatmul.mubr.bf16.gmra.mxu1 %v2114_v55  ;;  %v1025_v47 = vsel %vm10852_vm8, %v857_v44, %v1024_v58  ;;  %339 = vst [vmem:[#allocation2] sm:$0x1] %v338_v61  ;;  %v393_v39 = vld [vmem:[#allocation2 + $0x8] sm:$0x1]  ;;  %v1923_v1 = vrot.slane %v1921_v60, 1  ;;  %v1928_v4 = vshll.u32 %v11166_v51, 16  ;;  %v11189_v10 = vcombine.low %v1629_v23, %v11087_v35 }
  0xe1   : > { %1026 = vst [vmem:[#allocation2 + $0xc0] sm:$0xf] %v1025_v47  ;;  %v394_v2 = vsel %vm10826_vm4, 0, %v393_v39  ;;  %v866_v34 = vsel %vm10846_vm7, %v858_v49, %v865_v62  ;;  %v1029_v3 = vsel %vm10820_vm2, %v867_v45, %v1028_v59  ;;  %v1933_v5 = vshll.u32 %v11061_v26, 16  ;;  %v11186_v9 = vld [vmem:[#allocation2 + $0x4] sm:$0xf] }
  0xe2   : > { %395 = vst [vmem:[#allocation2 + $0x8] sm:$0x1] %v394_v2  ;;  %1027 = vst [vmem:[#allocation2 + $0xc4] sm:$0xf] %v866_v34  ;;  %v1924_v8 = vsel %vm1239_vm10, %v1919_v18, %v1923_v1  ;;  %v1930_v52 = vrot.slane %v1928_v4, 1  ;;  %v1938_v32 = vshrl.u32 %v11189_v10, 16 }
  0xe3   : > { %v11183_v6 = vld [vmem:[#allocation2 + $0xb8] sm:$0xf]  ;;  %v1671_v7 = vld [vmem:[#allocation2 + $0xb4] sm:$0xe]  ;;  %1030 = vst [vmem:[#allocation2 + $0xc8] sm:$0x1] %v1029_v3  ;;  %2426 = vmatprep.mubr.bf16.mxu0 %v1924_v8 }
  0xe4   : > { %v8413_v12 = vcombine.low %v1671_v7, %v11183_v6  ;;  %v1935_v14 = vrot.slane %v1933_v5, 1  ;;  %v1033_v16 = vld [vmem:[#allocation2 + $0xc] sm:$0xf]  ;;  %v11192_v20 = vld [vmem:[#allocation2 + $0x10] sm:$0xf]  ;;  %2427 = vmatmul.mubr.bf16.gmra.mxu0 %v11133_v56  ;;  %v1931_v22 = vor.u32 %v1930_v52, %v1926_v0  ;;  %v1940_v36 = vshll.u32 %v11189_v10, 16 }
  0xe5   : > { %v11194_v26 = vld [vmem:[#allocation2 + $0xbc] ss:$0 sps:$4 sm:$0x11]   ;;  %v11198_v21 = vcombine.low %v1033_v16, %v11192_v20  ;;  %v11200_v24 = vld [vmem:[#allocation2 + $0x14] ss:$0 sps:$4 sm:$0x11]  }
  0xe6   : > { %v2115_v43 = vrot.slane %v8413_v12, 1  ;;  %v2116_v35 = vrot.slane %v11194_v26, 1  ;;  %v1631_v63 = vld [vmem:[#allocation2 + $0x90] sm:$0xf]  ;;  %v1936_v56 = vsel %vm1239_vm10, %v1931_v22, %v1935_v14  ;;  %v1945_v37 = vshll.u32 %v11089_v46, 16 }
  0xe7   : > { %v1031_v29 = vld [vmem:[#allocation2] sm:$0xf]  ;;  %v1255_v30 = vshll.u32 %v11198_v21, 16  ;;  %2434 = vmatprep.mubr.bf16.mxu0 %v1936_v56  ;;  %v1260_v41 = vshll.u32 %v11200_v24, 16  ;;  %v1633_v42 = vld [vmem:[#allocation2 + $0x9c] sm:$0xf]  ;;  %v11220_v27 = vcombine.low %v1631_v63, %v11105_v54 }
  0xe8   : > { %v1672_v33 = vld [vmem:[#allocation2 + $0xc0] sm:$0xe]  ;;  %v11206_v28 = vcombine.low %v1031_v29, %v11186_v9  ;;  %v2117_v38 = vsel %vm1496_vm9, %v2115_v43, %v2116_v35  ;;  %v1035_v59 = vld [vmem:[#allocation2 + $0x18] sm:$0xf]  ;;  %v1253_v60 = vshrl.u32 %v11198_v21, 16  ;;  %v1942_v61 = vrot.slane %v1940_v36, 1 }
  0xe9   : > { %v11212_v40 = vld [vmem:[#allocation2 + $0x8] ss:$0 sps:$4 sm:$0x11]   ;;  %9686 = vmatprep.mubr.bf16.mxu1 %v2117_v38  ;;  %v11215_v44 = vld [vmem:[#allocation2 + $0xc4] sm:$0xf]  ;;  %v1947_v23 = vrot.slane %v1945_v37, 1  ;;  %v11235_v34 = vcombine.low %v1633_v42, %v11130_v53 }
  0xea   : > { %v1241_v49 = vshrl.u32 %v11206_v28, 16  ;;  %v1243_v50 = vshll.u32 %v11206_v28, 16  ;;  %v11222_v55 = vld [vmem:[#allocation2 + $0xc8] ss:$0 sps:$4 sm:$0x11]   ;;  %v8414_v46 = vcombine.low %v1672_v33, %v11215_v44  ;;  %v1248_v58 = vshll.u32 %v11212_v40, 16 }
  0xeb   : > { %v11227_v62 = vld [vmem:[#allocation2 + $0x1c] sm:$0xf]  ;;  %v2119_v47 = vrot.slane %v11222_v55, 1  ;;  %v1257_v54 = vrot.slane %v1255_v30, 1  ;;  %v1943_v1 = vor.u32 %v1942_v61, %v1938_v32  ;;  %v1262_v4 = vrot.slane %v1260_v41, 1 }
  0xec   : > { %v1245_v18 = vrot.slane %v1243_v50, 1  ;;  %v2118_v45 = vrot.slane %v8414_v46, 1  ;;  %v1250_v39 = vrot.slane %v1248_v58, 1  ;;  %2435 = vmatmul.mubr.bf16.gmra.mxu0 %v11166_v51  ;;  %v11232_v2 = vcombine.low %v1035_v59, %v11227_v62  ;;  %v1635_v5 = vld [vmem:[#allocation2 + $0xa8] sm:$0xf]  ;;  %v10109_v59 = vld [vmem:[#allocation7 + $0x228] sm:$0xff]  }
  0xed   : > { %v1948_v8 = vsel %vm1239_vm10, %v1943_v1, %v1947_v23  ;;  %v1950_v12 = vshrl.u32 %v11220_v27, 16  ;;  %v1952_v51 = vshll.u32 %v11220_v27, 16  ;;  %v1258_v52 = vor.u32 %v1257_v54, %v1253_v60  ;;  %v11242_v14 = vld [vmem:[#allocation2 + $0x20] ss:$0 sps:$4 sm:$0x11]  }
  0xee   : > { %v1246_v0 = vor.u32 %v1245_v18, %v1241_v49  ;;  %v2120_v3 = vsel %vm1496_vm9, %v2118_v45, %v2119_v47  ;;  %2442 = vmatprep.mubr.bf16.mxu0 %v1948_v8  ;;  %v1957_v53 = vshll.u32 %v11113_v11, 16  ;;  %v1267_v16 = vshll.u32 %v11232_v2, 16  ;;  %v1037_v22 = vld [vmem:[#allocation2 + $0x24] sm:$0xf]  ;;  %v11246_v29 = vld [vmem:[#allocation2 + $0x28] sm:$0xf] }
  0xef   : > { %9687 = vmatmul.mubr.bf16.gmra.mxu1 %v2120_v3  ;;  %v1954_v43 = vrot.slane %v1952_v51, 1  ;;  %v1962_v30 = vshrl.u32 %v11235_v34, 16  ;;  %v1964_v32 = vshll.u32 %v11235_v34, 16  ;;  %v1969_v63 = vshll.u32 %v11140_v31, 16  ;;  %v1637_v38 = vld [vmem:[#allocation2 + $0xb4] sm:$0xf] }
  0xf0   : > { %v1251_v7 = vsel %vm1239_vm10, %v1246_v0, %v1250_v39  ;;  %v1959_v35 = vrot.slane %v1957_v53, 1  ;;  %v11252_v33 = vcombine.low %v1635_v5, %v11151_v13  ;;  %v1263_v36 = vsel %vm1239_vm10, %v1258_v52, %v1262_v4  ;;  %v10103_v49 = vld [vmem:[#allocation7 + $0x230] sm:$0xff]   ;;  %v1039_v45 = vld [vmem:[#allocation2 + $0x30] sm:$0xf]  ;;  %v10124_v51 = vld [vmem:[#allocation7 + $0x218] sm:$0xff]  }
  0xf1   : > { %2828 = vmatprep.mubr.bf16.mxu1 %v1251_v7  ;;  %v1955_v56 = vor.u32 %v1954_v43, %v1950_v12  ;;  %v1265_v11 = vshrl.u32 %v11232_v2, 16  ;;  %v1966_v37 = vrot.slane %v1964_v32, 1  ;;  %v1269_v41 = vrot.slane %v1267_v16, 1  ;;  %v1639_v7 = vld [vmem:[#allocation2 + $0xc0] sm:$0xf] }
  0xf2   : > { %v1272_v42 = vshll.u32 %v11242_v14, 16  ;;  %v11260_v31 = vcombine.low %v1037_v22, %v11246_v29  ;;  %v1971_v46 = vrot.slane %v1969_v63, 1  ;;  %v1976_v58 = vshll.u32 %v11252_v33, 16  ;;  %v1041_v22 = vld [vmem:[#allocation2 + $0x3c] sm:$0xf] }
  0xf3   : > { %v1960_v50 = vsel %vm1239_vm10, %v1955_v56, %v1959_v35  ;;  %v1967_v13 = vor.u32 %v1966_v37, %v1962_v30  ;;  %v11268_v18 = vcombine.low %v1637_v38, %v11183_v6  ;;  %v1270_v60 = vor.u32 %v1269_v41, %v1265_v11  ;;  %v10115_v6 = vld [vmem:[#allocation7 + $0x220] sm:$0xff]   ;;  %v11292_v30 = vld [vmem:[#allocation2 + $0x40] sm:$0xf]  ;;  %v11303_v41 = vld [vmem:[#allocation2 + $0x44] ss:$0 sps:$4 sm:$0x11]  }
  0xf4   : > { %2443 = vmatmul.mubr.bf16.gmra.mxu0 %v11189_v10  ;;  %v11265_v10 = vld [vmem:[#allocation2 + $0x2c] ss:$0 sps:$4 sm:$0x11]   ;;  %v1274_v61 = vrot.slane %v1272_v42, 1  ;;  %v1279_v23 = vshll.u32 %v11260_v31, 16  ;;  %v1974_v39 = vshrl.u32 %v11252_v33, 16  ;;  %v11288_v52 = vcombine.low %v1639_v7, %v11215_v44 }
  0xf5   : > { %2450 = vmatprep.mubr.bf16.mxu0 %v1960_v50  ;;  %v1972_v47 = vsel %vm1239_vm10, %v1967_v13, %v1971_v46  ;;  %v1981_v54 = vshll.u32 %v11154_v25, 16  ;;  %v1277_v0 = vshrl.u32 %v11260_v31, 16  ;;  %v1284_v4 = vshll.u32 %v11265_v10, 16  ;;  %v10137_v38 = vld [vmem:[#allocation7 + $0x210] sm:$0xff]   ;;  %v1043_v46 = vld [vmem:[#allocation2 + $0x48] sm:$0xf] }
  0xf6   : > { %v1275_v1 = vsel %vm1239_vm10, %v1270_v60, %v1274_v61  ;;  %v1281_v3 = vrot.slane %v1279_v23, 1  ;;  %v1988_v25 = vshll.u32 %v11268_v18, 16  ;;  %v1993_v63 = vshll.u32 %v11194_v26, 16  ;;  %v11581_v48 = vld [vmem:[#allocation2 + $0x64] sm:$0xf] }
  0xf7   : > { %2829 = vmatmul.mubr.bf16.vlgmr.msra.gmra.mxu1 %v11206_v28  ;;  %v11272_v28 = vld [vmem:[#allocation2 + $0x34] sm:$0xf]  ;;  %v1983_v12 = vrot.slane %v1981_v54, 1  ;;  %v1286_v16 = vrot.slane %v1284_v4, 1  ;;  %v11301_v37 = vcombine.low %v1041_v22, %v11292_v30  ;;  %v1998_v61 = vshrl.u32 %v11288_v52, 16 }
  0xf8   : > { %9739 = vmatpush3.bf16.msra.mxu1 %v10994_v17  ;;  %2836 = vmatprep.mubr.bf16.mxu1 %v1263_v36  ;;  %v1978_v17 = vrot.slane %v1976_v58, 1  ;;  %v11281_v5 = vcombine.low %v1039_v45, %v11272_v28  ;;  %v1282_v53 = vor.u32 %v1281_v3, %v1277_v0  ;;  %v1990_v32 = vrot.slane %v1988_v25, 1  ;;  %v11308_v58 = vld [vmem:[#allocation2 + $0x4c] sm:$0xf]  ;;  %v1045_v4 = vld [vmem:[#allocation2 + $0x54] sm:$0xf] }
  0xf9   : > { %9740 = vmatprep.subr.bf16.mxu1 %v10103_v49  ;;  %v1995_v26 = vrot.slane %v1993_v63, 1  ;;  %v1303_v13 = vshll.u32 %v11301_v37, 16  ;;  %v2005_v45 = vshll.u32 %v11222_v55, 16  ;;  %v11321_v55 = vld [vmem:[#allocation2 + $0x50] ss:$0 sps:$4 sm:$0x11]  }
  0xfa   : > { %v1979_v8 = vor.u32 %v1978_v17, %v1974_v39  ;;  %v1291_v43 = vshll.u32 %v11281_v5, 16  ;;  %v1287_v44 = vsel %vm1239_vm10, %v1282_v53, %v1286_v16  ;;  %v1289_v36 = vshrl.u32 %v11281_v5, 16 }
  0xfb   : > { %v1301_v17 = vshrl.u32 %v11301_v37, 16  ;;  %v1305_v54 = vrot.slane %v1303_v13, 1  ;;  %v1320_v53 = vshll.u32 %v11321_v55, 16 }
  0xfc   : > { %9741 = vmatpush3.bf16.msra.mxu1 %v10103_v49  ;;  %2451 = vmatmul.mubr.bf16.gmra.mxu0 %v11220_v27  ;;  %v11285_v27 = vld [vmem:[#allocation2 + $0x38] ss:$0 sps:$4 sm:$0x11]   ;;  %v1984_v35 = vsel %vm1239_vm10, %v1979_v8, %v1983_v12  ;;  %v1293_v11 = vrot.slane %v1291_v43, 1  ;;  %v2000_v49 = vshll.u32 %v11288_v52, 16 }
  0xfd   : > { %2458 = vmatprep.mubr.bf16.mxu0 %v1972_v47  ;;  %9742 = vmatprep.subr.bf16.mxu1 %v10109_v59  ;;  %v1296_v56 = vshll.u32 %v11285_v27, 16  ;;  %v11316_v47 = vcombine.low %v1043_v46, %v11308_v58  ;;  %v1306_v7 = vor.u32 %v1305_v54, %v1301_v17  ;;  %v11324_v8 = vld [vmem:[#allocation2 + $0x58] sm:$0xf]  ;;  %v1322_v63 = vrot.slane %v1320_v53, 1 }
  0xfe   : > { %v1294_v50 = vor.u32 %v1293_v11, %v1289_v36  ;;  %v2002_v23 = vrot.slane %v2000_v49, 1  ;;  %v1047_v36 = vld [vmem:[#allocation2 + $0x60] sm:$0xf]  ;;  %v11340_v11 = vld [vmem:[#allocation2 + $0x64] sm:$0xf]  ;;  %v1507_v53 = vrot.slane %v11265_v10, 1 }
  0xff   : > { %2837 = vmatmul.mubr.bf16.gmra.mxu1 %v11198_v21  ;;  %v1986_v21 = vshrl.u32 %v11268_v18, 16  ;;  %v1315_v3 = vshll.u32 %v11316_v47, 16  ;;  %v1313_v43 = vshrl.u32 %v11316_v47, 16 }
 0x100   : > { %2844 = vmatprep.mubr.bf16.mxu1 %v1275_v1  ;;  %9743 = vmatpush3.bf16.msra.mxu1 %v10109_v59  ;;  %v10150_v59 = vld [vmem:[#allocation7 + $0x208] sm:$0xff]   ;;  %v2003_v0 = vor.u32 %v2002_v23, %v1998_v61  ;;  %v1079_v1 = vld [vmem:[#allocation2] sm:$0xe]  ;;  %v11355_v61 = vld [vmem:[#allocation2 + $0x70] sm:$0xf] }
 0x101   : > { %9744 = vmatprep.subr.bf16.mxu1 %v10115_v6  ;;  %v1991_v42 = vor.u32 %v1990_v32, %v1986_v21  ;;  %v8351_v25 = vcombine.low %v1079_v1, %v11186_v9  ;;  %v1317_v22 = vrot.slane %v1315_v3, 1  ;;  %v1498_v9 = vrot.slane %v11212_v40, 1  ;;  %v1080_v32 = vld [vmem:[#allocation2 + $0xc] sm:$0xe]  ;;  %v1083_v23 = vld [vmem:[#allocation2 + $0x30] sm:$0xe] }
 0x103   : > { %v1996_v60 = vsel %vm1239_vm10, %v1991_v42, %v1995_v26  ;;  %v1497_v21 = vrot.slane %v8351_v25, 1 }
 0x104   : > { %2459 = vmatmul.mubr.bf16.gmra.mxu0 %v11235_v34  ;;  %9745 = vmatpush3.bf16.msra.mxu1 %v10115_v6  ;;  %v1298_v34 = vrot.slane %v1296_v56, 1  ;;  %v2007_v6 = vrot.slane %v2005_v45, 1 }
 0x105   : > { %2466 = vmatprep.mubr.bf16.mxu0 %v1984_v35  ;;  %9746 = vmatprep.subr.bf16.mxu1 %v10124_v51  ;;  %v11335_v35 = vld [vmem:[#allocation2 + $0x5c] ss:$0 sps:$4 sm:$0x11]   ;;  %v1499_v42 = vsel %vm1496_vm9, %v1497_v21, %v1498_v9  ;;  %v1085_v9 = vld [vmem:[#allocation2 + $0x48] sm:$0xe] }
 0x106   : > { %v1299_v39 = vsel %vm1239_vm10, %v1294_v50, %v1298_v34  ;;  %v2008_v12 = vsel %vm1239_vm10, %v2003_v0, %v2007_v6  ;;  %v11349_v34 = vcombine.low %v1047_v36, %v11340_v11  ;;  %v10129_v0 = vld [vmem:[#allocation7 + $0x1f0] sm:$0xff]   ;;  %v8355_v6 = vcombine.low %v1083_v23, %v11272_v28 }
 0x107   : > { %2845 = vmatmul.mubr.bf16.gmra.mxu1 %v11232_v2  ;;  %v1308_v2 = vshll.u32 %v11303_v41, 16  ;;  %v1510_v28 = vrot.slane %v11285_v27, 1  ;;  %v10136_v27 = vld [vmem:[#allocation7 + $0x1a8] sm:$0xff]   ;;  %v1516_v23 = vrot.slane %v11321_v55, 1 }
 0x108   : > { %2852 = vmatprep.mubr.bf16.mxu1 %v1287_v44  ;;  %9747 = vmatpush3.bf16.msra.mxu1 %v10124_v51  ;;  %v10163_v51 = vld [vmem:[#allocation7 + $0x200] sm:$0xff]   ;;  %v1318_v44 = vor.u32 %v1317_v22, %v1313_v43  ;;  %v1339_v45 = vshll.u32 %v11349_v34, 16  ;;  %v1337_v1 = vshrl.u32 %v11349_v34, 16  ;;  %v1051_v43 = vld [vmem:[#allocation2 + $0x78] sm:$0xf]  ;;  %v1509_v22 = vrot.slane %v8355_v6, 1 }
 0x109   : > { %9748 = vmatprep.subr.bf16.mxu1 %v10137_v38 }
 0x10a   : > { %v1323_v50 = vsel %vm1239_vm10, %v1318_v44, %v1322_v63  ;;  %v1341_v3 = vrot.slane %v1339_v45, 1 }
 0x10c   : > { %2467 = vmatmul.mubr.bf16.gmra.mxu0 %v11252_v33  ;;  %9749 = vmatpush3.bf16.msra.mxu1 %v10137_v38  ;;  %v1310_v33 = vrot.slane %v1308_v2, 1  ;;  %v8352_v38 = vcombine.low %v1080_v32, %v11192_v20  ;;  %v1501_v20 = vrot.slane %v11200_v24, 1  ;;  %v10123_v24 = vld [vmem:[#allocation7 + $0x1b8] sm:$0xff]   ;;  %v11377_v32 = vld [vmem:[#allocation2 + $0x7c] sm:$0xf] }
 0x10d   : > { %2474 = vmatprep.mubr.bf16.mxu0 %v1996_v60  ;;  %9750 = vmatprep.subr.bf16.mxu1 %v10150_v59  ;;  %v1049_v60 = vld [vmem:[#allocation2 + $0x6c] sm:$0xf] }
 0x10e   : > { %v1311_v16 = vsel %vm1239_vm10, %v1306_v7, %v1310_v33  ;;  %v1500_v13 = vrot.slane %v8352_v38, 1  ;;  %v10130_v33 = vld [vmem:[#allocation7 + $0x1b0] sm:$0xff]   ;;  %v1084_v7 = vld [vmem:[#allocation2 + $0x3c] sm:$0xe]  ;;  %v1511_v38 = vsel %vm1496_vm9, %v1509_v22, %v1510_v28  ;;  %v1088_v28 = vld [vmem:[#allocation2 + $0x6c] sm:$0xe] }
 0x10f   : > { %2853 = vmatmul.mubr.bf16.gmra.mxu1 %v11260_v31  ;;  %v11331_v31 = vcombine.low %v1045_v4, %v11324_v8  ;;  %v8356_v21 = vcombine.low %v1084_v7, %v11292_v30  ;;  %v8357_v30 = vcombine.low %v1085_v9, %v11308_v58  ;;  %v1055_v58 = vld [vmem:[#allocation2 + $0x90] sm:$0xf]  ;;  %v10161_v22 = vld [vmem:[#allocation7 + $0x1c8] sm:$0xff]  }
 0x110   : > { %2860 = vmatprep.mubr.bf16.mxu1 %v1299_v39  ;;  %9751 = vmatpush3.bf16.msra.mxu1 %v10150_v59  ;;  %v1504_v59 = vrot.slane %v11242_v14, 1  ;;  %v1502_v17 = vsel %vm1496_vm9, %v1500_v13, %v1501_v20  ;;  %v11363_v14 = vcombine.low %v1049_v60, %v11355_v61  ;;  %v11390_v13 = vld [vmem:[#allocation2 + $0x88] sm:$0xf]  ;;  %v1086_v20 = vld [vmem:[#allocation2 + $0x54] sm:$0xe] }
 0x111   : > { %9752 = vmatprep.subr.bf16.mxu1 %v10163_v51  ;;  %v1327_v56 = vshll.u32 %v11331_v31, 16  ;;  %v1325_v40 = vshrl.u32 %v11331_v31, 16  ;;  %v1515_v60 = vrot.slane %v8357_v30, 1  ;;  %v11430_v30 = vld [vmem:[#allocation2 + $0xac] sm:$0xf] }
 0x113   : > { %v1329_v49 = vrot.slane %v1327_v56, 1  ;;  %v1349_v56 = vshrl.u32 %v11363_v14, 16 }
 0x114   : > { %2475 = vmatmul.mubr.bf16.gmra.mxu0 %v11268_v18  ;;  %9753 = vmatpush3.bf16.msra.mxu1 %v10163_v51  ;;  %v1081_v18 = vld [vmem:[#allocation2 + $0x18] sm:$0xe] }
 0x115   : > { %2482 = vmatprep.mubr.bf16.mxu0 %v2008_v12  ;;  %v8353_v26 = vcombine.low %v1081_v18, %v11227_v62  ;;  %v1082_v62 = vld [vmem:[#allocation2 + $0x24] sm:$0xe]  ;;  %v1330_v2 = vor.u32 %v1329_v49, %v1325_v40  ;;  %v10135_v12 = vld [vmem:[#allocation7 + $0x1e8] sm:$0xff]   ;;  %v1342_v18 = vor.u32 %v1341_v3, %v1337_v1  ;;  %v1513_v40 = vrot.slane %v11303_v41, 1 }
 0x116   : > { %v8354_v54 = vcombine.low %v1082_v62, %v11246_v29  ;;  %v11370_v29 = vld [vmem:[#allocation2 + $0x74] ss:$0 sps:$4 sm:$0x11]   ;;  %v1053_v49 = vld [vmem:[#allocation2 + $0x84] sm:$0xf] }
 0x117   : > { %2861 = vmatmul.mubr.bf16.gmra.mxu1 %v11281_v5  ;;  %v1332_v5 = vshll.u32 %v11335_v35, 16  ;;  %v1503_v46 = vrot.slane %v8353_v26, 1  ;;  %v1356_v36 = vshll.u32 %v11370_v29, 16  ;;  %v1512_v26 = vrot.slane %v8356_v21, 1  ;;  %v11393_v62 = vld [vmem:[#allocation2 + $0x94] sm:$0xf] }
 0x118   : > { %2868 = vmatprep.mubr.bf16.mxu1 %v1311_v16  ;;  %v1506_v51 = vrot.slane %v8354_v54, 1  ;;  %v1351_v16 = vshll.u32 %v11363_v14, 16  ;;  %v11399_v45 = vcombine.low %v1053_v49, %v11390_v13  ;;  %v11406_v55 = vcombine.low %v1055_v58, %v11393_v62 }
 0x119   : > { %v1334_v39 = vrot.slane %v1332_v5, 1  ;;  %v10143_v5 = vld [vmem:[#allocation7 + $0x1a0] sm:$0xff]   ;;  %v1514_v54 = vsel %vm1496_vm9, %v1512_v26, %v1513_v40  ;;  %v1525_v40 = vrot.slane %v11370_v29, 1 }
 0x11a   : > { %v1508_v10 = vsel %vm1496_vm9, %v1506_v51, %v1507_v53  ;;  %v1353_v44 = vrot.slane %v1351_v16, 1  ;;  %v10156_v51 = vld [vmem:[#allocation7 + $0x190] sm:$0xff]   ;;  %v1057_v16 = vld [vmem:[#allocation2 + $0x9c] sm:$0xf]  ;;  %v1387_v21 = vshll.u32 %v11406_v55, 16  ;;  %v1385_v49 = vshrl.u32 %v11406_v55, 16 }
 0x11b   : > { %v1335_v25 = vsel %vm1239_vm10, %v1330_v2, %v1334_v39  ;;  %v11401_v2 = vld [vmem:[#allocation2 + $0x8c] ss:$0 sps:$4 sm:$0x11]   ;;  %v1087_v39 = vld [vmem:[#allocation2 + $0x60] sm:$0xe]  ;;  %v10168_v29 = vld [vmem:[#allocation7 + $0x1c0] sm:$0xff]  }
 0x11c   : > { %2483 = vmatmul.mubr.bf16.gmra.mxu0 %v11288_v52  ;;  %v11357_v52 = vld [vmem:[#allocation2 + $0x68] ss:$0 sps:$4 sm:$0x11]   ;;  %v8359_v3 = vcombine.low %v1087_v39, %v11340_v11 }
 0x11d   : > { %9706 = vmatprep.mubr.bf16.mxu0 %v1499_v42  ;;  %v1344_v4 = vshll.u32 %v11357_v52, 16  ;;  %v11385_v42 = vcombine.low %v1051_v43, %v11377_v32  ;;  %v11418_v43 = vld [vmem:[#allocation2 + $0xa0] sm:$0xf] }
 0x11f   : > { %2869 = vmatmul.mubr.bf16.gmra.mxu1 %v11301_v37  ;;  %v1505_v37 = vsel %vm1496_vm9, %v1503_v46, %v1504_v59  ;;  %v1346_v63 = vrot.slane %v1344_v4, 1  ;;  %v10148_v46 = vld [vmem:[#allocation7 + $0x1d8] sm:$0xff]   ;;  %v1363_v41 = vshll.u32 %v11385_v42, 16  ;;  %v1361_v6 = vshrl.u32 %v11385_v42, 16  ;;  %v10155_v4 = vld [vmem:[#allocation7 + $0x1d0] sm:$0xff]  }
 0x120   : > { %2876 = vmatprep.mubr.bf16.mxu1 %v1323_v50  ;;  %v11388_v50 = vld [vmem:[#allocation2 + $0x80] ss:$0 sps:$4 sm:$0x11]  }
 0x121   : > { %v1347_v59 = vsel %vm1239_vm10, %v1342_v18, %v1346_v63  ;;  %v1368_v1 = vshll.u32 %v11388_v50, 16  ;;  %v1365_v7 = vrot.slane %v1363_v41, 1  ;;  %v1522_v18 = vrot.slane %v11357_v52, 1 }
 0x122   : > { %v1521_v63 = vrot.slane %v8359_v3, 1  ;;  %v1373_v52 = vshrl.u32 %v11399_v45, 16  ;;  %v1091_v3 = vld [vmem:[#allocation2 + $0x90] sm:$0xe] }
 0x124   : > { %9707 = vmatmul.mubr.bf16.vlgmr.msra.gmra.mxu0 %v1502_v17  ;;  %v1354_v17 = vor.u32 %v1353_v44, %v1349_v56  ;;  %v1089_v56 = vld [vmem:[#allocation2 + $0x78] sm:$0xe]  ;;  %v8360_v44 = vcombine.low %v1088_v28, %v11355_v61  ;;  %v1523_v58 = vsel %vm1496_vm9, %v1521_v63, %v1522_v18  ;;  %v1093_v63 = vld [vmem:[#allocation2 + $0xa8] sm:$0xe] }
 0x125   : > { %9099 = vmatpush3.bf16.msra.mxu0 %v10123_v24  ;;  %9710 = vmatprep.mubr.bf16.mxu0 %v1505_v37  ;;  %v1358_v24 = vrot.slane %v1356_v36, 1  ;;  %v8358_v37 = vcombine.low %v1086_v20, %v11324_v8  ;;  %v1375_v8 = vshll.u32 %v11399_v45, 16  ;;  %v11428_v36 = vcombine.low %v1057_v16, %v11418_v43  ;;  %v1090_v20 = vld [vmem:[#allocation2 + $0x84] sm:$0xe] }
 0x126   : > { %9100 = vmatprep.subr.bf16.mxu0 %v10129_v0  ;;  %v10149_v0 = vld [vmem:[#allocation7 + $0x198] sm:$0xff]   ;;  %v8361_v61 = vcombine.low %v1089_v56, %v11377_v32  ;;  %v1524_v41 = vrot.slane %v8360_v44, 1  ;;  %v11450_v32 = vld [vmem:[#allocation2 + $0xb0] ss:$0 sps:$4 sm:$0x11]  }
 0x127   : > { %2877 = vmatmul.mubr.bf16.gmra.mxu1 %v11316_v47  ;;  %v10142_v47 = vld [vmem:[#allocation7 + $0x1e0] sm:$0xff]   ;;  %v1359_v53 = vsel %vm1239_vm10, %v1354_v17, %v1358_v24  ;;  %v1518_v11 = vrot.slane %v8358_v37, 1  ;;  %v1399_v39 = vshll.u32 %v11428_v36, 16  ;;  %v8362_v37 = vcombine.low %v1090_v20, %v11390_v13 }
 0x128   : > { %2884 = vmatprep.mubr.bf16.mxu1 %v1335_v25  ;;  %v1519_v25 = vrot.slane %v11335_v35, 1  ;;  %v11423_v35 = vld [vmem:[#allocation2 + $0xa4] ss:$0 sps:$4 sm:$0x11]   ;;  %v10169_v24 = vld [vmem:[#allocation7 + $0x180] sm:$0xff]  }
 0x129   : > { %9101 = vmatpush3.bf16.msra.mxu0 %v10130_v33  ;;  %v1517_v33 = vsel %vm1496_vm9, %v1515_v60, %v1516_v23  ;;  %v1528_v60 = vrot.slane %v11388_v50, 1  ;;  %v1404_v17 = vshll.u32 %v11423_v35, 16  ;;  %v11454_v50 = vld [vmem:[#allocation2 + $0xb8] sm:$0xf]  ;;  %v11467_v28 = vrot.slane %v1399_v39, 1 }
 0x12a   : > { %9102 = vmatprep.subr.bf16.mxu0 %v10135_v12  ;;  %v1380_v12 = vshll.u32 %v11401_v2, 16  ;;  %v1537_v18 = vrot.slane %v11423_v35, 1  ;;  %v1094_v56 = vld [vmem:[#allocation2 + $0xb4] sm:$0xe]  ;;  %v3168_v39 = vld [vmem:[#allocation2 + $0x24] sm:$0xe] }
 0x12b   : > { %v11469_v16 = vrot.slane %v1404_v17, 1  ;;  %v8366_v20 = vcombine.low %v1094_v56, %v11454_v50 }
 0x12c   : > { %9711 = vmatmul.mubr.bf16.gmra.mxu0 %v1508_v10  ;;  %v1366_v10 = vor.u32 %v1365_v7, %v1361_v6  ;;  %v11433_v26 = vrot.slane %v1380_v12, 1  ;;  %v1397_v6 = vshrl.u32 %v11428_v36, 16  ;;  %v11460_v12 = vld [vmem:[#allocation2 + $0xbc] ss:$0 sps:$4 sm:$0x11]  }
 0x12d   : > { %9714 = vmatprep.mubr.bf16.mxu0 %v1511_v38  ;;  %9103 = vmatpush3.bf16.msra.mxu0 %v10136_v27  ;;  %v1370_v27 = vrot.slane %v1368_v1, 1  ;;  %v1059_v38 = vld [vmem:[#allocation2 + $0xa8] sm:$0xf]  ;;  %v1527_v1 = vrot.slane %v8361_v61, 1  ;;  %v1540_v61 = vrot.slane %v11450_v32, 1 }
 0x12e   : > { %9104 = vmatprep.subr.bf16.mxu0 %v10142_v47  ;;  %v1377_v47 = vrot.slane %v1375_v8, 1  ;;  %v11446_v23 = vcombine.low %v1059_v38, %v11430_v30  ;;  %v1092_v8 = vld [vmem:[#allocation2 + $0x9c] sm:$0xe]  ;;  %v11481_v38 = vld [vmem:[#allocation2 + $0x20] ss:$0 sps:$4 sm:$0x11]  }
 0x12f   : > { %2885 = vmatmul.mubr.bf16.gmra.mxu1 %v11331_v31  ;;  %v11408_v31 = vld [vmem:[#allocation2 + $0x98] ss:$0 sps:$4 sm:$0x11]  }
 0x130   : > { %2892 = vmatprep.mubr.bf16.mxu1 %v1347_v59  ;;  %v1392_v9 = vshll.u32 %v11408_v31, 16  ;;  %v1411_v7 = vshll.u32 %v11446_v23, 16  ;;  %v1378_v13 = vor.u32 %v1377_v47, %v1373_v52  ;;  %v3167_v52 = vld [vmem:[#allocation2 + $0x18] sm:$0xe] }
 0x131   : > { %9105 = vmatpush3.bf16.msra.mxu0 %v10143_v5  ;;  %v11438_v5 = vrot.slane %v1387_v21, 1  ;;  %v3172_v21 = vld [vmem:[#allocation2 + $0x54] sm:$0xe] }
 0x132   : > { %9106 = vmatprep.subr.bf16.mxu0 %v10148_v46  ;;  %v10162_v46 = vld [vmem:[#allocation7 + $0x188] sm:$0xff]   ;;  %v11441_v59 = vrot.slane %v1392_v9, 1  ;;  %v8364_v9 = vcombine.low %v1092_v8, %v11418_v43 }
 0x134   : > { %9715 = vmatmul.mubr.bf16.gmra.mxu0 %v1514_v54  ;;  %v1371_v54 = vsel %vm1239_vm10, %v1366_v10, %v1370_v27  ;;  %v1529_v10 = vsel %vm1496_vm9, %v1527_v1, %v1528_v60  ;;  %v11477_v27 = vrot.slane %v1411_v7, 1  ;;  %v11492_v60 = vrot.slane %v8364_v9, 1 }
 0x135   : > { %9718 = vmatprep.mubr.bf16.mxu0 %v1517_v33  ;;  %9107 = vmatpush3.bf16.msra.mxu0 %v10149_v0  ;;  %v1061_v0 = vld [vmem:[#allocation2 + $0xb4] sm:$0xf]  ;;  %v1531_v33 = vrot.slane %v11401_v2, 1  ;;  %v3120_v2 = vld [vmem:[#allocation2 + $0x1c] sm:$0xf]  ;;  %v3335_v1 = vshll.u32 %v11481_v38, 16 }
 0x136   : > { %9108 = vmatprep.subr.bf16.mxu0 %v10155_v4  ;;  %v1534_v4 = vrot.slane %v11408_v31, 1 }
 0x137   : > { %2893 = vmatmul.mubr.bf16.gmra.mxu1 %v11349_v34  ;;  %v1520_v34 = vsel %vm1496_vm9, %v1518_v11, %v1519_v25  ;;  %v1526_v25 = vsel %vm1496_vm9, %v1524_v41, %v1525_v40  ;;  %v1416_v11 = vshll.u32 %v11450_v32, 16  ;;  %v3121_v40 = vld [vmem:[#allocation2 + $0x24] sm:$0xf]  ;;  %v3122_v41 = vld [vmem:[#allocation2 + $0x28] sm:$0xf] }
 0x138   : > { %2900 = vmatprep.mubr.bf16.mxu1 %v1359_v53  ;;  %v3119_v53 = vld [vmem:[#allocation2 + $0x18] sm:$0xf] }
 0x139   : > { %9109 = vmatpush3.bf16.msra.mxu0 %v10156_v51  ;;  %v11465_v51 = vcombine.low %v1061_v0, %v11454_v50  ;;  %v11479_v44 = vcombine.low %v3119_v53, %v3120_v2  ;;  %v11485_v43 = vrot.slane %v1416_v11, 1  ;;  %v3124_v11 = vld [vmem:[#allocation2 + $0x34] sm:$0xf] }
 0x13a   : > { %9110 = vmatprep.subr.bf16.mxu0 %v10161_v22  ;;  %v1530_v22 = vrot.slane %v8362_v37, 1  ;;  %v11499_v37 = vcombine.low %v3121_v40, %v3122_v41 }
 0x13b   : > { %v1423_v47 = vshll.u32 %v11465_v51, 16 }
 0x13c   : > { %9719 = vmatmul.mubr.bf16.gmra.mxu0 %v1520_v34  ;;  %v8365_v34 = vcombine.low %v1093_v63, %v11430_v30  ;;  %v3330_v30 = vshll.u32 %v11479_v44, 16  ;;  %v1532_v7 = vsel %vm1496_vm9, %v1530_v22, %v1531_v33  ;;  %v3125_v63 = vld [vmem:[#allocation2 + $0x3c] sm:$0xf] }
 0x13d   : > { %9722 = vmatprep.mubr.bf16.mxu0 %v1523_v58  ;;  %9111 = vmatpush3.bf16.msra.mxu0 %v10162_v46  ;;  %v1383_v46 = vsel %vm1239_vm10, %v1378_v13, %v11433_v26  ;;  %v1390_v26 = vor.u32 %v11438_v5, %v1385_v49  ;;  %v11505_v0 = vrot.slane %v1423_v47, 1  ;;  %v11513_v13 = vrot.slane %v8366_v20, 1  ;;  %v3126_v20 = vld [vmem:[#allocation2 + $0x40] sm:$0xf] }
 0x13e   : > { %9112 = vmatprep.subr.bf16.mxu0 %v10168_v29  ;;  %v8495_v29 = vcombine.low %v3167_v52, %v3120_v2  ;;  %v1539_v8 = vrot.slane %v8365_v34, 1  ;;  %v3123_v2 = vld [vmem:[#allocation2 + $0x30] sm:$0xf]  ;;  %v3328_v49 = vshrl.u32 %v11479_v44, 16  ;;  %v3332_v22 = vrot.slane %v3330_v30, 1 }
 0x13f   : > { %2901 = vmatmul.mubr.bf16.gmra.mxu1 %v11363_v14  ;;  %v8363_v14 = vcombine.low %v1091_v3, %v11393_v62  ;;  %v1428_v62 = vshll.u32 %v11460_v12, 16  ;;  %v11510_v3 = vld [vmem:[#allocation2 + $0x2c] ss:$0 sps:$4 sm:$0x11]   ;;  %v3169_v52 = vld [vmem:[#allocation2 + $0x30] sm:$0xe]  ;;  %v11527_v34 = vcombine.low %v3123_v2, %v3124_v11 }
 0x140   : > { %2908 = vmatprep.mubr.bf16.mxu1 %v1371_v54  ;;  %v11516_v5 = vrot.slane %v8495_v29, 1  ;;  %v3347_v9 = vshll.u32 %v11510_v3, 16  ;;  %v11524_v47 = vrot.slane %v3335_v1, 1  ;;  %v8497_v2 = vcombine.low %v3169_v52, %v3124_v11 }
 0x141   : > { %9113 = vmatpush3.bf16.msra.mxu0 %v10169_v24  ;;  %v1533_v58 = vrot.slane %v8363_v14, 1  ;;  %v11497_v54 = vpop.f32.mrf.mxu1  ;;  %v11507_v50 = vrot.slane %v1428_v62, 1  ;;  %v3130_v24 = vld [vmem:[#allocation2 + $0x58] sm:$0xf] }
 0x142   : > { %v11540_v1 = vrot.slane %v3347_v9, 1 }
 0x143   : > { %v2525_v53 = vpop.f32.mrf.mxu1  ;;  %v1535_v33 = vsel %vm1496_vm9, %v1533_v58, %v1534_v4 }
 0x144   : > { %9723 = vmatmul.mubr.bf16.gmra.mxu0 %v1526_v25  ;;  %v8842_v25 = vpop.f32.mrf.mxu0 }
 0x145   : > { %9726 = vmatprep.mubr.bf16.mxu0 %v1529_v10  ;;  %v3342_v10 = vshll.u32 %v11499_v37, 16  ;;  %v11533_v58 = vpop.f32.mrf.mxu1 }
 0x146   : > { %v8843_v56 = vpop.f32.mrf.mxu0 }
 0x147   : > { %2909 = vmatmul.mubr.bf16.gmra.mxu1 %v11385_v42  ;;  %v8496_v42 = vcombine.low %v3168_v39, %v3122_v41  ;;  %v8844_v40 = vadd.f32 %v8843_v56, %v8842_v25  ;;  %v3170_v41 = vld [vmem:[#allocation2 + $0x3c] sm:$0xe]  ;;  %v11536_v39 = vcombine.low %v3125_v63, %v3126_v20  ;;  %v11542_v25 = vld [vmem:[#allocation2 + $0x38] ss:$0 sps:$4 sm:$0x11]   ;;  %v11555_v11 = vpop.f32.mrf.mxu1 }
 0x148   : > { %2916 = vmatprep.mubr.bf16.mxu1 %v1383_v46  ;;  %v1395_v46 = vsel %vm1239_vm10, %v1390_v26, %v11441_v59  ;;  %v8845_v4 = vpop.f32.mrf.mxu0  ;;  %v3127_v56 = vld [vmem:[#allocation2 + $0x48] sm:$0xf]  ;;  %v8498_v9 = vcombine.low %v3170_v41, %v3126_v20  ;;  %13763 = vst [vmem:[#allocation18_spill] sm:$0xff] %v11555_v11  ;;  %v3359_v62 = vshll.u32 %v11542_v25, 16  ;;  %v3129_v59 = vld [vmem:[#allocation2 + $0x54] sm:$0xf]  ;;  %v1541_v41 = vsel %vm1496_vm9, %v1539_v8, %v1540_v61 }
 0x149   : > { %v11531_v31 = vrot.slane %v8496_v42, 1  ;;  %v11538_v30 = vadd.f32 %v8844_v40, %v2525_v53  ;;  %v11547_v42 = vld [vmem:[#allocation2 + $0x44] ss:$0 sps:$4 sm:$0x11]   ;;  %v1402_v53 = vor.u32 %v11467_v28, %v1397_v6  ;;  %v3171_v40 = vld [vmem:[#allocation2 + $0x48] sm:$0xe]  ;;  %v1538_v6 = vsel %vm1496_vm9, %v11492_v60, %v1537_v18 }
 0x14a   : > { %v8846_v26 = vpop.f32.mrf.mxu0  ;;  %v3366_v14 = vshll.u32 %v11536_v39, 16  ;;  %v11565_v28 = vrot.slane %v8497_v2, 1  ;;  %v11576_v60 = vrot.slane %v8498_v9, 1  ;;  %v11579_v20 = vcombine.low %v3129_v59, %v3130_v24  ;;  %v11598_v9 = vld [vmem:[#allocation2 + $0x5c] ss:$0 sps:$4 sm:$0x11]  }
 0x14b   : > { %13761 = vst [vmem:[#allocation16_spill] sm:$0xff] %v11538_v30  ;;  %v11553_v63 = vadd.f32 %v8846_v26, %v8845_v4  ;;  %v11569_v4 = vld [vmem:[#allocation2 + $0x50] ss:$0 sps:$4 sm:$0x11]   ;;  %v3333_v26 = vor.u32 %v3332_v22, %v3328_v49  ;;  %v11587_v49 = vrot.slane %v3359_v62, 1 }
 0x14c   : > { %9727 = vmatmul.mubr.bf16.gmra.mxu0 %v1532_v7  ;;  %v11545_v7 = vrot.slane %v3342_v10, 1  ;;  %v8848_v52 = vpop.f32.mrf.mxu0  ;;  %v3354_v10 = vshll.u32 %v11527_v34, 16  ;;  %v11589_v22 = vrot.slane %v3366_v14, 1  ;;  %v3134_v14 = vld [vmem:[#allocation2 + $0x70] sm:$0xf] }
 0x14d   : > { %9730 = vmatprep.mubr.bf16.mxu0 %v1535_v33  ;;  %13762 = vst [vmem:[#allocation17_spill] sm:$0xff] %v11553_v63  ;;  %v3128_v33 = vld [vmem:[#allocation2 + $0x4c] sm:$0xf] }
 0x14e   : > { %v8849_v17 = vpop.f32.mrf.mxu0  ;;  %v11574_v29 = vcombine.low %v3127_v56, %v3128_v33  ;;  %v8499_v35 = vcombine.low %v3171_v40, %v3128_v33  ;;  %v11585_v8 = vrot.slane %v3354_v10, 1  ;;  %v1407_v56 = vsel %vm1239_vm10, %v1402_v53, %v11469_v16  ;;  %v3133_v16 = vld [vmem:[#allocation2 + $0x6c] sm:$0xf] }
 0x14f   : > { %2917 = vmatmul.mubr.bf16.gmra.mxu1 %v11399_v45  ;;  %v3371_v45 = vshll.u32 %v11547_v42, 16  ;;  %v8850_v18 = vadd.f32 %v8849_v17, %v8848_v52  ;;  %v8500_v33 = vcombine.low %v3172_v21, %v3130_v24  ;;  %v3383_v53 = vshll.u32 %v11569_v4, 16  ;;  %v3174_v2 = vld [vmem:[#allocation2 + $0x6c] sm:$0xe]  ;;  %v388_v11 = vld [vmem:[#allocation2 + $0xcc] sm:$0x1] }
 0x150   : > { %2924 = vmatprep.mubr.bf16.mxu1 %v1395_v46  ;;  %v3131_v46 = vld [vmem:[#allocation2 + $0x60] sm:$0xf]  ;;  %v11583_v32 = vpop.f32.mrf.mxu1  ;;  %v8851_v61 = vpop.f32.mrf.mxu0  ;;  %v11601_v10 = vrot.slane %v8499_v35, 1  ;;  %v3378_v62 = vshll.u32 %v11574_v29, 16  ;;  %v3390_v21 = vshll.u32 %v11579_v20, 16  ;;  %v3395_v24 = vshll.u32 %v11598_v9, 16 }
 0x151   : > { %v11591_v17 = vrot.slane %v3371_v45, 1  ;;  %v11596_v59 = vadd.f32 %v11497_v54, %v8850_v18  ;;  %v11606_v45 = vcombine.low %v3131_v46, %v11581_v48  ;;  %v13766_v18 = vrot.slane %v11460_v12, 1 }
 0x152   : > { %v8852_v52 = vpop.f32.mrf.mxu0  ;;  %v11629_v12 = vcombine.low %v3133_v16, %v3134_v14  ;;  %v11644_v63 = vrot.slane %v3395_v24, 1 }
 0x153   : > { %13764 = vst [vmem:[#allocation19_spill] sm:$0xff] %v11596_v59  ;;  %v8853_v54 = vadd.f32 %v8852_v52, %v8851_v61  ;;  %v1544_v46 = vsel %vm1496_vm9, %v11513_v13, %v13766_v18  ;;  %v2541_v61 = vpop.f32.mrf.mxu1  ;;  %v11632_v18 = vrot.slane %v3378_v62, 1 }
 0x154   : > { %9731 = vmatmul.mubr.bf16.gmra.mxu0 %v1538_v6  ;;  %v3173_v6 = vld [vmem:[#allocation2 + $0x60] sm:$0xe]  ;;  %v8854_v52 = vpop.f32.mrf.mxu0 }
 0x155   : > { %9734 = vmatprep.mubr.bf16.mxu0 %v1541_v41  ;;  %v13765_v41 = vshrl.u32 %v11446_v23, 16  ;;  %v11622_v40 = vadd.f32 %v11533_v58, %v8853_v54  ;;  %v11636_v58 = vrot.slane %v3383_v53, 1  ;;  %v8502_v54 = vcombine.low %v3174_v2, %v3134_v14  ;;  %v11640_v57 = vpop.f32.mrf.mxu1 }
 0x156   : > { %v3414_v14 = vshll.u32 %v11629_v12, 16  ;;  %v13770_v2 = vshrl.u32 %v11465_v51, 16 }
 0x157   : > { %2925 = vmatmul.mubr.bf16.gmra.mxu1 %v11406_v55  ;;  %v1414_v35 = vor.u32 %v11477_v27, %v13765_v41  ;;  %v3338_v55 = vsel %vm1239_vm10, %v3333_v26, %v11524_v47  ;;  %13767 = vst [vmem:[#allocation20_spill] sm:$0xff] %v11622_v40  ;;  %v11627_v27 = vld [vmem:[#allocation2 + $0x68] ss:$0 sps:$4 sm:$0x11]   ;;  %v8855_v41 = vpop.f32.mrf.mxu0  ;;  %v8501_v47 = vcombine.low %v3173_v6, %v11581_v48  ;;  %v3402_v26 = vshll.u32 %v11606_v45, 16 }
 0x158   : > { %2932 = vmatprep.mubr.bf16.mxu1 %v1407_v56  ;;  %v11624_v56 = vrot.slane %v8500_v33, 1  ;;  %v8856_v59 = vadd.f32 %v8855_v41, %v8854_v52  ;;  %v11638_v33 = vld [vmem:[#allocation2 + $0x74] ss:$0 sps:$4 sm:$0x11]   ;;  %v11642_v40 = vrot.slane %v3390_v21, 1  ;;  %v3407_v48 = vshll.u32 %v11627_v27, 16 }
 0x159   : > { %v8857_v16 = vpop.f32.mrf.mxu0  ;;  %v1419_v6 = vsel %vm1239_vm10, %v1414_v35, %v11485_v43  ;;  %v3136_v52 = vld [vmem:[#allocation2 + $0x7c] sm:$0xf]  ;;  %v13769_v21 = vshrl.u32 %v11499_v37, 16  ;;  %v11657_v62 = vrot.slane %v8501_v47, 1  ;;  %v11659_v13 = vrot.slane %v3402_v26, 1  ;;  %v2544_v47 = vpop.f32.mrf.mxu1 }
 0x15a   : > { %v11650_v53 = vadd.f32 %v8856_v59, %v2541_v61  ;;  %v444_v43 = vld [vmem:[#allocation2 + $0xd4] sm:$0x1]  ;;  %v11662_v35 = vrot.slane %v8502_v54, 1  ;;  %v11669_v26 = vrot.slane %v3407_v48, 1  ;;  %v11676_v54 = vrot.slane %v3414_v14, 1 }
 0x15b   : > { %v3345_v24 = vor.u32 %v11545_v7, %v13769_v21  ;;  %v8858_v41 = vpop.f32.mrf.mxu0  ;;  %v1426_v7 = vor.u32 %v11505_v0, %v13770_v2  ;;  %v3175_v48 = vld [vmem:[#allocation2 + $0x78] sm:$0xe] }
 0x15c   : > { %9735 = vmatmul.mubr.bf16.gmra.mxu0 %v1544_v46  ;;  %13768 = vst [vmem:[#allocation21_spill] sm:$0xff] %v11650_v53  ;;  %v3135_v46 = vld [vmem:[#allocation2 + $0x78] sm:$0xf]  ;;  %v8859_v59 = vadd.f32 %v8858_v41, %v8857_v16  ;;  %v3419_v53 = vshll.u32 %v11638_v33, 16  ;;  %v389_v16 = vsel %vm10820_vm2, 0, %v388_v11 }
 0x15d   : > { %3872 = vmatprep.mubr.bf16.mxu0 %v3338_v55  ;;  %v8860_v21 = vpop.f32.mrf.mxu0  ;;  %v11672_v30 = vcombine.low %v3135_v46, %v3136_v52  ;;  %v3350_v0 = vsel %vm1239_vm10, %v3345_v24, %v11540_v1  ;;  %390 = vst [vmem:[#allocation2 + $0xcc] sm:$0x1] %v389_v16  ;;  %v11684_v46 = vld [vmem:[#allocation2 + $0x88] sm:$0xf]  ;;  %v1431_v1 = vsel %vm1239_vm10, %v1426_v7, %v11507_v50 }
 0x15e   : > { %v11689_v11 = vld [vmem:[#allocation2 + $0x80] ss:$0 sps:$4 sm:$0x11]   ;;  %v8503_v16 = vcombine.low %v3175_v48, %v3136_v52  ;;  %v11704_v55 = vld [vmem:[#allocation2 + $0x8c] ss:$0 sps:$4 sm:$0x11]  }
 0x15f   : > { %2933 = vmatmul.mubr.bf16.gmra.mxu1 %v11428_v36  ;;  %v11674_v36 = vadd.f32 %v8859_v59, %v2544_v47  ;;  %v8861_v2 = vpop.f32.mrf.mxu0  ;;  %v3176_v59 = vld [vmem:[#allocation2 + $0x84] sm:$0xe]  ;;  %v11687_v47 = vrot.slane %v3419_v53, 1  ;;  %v13772_v53 = vshrl.u32 %v11527_v34, 16 }
 0x160   : > { %2940 = vmatprep.mubr.bf16.mxu1 %v1419_v6  ;;  %v445_v6 = vsel %vm10826_vm4, 0, %v444_v43  ;;  %v8862_v41 = vadd.f32 %v8861_v2, %v8860_v21  ;;  %v3426_v43 = vshll.u32 %v11672_v30, 16  ;;  %v11711_v52 = vrot.slane %v8503_v16, 1 }
 0x161   : > { %446 = vst [vmem:[#allocation2 + $0xd4] sm:$0x1] %v445_v6  ;;  %v8863_v14 = vpop.f32.mrf.mxu0  ;;  %v11699_v6 = vld [vmem:[#allocation2 + $0x94] sm:$0xf]  ;;  %v3357_v2 = vor.u32 %v11585_v8, %v13772_v53 }
 0x162   : > { %v11697_v21 = vadd.f32 %v11583_v32, %v8862_v41 }
 0x163   : > { %v11694_v24 = vpop.f32.mrf.mxu1  ;;  %v8864_v61 = vpop.f32.mrf.mxu0  ;;  %v3362_v8 = vsel %vm1239_vm10, %v3357_v2, %v11587_v49  ;;  %v13773_v49 = vrot.slane %v11481_v38, 1 }
 0x164   : > { %3873 = vmatmul.mubr.bf16.vlgmr.msra.gmra.mxu0 %v11479_v44  ;;  %13771 = vst [vmem:[#allocation22_spill] sm:$0xff] %v11697_v21  ;;  %v3177_v44 = vld [vmem:[#allocation2 + $0x90] sm:$0xe]  ;;  %v8865_v7 = vadd.f32 %v8864_v61, %v8863_v14 }
 0x165   : > { %3880 = vmatprep.mubr.bf16.mxu0 %v3350_v0  ;;  %v2557_v50 = vpop.f32.mrf.mxu1  ;;  %v8504_v0 = vcombine.low %v3176_v59, %v11684_v46  ;;  %v8505_v61 = vcombine.low %v3177_v44, %v11699_v6  ;;  %v3585_v2 = vsel %vm1496_vm9, %v11516_v5, %v13773_v49  ;;  %v13774_v44 = vshrl.u32 %v11536_v39, 16 }
 0x166   : > { %v11709_v32 = vadd.f32 %v11640_v57, %v8865_v7 }
 0x167   : > { %2941 = vmatmul.mubr.bf16.gmra.mxu1 %v11446_v23  ;;  %v9669_v41 = vpop.f32.mrf.mxu1  ;;  %v8866_v53 = vpop.f32.mrf.mxu0  ;;  %v11717_v23 = vld [vmem:[#allocation2 + $0x98] ss:$0 sps:$4 sm:$0x11]   ;;  %v11721_v57 = vrot.slane %v8504_v0, 1  ;;  %v11734_v21 = vrot.slane %v8505_v61, 1 }
 0x168   : > { %2948 = vmatprep.mubr.bf16.mxu1 %v1431_v1  ;;  %v11724_v1 = vrot.slane %v3426_v43, 1  ;;  %v3614_v43 = vrot.slane %v11717_v23, 1 }
 0x169   : > { %v8867_v59 = vpop.f32.mrf.mxu0  ;;  %v2560_v48 = vpop.f32.mrf.mxu1 }
 0x16a   : > { %v8868_v7 = vadd.f32 %v8867_v59, %v8866_v53 }
 0x16b   : > { %v8869_v0 = vpop.f32.mrf.mxu0 }
 0x16c   : > { %3881 = vmatmul.mubr.bf16.gmra.mxu0 %v11499_v37  ;;  %v3369_v37 = vor.u32 %v11589_v22, %v13774_v44  ;;  %v11738_v16 = vadd.f32 %v8868_v7, %v2557_v50  ;;  %v13775_v22 = vrot.slane %v11510_v3, 1 }
 0x16d   : > { %3888 = vmatprep.mubr.bf16.mxu0 %v3362_v8  ;;  %v8870_v38 = vpop.f32.mrf.mxu0 }
 0x16e   : > { %v8871_v14 = vadd.f32 %v8870_v38, %v8869_v0  ;;  %v3374_v5 = vsel %vm1239_vm10, %v3369_v37, %v11591_v17  ;;  %v3588_v61 = vsel %vm1496_vm9, %v11531_v31, %v13775_v22  ;;  %v13777_v17 = vshrl.u32 %v11574_v29, 16 }
 0x16f   : > { %2949 = vmatmul.mubr.bf16.gmra.mxu1 %v11465_v51  ;;  %v13776_v51 = vrot.slane %v11542_v25, 1  ;;  %v13778_v25 = vrot.slane %v11547_v42, 1 }
 0x170   : > { %9754 = vmatprep.mubr.bf16.mxu1 %v3585_v2  ;;  %v11744_v53 = vadd.f32 %v8871_v14, %v2560_v48  ;;  %v3381_v49 = vor.u32 %v11632_v18, %v13777_v17  ;;  %v13779_v18 = vrot.slane %v11569_v4, 1  ;;  %v3137_v17 = vld [vmem:[#allocation2 + $0x84] sm:$0xf] }
 0x171   : > { %v11742_v8 = vpop.f32.mrf.mxu1  ;;  %v3591_v50 = vsel %vm1496_vm9, %v11565_v28, %v13776_v51  ;;  %v3594_v28 = vsel %vm1496_vm9, %v11576_v60, %v13778_v25  ;;  %v11822_v25 = vcombine.low %v3137_v17, %v11684_v46 }
 0x172   : > { %v3386_v31 = vsel %vm1239_vm10, %v3381_v49, %v11636_v58  ;;  %v3597_v7 = vsel %vm1496_vm9, %v11601_v10, %v13779_v18  ;;  %v13780_v58 = vshrl.u32 %v11579_v20, 16  ;;  %v13781_v10 = vrot.slane %v11598_v9, 1 }
 0x173   : > { %v2573_v59 = vpop.f32.mrf.mxu1 }
 0x174   : > { %3889 = vmatmul.mubr.bf16.gmra.mxu0 %v11527_v34  ;;  %v3393_v42 = vor.u32 %v11642_v40, %v13780_v58  ;;  %v13782_v40 = vrot.slane %v11627_v27, 1  ;;  %v13784_v27 = vrot.slane %v11638_v33, 1  ;;  %v11817_v33 = vld [vmem:[#allocation2 + $0xa0] sm:$0xf]  ;;  %v3438_v58 = vshll.u32 %v11822_v25, 16 }
 0x175   : > { %3896 = vmatprep.mubr.bf16.mxu0 %v3374_v5  ;;  %v11758_v3 = vpop.f32.mrf.mxu1 }
 0x176   : > { %v3398_v4 = vsel %vm1239_vm10, %v3393_v42, %v11644_v63  ;;  %v3603_v22 = vsel %vm1496_vm9, %v11657_v62, %v13782_v40  ;;  %v3606_v62 = vsel %vm1496_vm9, %v11662_v35, %v13784_v27  ;;  %v3178_v35 = vld [vmem:[#allocation2 + $0x9c] sm:$0xe] }
 0x177   : > { %9755 = vmatmul.mubr.bf16.vlgmr.msra.gmra.mxu1 %v3588_v61  ;;  %v8872_v48 = vpop.f32.mrf.mxu0  ;;  %v2576_v44 = vpop.f32.mrf.mxu1  ;;  %v8506_v42 = vcombine.low %v3178_v35, %v11817_v33 }
 0x178   : > { %9758 = vmatprep.mubr.bf16.mxu1 %v3591_v50 }
 0x179   : > { %v8873_v34 = vpop.f32.mrf.mxu0 }
 0x17a   : > { %v8874_v14 = vadd.f32 %v8873_v34, %v8872_v48 }
 0x17b   : > { %v8875_v2 = vpop.f32.mrf.mxu0 }
 0x17c   : > { %3897 = vmatmul.mubr.bf16.gmra.mxu0 %v11536_v39  ;;  %v11772_v37 = vadd.f32 %v11694_v24, %v8874_v14  ;;  %v3600_v24 = vsel %vm1496_vm9, %v11624_v56, %v13781_v10  ;;  %v13786_v14 = vshrl.u32 %v11629_v12, 16 }
 0x17d   : > { %3904 = vmatprep.mubr.bf16.mxu0 %v3386_v31  ;;  %v8876_v0 = vpop.f32.mrf.mxu0  ;;  %v13785_v31 = vrot.slane %v11689_v11, 1 }
 0x17e   : > { %v8877_v60 = vadd.f32 %v8876_v0, %v8875_v2  ;;  %v3179_v2 = vld [vmem:[#allocation2 + $0xa8] sm:$0xe] }
 0x17f   : > { %9759 = vmatmul.mubr.bf16.gmra.mxu1 %v3594_v28  ;;  %v11824_v28 = vld [vmem:[#allocation2 + $0xac] sm:$0xf] }
 0x180   : > { %9762 = vmatprep.mubr.bf16.mxu1 %v3597_v7  ;;  %v11777_v39 = vpop.f32.mrf.mxu1  ;;  %v11779_v38 = vadd.f32 %v9669_v41, %v8877_v60  ;;  %v13783_v41 = vshrl.u32 %v11606_v45, 16  ;;  %v11830_v7 = vld [vmem:[#allocation2 + $0xa4] ss:$0 sps:$4 sm:$0x11]  }
 0x181   : > { %v11845_v60 = vld [vmem:[#allocation2 + $0xb0] ss:$0 sps:$4 sm:$0x11]  }
 0x182   : > { %v11788_v5 = vpop.f32.mrf.mxu1  ;;  %v3405_v61 = vor.u32 %v11659_v13, %v13783_v41  ;;  %v3436_v41 = vshrl.u32 %v11822_v25, 16 }
 0x184   : > { %3905 = vmatmul.mubr.bf16.gmra.mxu0 %v11574_v29  ;;  %v11797_v9 = vpop.f32.mrf.mxu1  ;;  %v3410_v29 = vsel %vm1239_vm10, %v3405_v61, %v11669_v26  ;;  %v3609_v26 = vsel %vm1496_vm9, %v11711_v52, %v13785_v31  ;;  %v3139_v61 = vld [vmem:[#allocation2 + $0x90] sm:$0xf]  ;;  %v11868_v31 = vld [vmem:[#allocation2 + $0xc4] sm:$0xf] }
 0x185   : > { %3912 = vmatprep.mubr.bf16.mxu0 %v3398_v4  ;;  %v13788_v4 = vshrl.u32 %v11672_v30, 16 }
 0x186   : > { %v11808_v49 = vpop.f32.mrf.mxu1 }
 0x187   : > { %9763 = vmatmul.mubr.bf16.gmra.mxu1 %v3600_v24  ;;  %v8878_v63 = vpop.f32.mrf.mxu0  ;;  %v3429_v10 = vor.u32 %v11724_v1, %v13788_v4  ;;  %v3620_v1 = vrot.slane %v11845_v60, 1 }
 0x188   : > { %9766 = vmatprep.mubr.bf16.mxu1 %v3603_v22 }
 0x189   : > { %v8879_v56 = vpop.f32.mrf.mxu0 }
 0x18a   : > { %v8880_v51 = vadd.f32 %v8879_v56, %v8878_v63  ;;  %v3617_v56 = vrot.slane %v11830_v7, 1 }
 0x18b   : > { %v8881_v50 = vpop.f32.mrf.mxu0 }
 0x18c   : > { %3913 = vmatmul.mubr.bf16.gmra.mxu0 %v11579_v20  ;;  %v11806_v13 = vadd.f32 %v8880_v51, %v2573_v59  ;;  %v3417_v20 = vor.u32 %v11676_v54, %v13786_v14 }
 0x18d   : > { %3920 = vmatprep.mubr.bf16.mxu0 %v3410_v29  ;;  %v8882_v48 = vpop.f32.mrf.mxu0 }
 0x18e   : > { %v8883_v34 = vadd.f32 %v8882_v48, %v8881_v50  ;;  %v3422_v52 = vsel %vm1239_vm10, %v3417_v20, %v11687_v47  ;;  %v3615_v47 = vsel %vm1496_vm9, %v11734_v21, %v3614_v43  ;;  %v3440_v21 = vrot.slane %v3438_v58, 1  ;;  %v11858_v50 = vld [vmem:[#allocation2 + $0xb8] sm:$0xf] }
 0x18f   : > { %9767 = vmatmul.mubr.bf16.gmra.mxu1 %v3606_v62  ;;  %v3616_v43 = vrot.slane %v8506_v42, 1  ;;  %v3443_v62 = vshll.u32 %v11704_v55, 16  ;;  %v11866_v48 = vcombine.low %v3139_v61, %v11699_v6  ;;  %v11878_v6 = vld [vmem:[#allocation2 + $0xc8] ss:$0 sps:$4 sm:$0x11]  }
 0x190   : > { %v11819_v59 = vadd.f32 %v8883_v34, %v2576_v44  ;;  %9770 = vmatprep.mubr.bf16.mxu1 %v3609_v26  ;;  %v13787_v44 = vrot.slane %v11704_v55, 1  ;;  %v3181_v26 = vld [vmem:[#allocation2 + $0xc0] sm:$0xe] }
 0x191   : > { %v11826_v18 = vpop.f32.mrf.mxu1  ;;  %v3618_v35 = vsel %vm1496_vm9, %v3616_v43, %v3617_v56  ;;  %v3445_v58 = vrot.slane %v3443_v62, 1  ;;  %v3450_v42 = vshll.u32 %v11866_v48, 16  ;;  %v11901_v56 = vld [vmem:[#allocation2 + $0xd4] ss:$0 sps:$4 sm:$0x11]  }
 0x192   : > { %v3612_v46 = vsel %vm1496_vm9, %v11721_v57, %v13787_v44  ;;  %v13789_v57 = vshll.u32 %v11689_v11, 16  ;;  %v3180_v11 = vld [vmem:[#allocation2 + $0xb4] sm:$0xe] }
 0x193   : > { %v11832_v54 = vpop.f32.mrf.mxu1  ;;  %v3452_v61 = vrot.slane %v3450_v42, 1 }
 0x194   : > { %3921 = vmatmul.mubr.bf16.gmra.mxu0 %v11606_v45  ;;  %v8507_v45 = vcombine.low %v3179_v2, %v11824_v28  ;;  %v3433_v24 = vrot.slane %v13789_v57, 1  ;;  %v8508_v2 = vcombine.low %v3180_v11, %v11858_v50  ;;  %v3626_v57 = vrot.slane %v11878_v6, 1 }
 0x195   : > { %3928 = vmatprep.mubr.bf16.mxu0 %v3422_v52  ;;  %v8884_v0 = vpop.f32.mrf.mxu0  ;;  %v11853_v40 = vpop.f32.mrf.mxu1  ;;  %v8509_v52 = vcombine.low %v3181_v26, %v11868_v31  ;;  %v10219_v26 = vld [vmem:[#allocation9 + $0xf8] sm:$0xff]  }
 0x196   : > { %v3619_v51 = vrot.slane %v8507_v45, 1  ;;  %v3434_v27 = vsel %vm1239_vm10, %v3429_v10, %v3433_v24  ;;  %v3182_v24 = vld [vmem:[#allocation2 + $0xcc] sm:$0xe] }
 0x197   : > { %v8885_v22 = vpop.f32.mrf.mxu0  ;;  %9771 = vmatmul.mubr.bf16.gmra.mxu1 %v3612_v46  ;;  %v11870_v34 = vpop.f32.mrf.mxu1  ;;  %v3441_v46 = vor.u32 %v3440_v21, %v3436_v41  ;;  %v3625_v10 = vrot.slane %v8509_v52, 1  ;;  %v3448_v41 = vshrl.u32 %v11866_v48, 16  ;;  %v3629_v52 = vrot.slane %v11901_v56, 1 }
 0x198   : > { %v8886_v63 = vadd.f32 %v8885_v22, %v8884_v0  ;;  %9774 = vmatprep.mubr.bf16.mxu1 %v3615_v47  ;;  %v3621_v55 = vsel %vm1496_vm9, %v3619_v51, %v3620_v1  ;;  %v3622_v47 = vrot.slane %v8508_v2, 1 }
 0x199   : > { %v8887_v29 = vpop.f32.mrf.mxu0  ;;  %v3446_v22 = vsel %vm1239_vm10, %v3441_v46, %v3445_v58  ;;  %v3627_v51 = vsel %vm1496_vm9, %v3625_v10, %v3626_v57  ;;  %v3453_v11 = vor.u32 %v3452_v61, %v3448_v41 }
 0x19a   : > { %v11861_v17 = vadd.f32 %v11742_v8, %v8886_v63  ;;  %v11874_v8 = vld [vmem:[#allocation2 + $0xbc] ss:$0 sps:$4 sm:$0x11]   ;;  %v3455_v63 = vshll.u32 %v11717_v23, 16  ;;  %v10218_v23 = vld [vmem:[#allocation9 + $0x138] sm:$0xff]  }
 0x19b   : > { %v8888_v14 = vpop.f32.mrf.mxu0  ;;  %v3623_v45 = vrot.slane %v11874_v8, 1  ;;  %9234 = vmatprep.subr.bf16.mxu1 %v10218_v23 }
 0x19c   : > { %3929 = vmatmul.mubr.bf16.gmra.mxu0 %v11629_v12  ;;  %v8889_v20 = vadd.f32 %v8888_v14, %v8887_v29  ;;  %v3141_v12 = vld [vmem:[#allocation2 + $0x9c] sm:$0xf]  ;;  %9235 = vmatpush3.bf16.msra.mxu1 %v10219_v26 }
 0x19d   : > { %3936 = vmatprep.mubr.bf16.mxu0 %v3434_v27  ;;  %v11889_v4 = vcombine.low %v3141_v12, %v11817_v33  ;;  %v3624_v33 = vsel %vm1496_vm9, %v3622_v47, %v3623_v45  ;;  %v3457_v27 = vrot.slane %v3455_v63, 1  ;;  %v3467_v45 = vshll.u32 %v11830_v7, 16 }
 0x19e   : > { %v11882_v44 = vadd.f32 %v11758_v3, %v8889_v20  ;;  %v11892_v3 = vld [vmem:[#allocation2 + $0xd0] sm:$0xf] }
 0x19f   : > { %9775 = vmatmul.mubr.bf16.gmra.mxu1 %v3618_v35  ;;  %v8510_v29 = vcombine.low %v3182_v24, %v11892_v3  ;;  %v3462_v62 = vshll.u32 %v11889_v4, 16  ;;  %v10220_v35 = vld [vmem:[#allocation9 + $0x178] sm:$0xff]   ;;  %v3460_v58 = vshrl.u32 %v11889_v4, 16  ;;  %v3458_v42 = vsel %vm1239_vm10, %v3453_v11, %v3457_v27 }
 0x1a0   : > { %v11885_v0 = vpop.f32.mrf.mxu1  ;;  %9778 = vmatprep.mubr.bf16.mxu1 %v3621_v55  ;;  %9786 = vmatprep.subr.bf16.mxu0 %v10220_v35  ;;  %v3469_v63 = vrot.slane %v3467_v45, 1 }
 0x1a1   : > { %v3628_v55 = vrot.slane %v8510_v29, 1  ;;  %v3464_v47 = vrot.slane %v3462_v62, 1  ;;  %9787 = vmatpush3.bf16.msra.mxu0 %v10220_v35 }
 0x1a2   : > { %v11897_v21 = vpop.f32.mrf.mxu1 }
 0x1a3   : > { %v3465_v61 = vor.u32 %v3464_v47, %v3460_v58  ;;  %v3147_v47 = vld [vmem:[#allocation2 + $0xc0] sm:$0xf] }
 0x1a4   : > { %v8890_v43 = vpop.f32.mrf.mxu0  ;;  %3937 = vmatmul.mubr.bf16.gmra.mxu0 %v11672_v30  ;;  %v11906_v14 = vpop.f32.mrf.mxu1  ;;  %v3143_v30 = vld [vmem:[#allocation2 + $0xa8] sm:$0xf] }
 0x1a5   : > { %3944 = vmatprep.mubr.bf16.mxu0 %v3446_v22  ;;  %v11916_v10 = vcombine.low %v3143_v30, %v11824_v28  ;;  %v3630_v22 = vsel %vm1496_vm9, %v3628_v55, %v3629_v52  ;;  %v10222_v28 = vld [vmem:[#allocation9 + $0xf0] sm:$0xff]   ;;  %v3470_v23 = vsel %vm1239_vm10, %v3465_v61, %v3469_v63  ;;  %v3479_v30 = vshll.u32 %v11845_v60, 16 }
 0x1a6   : > { %v8891_v1 = vpop.f32.mrf.mxu0  ;;  %v11918_v57 = vpop.f32.mrf.mxu1  ;;  %v11952_v61 = vcombine.low %v3147_v47, %v11868_v31 }
 0x1a7   : > { %v8892_v20 = vadd.f32 %v8891_v1, %v8890_v43  ;;  %9779 = vmatmul.mubr.bf16.gmra.mxu1 %v3624_v33  ;;  %v3145_v43 = vld [vmem:[#allocation2 + $0xb4] sm:$0xf]  ;;  %v3474_v7 = vshll.u32 %v11916_v10, 16  ;;  %v10221_v33 = vld [vmem:[#allocation9 + $0x130] sm:$0xff]   ;;  %v3472_v26 = vshrl.u32 %v11916_v10, 16 }
 0x1a8   : > { %v8893_v2 = vpop.f32.mrf.mxu0  ;;  %9782 = vmatprep.mubr.bf16.mxu1 %v3627_v51  ;;  %9236 = vmatprep.subr.bf16.mxu1 %v10221_v33  ;;  %v11933_v27 = vcombine.low %v3145_v43, %v11858_v50  ;;  %v3491_v33 = vshll.u32 %v11874_v8, 16  ;;  %v3498_v8 = vshll.u32 %v11952_v61, 16 }
 0x1a9   : > { %v11910_v46 = vadd.f32 %v8892_v20, %v11788_v5  ;;  %9237 = vmatpush3.bf16.msra.mxu1 %v10222_v28  ;;  %v3476_v20 = vrot.slane %v3474_v7, 1  ;;  %v10223_v28 = vld [vmem:[#allocation9 + $0x128] sm:$0xff]  }
 0x1aa   : > { %v8894_v12 = vpop.f32.mrf.mxu0  ;;  %9238 = vmatprep.subr.bf16.mxu1 %v10223_v28  ;;  %v3496_v28 = vshrl.u32 %v11952_v61, 16 }
 0x1ab   : > { %v11920_v24 = vadd.f32 %v8894_v12, %v8893_v2  ;;  %v3477_v58 = vor.u32 %v3476_v20, %v3472_v26  ;;  %v3481_v12 = vrot.slane %v3479_v30, 1  ;;  %v13790_v20 = vld [vmem:[#allocation16_spill] sm:$0xff] }
 0x1ac   : > { %v8896_v5 = vpop.f32.mrf.mxu0  ;;  %3945 = vmatmul.mubr.bf16.gmra.mxu0 %v11822_v25 }
 0x1ad   : > { %3952 = vmatprep.mubr.bf16.mxu0 %v3458_v42  ;;  %v3486_v42 = vshll.u32 %v11933_v27, 16  ;;  %v3482_v43 = vsel %vm1239_vm10, %v3477_v58, %v3481_v12 }
 0x1ae   : > { %v8897_v41 = vpop.f32.mrf.mxu0 }
 0x1af   : > { %v11925_v29 = vpop.f32.mrf.mxu1  ;;  %v8898_v51 = vadd.f32 %v8897_v41, %v8896_v5  ;;  %9783 = vmatmul.mubr.bf16.gmra.mxu1 %v3630_v22  ;;  %v3488_v7 = vrot.slane %v3486_v42, 1 }
 0x1b0   : > { %v8899_v1 = vpop.f32.mrf.mxu0 }
 0x1b1   : > { %v11927_v11 = vpop.f32.mrf.mxu1  ;;  %v11930_v25 = vadd.f32 %v11777_v39, %v8898_v51  ;;  %v10224_v51 = vld [vmem:[#allocation9 + $0xe8] sm:$0xff]  }
 0x1b2   : > { %v8900_v62 = vpop.f32.mrf.mxu0  ;;  %9239 = vmatpush3.bf16.msra.mxu1 %v10224_v51  ;;  %v3500_v51 = vrot.slane %v3498_v8, 1 }
 0x1b3   : > { %v11938_v35 = vpop.f32.mrf.mxu1  ;;  %v8901_v2 = vadd.f32 %v8900_v62, %v8899_v1  ;;  %v10225_v1 = vld [vmem:[#allocation9 + $0x170] sm:$0xff]  }
 0x1b4   : > { %v8902_v55 = vpop.f32.mrf.mxu0  ;;  %3953 = vmatmul.mubr.bf16.gmra.mxu0 %v11866_v48  ;;  %v3484_v48 = vshrl.u32 %v11933_v27, 16  ;;  %9788 = vmatprep.subr.bf16.mxu0 %v10225_v1 }
 0x1b5   : > { %v11941_v39 = vpop.f32.mrf.mxu1  ;;  %v11944_v50 = vadd.f32 %v11797_v9, %v8901_v2  ;;  %3960 = vmatprep.mubr.bf16.mxu0 %v3470_v23  ;;  %9789 = vmatpush3.bf16.msra.mxu0 %v10225_v1 }
 0x1b6   : > { %v8903_v52 = vpop.f32.mrf.mxu0  ;;  %v3489_v47 = vor.u32 %v3488_v7, %v3484_v48 }
 0x1b7   : > { %v8978_v45 = vpop.f32.mrf.mxu1  ;;  %v8904_v60 = vadd.f32 %v8903_v52, %v8902_v55  ;;  %v13791_v55 = vld [vmem:[#allocation18_spill] sm:$0xff]  ;;  %v13792_v52 = vld [vmem:[#allocation17_spill] sm:$0xff] }
 0x1b8   : > { %v8905_v5 = vpop.f32.mrf.mxu0  ;;  %v2529_v58 = vadd.f32 %v13792_v52, %v13791_v55 }
 0x1b9   : > { %v8979_v22 = vpop.f32.mrf.mxu1  ;;  %v11948_v41 = vadd.f32 %v8904_v60, %v11832_v54  ;;  %v457_v54 = vld [vmem:[#allocation3 + $0xc] sm:$0x1] }
 0x1ba   : > { %v8980_v9 = vadd.f32 %v8979_v22, %v8978_v45  ;;  %v8906_v63 = vpop.f32.mrf.mxu0  ;;  %v458_v30 = vsel %vm10820_vm2, 0, %v457_v54 }
 0x1bb   : > { %v8981_v62 = vpop.f32.mrf.mxu1  ;;  %v11956_v23 = vadd.f32 %v8906_v63, %v8905_v5  ;;  %459 = vst [vmem:[#allocation3 + $0xc] sm:$0x1] %v458_v30  ;;  %v3149_v5 = vld [vmem:[#allocation2 + $0xcc] sm:$0xf]  ;;  %v13793_v30 = vld [vmem:[#allocation19_spill] sm:$0xff] }
 0x1bc   : > { %v8908_v26 = vpop.f32.mrf.mxu0  ;;  %3961 = vmatmul.mubr.bf16.gmra.mxu0 %v11889_v4  ;;  %v11960_v31 = vadd.f32 %v8980_v9, %v13790_v20  ;;  %v3493_v4 = vrot.slane %v3491_v33, 1  ;;  %v11976_v33 = vcombine.low %v3149_v5, %v11892_v3 }
 0x1bd   : > { %v8982_v2 = vpop.f32.mrf.mxu1  ;;  %3968 = vmatprep.mubr.bf16.mxu0 %v3482_v43 }
 0x1be   : > { %v8983_v12 = vadd.f32 %v8982_v2, %v8981_v62  ;;  %v8909_v42 = vpop.f32.mrf.mxu0  ;;  %v3503_v62 = vshll.u32 %v11878_v6, 16  ;;  %v3494_v7 = vsel %vm1239_vm10, %v3489_v47, %v3493_v4  ;;  %v3501_v6 = vor.u32 %v3500_v51, %v3496_v28  ;;  %v13794_v4 = vld [vmem:[#allocation20_spill] sm:$0xff] }
 0x1bf   : > { %v8984_v45 = vpop.f32.mrf.mxu1  ;;  %v8910_v60 = vadd.f32 %v8909_v42, %v8908_v26  ;;  %v3510_v3 = vshll.u32 %v11976_v33, 16  ;;  %v3508_v51 = vshrl.u32 %v11976_v33, 16 }
 0x1c0   : > { %v8911_v22 = vpop.f32.mrf.mxu0  ;;  %v11967_v9 = vadd.f32 %v8983_v12, %v2529_v58  ;;  %v3505_v55 = vrot.slane %v3503_v62, 1 }
 0x1c1   : > { %v8985_v63 = vpop.f32.mrf.mxu1  ;;  %v11970_v43 = vadd.f32 %v11826_v18, %v8910_v60  ;;  %v3512_v62 = vrot.slane %v3510_v3, 1 }
 0x1c2   : > { %v8986_v54 = vadd.f32 %v8985_v63, %v8984_v45  ;;  %v8912_v48 = vpop.f32.mrf.mxu0  ;;  %v511_v45 = vld [vmem:[#allocation3 + $0x14] sm:$0x1] }
 0x1c3   : > { %v8987_v1 = vpop.f32.mrf.mxu1  ;;  %v8913_v26 = vadd.f32 %v8912_v48, %v8911_v22  ;;  %v512_v22 = vsel %vm10826_vm4, 0, %v511_v45  ;;  %v514_v45 = vld [vmem:[#allocation3 + $0x20] sm:$0x1] }
 0x1c4   : > { %v8914_v20 = vpop.f32.mrf.mxu0  ;;  %3969 = vmatmul.mubr.bf16.gmra.mxu0 %v11916_v10  ;;  %v11980_v18 = vadd.f32 %v8986_v54, %v13793_v30  ;;  %v3515_v54 = vshll.u32 %v11901_v56, 16  ;;  %513 = vst [vmem:[#allocation3 + $0x14] sm:$0x1] %v512_v22  ;;  %v10230_v56 = vld [vmem:[#allocation9 + $0x168] sm:$0xff]   ;;  %v515_v22 = vsel %vm10826_vm4, 0, %v514_v45 }
 0x1c5   : > { %v8988_v2 = vpop.f32.mrf.mxu1  ;;  %v11983_v8 = vadd.f32 %v11853_v40, %v8913_v26  ;;  %3976 = vmatprep.mubr.bf16.mxu0 %v3494_v7  ;;  %v3506_v40 = vsel %vm1239_vm10, %v3501_v6, %v3505_v55  ;;  %v460_v26 = vld [vmem:[#allocation3 + $0x18] sm:$0x1]  ;;  %v3513_v55 = vor.u32 %v3512_v62, %v3508_v51  ;;  %9790 = vmatprep.subr.bf16.mxu0 %v10230_v56 }
 0x1c6   : > { %v8989_v52 = vadd.f32 %v8988_v2, %v8987_v1  ;;  %v8915_v58 = vpop.f32.mrf.mxu0  ;;  %v461_v30 = vsel %vm10820_vm2, 0, %v460_v26  ;;  %9791 = vmatpush3.bf16.msra.mxu0 %v10230_v56  ;;  %516 = vst [vmem:[#allocation3 + $0x20] sm:$0x1] %v515_v22 }
 0x1c7   : > { %v8990_v12 = vpop.f32.mrf.mxu1  ;;  %v8916_v42 = vadd.f32 %v8915_v58, %v8914_v20  ;;  %462 = vst [vmem:[#allocation3 + $0x18] sm:$0x1] %v461_v30  ;;  %v13796_v30 = vld [vmem:[#allocation22_spill] sm:$0xff] }
 0x1c8   : > { %v11986_v47 = vpop.f32.mrf.mxu0  ;;  %v11989_v10 = vadd.f32 %v8989_v52, %v13794_v4  ;;  %v3517_v52 = vrot.slane %v3515_v54, 1  ;;  %v10227_v4 = vld [vmem:[#allocation9 + $0xe0] sm:$0xff]  }
 0x1c9   : > { %v8991_v60 = vpop.f32.mrf.mxu1  ;;  %v11992_v5 = vadd.f32 %v8916_v42, %v11897_v21  ;;  %v13795_v21 = vld [vmem:[#allocation21_spill] sm:$0xff] }
 0x1ca   : > { %v8992_v63 = vadd.f32 %v8991_v60, %v8990_v12  ;;  %v11997_v28 = vpop.f32.mrf.mxu0  ;;  %v10226_v12 = vld [vmem:[#allocation9 + $0x120] sm:$0xff]   ;;  %v3518_v54 = vsel %vm1239_vm10, %v3513_v55, %v3517_v52 }
 0x1cb   : > { %v8993_v48 = vpop.f32.mrf.mxu1  ;;  %9240 = vmatprep.subr.bf16.mxu1 %v10226_v12 }
 0x1cc   : > { %v8920_v7 = vpop.f32.mrf.mxu0  ;;  %3977 = vmatmul.mubr.bf16.gmra.mxu0 %v11933_v27  ;;  %v12003_v1 = vadd.f32 %v8992_v63, %v13795_v21  ;;  %v10228_v63 = vld [vmem:[#allocation9 + $0x118] sm:$0xff]   ;;  %9241 = vmatpush3.bf16.msra.mxu1 %v10227_v4  ;;  %v10231_v4 = vld [vmem:[#allocation9 + $0x110] sm:$0xff]  }
 0x1cd   : > { %v8994_v20 = vpop.f32.mrf.mxu1  ;;  %3984 = vmatprep.mubr.bf16.mxu0 %v3506_v40  ;;  %9242 = vmatprep.subr.bf16.mxu1 %v10228_v63 }
 0x1ce   : > { %v8995_v2 = vadd.f32 %v8994_v20, %v8993_v48  ;;  %v8921_v6 = vpop.f32.mrf.mxu0  ;;  %v463_v48 = vld [vmem:[#allocation3 + $0x24] sm:$0x1] }
 0x1cf   : > { %v8996_v58 = vpop.f32.mrf.mxu1  ;;  %v8922_v3 = vadd.f32 %v8921_v6, %v8920_v7  ;;  %v10233_v7 = vld [vmem:[#allocation9 + $0x160] sm:$0xff]  }
 0x1d0   : > { %v8923_v42 = vpop.f32.mrf.mxu0  ;;  %v12008_v27 = vadd.f32 %v8995_v2, %v11674_v36  ;;  %v10229_v36 = vld [vmem:[#allocation9 + $0xd8] sm:$0xff]   ;;  %9792 = vmatprep.subr.bf16.mxu0 %v10233_v7 }
 0x1d1   : > { %v8997_v60 = vpop.f32.mrf.mxu1  ;;  %v12011_v40 = vadd.f32 %v11885_v0, %v8922_v3  ;;  %v464_v0 = vsel %vm10820_vm2, 0, %v463_v48  ;;  %9793 = vmatpush3.bf16.msra.mxu0 %v10233_v7  ;;  %9243 = vmatpush3.bf16.msra.mxu1 %v10229_v36  ;;  %v10236_v3 = vld [vmem:[#allocation9 + $0x158] sm:$0xff]   ;;  %v520_v7 = vld [vmem:[#allocation3 + $0x38] sm:$0x1] }
 0x1d2   : > { %v8998_v51 = vadd.f32 %v8997_v60, %v8996_v58  ;;  %v8924_v62 = vpop.f32.mrf.mxu0  ;;  %465 = vst [vmem:[#allocation3 + $0x24] sm:$0x1] %v464_v0  ;;  %v517_v58 = vld [vmem:[#allocation3 + $0x2c] sm:$0x1]  ;;  %9794 = vmatprep.subr.bf16.mxu0 %v10236_v3  ;;  %9244 = vmatprep.subr.bf16.mxu1 %v10231_v4  ;;  %v466_v48 = vld [vmem:[#allocation3 + $0x30] sm:$0x1] }
 0x1d3   : > { %v8999_v21 = vpop.f32.mrf.mxu1  ;;  %v8925_v26 = vadd.f32 %v8924_v62, %v8923_v42  ;;  %v10234_v0 = vld [vmem:[#allocation9 + $0x108] sm:$0xff]   ;;  %v10239_v4 = vld [vmem:[#allocation9 + $0xc0] sm:$0xff]  }
 0x1d4   : > { %v8926_v20 = vpop.f32.mrf.mxu0  ;;  %3985 = vmatmul.mubr.bf16.gmra.mxu0 %v11952_v61  ;;  %v12020_v2 = vadd.f32 %v8998_v51, %v13796_v30  ;;  %v518_v61 = vsel %vm10826_vm4, 0, %v517_v58 }
 0x1d5   : > { %v9000_v6 = vpop.f32.mrf.mxu1  ;;  %v12023_v55 = vadd.f32 %v11906_v14, %v8925_v26  ;;  %3992 = vmatprep.mubr.bf16.mxu0 %v3518_v54  ;;  %519 = vst [vmem:[#allocation3 + $0x2c] sm:$0x1] %v518_v61  ;;  %v10232_v14 = vld [vmem:[#allocation9 + $0xd0] sm:$0xff]   ;;  %9795 = vmatpush3.bf16.msra.mxu0 %v10236_v3  ;;  %v521_v26 = vsel %vm10826_vm4, 0, %v520_v7 }
 0x1d6   : > { %v9001_v52 = vadd.f32 %v9000_v6, %v8999_v21  ;;  %v8927_v56 = vpop.f32.mrf.mxu0  ;;  %9245 = vmatpush3.bf16.msra.mxu1 %v10232_v14  ;;  %v10237_v54 = vld [vmem:[#allocation9 + $0x150] sm:$0xff]   ;;  %522 = vst [vmem:[#allocation3 + $0x38] sm:$0x1] %v521_v26 }
 0x1d7   : > { %v9002_v12 = vpop.f32.mrf.mxu1  ;;  %v8928_v42 = vadd.f32 %v8927_v56, %v8926_v20  ;;  %v10235_v20 = vld [vmem:[#allocation9 + $0xc8] sm:$0xff]   ;;  %9796 = vmatprep.subr.bf16.mxu0 %v10237_v54  ;;  %9246 = vmatprep.subr.bf16.mxu1 %v10234_v0 }
 0x1d8   : > { %v12027_v45 = vpop.f32.mrf.mxu0  ;;  %v12030_v60 = vadd.f32 %v9001_v52, %v11709_v32  ;;  %v10240_v56 = vld [vmem:[#allocation9 + $0x148] sm:$0xff]  }
 0x1d9   : > { %v9003_v22 = vpop.f32.mrf.mxu1  ;;  %v12033_v63 = vadd.f32 %v8928_v42, %v11927_v11  ;;  %v467_v11 = vsel %vm10820_vm2, 0, %v466_v48  ;;  %9797 = vmatpush3.bf16.msra.mxu0 %v10237_v54 }
 0x1da   : > { %v9004_v51 = vadd.f32 %v9003_v22, %v9002_v12  ;;  %v12035_v62 = vpop.f32.mrf.mxu0  ;;  %468 = vst [vmem:[#allocation3 + $0x30] sm:$0x1] %v467_v11  ;;  %9247 = vmatpush3.bf16.msra.mxu1 %v10235_v20  ;;  %v10238_v12 = vld [vmem:[#allocation9 + $0x100] sm:$0xff]   ;;  %9798 = vmatprep.subr.bf16.mxu0 %v10240_v56 }
 0x1db   : > { %v9005_v36 = vpop.f32.mrf.mxu1  ;;  %9248 = vmatprep.subr.bf16.mxu1 %v10238_v12  ;;  %v10244_v11 = vld [vmem:[#allocation9 + $0x140] sm:$0xff]  }
 0x1dc   : > { %v8932_v21 = vpop.f32.mrf.mxu0  ;;  %3993 = vmatmul.mubr.bf16.gmra.mxu0 %v11976_v33  ;;  %v12039_v32 = vadd.f32 %v9004_v51, %v11738_v16  ;;  %v469_v33 = vld [vmem:[#allocation3 + $0x3c] sm:$0x1] }
 0x1dd   : > { %v9006_v30 = vpop.f32.mrf.mxu1  ;;  %v470_v3 = vsel %vm10820_vm2, 0, %v469_v33  ;;  %9799 = vmatpush3.bf16.msra.mxu0 %v10240_v56 }
 0x1de   : > { %v9007_v6 = vadd.f32 %v9006_v30, %v9005_v36  ;;  %v8933_v52 = vpop.f32.mrf.mxu0  ;;  %471 = vst [vmem:[#allocation3 + $0x3c] sm:$0x1] %v470_v3  ;;  %9249 = vmatpush3.bf16.msra.mxu1 %v10239_v4  ;;  %v523_v30 = vld [vmem:[#allocation3 + $0x44] sm:$0x1]  ;;  %9800 = vmatprep.subr.bf16.mxu0 %v10244_v11  ;;  %v526_v3 = vld [vmem:[#allocation3 + $0x50] sm:$0x1] }
 0x1df   : > { %v9008_v16 = vpop.f32.mrf.mxu1  ;;  %v8934_v58 = vadd.f32 %v8933_v52, %v8932_v21  ;;  %v524_v33 = vsel %vm10826_vm4, 0, %v523_v30 }
 0x1e0   : > { %v8935_v42 = vpop.f32.mrf.mxu0  ;;  %v12048_v61 = vadd.f32 %v9007_v6, %v11744_v53  ;;  %525 = vst [vmem:[#allocation3 + $0x44] sm:$0x1] %v524_v33 }
 0x1e1   : > { %v9009_v14 = vpop.f32.mrf.mxu1  ;;  %v12051_v22 = vadd.f32 %v11925_v29, %v8934_v58  ;;  %9801 = vmatpush3.bf16.msra.mxu0 %v10244_v11 }
 0x1e2   : > { %v9010_v51 = vadd.f32 %v9009_v14, %v9008_v16  ;;  %v8936_v54 = vpop.f32.mrf.mxu0 }
 0x1e3   : > { %v9011_v36 = vpop.f32.mrf.mxu1  ;;  %v8937_v48 = vadd.f32 %v8936_v54, %v8935_v42  ;;  %v527_v42 = vsel %vm10826_vm4, 0, %v526_v3 }
 0x1e4   : > { %v9708_v7 = vpop.f32.mrf.mxu0  ;;  %v2871_v21 = vadd.f32 %v9010_v51, %v11772_v37  ;;  %528 = vst [vmem:[#allocation3 + $0x50] sm:$0x1] %v527_v42 }
 0x1e5   : > { %v9012_v53 = vpop.f32.mrf.mxu1  ;;  %v12055_v26 = vadd.f32 %v11938_v35, %v8937_v48  ;;  %v12058_v0 = vadd.f32 %v9708_v7, %v11980_v18  ;;  %v472_v35 = vld [vmem:[#allocation3 + $0x48] sm:$0x1] }
 0x1e6   : > { %v9013_v29 = vadd.f32 %v9012_v53, %v9011_v36  ;;  %v2991_v20 = vpop.f32.mrf.mxu0  ;;  %v473_v58 = vsel %vm10820_vm2, 0, %v472_v35 }
 0x1e7   : > { %v9014_v6 = vpop.f32.mrf.mxu1  ;;  %v12061_v52 = vadd.f32 %v2991_v20, %v11960_v31  ;;  %474 = vst [vmem:[#allocation3 + $0x48] sm:$0x1] %v473_v58  ;;  %v475_v20 = vld [vmem:[#allocation3 + $0x54] sm:$0x1] }
 0x1e8   : > { %v9709_v37 = vpop.f32.mrf.mxu0  ;;  %v2874_v56 = vadd.f32 %v9013_v29, %v11779_v38  ;;  %v12085_v29 = vld [vmem:[#allocation9 + $0xb8] sm:$0xff]  }
 0x1e9   : > { %v9015_v16 = vpop.f32.mrf.mxu1  ;;  %v12067_v18 = vadd.f32 %v9709_v37, %v11989_v10  ;;  %9834 = vmatprep.subr.bf16.mxu1 %v12085_v29 }
 0x1ea   : > { %v9016_v12 = vadd.f32 %v9015_v16, %v9014_v6  ;;  %v12071_v31 = vpop.f32.mrf.mxu0 }
 0x1eb   : > { %v9017_v4 = vpop.f32.mrf.mxu1 }
 0x1ec   : > { %v9712_v38 = vpop.f32.mrf.mxu0  ;;  %v2879_v14 = vadd.f32 %v9016_v12, %v11806_v13 }
 0x1ed   : > { %v9018_v51 = vpop.f32.mrf.mxu1  ;;  %v12077_v10 = vadd.f32 %v9712_v38, %v12020_v2  ;;  %v476_v2 = vsel %vm10820_vm2, 0, %v475_v20 }
 0x1ee   : > { %v9019_v54 = vadd.f32 %v9018_v51, %v9017_v4  ;;  %v3007_v36 = vpop.f32.mrf.mxu0  ;;  %477 = vst [vmem:[#allocation3 + $0x54] sm:$0x1] %v476_v2  ;;  %v478_v2 = vld [vmem:[#allocation3 + $0x60] sm:$0x1] }
 0x1ef   : > { %v9020_v48 = vpop.f32.mrf.mxu1  ;;  %v12080_v7 = vadd.f32 %v3007_v36, %v12003_v1 }
 0x1f0   : > { %v9713_v11 = vpop.f32.mrf.mxu0  ;;  %v12083_v53 = vadd.f32 %v9019_v54, %v11819_v59  ;;  %v529_v54 = vld [vmem:[#allocation3 + $0x5c] sm:$0x1] }
 0x1f1   : > { %v9021_v30 = vpop.f32.mrf.mxu1  ;;  %v12088_v13 = vadd.f32 %v9713_v11, %v12030_v60 }
 0x1f2   : > { %v9022_v6 = vadd.f32 %v9021_v30, %v9020_v48  ;;  %v12092_v33 = vpop.f32.mrf.mxu0 }
 0x1f3   : > { %v9023_v1 = vpop.f32.mrf.mxu1 }
 0x1f4   : > { %v9716_v37 = vpop.f32.mrf.mxu0  ;;  %v2887_v59 = vadd.f32 %v9022_v6, %v11861_v17  ;;  %v530_v17 = vsel %vm10826_vm4, 0, %v529_v54 }
 0x1f5   : > { %v9024_v35 = vpop.f32.mrf.mxu1  ;;  %v12096_v16 = vadd.f32 %v9716_v37, %v2871_v21  ;;  %531 = vst [vmem:[#allocation3 + $0x5c] sm:$0x1] %v530_v17 }
 0x1f6   : > { %v9025_v58 = vadd.f32 %v9024_v35, %v9023_v1  ;;  %v3023_v3 = vpop.f32.mrf.mxu0  ;;  %v479_v1 = vsel %vm10820_vm2, 0, %v478_v2 }
 0x1f7   : > { %v9026_v60 = vpop.f32.mrf.mxu1  ;;  %v12099_v12 = vadd.f32 %v3023_v3, %v12039_v32  ;;  %480 = vst [vmem:[#allocation3 + $0x60] sm:$0x1] %v479_v1 }
 0x1f8   : > { %v9717_v42 = vpop.f32.mrf.mxu0  ;;  %v2890_v4 = vadd.f32 %v9025_v58, %v11882_v44  ;;  %v2593_v44 = vadd.f32 %v11920_v24, %v11808_v49 }
 0x1f9   : > { %v9027_v38 = vpop.f32.mrf.mxu1  ;;  %v12102_v51 = vadd.f32 %v9717_v42, %v2874_v56 }
 0x1fa   : > { %v9028_v36 = vadd.f32 %v9027_v38, %v9026_v60  ;;  %v12104_v48 = vpop.f32.mrf.mxu0 }
 0x1fb   : > { %v9029_v21 = vpop.f32.mrf.mxu1 }
 0x1fc   : > { %v9720_v11 = vpop.f32.mrf.mxu0  ;;  %v2895_v20 = vadd.f32 %v9028_v36, %v11910_v46  ;;  %v532_v46 = vld [vmem:[#allocation3 + $0x68] sm:$0x1] }
 0x1fd   : > { %v9030_v32 = vpop.f32.mrf.mxu1  ;;  %v12109_v30 = vadd.f32 %v9720_v11, %v2887_v59  ;;  %v533_v42 = vsel %vm10826_vm4, 0, %v532_v46  ;;  %v535_v46 = vld [vmem:[#allocation3 + $0x74] sm:$0x1] }
 0x1fe   : > { %v9031_v56 = vadd.f32 %v9030_v32, %v9029_v21  ;;  %v3039_v6 = vpop.f32.mrf.mxu0  ;;  %534 = vst [vmem:[#allocation3 + $0x68] sm:$0x1] %v533_v42  ;;  %v481_v32 = vld [vmem:[#allocation3 + $0x6c] sm:$0x1]  ;;  %v536_v42 = vsel %vm10826_vm4, 0, %v535_v46 }
 0x1ff   : > { %v9032_v37 = vpop.f32.mrf.mxu1  ;;  %v12115_v35 = vadd.f32 %v3039_v6, %v2879_v14  ;;  %537 = vst [vmem:[#allocation3 + $0x74] sm:$0x1] %v536_v42  ;;  %v538_v46 = vld [vmem:[#allocation3 + $0x80] sm:$0x1] }
 0x200   : > { %v9721_v58 = vpop.f32.mrf.mxu0  ;;  %v12117_v3 = vadd.f32 %v9031_v56, %v2593_v44  ;;  %v482_v44 = vsel %vm10820_vm2, 0, %v481_v32 }
 0x201   : > { %v9033_v60 = vpop.f32.mrf.mxu1  ;;  %v12119_v59 = vadd.f32 %v9721_v58, %v2890_v4  ;;  %483 = vst [vmem:[#allocation3 + $0x6c] sm:$0x1] %v482_v44  ;;  %v484_v44 = vld [vmem:[#allocation3 + $0x78] sm:$0x1] }
 0x202   : > { %v9034_v49 = vadd.f32 %v9033_v60, %v9032_v37  ;;  %v12123_v24 = vpop.f32.mrf.mxu0 }
 0x203   : > { %v9035_v38 = vpop.f32.mrf.mxu1 }
 0x204   : > { %v2903_v54 = vadd.f32 %v9034_v49, %v11930_v25  ;;  %v9724_v14 = vpop.f32.mrf.mxu0 }
 0x205   : > { %v9036_v36 = vpop.f32.mrf.mxu1 }
 0x206   : > { %v9037_v17 = vadd.f32 %v9036_v36, %v9035_v38  ;;  %v12126_v21 = vadd.f32 %v9724_v14, %v2903_v54  ;;  %v3055_v11 = vpop.f32.mrf.mxu0 }
 0x207   : > { %v9038_v2 = vpop.f32.mrf.mxu1  ;;  %v12128_v4 = vadd.f32 %v3055_v11, %v2895_v20 }
 0x208   : > { %v2906_v56 = vadd.f32 %v9037_v17, %v11944_v50  ;;  %v9725_v6 = vpop.f32.mrf.mxu0  ;;  %v2609_v50 = vadd.f32 %v11956_v23, %v11870_v34 }
 0x209   : > { %v9039_v1 = vpop.f32.mrf.mxu1 }
 0x20a   : > { %v9040_v37 = vadd.f32 %v9039_v1, %v9038_v2  ;;  %v12133_v25 = vadd.f32 %v9725_v6, %v2906_v56  ;;  %v12135_v58 = vpop.f32.mrf.mxu0 }
 0x20b   : > { %v9041_v60 = vpop.f32.mrf.mxu1 }
 0x20c   : > { %v9728_v20 = vpop.f32.mrf.mxu0  ;;  %v2911_v49 = vadd.f32 %v9040_v37, %v11948_v41  ;;  %v485_v41 = vsel %vm10820_vm2, 0, %v484_v44 }
 0x20d   : > { %v9042_v38 = vpop.f32.mrf.mxu1  ;;  %486 = vst [vmem:[#allocation3 + $0x78] sm:$0x1] %v485_v41 }
 0x20e   : > { %v9043_v54 = vadd.f32 %v9042_v38, %v9041_v60  ;;  %v3071_v14 = vpop.f32.mrf.mxu0  ;;  %v539_v38 = vsel %vm10826_vm4, 0, %v538_v46 }
 0x20f   : > { %v9044_v36 = vpop.f32.mrf.mxu1  ;;  %v12142_v17 = vadd.f32 %v3071_v14, %v2911_v49  ;;  %540 = vst [vmem:[#allocation3 + $0x80] sm:$0x1] %v539_v38 }
 0x210   : > { %v9729_v11 = vpop.f32.mrf.mxu0  ;;  %v12144_v32 = vadd.f32 %v9043_v54, %v2609_v50 }
 0x211   : > { %13797 = vst [vmem:[#allocation16_spill] sm:$0xff] %v12142_v17  ;;  %v9045_v2 = vpop.f32.mrf.mxu1 }
 0x212   : > { %v9046_v56 = vadd.f32 %v9045_v2, %v9044_v36  ;;  %v12146_v6 = vpop.f32.mrf.mxu0  ;;  %v8919_v2 = vadd.f32 %v11997_v28, %v11986_v47  ;;  %v541_v28 = vld [vmem:[#allocation3 + $0x8c] sm:$0x1] }
 0x213   : > { %v9047_v1 = vpop.f32.mrf.mxu1 }
 0x214   : > { %v2919_v34 = vadd.f32 %v9046_v56, %v11970_v43  ;;  %v9732_v23 = vpop.f32.mrf.mxu0  ;;  %v2625_v46 = vadd.f32 %v8919_v2, %v11918_v57  ;;  %v490_v57 = vld [vmem:[#allocation3 + $0x90] sm:$0x1] }
 0x215   : > { %v9048_v37 = vpop.f32.mrf.mxu1 }
 0x216   : > { %v9049_v60 = vadd.f32 %v9048_v37, %v9047_v1  ;;  %v12151_v42 = vadd.f32 %v9728_v20, %v2919_v34  ;;  %v3087_v49 = vpop.f32.mrf.mxu0  ;;  %v487_v20 = vld [vmem:[#allocation3 + $0x84] sm:$0x1] }
 0x217   : > { %v9050_v50 = vpop.f32.mrf.mxu1  ;;  %v488_v1 = vsel %vm10820_vm2, 0, %v487_v20 }
 0x218   : > { %13798 = vst [vmem:[#allocation18_spill] sm:$0xff] %v12151_v42  ;;  %v2922_v54 = vadd.f32 %v9049_v60, %v11983_v8  ;;  %v9733_v14 = vpop.f32.mrf.mxu0  ;;  %489 = vst [vmem:[#allocation3 + $0x84] sm:$0x1] %v488_v1 }
 0x219   : > { %v9051_v36 = vpop.f32.mrf.mxu1 }
 0x21a   : > { %v9052_v43 = vadd.f32 %v9051_v36, %v9050_v50  ;;  %v12158_v44 = vadd.f32 %v9729_v11, %v2922_v54  ;;  %v12160_v56 = vpop.f32.mrf.mxu0  ;;  %v542_v50 = vsel %vm10826_vm4, 0, %v541_v28 }
 0x21b   : > { %v9053_v41 = vpop.f32.mrf.mxu1  ;;  %543 = vst [vmem:[#allocation3 + $0x8c] sm:$0x1] %v542_v50 }
 0x21c   : > { %13799 = vst [vmem:[#allocation17_spill] sm:$0xff] %v12158_v44  ;;  %v2927_v34 = vadd.f32 %v9052_v43, %v11992_v5  ;;  %v9736_v37 = vpop.f32.mrf.mxu0  ;;  %v8931_v44 = vadd.f32 %v12035_v62, %v12027_v45 }
 0x21d   : > { %v9054_v8 = vpop.f32.mrf.mxu1 }
 0x21e   : > { %v9055_v60 = vadd.f32 %v9054_v8, %v9053_v41  ;;  %v12166_v38 = vadd.f32 %v3087_v49, %v2927_v34  ;;  %v3103_v47 = vpop.f32.mrf.mxu0  ;;  %v491_v41 = vsel %vm10820_vm2, 0, %v490_v57 }
 0x21f   : > { %v9056_v11 = vpop.f32.mrf.mxu1  ;;  %492 = vst [vmem:[#allocation3 + $0x90] sm:$0x1] %v491_v41  ;;  %v493_v41 = vld [vmem:[#allocation3 + $0x9c] sm:$0x1] }
 0x220   : > { %13800 = vst [vmem:[#allocation19_spill] sm:$0xff] %v12166_v38  ;;  %v12170_v54 = vadd.f32 %v9055_v60, %v2625_v46  ;;  %v12172_v36 = vpop.f32.mrf.mxu0  ;;  %v544_v38 = vld [vmem:[#allocation3 + $0x98] sm:$0x1] }
 0x221   : > { %v9057_v5 = vpop.f32.mrf.mxu1  ;;  %v545_v57 = vsel %vm10826_vm4, 0, %v544_v38 }
 0x222   : > { %v9058_v43 = vadd.f32 %v9057_v5, %v9056_v11  ;;  %v12174_v20 = vpop.f32.mrf.mxu0  ;;  %546 = vst [vmem:[#allocation3 + $0x98] sm:$0x1] %v545_v57 }
 0x223   : > { %v9059_v1 = vpop.f32.mrf.mxu1 }
 0x224   : > { %v2935_v49 = vadd.f32 %v9058_v43, %v12011_v40  ;;  %v9114_v2 = vpop.f32.mrf.mxu0 }
 0x225   : > { %v9060_v34 = vpop.f32.mrf.mxu1 }
 0x226   : > { %v9061_v8 = vadd.f32 %v9060_v34, %v9059_v1  ;;  %v12179_v46 = vadd.f32 %v9732_v23, %v2935_v49  ;;  %v9115_v60 = vpop.f32.mrf.mxu0  ;;  %v494_v34 = vsel %vm10820_vm2, 0, %v493_v41 }
 0x227   : > { %v9062_v28 = vpop.f32.mrf.mxu1  ;;  %495 = vst [vmem:[#allocation3 + $0x9c] sm:$0x1] %v494_v34 }
 0x228   : > { %13801 = vst [vmem:[#allocation20_spill] sm:$0xff] %v12179_v46  ;;  %v2938_v50 = vadd.f32 %v9061_v8, %v12023_v55  ;;  %v9117_v11 = vpop.f32.mrf.mxu0  ;;  %v2641_v8 = vadd.f32 %v8931_v44, %v11941_v39 }
 0x229   : > { %v9063_v5 = vpop.f32.mrf.mxu1 }
 0x22a   : > { %v9064_v40 = vadd.f32 %v9063_v5, %v9062_v28  ;;  %v12184_v43 = vadd.f32 %v9733_v14, %v2938_v50  ;;  %v9118_v42 = vpop.f32.mrf.mxu0 }
 0x22b   : > { %v9065_v1 = vpop.f32.mrf.mxu1 }
 0x22c   : > { %13802 = vst [vmem:[#allocation21_spill] sm:$0xff] %v12184_v43  ;;  %v2943_v23 = vadd.f32 %v9064_v40, %v12033_v63  ;;  %v9120_v49 = vpop.f32.mrf.mxu0  ;;  %v547_v43 = vld [vmem:[#allocation3 + $0xa4] sm:$0x1] }
 0x22d   : > { %v9066_v55 = vpop.f32.mrf.mxu1  ;;  %v548_v39 = vsel %vm10826_vm4, 0, %v547_v43 }
 0x22e   : > { %v9067_v45 = vadd.f32 %v9066_v55, %v9065_v1  ;;  %v12192_v62 = vadd.f32 %v3103_v47, %v2943_v23  ;;  %v9121_v14 = vpop.f32.mrf.mxu0  ;;  %549 = vst [vmem:[#allocation3 + $0xa4] sm:$0x1] %v548_v39  ;;  %v9116_v23 = vadd.f32 %v9115_v60, %v9114_v2 }
 0x22f   : > { %v9068_v28 = vpop.f32.mrf.mxu1  ;;  %v9122_v17 = vadd.f32 %v9121_v14, %v9120_v49  ;;  %v2995_v14 = vadd.f32 %v12071_v31, %v11967_v9  ;;  %v12232_v9 = vld [vmem:[%s13722_s3] ss:$0 sm:$0xff] }
 0x230   : > { %13803 = vst [vmem:[#allocation22_spill] sm:$0xff] %v12192_v62  ;;  %v12194_v50 = vadd.f32 %v9067_v45, %v2641_v8  ;;  %v9123_v38 = vpop.f32.mrf.mxu0  ;;  %v496_v8 = vld [vmem:[#allocation3 + $0xa8] sm:$0x1] }
 0x231   : > { %v9069_v5 = vpop.f32.mrf.mxu1 }
 0x232   : > { %v9070_v57 = vadd.f32 %v9069_v5, %v9068_v28  ;;  %v9124_v63 = vpop.f32.mrf.mxu0 }
 0x233   : > { %v9071_v40 = vpop.f32.mrf.mxu1  ;;  %v9125_v5 = vadd.f32 %v9124_v63, %v9123_v38 }
 0x234   : > { %v2951_v46 = vadd.f32 %v9070_v57, %v12051_v22  ;;  %v9126_v41 = vpop.f32.mrf.mxu0  ;;  %v497_v22 = vsel %vm10820_vm2, 0, %v496_v8 }
 0x235   : > { %v9072_v44 = vpop.f32.mrf.mxu1  ;;  %498 = vst [vmem:[#allocation3 + $0xa8] sm:$0x1] %v497_v22  ;;  %v499_v22 = vld [vmem:[#allocation3 + $0xb4] sm:$0x1] }
 0x236   : > { %v12199_v47 = vadd.f32 %v9736_v37, %v2951_v46  ;;  %v9073_v1 = vadd.f32 %v9072_v44, %v9071_v40  ;;  %v9127_v55 = vpop.f32.mrf.mxu0  ;;  %v9119_v46 = vadd.f32 %v9118_v42, %v9117_v11  ;;  %v550_v40 = vld [vmem:[#allocation3 + $0xb0] sm:$0x1]  ;;  %v12223_v42 = vadd.f32 %v12104_v48, %v12048_v61 }
 0x237   : > { %v9756_v34 = vpop.f32.mrf.mxu1  ;;  %v12227_v11 = vadd.f32 %v12123_v24, %v12083_v53  ;;  %v551_v31 = vsel %vm10826_vm4, 0, %v550_v40  ;;  %v12241_v53 = vadd.f32 %v12135_v58, %v12117_v3  ;;  %v12245_v24 = vadd.f32 %v12146_v6, %v12144_v32 }
 0x238   : > { %v2954_v45 = vadd.f32 %v9073_v1, %v12055_v26  ;;  %v4044_v28 = vadd.f32 %v9756_v34, %v9122_v17  ;;  %v9129_v62 = vpop.f32.mrf.mxu0  ;;  %v12211_v26 = vld [vmem:[%s13721_s2] ss:$0 sm:$0xff]  ;;  %552 = vst [vmem:[#allocation3 + $0xb0] sm:$0x1] %v551_v31  ;;  %v9128_v1 = vadd.f32 %v9127_v55, %v9126_v41  ;;  %v10274_v34 = vld [vmem:[#allocation9 + $0x78] sm:$0xff]   ;;  %v12251_v3 = vadd.f32 %v12160_v56, %v12170_v54 }
 0x239   : > { %v4035_v49 = vpop.f32.mrf.mxu1  ;;  %v12255_v58 = vadd.f32 %v12174_v20, %v12194_v50  ;;  %9370 = vmatprep.subr.bf16.mxu0 %v10274_v34  ;;  %v500_v41 = vsel %vm10820_vm2, 0, %v499_v22  ;;  %v4721_v22 = vld [vmem:[#allocation3 + $0xc] sm:$0xf] }
 0x23a   : > { %v12205_v43 = vadd.f32 %v12172_v36, %v2954_v45  ;;  %v4036_v37 = vadd.f32 %v9116_v23, %v4035_v49  ;;  %v4164_v2 = vadd.f32 %v4044_v28, %v12058_v0  ;;  %v9130_v60 = vpop.f32.mrf.mxu0  ;;  %v12219_v0 = vadd.f32 %v12092_v33, %v12008_v27  ;;  %501 = vst [vmem:[#allocation3 + $0xb4] sm:$0x1] %v500_v41 }
 0x23b   : > { %v9757_v17 = vpop.f32.mrf.mxu1 }
 0x23c   : > { %v4162_v38 = vadd.f32 %v4036_v37, %v12061_v52  ;;  %v4203_v57 = vmul.f32 %v12211_v26, %v4164_v2  ;;  %v4047_v36 = vadd.f32 %v9757_v17, %v9125_v5  ;;  %v9132_v63 = vpop.f32.mrf.mxu0  ;;  %v9131_v17 = vadd.f32 %v9130_v60, %v9129_v62 }
 0x23d   : > { %v4038_v52 = vpop.f32.mrf.mxu1 }
 0x23e   : > { %v4201_v27 = vmul.f32 %v12211_v26, %v4162_v38  ;;  %v4039_v33 = vadd.f32 %v9119_v46, %v4038_v52  ;;  %v4242_v39 = vadd.f32 %v12232_v9, %v4203_v57  ;;  %v4165_v61 = vadd.f32 %v4047_v36, %v12067_v18  ;;  %v9133_v48 = vpop.f32.mrf.mxu0 }
 0x23f   : > { %v9760_v44 = vpop.f32.mrf.mxu1  ;;  %v9134_v23 = vadd.f32 %v9133_v48, %v9132_v63 }
 0x240   : > { %v4240_v8 = vadd.f32 %v12232_v9, %v4201_v27  ;;  %v4163_v45 = vadd.f32 %v4039_v33, %v2995_v14  ;;  %v4274_v28 = vmax.f32 %v4242_v39, 0.0  ;;  %v4204_v18 = vmul.f32 %v12211_v26, %v4165_v61  ;;  %v9135_v5 = vpop.f32.mrf.mxu0 }
 0x241   : > { %v4051_v32 = vpop.f32.mrf.mxu1  ;;  %v4060_v6 = vadd.f32 %v9760_v44, %v9134_v23 }
 0x242   : > { %v4272_v55 = vmax.f32 %v4240_v8, 0.0  ;;  %v4202_v49 = vmul.f32 %v12211_v26, %v4163_v45  ;;  %v8795_v37 = vpack.c.bf16 %v4274_v28, %v4274_v28  ;;  %v4243_v46 = vadd.f32 %v12232_v9, %v4204_v18  ;;  %v9136_v2 = vpop.f32.mrf.mxu0 }
 0x243   : > { %v9761_v56 = vpop.f32.mrf.mxu1  ;;  %v4052_v54 = vadd.f32 %v9128_v1, %v4051_v32  ;;  %v4168_v20 = vadd.f32 %v4060_v6, %v12077_v10  ;;  %v9137_v50 = vadd.f32 %v9136_v2, %v9135_v5 }
 0x244   : > { %v8793_v14 = vpack.c.bf16 %v4272_v55, %v4272_v55  ;;  %v4241_v38 = vadd.f32 %v12232_v9, %v4202_v49  ;;  %v4418_v57 = vshrl.u32 %v8795_v37, 16  ;;  %v4421_v36 = vshll.u32 %v8795_v37, 16  ;;  %v12263_v63 = vpop.f32.mrf.mxu0 }
 0x245   : > { %v4275_v40 = vmax.f32 %v4243_v46, 0.0  ;;  %v4166_v52 = vadd.f32 %v4052_v54, %v12080_v7  ;;  %v4207_v31 = vmul.f32 %v12211_v26, %v4168_v20  ;;  %v4063_v27 = vadd.f32 %v9761_v56, %v9137_v50  ;;  %v4054_v60 = vpop.f32.mrf.mxu1  ;;  %v4728_v7 = vld [vmem:[#allocation3 + $0x18] sm:$0xf] }
 0x246   : > { %v4401_v33 = vshrl.u32 %v8793_v14, 16  ;;  %v4404_v39 = vshll.u32 %v8793_v14, 16  ;;  %v4273_v61 = vmax.f32 %v4241_v38, 0.0  ;;  %v4420_v62 = vrot.slane %v4418_v57, 7  ;;  %v9139_v10 = vpop.f32.mrf.mxu0 }
 0x247   : > { %v8796_v48 = vpack.c.bf16 %v4275_v40, %v4275_v40  ;;  %v4205_v44 = vmul.f32 %v12211_v26, %v4166_v52  ;;  %v4055_v1 = vadd.f32 %v9131_v17, %v4054_v60  ;;  %v4246_v23 = vadd.f32 %v12232_v9, %v4207_v31  ;;  %v12269_v18 = vpop.f32.mrf.mxu1 }
 0x248   : > { %v4403_v34 = vrot.slane %v4401_v33, 7  ;;  %v8794_v8 = vpack.c.bf16 %v4273_v61, %v4273_v61  ;;  %v4423_v45 = vor.u32 %v4421_v36, %v4420_v62  ;;  %v4424_v28 = vrot.slane %v4420_v62, 4  ;;  %v9141_v5 = vpop.f32.mrf.mxu0  ;;  %v4732_v36 = vld [vmem:[#allocation3 + $0x20] sm:$0x1]  ;;  %v4725_v33 = vld [vmem:[#allocation3 + $0x14] sm:$0x1] }
 0x249   : > { %v4426_v32 = vshrl.u32 %v8796_v48, 16  ;;  %v4429_v6 = vshll.u32 %v8796_v48, 16  ;;  %v4244_v41 = vadd.f32 %v12232_v9, %v4205_v44  ;;  %v4167_v55 = vadd.f32 %v4055_v1, %v12219_v0  ;;  %v4067_v52 = vpop.f32.mrf.mxu1 }
 0x24a   : > { %v4406_v49 = vor.u32 %v4404_v39, %v4403_v34  ;;  %v4407_v37 = vrot.slane %v4403_v34, 4  ;;  %v4409_v46 = vshrl.u32 %v8794_v8, 16  ;;  %v4412_v2 = vshll.u32 %v8794_v8, 16  ;;  %v9142_v56 = vpop.f32.mrf.mxu0 }
 0x24b   : > { %v4729_v17 = vsel %vm10852_vm8, %v4423_v45, %v4728_v7  ;;  %v4428_v20 = vrot.slane %v4426_v32, 7  ;;  %v4276_v50 = vmax.f32 %v4244_v41, 0.0  ;;  %v4206_v14 = vmul.f32 %v12211_v26, %v4167_v55  ;;  %v9765_v55 = vpop.f32.mrf.mxu1 }
 0x24c   : > { %v4722_v38 = vsel %vm10852_vm8, %v4406_v49, %v4721_v22  ;;  %v4411_v57 = vrot.slane %v4409_v46, 7  ;;  %4730 = vst [vmem:[#allocation3 + $0x18] sm:$0xf] %v4729_v17  ;;  %v4278_v40 = vmax.f32 %v4246_v23, 0.0  ;;  %v4169_v0 = vadd.f32 %v4063_v27, %v12088_v13  ;;  %v9144_v31 = vpop.f32.mrf.mxu0 }
 0x24d   : > { %4723 = vst [vmem:[#allocation3 + $0xc] sm:$0xf] %v4722_v38  ;;  %v4431_v39 = vor.u32 %v4429_v6, %v4428_v20  ;;  %v4433_v61 = vrot.slane %v4428_v20, 4  ;;  %v8797_v62 = vpack.c.bf16 %v4276_v50, %v4276_v50  ;;  %v4245_v60 = vadd.f32 %v12232_v9, %v4206_v14  ;;  %v4735_v20 = vld [vmem:[#allocation3 + $0x24] sm:$0xf] }
 0x24e   : > { %v4414_v48 = vor.u32 %v4412_v2, %v4411_v57  ;;  %v4416_v44 = vrot.slane %v4411_v57, 4  ;;  %v8799_v1 = vpack.c.bf16 %v4278_v40, %v4278_v40  ;;  %v4208_v34 = vmul.f32 %v12211_v26, %v4169_v0  ;;  %v9145_v8 = vpop.f32.mrf.mxu0  ;;  %v4742_v0 = vld [vmem:[#allocation3 + $0x30] sm:$0xf] }
 0x24f   : > { %v4432_v23 = vsel %vm10846_vm7, %v4424_v28, %v4431_v39  ;;  %v4733_v13 = vsel %vm10820_vm2, %v4433_v61, %v4732_v36  ;;  %v4435_v27 = vshrl.u32 %v8797_v62, 16  ;;  %v4438_v7 = vshll.u32 %v8797_v62, 16 }
 0x250   : > { %v4415_v22 = vsel %vm10846_vm7, %v4407_v37, %v4414_v48  ;;  %v4726_v32 = vsel %vm10820_vm2, %v4416_v44, %v4725_v33  ;;  %4731 = vst [vmem:[#allocation3 + $0x1c] sm:$0xf] %v4432_v23  ;;  %4734 = vst [vmem:[#allocation3 + $0x20] sm:$0x1] %v4733_v13  ;;  %v4277_v6 = vmax.f32 %v4245_v60, 0.0  ;;  %v4452_v41 = vshrl.u32 %v8799_v1, 16  ;;  %v9147_v49 = vpop.f32.mrf.mxu0  ;;  %v4070_v44 = vpop.f32.mrf.mxu1 }
 0x251   : > { %4724 = vst [vmem:[#allocation3 + $0x10] sm:$0xf] %v4415_v22  ;;  %4727 = vst [vmem:[#allocation3 + $0x14] sm:$0x1] %v4726_v32  ;;  %v4437_v28 = vrot.slane %v4435_v27, 7  ;;  %v4455_v46 = vshll.u32 %v8799_v1, 16  ;;  %v4247_v2 = vadd.f32 %v12232_v9, %v4208_v34  ;;  %v9140_v17 = vadd.f32 %v9139_v10, %v12263_v63 }
 0x252   : > { %v8798_v50 = vpack.c.bf16 %v4277_v6, %v4277_v6  ;;  %v12291_v37 = vrot.slane %v4452_v41, 7  ;;  %v9143_v14 = vadd.f32 %v9142_v56, %v9141_v5  ;;  %v9146_v38 = vadd.f32 %v9145_v8, %v9144_v31  ;;  %v9148_v57 = vpop.f32.mrf.mxu0  ;;  %v4739_v34 = vld [vmem:[#allocation3 + $0x2c] sm:$0x1] }
 0x253   : > { %v4440_v36 = vor.u32 %v4438_v7, %v4437_v28  ;;  %v4441_v40 = vrot.slane %v4437_v28, 4  ;;  %v4279_v33 = vmax.f32 %v4247_v2, 0.0  ;;  %v4068_v39 = vadd.f32 %v9140_v17, %v4067_v52 }
 0x254   : > { %v4443_v61 = vshrl.u32 %v8798_v50, 16  ;;  %v4446_v62 = vshll.u32 %v8798_v50, 16  ;;  %v4457_v60 = vor.u32 %v4455_v46, %v12291_v37  ;;  %v4458_v48 = vrot.slane %v12291_v37, 4  ;;  %v12295_v63 = vpop.f32.mrf.mxu0  ;;  %v5457_v50 = vld [vmem:[#allocation3 + $0xc] sm:$0xe] }
 0x255   : > { %v4736_v10 = vsel %vm10852_vm8, %v4440_v36, %v4735_v20  ;;  %v8800_v5 = vpack.c.bf16 %v4279_v33, %v4279_v33  ;;  %v4170_v56 = vadd.f32 %v4068_v39, %v12099_v12  ;;  %v4071_v31 = vadd.f32 %v9143_v14, %v4070_v44  ;;  %v5409_v12 = vld [vmem:[#allocation3 + $0xc] sm:$0xf] }
 0x256   : > { %4737 = vst [vmem:[#allocation3 + $0x24] sm:$0xf] %v4736_v10  ;;  %v4445_v1 = vrot.slane %v4443_v61, 7  ;;  %v4743_v52 = vsel %vm10852_vm8, %v4457_v60, %v4742_v0  ;;  %v4076_v8 = vadd.f32 %v12269_v18, %v9146_v38  ;;  %v9149_v23 = vadd.f32 %v9148_v57, %v9147_v49  ;;  %v12303_v13 = vpop.f32.mrf.mxu0  ;;  %v4746_v57 = vld [vmem:[#allocation3 + $0x38] sm:$0x1] }
 0x257   : > { %4744 = vst [vmem:[#allocation3 + $0x30] sm:$0xf] %v4743_v52  ;;  %v4460_v27 = vshrl.u32 %v8800_v5, 16  ;;  %v4463_v7 = vshll.u32 %v8800_v5, 16  ;;  %v4209_v22 = vmul.f32 %v12211_v26, %v4170_v56  ;;  %v4171_v32 = vadd.f32 %v4071_v31, %v12223_v42  ;;  %v12332_v52 = vld [vmem:[#allocation3 + $0x1c] sm:$0xf] }
 0x258   : > { %v4448_v6 = vor.u32 %v4446_v62, %v4445_v1  ;;  %v4450_v41 = vrot.slane %v4445_v1, 4  ;;  %v5410_v28 = vld [vmem:[#allocation3 + $0x10] sm:$0xf]  ;;  %v4172_v46 = vadd.f32 %v4076_v8, %v12096_v16  ;;  %v4079_v2 = vadd.f32 %v9765_v55, %v9149_v23  ;;  %v12308_v17 = vpop.f32.mrf.mxu0  ;;  %v10242_v14 = vld [vmem:[#allocation3 + $0x14] ss:$0 sps:$4 sm:$0x11]  }
 0x259   : > { %v4462_v18 = vrot.slane %v4460_v27, 7  ;;  %v4248_v49 = vadd.f32 %v12232_v9, %v4209_v22  ;;  %v4210_v20 = vmul.f32 %v12211_v26, %v4171_v32  ;;  %v12312_v37 = vcombine.low %v5409_v12, %v5410_v28 }
 0x25a   : > { %v4449_v42 = vsel %vm10846_vm7, %v4441_v40, %v4448_v6  ;;  %v4740_v38 = vsel %vm10820_vm2, %v4450_v41, %v4739_v34  ;;  %v8649_v16 = vcombine.low %v5457_v50, %v5410_v28  ;;  %v4211_v55 = vmul.f32 %v12211_v26, %v4172_v46  ;;  %v12319_v36 = vpop.f32.mrf.mxu0  ;;  %v12330_v34 = vpop.f32.mrf.mxu1  ;;  %v5458_v41 = vld [vmem:[#allocation3 + $0x18] sm:$0xe] }
 0x25b   : > { %4738 = vst [vmem:[#allocation3 + $0x28] sm:$0xf] %v4449_v42  ;;  %4741 = vst [vmem:[#allocation3 + $0x2c] sm:$0x1] %v4740_v38  ;;  %v4465_v0 = vor.u32 %v4463_v7, %v4462_v18  ;;  %v4467_v33 = vrot.slane %v4462_v18, 4  ;;  %v4280_v39 = vmax.f32 %v4248_v49, 0.0  ;;  %v4249_v61 = vadd.f32 %v12232_v9, %v4210_v20 }
 0x25c   : > { %v5873_v62 = vrot.slane %v8649_v16, 1  ;;  %v5874_v60 = vrot.slane %v10242_v14, 1  ;;  %v4250_v40 = vadd.f32 %v12232_v9, %v4211_v55  ;;  %v5618_v44 = vshrl.u32 %v12312_v37, 16  ;;  %v12324_v10 = vpop.f32.mrf.mxu0  ;;  %v12339_v49 = vld [vmem:[#allocation3 + $0x20] ss:$0 sps:$4 sm:$0x11]   ;;  %v4083_v16 = vpop.f32.mrf.mxu1 }
 0x25d   : > { %v4466_v5 = vsel %vm10846_vm7, %v4458_v48, %v4465_v0  ;;  %v4747_v56 = vsel %vm10820_vm2, %v4467_v33, %v4746_v57  ;;  %v8801_v31 = vpack.c.bf16 %v4280_v39, %v4280_v39  ;;  %v4281_v1 = vmax.f32 %v4249_v61, 0.0  ;;  %v4749_v55 = vld [vmem:[#allocation3 + $0x3c] sm:$0xf] }
 0x25e   : > { %4745 = vst [vmem:[#allocation3 + $0x34] sm:$0xf] %v4466_v5  ;;  %4748 = vst [vmem:[#allocation3 + $0x38] sm:$0x1] %v4747_v56  ;;  %v5875_v8 = vsel %vm1496_vm9, %v5873_v62, %v5874_v60  ;;  %v4282_v23 = vmax.f32 %v4250_v40, 0.0  ;;  %v5620_v27 = vshll.u32 %v12312_v37, 16  ;;  %v12336_v22 = vpop.f32.mrf.mxu0  ;;  %v4173_v6 = vadd.f32 %v4079_v2, %v12102_v51 }
 0x25f   : > { %v5625_v7 = vshll.u32 %v10242_v14, 16  ;;  %v4469_v48 = vshrl.u32 %v8801_v31, 16  ;;  %v4472_v32 = vshll.u32 %v8801_v31, 16  ;;  %v8802_v12 = vpack.c.bf16 %v4281_v1, %v4281_v1  ;;  %9802 = vmatprep.mubr.bf16.mxu0 %v5875_v8  ;;  %v4753_v40 = vld [vmem:[#allocation3 + $0x44] sm:$0x1] }
 0x260   : > { %v8803_v28 = vpack.c.bf16 %v4282_v23, %v4282_v23  ;;  %v5622_v46 = vrot.slane %v5620_v27, 1  ;;  %v8650_v20 = vcombine.low %v5458_v41, %v12332_v52  ;;  %v12342_v50 = vpop.f32.mrf.mxu0  ;;  %v4212_v57 = vmul.f32 %v12211_v26, %v4173_v6  ;;  %v4756_v31 = vld [vmem:[#allocation3 + $0x48] sm:$0xf]  ;;  %v12358_v6 = vpop.f32.mrf.mxu1  ;;  %v10278_v41 = vld [vmem:[#allocation9 + $0x38] sm:$0xff]  }
 0x261   : > { %v5627_v18 = vrot.slane %v5625_v7, 1  ;;  %v4471_v42 = vrot.slane %v4469_v48, 7  ;;  %v4477_v14 = vshrl.u32 %v8802_v12, 16  ;;  %v4480_v38 = vshll.u32 %v8802_v12, 16 }
 0x262   : > { %v4486_v0 = vshrl.u32 %v8803_v28, 16  ;;  %v4489_v33 = vshll.u32 %v8803_v28, 16  ;;  %v5623_v51 = vor.u32 %v5622_v46, %v5618_v44  ;;  %v5876_v2 = vrot.slane %v8650_v20, 1  ;;  %v12345_v39 = vpop.f32.mrf.mxu0  ;;  %v10252_v44 = vld [vmem:[#allocation9 + $0xb0] sm:$0xff]  }
 0x263   : > { %v4474_v61 = vor.u32 %v4472_v32, %v4471_v42  ;;  %v4475_v62 = vrot.slane %v4471_v42, 4  ;;  %v4479_v60 = vrot.slane %v4477_v14, 7  ;;  %v4251_v5 = vadd.f32 %v12232_v9, %v4212_v57  ;;  %v10279_v42 = vld [vmem:[#allocation9 + $0x70] sm:$0xff]  }
 0x264   : > { %v12348_v56 = vrot.slane %v4486_v0, 7  ;;  %v5628_v1 = vsel %vm1239_vm10, %v5623_v51, %v5627_v18  ;;  %v5877_v8 = vrot.slane %v12339_v49, 1  ;;  %v9152_v23 = vadd.f32 %v12303_v13, %v12295_v63  ;;  %v12354_v27 = vpop.f32.mrf.mxu0  ;;  %v5414_v18 = vld [vmem:[#allocation3 + $0x28] sm:$0xf] }
 0x265   : > { %v4750_v7 = vsel %vm10852_vm8, %v4474_v61, %v4749_v55  ;;  %v4482_v48 = vor.u32 %v4480_v38, %v4479_v60  ;;  %v4484_v32 = vrot.slane %v4479_v60, 4  ;;  %6162 = vmatprep.mubr.bf16.mxu1 %v5628_v1  ;;  %v4283_v12 = vmax.f32 %v4251_v5, 0.0  ;;  %v5411_v55 = vld [vmem:[#allocation3 + $0x18] sm:$0xf] }
 0x266   : > { %4751 = vst [vmem:[#allocation3 + $0x3c] sm:$0xf] %v4750_v7  ;;  %v4491_v28 = vor.u32 %v4489_v33, %v12348_v56  ;;  %v4492_v46 = vrot.slane %v12348_v56, 4  ;;  %6163 = vmatmul.mubr.bf16.vlgmr.msra.gmra.mxu1 %v12312_v37  ;;  %v5878_v63 = vsel %vm1496_vm9, %v5876_v2, %v5877_v8  ;;  %v4084_v13 = vadd.f32 %v9152_v23, %v4083_v16  ;;  %v12364_v20 = vpop.f32.mrf.mxu0  ;;  %v12372_v0 = vld [vmem:[#allocation3 + $0x2c] ss:$0 sps:$4 sm:$0x11]  }
 0x267   : > { %v4483_v14 = vsel %vm10846_vm7, %v4475_v62, %v4482_v48  ;;  %v4754_v38 = vsel %vm10820_vm2, %v4484_v32, %v4753_v40  ;;  %v8804_v57 = vpack.c.bf16 %v4283_v12, %v4283_v12  ;;  %9835 = vmatpush3.bf16.msra.mxu1 %v12085_v29  ;;  %9803 = vmatmul.mubr.bf16.vlgmr.msra.gmra.mxu0 %v5878_v63  ;;  %v5637_v37 = vshll.u32 %v12339_v49, 16  ;;  %v5413_v29 = vld [vmem:[#allocation3 + $0x24] sm:$0xf]  ;;  %v4086_v40 = vpop.f32.mrf.mxu1  ;;  %v4760_v32 = vld [vmem:[#allocation3 + $0x50] sm:$0x1] }
 0x268   : > { %4752 = vst [vmem:[#allocation3 + $0x40] sm:$0xf] %v4483_v14  ;;  %4755 = vst [vmem:[#allocation3 + $0x44] sm:$0x1] %v4754_v38  ;;  %v4757_v16 = vsel %vm10852_vm8, %v4491_v28, %v4756_v31  ;;  %v4174_v33 = vadd.f32 %v4084_v13, %v12115_v35  ;;  %v12378_v51 = vcombine.low %v5411_v55, %v12332_v52  ;;  %9836 = vmatprep.subr.bf16.mxu1 %v10252_v44  ;;  %v12382_v61 = vpop.f32.mrf.mxu0  ;;  %v10259_v49 = vld [vmem:[#allocation9 + $0xa8] sm:$0xff]   ;;  %v10283_v35 = vld [vmem:[#allocation9 + $0x30] sm:$0xff]  }
 0x269   : > { %v9155_v2 = vadd.f32 %v12319_v36, %v12308_v17  ;;  %4758 = vst [vmem:[#allocation3 + $0x48] sm:$0xf] %v4757_v16  ;;  %v4494_v62 = vshrl.u32 %v8804_v57, 16  ;;  %v4497_v60 = vshll.u32 %v8804_v57, 16  ;;  %v5639_v5 = vrot.slane %v5637_v37, 1  ;;  %9371 = vmatpush3.bf16.msra.mxu0 %v10278_v41  ;;  %v10285_v7 = vld [vmem:[#allocation9 + $0x68] sm:$0xff]  }
 0x26a   : > { %v12384_v1 = vcombine.low %v5413_v29, %v5414_v18  ;;  %v4213_v52 = vmul.f32 %v12211_v26, %v4174_v33  ;;  %v5630_v31 = vshrl.u32 %v12378_v51, 16  ;;  %v5632_v17 = vshll.u32 %v12378_v51, 16  ;;  %v5459_v8 = vld [vmem:[#allocation3 + $0x24] sm:$0xe]  ;;  %v12389_v23 = vpop.f32.mrf.mxu0  ;;  %9372 = vmatprep.subr.bf16.mxu0 %v10279_v42  ;;  %v10266_v42 = vld [vmem:[#allocation9 + $0xa0] sm:$0xff]  }
 0x26b   : > { %v4087_v36 = vadd.f32 %v9155_v2, %v4086_v40  ;;  %v4496_v48 = vrot.slane %v4494_v62, 7  ;;  %v8651_v12 = vcombine.low %v5459_v8, %v5414_v18  ;;  %v5880_v28 = vrot.slane %v12372_v0, 1  ;;  %9837 = vmatpush3.bf16.msra.mxu1 %v10252_v44  ;;  %v10289_v33 = vld [vmem:[#allocation9 + $0x28] sm:$0xff]   ;;  %v10290_v62 = vld [vmem:[#allocation9 + $0x60] sm:$0xff]   ;;  %v5415_v8 = vld [vmem:[#allocation3 + $0x30] sm:$0xf] }
 0x26c   : > { %v9158_v41 = vadd.f32 %v12336_v22, %v12324_v10  ;;  %v4252_v63 = vadd.f32 %v12232_v9, %v4213_v52  ;;  %v5634_v13 = vrot.slane %v5632_v17, 1  ;;  %v5642_v38 = vshrl.u32 %v12384_v1, 16  ;;  %v12397_v57 = vpop.f32.mrf.mxu0  ;;  %9838 = vmatprep.subr.bf16.mxu1 %v10259_v49  ;;  %v10273_v52 = vld [vmem:[#allocation9 + $0x98] sm:$0xff]  }
 0x26d   : > { %v4175_v14 = vadd.f32 %v4087_v36, %v12227_v11  ;;  %v4499_v55 = vor.u32 %v4497_v60, %v4496_v48  ;;  %v4501_v37 = vrot.slane %v4496_v48, 4  ;;  %v5879_v18 = vrot.slane %v8651_v12, 1  ;;  %9373 = vmatpush3.bf16.msra.mxu0 %v10283_v35  ;;  %v5416_v11 = vld [vmem:[#allocation3 + $0x34] sm:$0xf]  ;;  %v10294_v12 = vld [vmem:[#allocation9 + $0x20] sm:$0xff]  }
 0x26e   : > { %v4092_v16 = vadd.f32 %v12330_v34, %v9158_v41  ;;  %v4284_v10 = vmax.f32 %v4252_v63, 0.0  ;;  %v5635_v22 = vor.u32 %v5634_v13, %v5630_v31  ;;  %v5644_v2 = vshll.u32 %v12384_v1, 16  ;;  %v12402_v29 = vpop.f32.mrf.mxu0  ;;  %9374 = vmatprep.subr.bf16.mxu0 %v10285_v7 }
 0x26f   : > { %v4214_v44 = vmul.f32 %v12211_v26, %v4175_v14  ;;  %v4500_v60 = vsel %vm10846_vm7, %v4492_v46, %v4499_v55  ;;  %v4761_v34 = vsel %vm10820_vm2, %v4501_v37, %v4760_v32  ;;  %v5881_v40 = vsel %vm1496_vm9, %v5879_v18, %v5880_v28  ;;  %9839 = vmatpush3.bf16.msra.mxu1 %v10259_v49  ;;  %v12414_v46 = vld [vmem:[#allocation3 + $0x38] ss:$0 sps:$4 sm:$0x11]   ;;  %v12419_v49 = vpop.f32.mrf.mxu1  ;;  %v5460_v14 = vld [vmem:[#allocation3 + $0x30] sm:$0xe] }
 0x270   : > { %v4176_v35 = vadd.f32 %v4092_v16, %v12109_v30  ;;  %4759 = vst [vmem:[#allocation3 + $0x4c] sm:$0xf] %v4500_v60  ;;  %4762 = vst [vmem:[#allocation3 + $0x50] sm:$0x1] %v4761_v34  ;;  %v8805_v31 = vpack.c.bf16 %v4284_v10, %v4284_v10  ;;  %v5640_v17 = vsel %vm1239_vm10, %v5635_v22, %v5639_v5  ;;  %9806 = vmatprep.mubr.bf16.mxu0 %v5881_v40  ;;  %v12416_v7 = vpop.f32.mrf.mxu0  ;;  %v10296_v37 = vld [vmem:[#allocation9 + $0x58] sm:$0xff]   ;;  %v10284_v22 = vld [vmem:[#allocation9 + $0x90] sm:$0xff]  }
 0x271   : > { %v4253_v36 = vadd.f32 %v12232_v9, %v4214_v44  ;;  %v5646_v56 = vrot.slane %v5644_v2, 1  ;;  %9840 = vmatprep.subr.bf16.mxu1 %v10266_v42  ;;  %6170 = vmatprep.mubr.bf16.mxu1 %v5640_v17  ;;  %v5649_v48 = vshll.u32 %v12372_v0, 16  ;;  %v9161_v5 = vadd.f32 %v12345_v39, %v12342_v50  ;;  %v4763_v44 = vld [vmem:[#allocation3 + $0x54] sm:$0xf] }
 0x272   : > { %v4215_v30 = vmul.f32 %v12211_v26, %v4176_v35  ;;  %v12424_v32 = vcombine.low %v5415_v8, %v5416_v11  ;;  %9375 = vmatpush3.bf16.msra.mxu0 %v10289_v33  ;;  %v4503_v28 = vshrl.u32 %v8805_v31, 16  ;;  %v4506_v41 = vshll.u32 %v8805_v31, 16  ;;  %6171 = vmatmul.mubr.bf16.gmra.mxu1 %v12378_v51  ;;  %v12427_v55 = vpop.f32.mrf.mxu0  ;;  %v10300_v60 = vld [vmem:[#allocation9 + $0x18] sm:$0xff]   ;;  %v10301_v31 = vld [vmem:[#allocation9 + $0x50] sm:$0xff]  }
 0x273   : > { %v4285_v63 = vmax.f32 %v4253_v36, 0.0  ;;  %v5647_v13 = vor.u32 %v5646_v56, %v5642_v38  ;;  %9376 = vmatprep.subr.bf16.mxu0 %v10290_v62  ;;  %v5651_v18 = vrot.slane %v5649_v48, 1  ;;  %v4095_v50 = vadd.f32 %v12358_v6, %v9161_v5  ;;  %9841 = vmatpush3.bf16.msra.mxu1 %v10266_v42  ;;  %v4767_v48 = vld [vmem:[#allocation3 + $0x5c] sm:$0x1] }
 0x274   : > { %v4254_v0 = vadd.f32 %v12232_v9, %v4215_v30  ;;  %v8652_v39 = vcombine.low %v5460_v14, %v5416_v11  ;;  %v12431_v16 = vrot.slane %v4503_v28, 7  ;;  %v5883_v10 = vrot.slane %v12414_v46, 1  ;;  %v12436_v38 = vpop.f32.mrf.mxu0  ;;  %9842 = vmatprep.subr.bf16.mxu1 %v10273_v52  ;;  %v4099_v11 = vpop.f32.mrf.mxu1 }
 0x275   : > { %v8806_v33 = vpack.c.bf16 %v4285_v63, %v4285_v63  ;;  %v9164_v51 = vadd.f32 %v12364_v20, %v12354_v27  ;;  %v5652_v62 = vsel %vm1239_vm10, %v5647_v13, %v5651_v18  ;;  %v4177_v6 = vadd.f32 %v4095_v50, %v12119_v59 }
 0x276   : > { %v4286_v2 = vmax.f32 %v4254_v0, 0.0  ;;  %v5882_v42 = vrot.slane %v8652_v39, 1  ;;  %9377 = vmatpush3.bf16.msra.mxu0 %v10294_v12  ;;  %v4508_v34 = vor.u32 %v4506_v41, %v12431_v16  ;;  %v4509_v40 = vrot.slane %v12431_v16, 4  ;;  %6178 = vmatprep.mubr.bf16.mxu1 %v5652_v62  ;;  %v12442_v20 = vpop.f32.mrf.mxu0  ;;  %v10295_v41 = vld [vmem:[#allocation9 + $0x88] sm:$0xff]   ;;  %v10305_v0 = vld [vmem:[#allocation9 + $0x10] sm:$0xff]  }
 0x277   : > { %v4511_v35 = vshrl.u32 %v8806_v33, 16  ;;  %v4514_v27 = vshll.u32 %v8806_v33, 16  ;;  %9378 = vmatprep.subr.bf16.mxu0 %v10296_v37  ;;  %v4216_v36 = vmul.f32 %v12211_v26, %v4177_v6  ;;  %v4100_v56 = vadd.f32 %v9164_v51, %v4099_v11  ;;  %9843 = vmatpush3.bf16.msra.mxu1 %v10273_v52  ;;  %v12453_v52 = vpop.f32.mrf.mxu1  ;;  %v4770_v39 = vld [vmem:[#allocation3 + $0x60] sm:$0xf]  ;;  %v10306_v11 = vld [vmem:[#allocation9 + $0x80] sm:$0xff]  }
 0x278   : > { %v8807_v17 = vpack.c.bf16 %v4286_v2, %v4286_v2  ;;  %v5884_v59 = vsel %vm1496_vm9, %v5882_v42, %v5883_v10  ;;  %v4764_v8 = vsel %vm10852_vm8, %v4508_v34, %v4763_v44  ;;  %v5654_v5 = vshrl.u32 %v12424_v32, 16  ;;  %v12450_v28 = vpop.f32.mrf.mxu0  ;;  %9844 = vmatprep.subr.bf16.mxu1 %v10284_v22  ;;  %v10307_v51 = vld [vmem:[#allocation9 + $0x48] sm:$0xff]  }
 0x279   : > { %v4513_v30 = vrot.slane %v4511_v35, 7  ;;  %9807 = vmatmul.mubr.bf16.gmra.mxu0 %v5884_v59  ;;  %v5656_v12 = vshll.u32 %v12424_v32, 16  ;;  %4765 = vst [vmem:[#allocation3 + $0x54] sm:$0xf] %v4764_v8  ;;  %v4255_v14 = vadd.f32 %v12232_v9, %v4216_v36  ;;  %v4178_v37 = vadd.f32 %v4100_v56, %v12128_v4  ;;  %v5418_v6 = vld [vmem:[#allocation3 + $0x40] sm:$0xf] }
 0x27a   : > { %v4520_v63 = vshrl.u32 %v8807_v17, 16  ;;  %v4523_v13 = vshll.u32 %v8807_v17, 16  ;;  %9379 = vmatpush3.bf16.msra.mxu0 %v10300_v60  ;;  %6179 = vmatmul.mubr.bf16.gmra.mxu1 %v12384_v1  ;;  %v5661_v33 = vshll.u32 %v12414_v46, 16  ;;  %v12458_v10 = vpop.f32.mrf.mxu0  ;;  %v9167_v4 = vadd.f32 %v12389_v23, %v12382_v61  ;;  %v10257_v34 = vld [vmem:[#allocation3 + $0x44] ss:$0 sps:$4 sm:$0x11]  }
 0x27b   : > { %v4516_v18 = vor.u32 %v4514_v27, %v4513_v30  ;;  %v4518_v50 = vrot.slane %v4513_v30, 4  ;;  %v5658_v16 = vrot.slane %v5656_v12, 1  ;;  %9380 = vmatprep.subr.bf16.mxu0 %v10301_v31  ;;  %v4287_v2 = vmax.f32 %v4255_v14, 0.0  ;;  %9845 = vmatpush3.bf16.msra.mxu1 %v10284_v22  ;;  %v4102_v31 = vpop.f32.mrf.mxu1  ;;  %v5461_v17 = vld [vmem:[#allocation3 + $0x3c] sm:$0xe]  ;;  %v10311_v36 = vld [vmem:[#allocation9 + $0x8] sm:$0xff]  }
 0x27c   : > { %v12460_v44 = vrot.slane %v4520_v63, 7  ;;  %v4217_v62 = vmul.f32 %v12211_v26, %v4178_v37  ;;  %v5663_v60 = vrot.slane %v5661_v33, 1  ;;  %v12469_v35 = vpop.f32.mrf.mxu0  ;;  %9846 = vmatprep.subr.bf16.mxu1 %v10295_v41  ;;  %v4103_v56 = vadd.f32 %v9167_v4, %v4102_v31  ;;  %v10320_v33 = vld [vmem:[#allocation9 + $0x1f8] sm:$0xff]  }
 0x27d   : > { %v4517_v1 = vsel %vm10846_vm7, %v4509_v40, %v4516_v18  ;;  %v4768_v46 = vsel %vm10820_vm2, %v4518_v50, %v4767_v48  ;;  %v5659_v42 = vor.u32 %v5658_v16, %v5654_v5  ;;  %v8808_v23 = vpack.c.bf16 %v4287_v2, %v4287_v2  ;;  %v5417_v40 = vld [vmem:[#allocation3 + $0x3c] sm:$0xf]  ;;  %v12496_v31 = vld [vmem:[#allocation3 + $0x50] ss:$0 sps:$4 sm:$0x11]  }
 0x27e   : > { %4766 = vst [vmem:[#allocation3 + $0x58] sm:$0xf] %v4517_v1  ;;  %4769 = vst [vmem:[#allocation3 + $0x5c] sm:$0x1] %v4768_v46  ;;  %v4525_v27 = vor.u32 %v4523_v13, %v12460_v44  ;;  %v4526_v61 = vrot.slane %v12460_v44, 4  ;;  %v4256_v22 = vadd.f32 %v12232_v9, %v4217_v62  ;;  %9381 = vmatpush3.bf16.msra.mxu0 %v10305_v0  ;;  %v12477_v48 = vpop.f32.mrf.mxu0  ;;  %v10312_v5 = vld [vmem:[#allocation9 + $0x40] sm:$0xff]  }
 0x27f   : > { %v5664_v59 = vsel %vm1239_vm10, %v5659_v42, %v5663_v60  ;;  %v12475_v8 = vcombine.low %v5417_v40, %v5418_v6  ;;  %v8653_v30 = vcombine.low %v5461_v17, %v5418_v6  ;;  %9382 = vmatprep.subr.bf16.mxu0 %v10307_v51  ;;  %v4528_v63 = vshrl.u32 %v8808_v23, 16  ;;  %9847 = vmatpush3.bf16.msra.mxu1 %v10295_v41  ;;  %v4774_v44 = vld [vmem:[#allocation3 + $0x68] sm:$0x1]  ;;  %v10313_v41 = vld [vmem:[#allocation9] sm:$0xff]   ;;  %v5420_v6 = vld [vmem:[#allocation3 + $0x4c] sm:$0xf] }
 0x280   : > { %v4771_v12 = vsel %vm10852_vm8, %v4525_v27, %v4770_v39  ;;  %v4531_v13 = vshll.u32 %v8808_v23, 16  ;;  %v4288_v14 = vmax.f32 %v4256_v22, 0.0  ;;  %6186 = vmatprep.mubr.bf16.mxu1 %v5664_v59  ;;  %v4179_v37 = vadd.f32 %v4103_v56, %v12241_v53  ;;  %v12484_v16 = vpop.f32.mrf.mxu0  ;;  %9848 = vmatprep.subr.bf16.mxu1 %v10306_v11  ;;  %v10325_v46 = vld [vmem:[#allocation9 + $0x238] sm:$0xff]   ;;  %v12494_v22 = vpop.f32.mrf.mxu1 }
 0x281   : > { %4772 = vst [vmem:[#allocation3 + $0x60] sm:$0xf] %v4771_v12  ;;  %v5885_v0 = vrot.slane %v8653_v30, 1  ;;  %v5886_v18 = vrot.slane %v10257_v34, 1  ;;  %v9170_v50 = vadd.f32 %v12402_v29, %v12397_v57  ;;  %v4530_v51 = vrot.slane %v4528_v63, 7 }
 0x282   : > { %v8809_v39 = vpack.c.bf16 %v4288_v14, %v4288_v14  ;;  %v5666_v2 = vshrl.u32 %v12475_v8, 16  ;;  %v5668_v62 = vshll.u32 %v12475_v8, 16  ;;  %9383 = vmatpush3.bf16.msra.mxu0 %v10311_v36  ;;  %v4218_v53 = vmul.f32 %v12211_v26, %v4179_v37  ;;  %6187 = vmatmul.mubr.bf16.gmra.mxu1 %v12424_v32  ;;  %v12492_v1 = vpop.f32.mrf.mxu0  ;;  %v4777_v30 = vld [vmem:[#allocation3 + $0x6c] sm:$0xf] }
 0x283   : > { %v5887_v4 = vsel %vm1496_vm9, %v5885_v0, %v5886_v18  ;;  %v4108_v57 = vadd.f32 %v12419_v49, %v9170_v50  ;;  %v5673_v29 = vshll.u32 %v10257_v34, 16  ;;  %9384 = vmatprep.subr.bf16.mxu0 %v10312_v5  ;;  %v4533_v42 = vor.u32 %v4531_v13, %v4530_v51  ;;  %9849 = vmatpush3.bf16.msra.mxu1 %v10306_v11  ;;  %v5419_v5 = vld [vmem:[#allocation3 + $0x48] sm:$0xf] }
 0x284   : > { %v4535_v60 = vrot.slane %v4530_v51, 4  ;;  %v4537_v27 = vshrl.u32 %v8809_v39, 16  ;;  %v4540_v23 = vshll.u32 %v8809_v39, 16  ;;  %9810 = vmatprep.mubr.bf16.mxu0 %v5887_v4  ;;  %v4257_v32 = vadd.f32 %v12232_v9, %v4218_v53  ;;  %v12500_v17 = vpop.f32.mrf.mxu0  ;;  %9506 = vmatprep.subr.bf16.mxu1 %v10320_v33  ;;  %v5462_v13 = vld [vmem:[#allocation3 + $0x48] sm:$0xe] }
 0x285   : > { %v4180_v49 = vadd.f32 %v4108_v57, %v12126_v21  ;;  %v5670_v34 = vrot.slane %v5668_v62, 1  ;;  %v5675_v40 = vrot.slane %v5673_v29, 1  ;;  %v4534_v36 = vsel %vm10846_vm7, %v4526_v61, %v4533_v42  ;;  %v5422_v57 = vld [vmem:[#allocation3 + $0x58] sm:$0xf]  ;;  %v12533_v29 = vld [vmem:[%s13721_s2] ss:$0 sm:$0xff] }
 0x286   : > { %v4775_v59 = vsel %vm10820_vm2, %v4535_v60, %v4774_v44  ;;  %v12506_v56 = vrot.slane %v4537_v27, 7  ;;  %v9173_v11 = vadd.f32 %v12427_v55, %v12416_v7  ;;  %9385 = vmatpush3.bf16.msra.mxu0 %v10313_v41  ;;  %4773 = vst [vmem:[#allocation3 + $0x64] sm:$0xf] %v4534_v36  ;;  %v4289_v21 = vmax.f32 %v4257_v32, 0.0  ;;  %v12513_v61 = vpop.f32.mrf.mxu0  ;;  %v4115_v55 = vpop.f32.mrf.mxu1  ;;  %v4781_v32 = vld [vmem:[#allocation3 + $0x74] sm:$0x1] }
 0x287   : > { %4776 = vst [vmem:[#allocation3 + $0x68] sm:$0x1] %v4775_v59  ;;  %v4219_v12 = vmul.f32 %v12211_v26, %v4180_v49  ;;  %v5671_v63 = vor.u32 %v5670_v34, %v5666_v2  ;;  %v12511_v14 = vcombine.low %v5419_v5, %v5420_v6  ;;  %9882 = vmatprep.subr.bf16.mxu0 %v10325_v46  ;;  %v5889_v51 = vrot.slane %v12496_v31, 1  ;;  %v12546_v49 = vld [vmem:[%s13722_s3] ss:$0 sm:$0xff] }
 0x288   : > { %v4542_v37 = vor.u32 %v4540_v23, %v12506_v56  ;;  %v4543_v0 = vrot.slane %v12506_v56, 4  ;;  %v4111_v7 = vadd.f32 %v12453_v52, %v9173_v11  ;;  %v8654_v18 = vcombine.low %v5462_v13, %v5420_v6  ;;  %v12526_v52 = vpop.f32.mrf.mxu0  ;;  %v12536_v6 = vpop.f32.mrf.mxu1  ;;  %v5421_v23 = vld [vmem:[#allocation3 + $0x54] sm:$0xf] }
 0x289   : > { %v8810_v50 = vpack.c.bf16 %v4289_v21, %v4289_v21  ;;  %v4258_v33 = vadd.f32 %v12232_v9, %v4219_v12  ;;  %v5676_v26 = vsel %vm1239_vm10, %v5671_v63, %v5675_v40  ;;  %v9176_v62 = vadd.f32 %v12442_v20, %v12436_v38  ;;  %v13806_v40 = vld [vmem:[#allocation16_spill] sm:$0xff] }
 0x28a   : > { %v4778_v44 = vsel %vm10852_vm8, %v4542_v37, %v4777_v30  ;;  %6194 = vmatprep.mubr.bf16.mxu1 %v5676_v26  ;;  %v4181_v39 = vadd.f32 %v4111_v7, %v12133_v25  ;;  %v5888_v2 = vrot.slane %v8654_v18, 1  ;;  %v5678_v4 = vshrl.u32 %v12511_v14, 16  ;;  %v12552_v30 = vpop.f32.mrf.mxu0  ;;  %v4118_v63 = vpop.f32.mrf.mxu1  ;;  %v4784_v26 = vld [vmem:[#allocation3 + $0x78] sm:$0xf] }
 0x28b   : > { %4779 = vst [vmem:[#allocation3 + $0x6c] sm:$0xf] %v4778_v44  ;;  %v4545_v41 = vshrl.u32 %v8810_v50, 16  ;;  %v4548_v53 = vshll.u32 %v8810_v50, 16  ;;  %v4290_v9 = vmax.f32 %v4258_v33, 0.0  ;;  %6195 = vmatmul.mubr.bf16.gmra.mxu1 %v12475_v8  ;;  %v4116_v20 = vadd.f32 %v9176_v62, %v4115_v55 }
 0x28c   : > { %v4220_v25 = vmul.f32 %v12533_v29, %v4181_v39  ;;  %v5890_v38 = vsel %vm1496_vm9, %v5888_v2, %v5889_v51  ;;  %v5680_v46 = vshll.u32 %v12511_v14, 16  ;;  %v5685_v8 = vshll.u32 %v12496_v31, 16  ;;  %v5463_v33 = vld [vmem:[#allocation3 + $0x54] sm:$0xe]  ;;  %v12561_v62 = vpop.f32.mrf.mxu0 }
 0x28d   : > { %v4547_v42 = vrot.slane %v4545_v41, 7  ;;  %v8811_v60 = vpack.c.bf16 %v4290_v9, %v4290_v9  ;;  %9811 = vmatmul.mubr.bf16.gmra.mxu0 %v5890_v38  ;;  %v9179_v27 = vadd.f32 %v12458_v10, %v12450_v28  ;;  %v4182_v36 = vadd.f32 %v4116_v20, %v13806_v40  ;;  %v10264_v10 = vld [vmem:[#allocation3 + $0x5c] ss:$0 sps:$4 sm:$0x11]  }
 0x28e   : > { %v4259_v34 = vadd.f32 %v12546_v49, %v4220_v25  ;;  %v5682_v59 = vrot.slane %v5680_v46, 1  ;;  %v12550_v56 = vcombine.low %v5421_v23, %v5422_v57  ;;  %v5687_v37 = vrot.slane %v5685_v8, 1 }
 0x28f   : > { %v4550_v31 = vor.u32 %v4548_v53, %v4547_v42  ;;  %v4552_v11 = vrot.slane %v4547_v42, 4  ;;  %v4554_v5 = vshrl.u32 %v8811_v60, 16  ;;  %v4557_v28 = vshll.u32 %v8811_v60, 16 }
 0x290   : > { %v4291_v21 = vmax.f32 %v4259_v34, 0.0  ;;  %v4221_v12 = vmul.f32 %v12533_v29, %v4182_v36  ;;  %v5683_v13 = vor.u32 %v5682_v59, %v5678_v4  ;;  %v4119_v50 = vadd.f32 %v9179_v27, %v4118_v63  ;;  %v12577_v36 = vpop.f32.mrf.mxu1 }
 0x291   : > { %v4551_v7 = vsel %vm10846_vm7, %v4543_v0, %v4550_v31  ;;  %v4782_v55 = vsel %vm10820_vm2, %v4552_v11, %v4781_v32  ;;  %v4556_v18 = vrot.slane %v4554_v5, 7  ;;  %v8655_v2 = vcombine.low %v5463_v33, %v5422_v57  ;;  %v12573_v32 = vpop.f32.mrf.mxu0 }
 0x292   : > { %4780 = vst [vmem:[#allocation3 + $0x70] sm:$0xf] %v4551_v7  ;;  %4783 = vst [vmem:[#allocation3 + $0x74] sm:$0x1] %v4782_v55  ;;  %v8812_v51 = vpack.c.bf16 %v4291_v21, %v4291_v21  ;;  %v4260_v44 = vadd.f32 %v12546_v49, %v4221_v12  ;;  %v5688_v39 = vsel %vm1239_vm10, %v5683_v13, %v5687_v37  ;;  %v5892_v9 = vrot.slane %v10264_v10, 1  ;;  %v13807_v12 = vld [vmem:[#allocation18_spill] sm:$0xff] }
 0x293   : > { %v4559_v41 = vor.u32 %v4557_v28, %v4556_v18  ;;  %v4560_v53 = vrot.slane %v4556_v18, 4  ;;  %6202 = vmatprep.mubr.bf16.mxu1 %v5688_v39  ;;  %v4183_v0 = vadd.f32 %v4119_v50, %v12245_v24  ;;  %v5891_v20 = vrot.slane %v8655_v2, 1  ;;  %v5424_v28 = vld [vmem:[#allocation3 + $0x64] sm:$0xf]  ;;  %v5423_v7 = vld [vmem:[#allocation3 + $0x60] sm:$0xf]  ;;  %v12587_v18 = vpop.f32.mrf.mxu0 }
 0x294   : > { %v4562_v4 = vshrl.u32 %v8812_v51, 16  ;;  %v4565_v25 = vshll.u32 %v8812_v51, 16  ;;  %v4292_v38 = vmax.f32 %v4260_v44, 0.0  ;;  %6203 = vmatmul.mubr.bf16.gmra.mxu1 %v12511_v14  ;;  %v9182_v57 = vadd.f32 %v12477_v48, %v12469_v35  ;;  %v4788_v14 = vld [vmem:[#allocation3 + $0x80] sm:$0x1]  ;;  %v4131_v44 = vpop.f32.mrf.mxu1 }
 0x295   : > { %v4785_v46 = vsel %vm10852_vm8, %v4559_v41, %v4784_v26  ;;  %v4222_v42 = vmul.f32 %v12533_v29, %v4183_v0  ;;  %v5690_v60 = vshrl.u32 %v12550_v56, 16  ;;  %v5893_v27 = vsel %vm1496_vm9, %v5891_v20, %v5892_v9  ;;  %v4791_v50 = vld [vmem:[#allocation3 + $0x84] sm:$0xf]  ;;  %v5464_v39 = vld [vmem:[#allocation3 + $0x60] sm:$0xe]  ;;  %v13808_v0 = vld [vmem:[#allocation17_spill] sm:$0xff] }
 0x296   : > { %4786 = vst [vmem:[#allocation3 + $0x78] sm:$0xf] %v4785_v46  ;;  %v4564_v8 = vrot.slane %v4562_v4, 7  ;;  %v8813_v24 = vpack.c.bf16 %v4292_v38, %v4292_v38  ;;  %v5692_v23 = vshll.u32 %v12550_v56, 16  ;;  %9814 = vmatprep.mubr.bf16.mxu0 %v5893_v27  ;;  %v4124_v40 = vadd.f32 %v12494_v22, %v9182_v57  ;;  %v4795_v27 = vld [vmem:[#allocation3 + $0x8c] sm:$0x1] }
 0x297   : > { %v4261_v34 = vadd.f32 %v12546_v49, %v4222_v42  ;;  %v5697_v35 = vshll.u32 %v10264_v10, 16  ;;  %v9185_v48 = vadd.f32 %v12492_v1, %v12484_v16  ;;  %v10268_v1 = vld [vmem:[#allocation3 + $0x68] ss:$0 sps:$4 sm:$0x11]   ;;  %v12590_v2 = vcombine.low %v5423_v7, %v5424_v28 }
 0x298   : > { %v4567_v59 = vor.u32 %v4565_v25, %v4564_v8  ;;  %v4569_v31 = vrot.slane %v4564_v8, 4  ;;  %v4571_v11 = vshrl.u32 %v8813_v24, 16  ;;  %v4574_v5 = vshll.u32 %v8813_v24, 16  ;;  %v12598_v8 = vpop.f32.mrf.mxu0 }
 0x299   : > { %v4293_v21 = vmax.f32 %v4261_v34, 0.0  ;;  %v4184_v63 = vadd.f32 %v4124_v40, %v13807_v12  ;;  %v5694_v13 = vrot.slane %v5692_v23, 1  ;;  %v5699_v37 = vrot.slane %v5697_v35, 1 }
 0x29a   : > { %v4568_v22 = vsel %vm10846_vm7, %v4560_v53, %v4567_v59  ;;  %v4789_v10 = vsel %vm10820_vm2, %v4569_v31, %v4788_v14  ;;  %v4573_v55 = vrot.slane %v4571_v11, 7  ;;  %v4127_v16 = vadd.f32 %v12536_v6, %v9185_v48  ;;  %v12601_v14 = vpop.f32.mrf.mxu1  ;;  %v12609_v11 = vld [vmem:[#allocation3 + $0x74] ss:$0 sps:$4 sm:$0x11]  }
 0x29b   : > { %4787 = vst [vmem:[#allocation3 + $0x7c] sm:$0xf] %v4568_v22  ;;  %4790 = vst [vmem:[#allocation3 + $0x80] sm:$0x1] %v4789_v10  ;;  %v8814_v33 = vpack.c.bf16 %v4293_v21, %v4293_v21  ;;  %v4223_v26 = vmul.f32 %v12533_v29, %v4184_v63  ;;  %v5695_v51 = vor.u32 %v5694_v13, %v5690_v60  ;;  %v5895_v60 = vrot.slane %v10268_v1, 1 }
 0x29c   : > { %v4576_v41 = vor.u32 %v4574_v5, %v4573_v55  ;;  %v4577_v53 = vrot.slane %v4573_v55, 4  ;;  %v4185_v9 = vadd.f32 %v4127_v16, %v13808_v0  ;;  %v8656_v4 = vcombine.low %v5464_v39, %v5424_v28  ;;  %v4134_v16 = vpop.f32.mrf.mxu1  ;;  %v4798_v0 = vld [vmem:[#allocation3 + $0x90] sm:$0xf] }
 0x29d   : > { %v4579_v6 = vshrl.u32 %v8814_v33, 16  ;;  %v4582_v25 = vshll.u32 %v8814_v33, 16  ;;  %v4262_v38 = vadd.f32 %v12546_v49, %v4223_v26  ;;  %v5700_v20 = vsel %vm1239_vm10, %v5695_v51, %v5699_v37  ;;  %v12613_v37 = vpop.f32.mrf.mxu0 }
 0x29e   : > { %v4792_v46 = vsel %vm10852_vm8, %v4576_v41, %v4791_v50  ;;  %6210 = vmatprep.mubr.bf16.mxu1 %v5700_v20  ;;  %v4224_v42 = vmul.f32 %v12533_v29, %v4185_v9  ;;  %v5894_v57 = vrot.slane %v8656_v4, 1  ;;  %v9188_v34 = vadd.f32 %v12513_v61, %v12500_v17  ;;  %v5426_v61 = vld [vmem:[#allocation3 + $0x70] sm:$0xf]  ;;  %v13809_v50 = vld [vmem:[#allocation19_spill] sm:$0xff] }
 0x29f   : > { %4793 = vst [vmem:[#allocation3 + $0x84] sm:$0xf] %v4792_v46  ;;  %v4581_v24 = vrot.slane %v4579_v6, 7  ;;  %v4294_v23 = vmax.f32 %v4262_v38, 0.0  ;;  %6211 = vmatmul.mubr.bf16.gmra.mxu1 %v12550_v56  ;;  %v5702_v40 = vshrl.u32 %v12590_v2, 16  ;;  %v5704_v59 = vshll.u32 %v12590_v2, 16  ;;  %v9199_v38 = vpop.f32.mrf.mxu0 }
 0x2a0   : > { %v4263_v35 = vadd.f32 %v12546_v49, %v4224_v42  ;;  %v5896_v48 = vsel %vm1496_vm9, %v5894_v57, %v5895_v60  ;;  %v5709_v31 = vshll.u32 %v10268_v1, 16  ;;  %v4132_v56 = vadd.f32 %v9188_v34, %v4131_v44 }
 0x2a1   : > { %v4584_v5 = vor.u32 %v4582_v25, %v4581_v24  ;;  %v4586_v28 = vrot.slane %v4581_v24, 4  ;;  %v8815_v21 = vpack.c.bf16 %v4294_v23, %v4294_v23  ;;  %9815 = vmatmul.mubr.bf16.gmra.mxu0 %v5896_v48  ;;  %v5706_v63 = vrot.slane %v5704_v59, 1 }
 0x2a2   : > { %v4295_v12 = vmax.f32 %v4263_v35, 0.0  ;;  %v5711_v13 = vrot.slane %v5709_v31, 1  ;;  %v9191_v17 = vadd.f32 %v12552_v30, %v12526_v52  ;;  %v4186_v33 = vadd.f32 %v4132_v56, %v13809_v50  ;;  %v5425_v52 = vld [vmem:[#allocation3 + $0x6c] sm:$0xf] }
 0x2a3   : > { %v4585_v7 = vsel %vm10846_vm7, %v4577_v53, %v4584_v5  ;;  %v4796_v22 = vsel %vm10820_vm2, %v4586_v28, %v4795_v27  ;;  %v4588_v10 = vshrl.u32 %v8815_v21, 16  ;;  %v4591_v55 = vshll.u32 %v8815_v21, 16  ;;  %v5465_v30 = vld [vmem:[#allocation3 + $0x6c] sm:$0xe] }
 0x2a4   : > { %4794 = vst [vmem:[#allocation3 + $0x88] sm:$0xf] %v4585_v7  ;;  %4797 = vst [vmem:[#allocation3 + $0x8c] sm:$0x1] %v4796_v22  ;;  %v8816_v1 = vpack.c.bf16 %v4295_v12, %v4295_v12  ;;  %v5707_v26 = vor.u32 %v5706_v63, %v5702_v40  ;;  %v4135_v51 = vadd.f32 %v9191_v17, %v4134_v16  ;;  %v5898_v53 = vrot.slane %v12609_v11, 1 }
 0x2a5   : > { %v4590_v44 = vrot.slane %v4588_v10, 7  ;;  %v12620_v39 = vcombine.low %v5425_v52, %v5426_v61  ;;  %v8657_v41 = vcombine.low %v5465_v30, %v5426_v61  ;;  %v4225_v6 = vmul.f32 %v12533_v29, %v4186_v33  ;;  %v4802_v40 = vld [vmem:[#allocation3 + $0x98] sm:$0x1]  ;;  %v5428_v12 = vld [vmem:[#allocation3 + $0x7c] sm:$0xf]  ;;  %v13810_v61 = vld [vmem:[#allocation20_spill] sm:$0xff]  ;;  %v12648_v10 = vpop.f32.mrf.mxu1 }
 0x2a6   : > { %v4596_v9 = vshrl.u32 %v8816_v1, 16  ;;  %v4599_v4 = vshll.u32 %v8816_v1, 16  ;;  %v5712_v25 = vsel %vm1239_vm10, %v5707_v26, %v5711_v13  ;;  %v4187_v42 = vadd.f32 %v4135_v51, %v12251_v3  ;;  %v10276_v7 = vld [vmem:[#allocation3 + $0x80] ss:$0 sps:$4 sm:$0x11]  }
 0x2a7   : > { %v4593_v20 = vor.u32 %v4591_v55, %v4590_v44  ;;  %v4594_v46 = vrot.slane %v4590_v44, 4  ;;  %6218 = vmatprep.mubr.bf16.mxu1 %v5712_v25  ;;  %v5897_v57 = vrot.slane %v8657_v41, 1  ;;  %v4264_v24 = vadd.f32 %v12546_v49, %v4225_v6  ;;  %v5466_v33 = vld [vmem:[#allocation3 + $0x78] sm:$0xe]  ;;  %v13811_v44 = vld [vmem:[#allocation21_spill] sm:$0xff] }
 0x2a8   : > { %v4598_v60 = vrot.slane %v4596_v9, 7  ;;  %6219 = vmatmul.mubr.bf16.gmra.mxu1 %v12590_v2  ;;  %v9194_v27 = vadd.f32 %v12573_v32, %v12561_v62  ;;  %v5714_v23 = vshrl.u32 %v12620_v39, 16  ;;  %v4226_v35 = vmul.f32 %v12533_v29, %v4187_v42  ;;  %v12637_v62 = vpop.f32.mrf.mxu0  ;;  %v4805_v6 = vld [vmem:[#allocation3 + $0x9c] sm:$0xf]  ;;  %v4147_v42 = vpop.f32.mrf.mxu1 }
 0x2a9   : > { %v4799_v34 = vsel %vm10852_vm8, %v4593_v20, %v4798_v0  ;;  %v5899_v48 = vsel %vm1496_vm9, %v5897_v57, %v5898_v53  ;;  %v5716_v3 = vshll.u32 %v12620_v39, 16  ;;  %v4296_v5 = vmax.f32 %v4264_v24, 0.0 }
 0x2aa   : > { %4800 = vst [vmem:[#allocation3 + $0x90] sm:$0xf] %v4799_v34  ;;  %v4601_v59 = vor.u32 %v4599_v4, %v4598_v60  ;;  %v4603_v31 = vrot.slane %v4598_v60, 4  ;;  %9818 = vmatprep.mubr.bf16.mxu0 %v5899_v48  ;;  %v4140_v2 = vadd.f32 %v12577_v36, %v9194_v27  ;;  %v4265_v32 = vadd.f32 %v12546_v49, %v4226_v35  ;;  %v9202_v51 = vpop.f32.mrf.mxu0 }
 0x2ab   : > { %v5718_v28 = vrot.slane %v5716_v3, 1  ;;  %v5721_v21 = vshll.u32 %v12609_v11, 16  ;;  %v9197_v56 = vadd.f32 %v12598_v8, %v12587_v18  ;;  %v8817_v17 = vpack.c.bf16 %v4296_v5, %v4296_v5  ;;  %v5427_v8 = vld [vmem:[#allocation3 + $0x78] sm:$0xf]  ;;  %v4809_v3 = vld [vmem:[#allocation3 + $0xa4] sm:$0x1] }
 0x2ac   : > { %v4602_v63 = vsel %vm10846_vm7, %v4594_v46, %v4601_v59  ;;  %v4803_v13 = vsel %vm10820_vm2, %v4603_v31, %v4802_v40  ;;  %v4188_v36 = vadd.f32 %v4140_v2, %v13810_v61  ;;  %v4297_v22 = vmax.f32 %v4265_v32, 0.0  ;;  %v9204_v34 = vpop.f32.mrf.mxu0 }
 0x2ad   : > { %4801 = vst [vmem:[#allocation3 + $0x94] sm:$0xf] %v4602_v63  ;;  %4804 = vst [vmem:[#allocation3 + $0x98] sm:$0x1] %v4803_v13  ;;  %v5719_v11 = vor.u32 %v5718_v28, %v5714_v23  ;;  %v5723_v55 = vrot.slane %v5721_v21, 1  ;;  %v4143_v18 = vadd.f32 %v12601_v14, %v9197_v56  ;;  %v4605_v16 = vshrl.u32 %v8817_v17, 16  ;;  %v12667_v13 = vpop.f32.mrf.mxu1 }
 0x2ae   : > { %v4608_v1 = vshll.u32 %v8817_v17, 16  ;;  %v4227_v50 = vmul.f32 %v12533_v29, %v4188_v36  ;;  %v12652_v26 = vcombine.low %v5427_v8, %v5428_v12  ;;  %v8818_v52 = vpack.c.bf16 %v4297_v22, %v4297_v22  ;;  %v553_v56 = vld [vmem:[#allocation3 + $0xbc] sm:$0x1]  ;;  %v5430_v36 = vld [vmem:[#allocation3 + $0x88] sm:$0xf]  ;;  %v9205_v22 = vpop.f32.mrf.mxu0 }
 0x2af   : > { %v5724_v30 = vsel %vm1239_vm10, %v5719_v11, %v5723_v55  ;;  %v4189_v41 = vadd.f32 %v4143_v18, %v13811_v44  ;;  %v8658_v53 = vcombine.low %v5466_v33, %v5428_v12  ;;  %v4607_v0 = vrot.slane %v4605_v16, 7  ;;  %v12674_v16 = vld [vmem:[#allocation3 + $0x8c] ss:$0 sps:$4 sm:$0x11]  }
 0x2b0   : > { %v4266_v9 = vadd.f32 %v12546_v49, %v4227_v50  ;;  %6226 = vmatprep.mubr.bf16.mxu1 %v5724_v30  ;;  %v5901_v14 = vrot.slane %v10276_v7, 1  ;;  %v9200_v4 = vadd.f32 %v9199_v38, %v12613_v37  ;;  %v4613_v25 = vshrl.u32 %v8818_v52, 16  ;;  %v4812_v30 = vld [vmem:[#allocation3 + $0xa8] sm:$0xf] }
 0x2b1   : > { %v4616_v20 = vshll.u32 %v8818_v52, 16  ;;  %v4228_v46 = vmul.f32 %v12533_v29, %v4189_v41  ;;  %6227 = vmatmul.mubr.bf16.gmra.mxu1 %v12620_v39  ;;  %v5900_v57 = vrot.slane %v8658_v53, 1  ;;  %v4610_v60 = vor.u32 %v4608_v1, %v4607_v0  ;;  %v13812_v39 = vld [vmem:[#allocation22_spill] sm:$0xff]  ;;  %v5429_v52 = vld [vmem:[#allocation3 + $0x84] sm:$0xf] }
 0x2b2   : > { %v4611_v24 = vrot.slane %v4607_v0, 4  ;;  %v4298_v27 = vmax.f32 %v4266_v9, 0.0  ;;  %v4148_v23 = vadd.f32 %v9200_v4, %v4147_v42  ;;  %v4615_v40 = vrot.slane %v4613_v25, 7  ;;  %v502_v9 = vld [vmem:[#allocation3 + $0xc0] sm:$0x1]  ;;  %v4150_v25 = vpop.f32.mrf.mxu1  ;;  %v9207_v42 = vpop.f32.mrf.mxu0 }
 0x2b3   : > { %v4267_v35 = vadd.f32 %v12546_v49, %v4228_v46  ;;  %v5902_v48 = vsel %vm1496_vm9, %v5900_v57, %v5901_v14  ;;  %v5726_v37 = vshrl.u32 %v12652_v26, 16  ;;  %v4806_v38 = vsel %vm10852_vm8, %v4610_v60, %v4805_v6  ;;  %v5467_v46 = vld [vmem:[#allocation3 + $0x84] sm:$0xe] }
 0x2b4   : > { %v8819_v59 = vpack.c.bf16 %v4298_v27, %v4298_v27  ;;  %9819 = vmatmul.mubr.bf16.gmra.mxu0 %v5902_v48  ;;  %v4190_v31 = vadd.f32 %v4148_v23, %v13812_v39  ;;  %v5728_v5 = vshll.u32 %v12652_v26, 16  ;;  %4807 = vst [vmem:[#allocation3 + $0x9c] sm:$0xf] %v4806_v38  ;;  %v4618_v2 = vor.u32 %v4616_v20, %v4615_v40 }
 0x2b5   : > { %v4620_v32 = vrot.slane %v4615_v40, 4  ;;  %v4299_v28 = vmax.f32 %v4267_v35, 0.0  ;;  %v5733_v21 = vshll.u32 %v10276_v7, 16  ;;  %v554_v33 = vsel %vm10826_vm4, 0, %v553_v56 }
 0x2b6   : > { %v4622_v12 = vshrl.u32 %v8819_v59, 16  ;;  %v4625_v63 = vshll.u32 %v8819_v59, 16  ;;  %v4229_v17 = vmul.f32 %v12533_v29, %v4190_v31  ;;  %v5730_v61 = vrot.slane %v5728_v5, 1  ;;  %555 = vst [vmem:[#allocation3 + $0xbc] sm:$0x1] %v554_v33 }
 0x2b7   : > { %v4619_v11 = vsel %vm10846_vm7, %v4611_v24, %v4618_v2  ;;  %v4810_v55 = vsel %vm10820_vm2, %v4620_v32, %v4809_v3  ;;  %v8820_v18 = vpack.c.bf16 %v4299_v28, %v4299_v28  ;;  %v5735_v8 = vrot.slane %v5733_v21, 1  ;;  %v556_v5 = vld [vmem:[#allocation3 + $0xc8] sm:$0x1]  ;;  %v9208_v2 = vpop.f32.mrf.mxu0 }
 0x2b8   : > { %4808 = vst [vmem:[#allocation3 + $0xa0] sm:$0xf] %v4619_v11  ;;  %4811 = vst [vmem:[#allocation3 + $0xa4] sm:$0x1] %v4810_v55  ;;  %v4624_v7 = vrot.slane %v4622_v12, 7  ;;  %v4268_v1 = vadd.f32 %v12546_v49, %v4229_v17  ;;  %v5731_v50 = vor.u32 %v5730_v61, %v5726_v37  ;;  %v9203_v53 = vadd.f32 %v9202_v51, %v12637_v62 }
 0x2b9   : > { %v4630_v44 = vshrl.u32 %v8820_v18, 16  ;;  %v4633_v41 = vshll.u32 %v8820_v18, 16  ;;  %v12680_v0 = vcombine.low %v5429_v52, %v5430_v36  ;;  %v8659_v24 = vcombine.low %v5467_v46, %v5430_v36  ;;  %v4816_v51 = vld [vmem:[#allocation3 + $0xb0] sm:$0x1] }
 0x2ba   : > { %v4627_v14 = vor.u32 %v4625_v63, %v4624_v7  ;;  %v4628_v4 = vrot.slane %v4624_v7, 4  ;;  %v4300_v6 = vmax.f32 %v4268_v1, 0.0  ;;  %v5736_v20 = vsel %vm1239_vm10, %v5731_v50, %v5735_v8  ;;  %v10287_v17 = vld [vmem:[#allocation3 + $0x98] ss:$0 sps:$4 sm:$0x11]  }
 0x2bb   : > { %v4632_v57 = vrot.slane %v4630_v44, 7  ;;  %6234 = vmatprep.mubr.bf16.mxu1 %v5736_v20  ;;  %v4151_v60 = vadd.f32 %v9203_v53, %v4150_v25  ;;  %v5904_v27 = vrot.slane %v12674_v16, 1  ;;  %v503_v40 = vsel %vm10820_vm2, 0, %v502_v9  ;;  %v5431_v55 = vld [vmem:[#allocation3 + $0x90] sm:$0xf] }
 0x2bc   : > { %v4813_v62 = vsel %vm10852_vm8, %v4627_v14, %v4812_v30  ;;  %v8821_v23 = vpack.c.bf16 %v4300_v6, %v4300_v6  ;;  %6235 = vmatmul.mubr.bf16.gmra.mxu1 %v12652_v26  ;;  %v9206_v35 = vadd.f32 %v9205_v22, %v9204_v34  ;;  %v5903_v3 = vrot.slane %v8659_v24, 1  ;;  %504 = vst [vmem:[#allocation3 + $0xc0] sm:$0x1] %v503_v40  ;;  %v4819_v34 = vld [vmem:[#allocation3 + $0xb4] sm:$0xf] }
 0x2bd   : > { %4814 = vst [vmem:[#allocation3 + $0xa8] sm:$0xf] %v4813_v62  ;;  %v4635_v48 = vor.u32 %v4633_v41, %v4632_v57  ;;  %v4637_v37 = vrot.slane %v4632_v57, 4  ;;  %v4191_v38 = vadd.f32 %v4151_v60, %v12255_v58  ;;  %v5432_v58 = vld [vmem:[#allocation3 + $0x94] sm:$0xf]  ;;  %v5740_v12 = vshll.u32 %v12680_v0, 16 }
 0x2be   : > { %v4639_v59 = vshrl.u32 %v8821_v23, 16  ;;  %v4642_v39 = vshll.u32 %v8821_v23, 16  ;;  %v4156_v31 = vadd.f32 %v12648_v10, %v9206_v35  ;;  %v5905_v21 = vsel %vm1496_vm9, %v5903_v3, %v5904_v27  ;;  %v5469_v35 = vld [vmem:[#allocation3 + $0x9c] sm:$0xe] }
 0x2bf   : > { %v4636_v26 = vsel %vm10846_vm7, %v4628_v4, %v4635_v48  ;;  %v4817_v32 = vsel %vm10820_vm2, %v4637_v37, %v4816_v51  ;;  %v4230_v28 = vmul.f32 %v12533_v29, %v4191_v38  ;;  %9822 = vmatprep.mubr.bf16.mxu0 %v5905_v21  ;;  %v5745_v63 = vshll.u32 %v12674_v16, 16  ;;  %v5434_v9 = vld [vmem:[#allocation3 + $0xa0] sm:$0xf]  ;;  %v10292_v20 = vld [vmem:[#allocation3 + $0xa4] ss:$0 sps:$4 sm:$0x11]  }
 0x2c0   : > { %4815 = vst [vmem:[#allocation3 + $0xac] sm:$0xf] %v4636_v26  ;;  %4818 = vst [vmem:[#allocation3 + $0xb0] sm:$0x1] %v4817_v32  ;;  %v12697_v56 = vrot.slane %v4639_v59, 7  ;;  %v4192_v10 = vadd.f32 %v4156_v31, %v12199_v47  ;;  %v5738_v36 = vshrl.u32 %v12680_v0, 16  ;;  %v9209_v11 = vadd.f32 %v9208_v2, %v9207_v42 }
 0x2c1   : > { %v4269_v61 = vadd.f32 %v12546_v49, %v4230_v28  ;;  %v557_v22 = vsel %vm10826_vm4, 0, %v556_v5  ;;  %v5742_v7 = vrot.slane %v5740_v12, 1  ;;  %v5468_v47 = vld [vmem:[#allocation3 + $0x90] sm:$0xe]  ;;  %v12708_v1 = vcombine.low %v5431_v55, %v5432_v58  ;;  %v5433_v51 = vld [vmem:[#allocation3 + $0x9c] sm:$0xf] }
 0x2c2   : > { %v4644_v18 = vor.u32 %v4642_v39, %v12697_v56  ;;  %v4231_v8 = vmul.f32 %v12533_v29, %v4192_v10  ;;  %558 = vst [vmem:[#allocation3 + $0xc8] sm:$0x1] %v557_v22  ;;  %v5747_v50 = vrot.slane %v5745_v63, 1  ;;  %v4159_v33 = vadd.f32 %v12667_v13, %v9209_v11  ;;  %v4823_v38 = vld [vmem:[#allocation3 + $0xbc] sm:$0x1] }
 0x2c3   : > { %v4301_v16 = vmax.f32 %v4269_v61, 0.0  ;;  %v8660_v52 = vcombine.low %v5468_v47, %v5432_v58  ;;  %v5743_v41 = vor.u32 %v5742_v7, %v5738_v36  ;;  %v5907_v53 = vrot.slane %v10287_v17, 1  ;;  %v454_v11 = vld [vmem:[#allocation3] sm:$0x1] }
 0x2c4   : > { %v4820_v30 = vsel %vm10852_vm8, %v4644_v18, %v4819_v34  ;;  %v4270_v44 = vadd.f32 %v12546_v49, %v4231_v8  ;;  %v4645_v14 = vrot.slane %v12697_v56, 4  ;;  %v4193_v6 = vadd.f32 %v4159_v33, %v12205_v43  ;;  %v5435_v22 = vld [vmem:[#allocation3 + $0xa8] sm:$0xf] }
 0x2c5   : > { %4821 = vst [vmem:[#allocation3 + $0xb4] sm:$0xf] %v4820_v30  ;;  %v8822_v4 = vpack.c.bf16 %v4301_v16, %v4301_v16  ;;  %v5906_v25 = vrot.slane %v8660_v52, 1  ;;  %v5748_v13 = vsel %vm1239_vm10, %v5743_v41, %v5747_v50  ;;  %v5752_v42 = vshll.u32 %v12708_v1, 16  ;;  %v5470_v47 = vld [vmem:[#allocation3 + $0xa8] sm:$0xe] }
 0x2c6   : > { %v4302_v46 = vmax.f32 %v4270_v44, 0.0  ;;  %v5757_v57 = vshll.u32 %v10287_v17, 16  ;;  %6242 = vmatprep.mubr.bf16.mxu1 %v5748_v13  ;;  %v4232_v24 = vmul.f32 %v12533_v29, %v4193_v6  ;;  %v5750_v62 = vshrl.u32 %v12708_v1, 16  ;;  %v4826_v17 = vld [vmem:[#allocation3 + $0xc0] sm:$0xf] }
 0x2c7   : > { %v4647_v60 = vshrl.u32 %v8822_v4, 16  ;;  %v5908_v27 = vsel %vm1496_vm9, %v5906_v25, %v5907_v53  ;;  %v4650_v23 = vshll.u32 %v8822_v4, 16  ;;  %6243 = vmatmul.mubr.bf16.gmra.mxu1 %v12680_v0  ;;  %v5754_v43 = vrot.slane %v5752_v42, 1  ;;  %v5436_v0 = vld [vmem:[#allocation3 + $0xac] sm:$0xf] }
 0x2c8   : > { %v8823_v40 = vpack.c.bf16 %v4302_v46, %v4302_v46  ;;  %9823 = vmatmul.mubr.bf16.gmra.mxu0 %v5908_v27  ;;  %v12722_v48 = vcombine.low %v5433_v51, %v5434_v9  ;;  %v4271_v3 = vadd.f32 %v12546_v49, %v4232_v24  ;;  %v8661_v59 = vcombine.low %v5469_v35, %v5434_v9  ;;  %v10298_v12 = vld [vmem:[#allocation3 + $0xb0] ss:$0 sps:$4 sm:$0x11]   ;;  %v508_v30 = vld [vmem:[#allocation3 + $0x8] sm:$0x1] }
 0x2c9   : > { %v4649_v37 = vrot.slane %v4647_v60, 7  ;;  %v5910_v29 = vrot.slane %v10292_v20, 1  ;;  %v5755_v5 = vor.u32 %v5754_v43, %v5750_v62  ;;  %v5759_v2 = vrot.slane %v5757_v57, 1 }
 0x2ca   : > { %v4656_v39 = vshrl.u32 %v8823_v40, 16  ;;  %v4659_v31 = vshll.u32 %v8823_v40, 16  ;;  %v4303_v34 = vmax.f32 %v4271_v3, 0.0  ;;  %v5909_v28 = vrot.slane %v8661_v59, 1 }
 0x2cb   : > { %v4652_v26 = vor.u32 %v4650_v23, %v4649_v37  ;;  %v4654_v32 = vrot.slane %v4649_v37, 4  ;;  %v5760_v58 = vsel %vm1239_vm10, %v5755_v5, %v5759_v2  ;;  %v5764_v56 = vshll.u32 %v12722_v48, 16  ;;  %v4834_v5 = vld [vmem:[#allocation3 + $0x4] sm:$0xf] }
 0x2cc   : > { %v4658_v21 = vrot.slane %v4656_v39, 7  ;;  %v5769_v10 = vshll.u32 %v10292_v20, 16  ;;  %v8824_v61 = vpack.c.bf16 %v4303_v34, %v4303_v34  ;;  %6250 = vmatprep.mubr.bf16.mxu1 %v5760_v58  ;;  %v5911_v36 = vsel %vm1496_vm9, %v5909_v28, %v5910_v29  ;;  %v4830_v20 = vld [vmem:[#allocation3 + $0xc8] sm:$0x1]  ;;  %v5437_v27 = vld [vmem:[#allocation3 + $0xb4] sm:$0xf] }
 0x2cd   : > { %v4653_v49 = vsel %vm10846_vm7, %v4645_v14, %v4652_v26  ;;  %v4824_v63 = vsel %vm10820_vm2, %v4654_v32, %v4823_v38  ;;  %9826 = vmatprep.mubr.bf16.mxu0 %v5911_v36  ;;  %v5762_v8 = vshrl.u32 %v12722_v48, 16  ;;  %v5766_v7 = vrot.slane %v5764_v56, 1  ;;  %v5471_v62 = vld [vmem:[#allocation3 + $0xb4] sm:$0xe]  ;;  %v12751_v29 = vld [vmem:[#allocation3 + $0x10] sm:$0xf] }
 0x2ce   : > { %4822 = vst [vmem:[#allocation3 + $0xb8] sm:$0xf] %v4653_v49  ;;  %4825 = vst [vmem:[#allocation3 + $0xbc] sm:$0x1] %v4824_v63  ;;  %v4661_v55 = vor.u32 %v4659_v31, %v4658_v21  ;;  %v4662_v18 = vrot.slane %v4658_v21, 4  ;;  %v4664_v16 = vshrl.u32 %v8824_v61, 16  ;;  %v12733_v33 = vcombine.low %v5435_v22, %v5436_v0 }
 0x2cf   : > { %v5771_v50 = vrot.slane %v5769_v10, 1  ;;  %v8662_v52 = vcombine.low %v5470_v47, %v5436_v0  ;;  %v4667_v41 = vshll.u32 %v8824_v61, 16  ;;  %6251 = vmatmul.mubr.bf16.gmra.mxu1 %v12708_v1  ;;  %v5767_v53 = vor.u32 %v5766_v7, %v5762_v8  ;;  %v4835_v26 = vld [vmem:[#allocation3 + $0xc] sm:$0xf] }
 0x2d0   : > { %v4827_v44 = vsel %vm10852_vm8, %v4661_v55, %v4826_v17  ;;  %v5913_v9 = vrot.slane %v10298_v12, 1  ;;  %v4666_v14 = vrot.slane %v4664_v16, 7  ;;  %v5776_v6 = vshll.u32 %v12733_v33, 16 }
 0x2d1   : > { %4828 = vst [vmem:[#allocation3 + $0xc0] sm:$0xf] %v4827_v44  ;;  %v5912_v4 = vrot.slane %v8662_v52, 1  ;;  %v5781_v25 = vshll.u32 %v10298_v12, 16  ;;  %v5772_v46 = vsel %vm1239_vm10, %v5767_v53, %v5771_v50  ;;  %v5774_v13 = vshrl.u32 %v12733_v33, 16 }
 0x2d2   : > { %v455_v54 = vsel %vm10820_vm2, 0, %v454_v11  ;;  %v509_v42 = vsel %vm10826_vm4, 0, %v508_v30  ;;  %v4669_v1 = vor.u32 %v4667_v41, %v4666_v14  ;;  %v4671_v57 = vrot.slane %v4666_v14, 4  ;;  %6258 = vmatprep.mubr.bf16.mxu1 %v5772_v46  ;;  %v12764_v52 = vld [vmem:[#allocation3 + $0x1c] sm:$0xf] }
 0x2d3   : > { %v5914_v60 = vsel %vm1496_vm9, %v5912_v4, %v5913_v9  ;;  %v5778_v24 = vrot.slane %v5776_v6, 1  ;;  %456 = vst [vmem:[#allocation3] sm:$0x1] %v455_v54  ;;  %510 = vst [vmem:[#allocation3 + $0x8] sm:$0x1] %v509_v42  ;;  %v5783_v43 = vrot.slane %v5781_v25, 1  ;;  %v12758_v56 = vcombine.low %v4835_v26, %v12751_v29 }
 0x2d4   : > { %9827 = vmatmul.mubr.bf16.gmra.mxu0 %v5914_v60  ;;  %v4670_v51 = vsel %vm10846_vm7, %v4662_v18, %v4669_v1  ;;  %v4831_v23 = vsel %vm10820_vm2, %v4671_v57, %v4830_v20  ;;  %v12766_v53 = vld [vmem:[#allocation3 + $0x14] ss:$0 sps:$4 sm:$0x11]   ;;  %v4881_v6 = vld [vmem:[#allocation3] sm:$0xe] }
 0x2d5   : > { %v5779_v40 = vor.u32 %v5778_v24, %v5774_v13  ;;  %v5438_v35 = vld [vmem:[#allocation3 + $0xb8] sm:$0xf]  ;;  %4829 = vst [vmem:[#allocation3 + $0xc4] sm:$0xf] %v4670_v51  ;;  %4832 = vst [vmem:[#allocation3 + $0xc8] sm:$0x1] %v4831_v23  ;;  %v8601_v60 = vcombine.low %v4881_v6, %v4834_v5 }
 0x2d6   : > { %v8631_v37 = vcombine.low %v5437_v27, %v5438_v35  ;;  %v10303_v38 = vld [vmem:[#allocation3 + $0xbc] ss:$0 sps:$4 sm:$0x11]   ;;  %v8663_v3 = vcombine.low %v5471_v62, %v5438_v35  ;;  %v5056_v7 = vshll.u32 %v12758_v56, 16  ;;  %v4837_v25 = vld [vmem:[#allocation3 + $0x18] sm:$0xf] }
 0x2d7   : > { %v5784_v59 = vsel %vm1239_vm10, %v5779_v40, %v5783_v43  ;;  %6259 = vmatmul.mubr.bf16.gmra.mxu1 %v12722_v48  ;;  %v5916_v45 = vrot.slane %v10303_v38, 1  ;;  %v5793_v2 = vshll.u32 %v10303_v38, 16  ;;  %v12771_v46 = vcombine.low %v4837_v25, %v12764_v52  ;;  %v12777_v62 = vld [vmem:[#allocation3 + $0x28] sm:$0xf]  ;;  %v4839_v38 = vld [vmem:[#allocation3 + $0x24] sm:$0xf] }
 0x2d8   : > { %v5915_v39 = vrot.slane %v8663_v3, 1  ;;  %v5788_v31 = vshll.u32 %v8631_v37, 16  ;;  %6266 = vmatprep.mubr.bf16.mxu1 %v5784_v59  ;;  %v5786_v34 = vshrl.u32 %v8631_v37, 16  ;;  %v5439_v12 = vld [vmem:[#allocation3 + $0xc0] sm:$0xf]  ;;  %v5058_v20 = vrot.slane %v5056_v7, 1 }
 0x2d9   : > { %v5795_v10 = vrot.slane %v5793_v2, 1  ;;  %v5472_v49 = vld [vmem:[#allocation3 + $0xc0] sm:$0xe]  ;;  %v5054_v42 = vshrl.u32 %v12758_v56, 16  ;;  %v5061_v1 = vshll.u32 %v12766_v53, 16  ;;  %v5068_v27 = vshll.u32 %v12771_v46, 16 }
 0x2da   : > { %v5917_v32 = vsel %vm1496_vm9, %v5915_v39, %v5916_v45  ;;  %v5790_v28 = vrot.slane %v5788_v31, 1  ;;  %v4833_v0 = vld [vmem:[#allocation3] sm:$0xf]  ;;  %v12755_v58 = vld [vmem:[#allocation3 + $0x8] ss:$0 sps:$4 sm:$0x11]   ;;  %v12782_v39 = vcombine.low %v4839_v38, %v12777_v62 }
 0x2db   : > { %9830 = vmatprep.mubr.bf16.mxu0 %v5917_v32  ;;  %v8569_v21 = vcombine.low %v4833_v0, %v4834_v5  ;;  %v5049_v18 = vshll.u32 %v12755_v58, 16  ;;  %v5059_v24 = vor.u32 %v5058_v20, %v5054_v42  ;;  %v5063_v51 = vrot.slane %v5061_v1, 1  ;;  %v10322_v23 = vld [vmem:[#allocation3 + $0x20] ss:$0 sps:$4 sm:$0x11]   ;;  %v10342_v40 = vld [vmem:[#allocation9 + $0x230] sm:$0xff]  }
 0x2dc   : > { %v5791_v48 = vor.u32 %v5790_v28, %v5786_v34  ;;  %v5440_v63 = vld [vmem:[#allocation3 + $0xc4] sm:$0xf]  ;;  %v10309_v11 = vld [vmem:[#allocation3 + $0xc8] ss:$0 sps:$4 sm:$0x11]   ;;  %v5297_v43 = vrot.slane %v8601_v60, 1 }
 0x2dd   : > { %v5042_v17 = vshrl.u32 %v8569_v21, 16  ;;  %v5044_v61 = vshll.u32 %v8569_v21, 16  ;;  %v8632_v22 = vcombine.low %v5439_v12, %v5440_v63  ;;  %v8664_v55 = vcombine.low %v5472_v49, %v5440_v63  ;;  %v10436_v45 = vld [vmem:[#allocation9 + $0x238] sm:$0xff]   ;;  %v10359_v5 = vld [vmem:[#allocation9 + $0x228] sm:$0xff]   ;;  %v4882_v26 = vld [vmem:[#allocation3 + $0xc] sm:$0xe] }
 0x2de   : > { %v5796_v36 = vsel %vm1239_vm10, %v5791_v48, %v5795_v10  ;;  %v5919_v16 = vrot.slane %v10309_v11, 1  ;;  %v5805_v30 = vshll.u32 %v10309_v11, 16  ;;  %v5051_v41 = vrot.slane %v5049_v18, 1  ;;  %v4883_v34 = vld [vmem:[#allocation3 + $0x18] sm:$0xe]  ;;  %v10391_v25 = vld [vmem:[#allocation9 + $0x210] sm:$0xff]  }
 0x2df   : > { %v5046_v8 = vrot.slane %v5044_v61, 1  ;;  %6267 = vmatmul.mubr.bf16.gmra.mxu1 %v12733_v33  ;;  %v5918_v47 = vrot.slane %v8664_v55, 1  ;;  %v5800_v50 = vshll.u32 %v8632_v22, 16  ;;  %v5798_v14 = vshrl.u32 %v8632_v22, 16  ;;  %v10376_v12 = vld [vmem:[#allocation9 + $0x220] sm:$0xff]   ;;  %v10324_v55 = vld [vmem:[#allocation9 + $0x1b8] sm:$0xff]  }
 0x2e0   : > { %6274 = vmatprep.mubr.bf16.mxu1 %v5796_v36  ;;  %v5807_v54 = vrot.slane %v5805_v30, 1  ;;  %v5298_v35 = vrot.slane %v12755_v58, 1  ;;  %v5064_v3 = vsel %vm1239_vm10, %v5059_v24, %v5063_v51  ;;  %v5070_v59 = vrot.slane %v5068_v27, 1  ;;  %v4842_v58 = vld [vmem:[#allocation3 + $0x34] sm:$0xf]  ;;  %v10341_v51 = vld [vmem:[#allocation9 + $0x1a8] sm:$0xff]  }
 0x2e1   : > { %v5047_v44 = vor.u32 %v5046_v8, %v5042_v17  ;;  %v5920_v9 = vsel %vm1496_vm9, %v5918_v47, %v5919_v16  ;;  %v5802_v4 = vrot.slane %v5800_v50, 1  ;;  %v5073_v31 = vshll.u32 %v10322_v23, 16  ;;  %v12789_v10 = vld [vmem:[#allocation3 + $0x2c] ss:$0 sps:$4 sm:$0x11]   ;;  %v10386_v16 = vld [vmem:[#allocation9 + $0x218] sm:$0xff]  }
 0x2e2   : > { %9831 = vmatmul.mubr.bf16.gmra.mxu0 %v5920_v9  ;;  %v5299_v2 = vsel %vm1496_vm9, %v5297_v43, %v5298_v35  ;;  %v8602_v32 = vcombine.low %v4882_v26, %v12751_v29  ;;  %v5080_v0 = vshll.u32 %v12782_v39, 16  ;;  %v5301_v49 = vrot.slane %v12766_v53, 1  ;;  %v4841_v63 = vld [vmem:[#allocation3 + $0x30] sm:$0xf]  ;;  %v4884_v7 = vld [vmem:[#allocation3 + $0x24] sm:$0xe] }
 0x2e3   : > { %v5052_v33 = vsel %vm1239_vm10, %v5047_v44, %v5051_v41  ;;  %v5803_v13 = vor.u32 %v5802_v4, %v5798_v14  ;;  %v5075_v48 = vrot.slane %v5073_v31, 1  ;;  %v12794_v61 = vcombine.low %v4841_v63, %v4842_v58  ;;  %v10329_v47 = vld [vmem:[#allocation9 + $0x1f0] sm:$0xff]   ;;  %v10331_v53 = vld [vmem:[#allocation3 + $0x38] ss:$0 sps:$4 sm:$0x11]   ;;  %v10396_v35 = vld [vmem:[#allocation9 + $0x208] sm:$0xff]  }
 0x2e4   : > { %6628 = vmatprep.mubr.bf16.mxu0 %v5052_v33  ;;  %v5300_v17 = vrot.slane %v8602_v32, 1  ;;  %v5082_v36 = vrot.slane %v5080_v0, 1  ;;  %v5304_v11 = vrot.slane %v10322_v23, 1  ;;  %v5078_v18 = vshrl.u32 %v12782_v39, 16  ;;  %v4844_v14 = vld [vmem:[#allocation3 + $0x40] sm:$0xf] }
 0x2e5   : > { %v5808_v57 = vsel %vm1239_vm10, %v5803_v13, %v5807_v54  ;;  %v5085_v8 = vshll.u32 %v12789_v10, 16  ;;  %v8604_v50 = vcombine.low %v4884_v7, %v12777_v62  ;;  %v5092_v44 = vshll.u32 %v12794_v61, 16  ;;  %v10333_v4 = vld [vmem:[#allocation9 + $0x1b0] sm:$0xff]   ;;  %v4843_v20 = vld [vmem:[#allocation3 + $0x3c] sm:$0xf]  ;;  %v10337_v13 = vld [vmem:[#allocation9 + $0x1e8] sm:$0xff]  }
 0x2e6   : > { %v5083_v30 = vor.u32 %v5082_v36, %v5078_v18  ;;  %v5307_v33 = vrot.slane %v12789_v10, 1  ;;  %v12805_v1 = vcombine.low %v4843_v20, %v4844_v14  ;;  %v5310_v24 = vrot.slane %v10331_v53, 1  ;;  %v4886_v27 = vld [vmem:[#allocation3 + $0x3c] sm:$0xe]  ;;  %v4846_v62 = vld [vmem:[#allocation3 + $0x4c] sm:$0xf] }
 0x2e7   : > { %6275 = vmatmul.mubr.bf16.gmra.mxu1 %v8631_v37  ;;  %v5066_v37 = vshrl.u32 %v12771_v46, 16  ;;  %v5087_v6 = vrot.slane %v5085_v8, 1  ;;  %v5306_v54 = vrot.slane %v8604_v50, 1  ;;  %v5090_v23 = vshrl.u32 %v12794_v61, 16  ;;  %v10350_v32 = vld [vmem:[#allocation9 + $0x1a0] sm:$0xff]   ;;  %v10363_v18 = vld [vmem:[#allocation9 + $0x1d0] sm:$0xff]  }
 0x2e8   : > { %6282 = vmatprep.mubr.bf16.mxu1 %v5808_v57  ;;  %v5094_v57 = vrot.slane %v5092_v44, 1  ;;  %v10335_v43 = vld [vmem:[#allocation3 + $0x44] ss:$0 sps:$4 sm:$0x11]   ;;  %v4845_v0 = vld [vmem:[#allocation3 + $0x48] sm:$0xf] }
 0x2e9   : > { %v5071_v28 = vor.u32 %v5070_v59, %v5066_v37  ;;  %v5088_v42 = vsel %vm1239_vm10, %v5083_v30, %v5087_v6  ;;  %v5308_v38 = vsel %vm1496_vm9, %v5306_v54, %v5307_v33  ;;  %v4887_v59 = vld [vmem:[#allocation3 + $0x48] sm:$0xe]  ;;  %v5104_v37 = vshll.u32 %v12805_v1, 16  ;;  %v12820_v8 = vld [vmem:[#allocation3 + $0x5c] ss:$0 sps:$4 sm:$0x11]  }
 0x2ea   : > { %6629 = vmatmul.mubr.bf16.vlgmr.msra.gmra.mxu0 %v8569_v21  ;;  %v8603_v21 = vcombine.low %v4883_v34, %v12764_v52  ;;  %v4885_v52 = vld [vmem:[#allocation3 + $0x30] sm:$0xe]  ;;  %v10401_v34 = vld [vmem:[#allocation9 + $0x200] sm:$0xff]   ;;  %v5102_v36 = vshrl.u32 %v12805_v1, 16  ;;  %v4847_v44 = vld [vmem:[#allocation3 + $0x54] sm:$0xf] }
 0x2eb   : > { %6636 = vmatprep.mubr.bf16.mxu0 %v5064_v3  ;;  %9883 = vmatpush3.bf16.msra.mxu0 %v10436_v45  ;;  %v5076_v29 = vsel %vm1239_vm10, %v5071_v28, %v5075_v48  ;;  %v8605_v9 = vcombine.low %v4885_v52, %v4842_v58  ;;  %v8606_v3 = vcombine.low %v4886_v27, %v4844_v14  ;;  %v5313_v28 = vrot.slane %v10335_v43, 1  ;;  %v12824_v52 = vld [vmem:[#allocation3 + $0x68] ss:$0 sps:$4 sm:$0x11]   ;;  %v10371_v14 = vld [vmem:[#allocation9 + $0x1c8] sm:$0xff]  }
 0x2ec   : > { %9884 = vmatprep.subr.bf16.mxu0 %v10342_v40  ;;  %v5095_v45 = vor.u32 %v5094_v57, %v5090_v23  ;;  %v12813_v48 = vcombine.low %v4845_v0, %v4846_v62  ;;  %v5319_v6 = vrot.slane %v12820_v8, 1  ;;  %v4852_v54 = vld [vmem:[#allocation3 + $0x70] sm:$0xf]  ;;  %v4890_v27 = vld [vmem:[#allocation3 + $0x6c] sm:$0xe] }
 0x2ed   : > { %v5309_v60 = vrot.slane %v8605_v9, 1  ;;  %v5312_v58 = vrot.slane %v8606_v3, 1  ;;  %v8610_v23 = vcombine.low %v4890_v27, %v4852_v54  ;;  %v12850_v0 = vld [vmem:[#allocation3 + $0x88] sm:$0xf] }
 0x2ee   : > { %v5114_v57 = vshrl.u32 %v12813_v48, 16 }
 0x2ef   : > { %6283 = vmatmul.mubr.bf16.gmra.mxu1 %v8632_v22  ;;  %9885 = vmatpush3.bf16.msra.mxu0 %v10342_v40  ;;  %v5303_v22 = vrot.slane %v8603_v21, 1  ;;  %v5097_v40 = vshll.u32 %v10331_v53, 16  ;;  %v5311_v31 = vsel %vm1496_vm9, %v5309_v60, %v5310_v24  ;;  %v10354_v21 = vld [vmem:[#allocation9 + $0x1d8] sm:$0xff]   ;;  %v10367_v53 = vld [vmem:[#allocation9 + $0x190] sm:$0xff]   ;;  %v10375_v24 = vld [vmem:[#allocation9 + $0x188] sm:$0xff]  }
 0x2f0   : > { %9850 = vmatprep.mubr.bf16.mxu1 %v5299_v2  ;;  %9886 = vmatprep.subr.bf16.mxu0 %v10359_v5  ;;  %v8607_v2 = vcombine.low %v4887_v59, %v4846_v62  ;;  %v10380_v62 = vld [vmem:[#allocation9 + $0x1c0] sm:$0xff]   ;;  %v4849_v59 = vld [vmem:[#allocation3 + $0x60] sm:$0xf] }
 0x2f1   : > { %v5305_v41 = vsel %vm1496_vm9, %v5303_v22, %v5304_v11  ;;  %v5099_v26 = vrot.slane %v5097_v40, 1  ;;  %v5109_v22 = vshll.u32 %v10335_v43, 16  ;;  %v10358_v11 = vld [vmem:[#allocation9 + $0x198] sm:$0xff]   ;;  %v4891_v40 = vld [vmem:[#allocation3 + $0x78] sm:$0xe] }
 0x2f2   : > { %6637 = vmatmul.mubr.bf16.gmra.mxu0 %v12758_v56  ;;  %v5302_v56 = vsel %vm1496_vm9, %v5300_v17, %v5301_v49  ;;  %v5315_v49 = vrot.slane %v8607_v2, 1  ;;  %v4848_v17 = vld [vmem:[#allocation3 + $0x58] sm:$0xf] }
 0x2f3   : > { %6644 = vmatprep.mubr.bf16.mxu0 %v5076_v29  ;;  %9887 = vmatpush3.bf16.msra.mxu0 %v10359_v5  ;;  %v12811_v5 = vld [vmem:[#allocation3 + $0x50] ss:$0 sps:$4 sm:$0x11]   ;;  %v5100_v10 = vsel %vm1239_vm10, %v5095_v45, %v5099_v26  ;;  %v4850_v29 = vld [vmem:[#allocation3 + $0x64] sm:$0xf]  ;;  %v12826_v9 = vcombine.low %v4847_v44, %v4848_v17 }
 0x2f4   : > { %9888 = vmatprep.subr.bf16.mxu0 %v10376_v12  ;;  %v5316_v63 = vrot.slane %v12811_v5, 1  ;;  %v5121_v60 = vshll.u32 %v12811_v5, 16  ;;  %v5324_v5 = vrot.slane %v8610_v23, 1  ;;  %v12871_v44 = vld [vmem:[#allocation3 + $0xa0] sm:$0xf] }
 0x2f6   : > { %v5317_v50 = vsel %vm1496_vm9, %v5315_v49, %v5316_v63  ;;  %v5123_v45 = vrot.slane %v5121_v60, 1 }
 0x2f7   : > { %9851 = vmatmul.mubr.bf16.vlgmr.msra.gmra.mxu1 %v5302_v56  ;;  %9889 = vmatpush3.bf16.msra.mxu0 %v10376_v12  ;;  %v5106_v12 = vrot.slane %v5104_v37, 1  ;;  %v5116_v56 = vshll.u32 %v12813_v48, 16  ;;  %v10381_v37 = vld [vmem:[#allocation9 + $0x180] sm:$0xff]  }
 0x2f8   : > { %9854 = vmatprep.mubr.bf16.mxu1 %v5305_v41  ;;  %9507 = vmatpush3.bf16.msra.mxu1 %v10324_v55  ;;  %v4888_v55 = vld [vmem:[#allocation3 + $0x54] sm:$0xe]  ;;  %v5111_v41 = vrot.slane %v5109_v22, 1 }
 0x2f9   : > { %9508 = vmatprep.subr.bf16.mxu1 %v10329_v47  ;;  %9890 = vmatprep.subr.bf16.mxu0 %v10386_v16  ;;  %v8608_v7 = vcombine.low %v4888_v55, %v4848_v17  ;;  %v4889_v47 = vld [vmem:[#allocation3 + $0x60] sm:$0xe]  ;;  %v5118_v33 = vrot.slane %v5116_v56, 1  ;;  %v4893_v17 = vld [vmem:[#allocation3 + $0x90] sm:$0xe] }
 0x2fa   : > { %6645 = vmatmul.mubr.bf16.gmra.mxu0 %v12771_v46  ;;  %v10346_v46 = vld [vmem:[#allocation9 + $0x1e0] sm:$0xff]   ;;  %v8609_v30 = vcombine.low %v4889_v47, %v4850_v29 }
 0x2fb   : > { %6652 = vmatprep.mubr.bf16.mxu0 %v5088_v42  ;;  %9891 = vmatpush3.bf16.msra.mxu0 %v10386_v16  ;;  %v5107_v16 = vor.u32 %v5106_v12, %v5102_v36  ;;  %v12832_v42 = vld [vmem:[#allocation3 + $0x7c] sm:$0xf]  ;;  %v5119_v43 = vor.u32 %v5118_v33, %v5114_v57  ;;  %v4892_v12 = vld [vmem:[#allocation3 + $0x84] sm:$0xe] }
 0x2fc   : > { %9509 = vmatpush3.bf16.msra.mxu1 %v10333_v4  ;;  %9892 = vmatprep.subr.bf16.mxu0 %v10391_v25  ;;  %v5318_v4 = vrot.slane %v8608_v7, 1  ;;  %v5321_v20 = vrot.slane %v8609_v30, 1  ;;  %v8611_v3 = vcombine.low %v4891_v40, %v12832_v42  ;;  %v8612_v63 = vcombine.low %v4892_v12, %v12850_v0  ;;  %v12880_v33 = vld [vmem:[#allocation3 + $0xa4] ss:$0 sps:$4 sm:$0x11]  }
 0x2fd   : > { %9510 = vmatprep.subr.bf16.mxu1 %v10337_v13  ;;  %v5322_v13 = vrot.slane %v12824_v52, 1  ;;  %v5124_v26 = vsel %vm1239_vm10, %v5119_v43, %v5123_v45  ;;  %v12894_v40 = vld [vmem:[#allocation3 + $0x28] sm:$0xf] }
 0x2fe   : > { %v5330_v7 = vrot.slane %v8612_v63, 1 }
 0x2ff   : > { %9855 = vmatmul.mubr.bf16.gmra.mxu1 %v5308_v38  ;;  %9893 = vmatpush3.bf16.msra.mxu0 %v10391_v25  ;;  %v5112_v25 = vsel %vm1239_vm10, %v5107_v16, %v5111_v41  ;;  %v12841_v38 = vld [vmem:[#allocation3 + $0x80] ss:$0 sps:$4 sm:$0x11]   ;;  %v12873_v41 = vld [vmem:[#allocation3 + $0xac] sm:$0xf] }
 0x300   : > { %9858 = vmatprep.mubr.bf16.mxu1 %v5311_v31  ;;  %9511 = vmatpush3.bf16.msra.mxu1 %v10341_v51  ;;  %v12837_v51 = vld [vmem:[#allocation3 + $0x74] ss:$0 sps:$4 sm:$0x11]   ;;  %v12844_v31 = vcombine.low %v4849_v59, %v4850_v29 }
 0x301   : > { %9512 = vmatprep.subr.bf16.mxu1 %v10346_v46  ;;  %9894 = vmatprep.subr.bf16.mxu0 %v10396_v35  ;;  %v5128_v46 = vshll.u32 %v12826_v9, 16  ;;  %v5325_v2 = vrot.slane %v12837_v51, 1 }
 0x302   : > { %6653 = vmatmul.mubr.bf16.gmra.mxu0 %v12782_v39  ;;  %v5314_v39 = vsel %vm1496_vm9, %v5312_v58, %v5313_v28  ;;  %v5328_v28 = vrot.slane %v12841_v38, 1  ;;  %v5126_v58 = vshrl.u32 %v12826_v9, 16  ;;  %v5140_v36 = vshll.u32 %v12844_v31, 16 }
 0x303   : > { %6660 = vmatprep.mubr.bf16.mxu0 %v5100_v10  ;;  %9895 = vmatpush3.bf16.msra.mxu0 %v10396_v35  ;;  %v5323_v35 = vsel %vm1496_vm9, %v5321_v20, %v5322_v13  ;;  %v5133_v10 = vshll.u32 %v12820_v8, 16  ;;  %v5326_v49 = vsel %vm1496_vm9, %v5324_v5, %v5325_v2  ;;  %v4895_v13 = vld [vmem:[#allocation3 + $0xa8] sm:$0xe]  ;;  %v4896_v5 = vld [vmem:[#allocation3 + $0xb4] sm:$0xe] }
 0x304   : > { %9513 = vmatpush3.bf16.msra.mxu1 %v10350_v32  ;;  %9896 = vmatprep.subr.bf16.mxu0 %v10401_v34  ;;  %v5130_v32 = vrot.slane %v5128_v46, 1  ;;  %v5142_v56 = vrot.slane %v5140_v36, 1  ;;  %v5337_v46 = vrot.slane %v12880_v33, 1  ;;  %v12903_v2 = vld [vmem:[#allocation3 + $0xbc] ss:$0 sps:$4 sm:$0x11]  }
 0x305   : > { %9514 = vmatprep.subr.bf16.mxu1 %v10354_v21  ;;  %v12852_v21 = vld [vmem:[#allocation3 + $0x94] sm:$0xf] }
 0x306   : > { %v5131_v29 = vor.u32 %v5130_v32, %v5126_v58  ;;  %v8613_v55 = vcombine.low %v4893_v17, %v12852_v21  ;;  %v5157_v32 = vshll.u32 %v12837_v51, 16  ;;  %v5343_v51 = vrot.slane %v12903_v2, 1 }
 0x307   : > { %9859 = vmatmul.mubr.bf16.gmra.mxu1 %v5314_v39  ;;  %9897 = vmatpush3.bf16.msra.mxu0 %v10401_v34  ;;  %v5327_v34 = vrot.slane %v8611_v3, 1  ;;  %v5135_v39 = vrot.slane %v5133_v10, 1  ;;  %v12899_v3 = vld [vmem:[#allocation3 + $0xb8] sm:$0xf] }
 0x308   : > { %9862 = vmatprep.mubr.bf16.mxu1 %v5317_v50  ;;  %9515 = vmatpush3.bf16.msra.mxu1 %v10358_v11  ;;  %v12862_v11 = vld [vmem:[#allocation3 + $0x98] ss:$0 sps:$4 sm:$0x11]   ;;  %v5333_v50 = vrot.slane %v8613_v55, 1 }
 0x309   : > { %9516 = vmatprep.subr.bf16.mxu1 %v10363_v18  ;;  %v5329_v22 = vsel %vm1496_vm9, %v5327_v34, %v5328_v28  ;;  %v4851_v18 = vld [vmem:[#allocation3 + $0x6c] sm:$0xf]  ;;  %v5136_v16 = vsel %vm1239_vm10, %v5131_v29, %v5135_v39  ;;  %v5334_v30 = vrot.slane %v12862_v11, 1  ;;  %v12908_v34 = vld [vmem:[#allocation3 + $0x20] ss:$0 sps:$4 sm:$0x11]  }
 0x30a   : > { %6661 = vmatmul.mubr.bf16.gmra.mxu0 %v12794_v61  ;;  %v5320_v61 = vsel %vm1496_vm9, %v5318_v4, %v5319_v6  ;;  %v12865_v8 = vcombine.low %v4851_v18, %v4852_v54  ;;  %v12877_v4 = vld [vmem:[#allocation3 + $0x1c] sm:$0xf]  ;;  %v6921_v28 = vld [vmem:[#allocation3 + $0x24] sm:$0xf] }
 0x30b   : > { %6668 = vmatprep.mubr.bf16.mxu0 %v5112_v25  ;;  %v4894_v6 = vld [vmem:[#allocation3 + $0x9c] sm:$0xe]  ;;  %v6919_v25 = vld [vmem:[#allocation3 + $0x18] sm:$0xf]  ;;  %v5335_v60 = vsel %vm1496_vm9, %v5333_v50, %v5334_v30  ;;  %v4855_v18 = vld [vmem:[#allocation3 + $0x84] sm:$0xf] }
 0x30c   : > { %9517 = vmatpush3.bf16.msra.mxu1 %v10367_v53  ;;  %v5138_v53 = vshrl.u32 %v12844_v31, 16  ;;  %v8614_v20 = vcombine.low %v4894_v6, %v12871_v44  ;;  %v5152_v57 = vshll.u32 %v12865_v8, 16  ;;  %v12889_v27 = vcombine.low %v6919_v25, %v12877_v4 }
 0x30d   : > { %9518 = vmatprep.subr.bf16.mxu1 %v10371_v14  ;;  %v5145_v14 = vshll.u32 %v12824_v52, 16  ;;  %v8615_v52 = vcombine.low %v4895_v13, %v12873_v41  ;;  %v12922_v50 = vcombine.low %v4855_v18, %v12850_v0  ;;  %v12931_v13 = vld [vmem:[#allocation3 + $0x34] sm:$0xf]  ;;  %v5169_v0 = vshll.u32 %v12841_v38, 16  ;;  %v4857_v38 = vld [vmem:[#allocation3 + $0x90] sm:$0xf] }
 0x30e   : > { %v5143_v54 = vor.u32 %v5142_v56, %v5138_v53  ;;  %v5336_v43 = vrot.slane %v8614_v20, 1  ;;  %v5154_v59 = vrot.slane %v5152_v57, 1 }
 0x30f   : > { %9863 = vmatmul.mubr.bf16.gmra.mxu1 %v5320_v61  ;;  %v5147_v61 = vrot.slane %v5145_v14, 1  ;;  %v5339_v45 = vrot.slane %v8615_v52, 1 }
 0x310   : > { %9866 = vmatprep.mubr.bf16.mxu1 %v5323_v35  ;;  %9519 = vmatpush3.bf16.msra.mxu1 %v10375_v24  ;;  %v12885_v24 = vld [vmem:[#allocation3 + $0xb0] ss:$0 sps:$4 sm:$0x11]   ;;  %v5338_v58 = vsel %vm1496_vm9, %v5336_v43, %v5337_v46 }
 0x311   : > { %9520 = vmatprep.subr.bf16.mxu1 %v10380_v62  ;;  %v4853_v62 = vld [vmem:[#allocation3 + $0x78] sm:$0xf]  ;;  %v5148_v35 = vsel %vm1239_vm10, %v5143_v54, %v5147_v61 }
 0x312   : > { %6669 = vmatmul.mubr.bf16.gmra.mxu0 %v12805_v1  ;;  %v12857_v1 = vld [vmem:[#allocation3 + $0x8c] ss:$0 sps:$4 sm:$0x11]   ;;  %v12892_v23 = vcombine.low %v4853_v62, %v12832_v42  ;;  %v7130_v42 = vshll.u32 %v12889_v27, 16  ;;  %v6923_v62 = vld [vmem:[#allocation3 + $0x30] sm:$0xf] }
 0x313   : > { %6676 = vmatprep.mubr.bf16.mxu0 %v5124_v26  ;;  %v5331_v47 = vrot.slane %v12857_v1, 1  ;;  %v5150_v26 = vshrl.u32 %v12865_v8, 16  ;;  %v12939_v46 = vcombine.low %v6923_v62, %v12931_v13 }
 0x314   : > { %9521 = vmatpush3.bf16.msra.mxu1 %v10381_v37  ;;  %v5340_v37 = vrot.slane %v12885_v24, 1  ;;  %v5164_v63 = vshll.u32 %v12892_v23, 16  ;;  %v7132_v29 = vrot.slane %v7130_v42, 1  ;;  %v5162_v54 = vshrl.u32 %v12892_v23, 16 }
 0x315   : > { %v5155_v10 = vor.u32 %v5154_v59, %v5150_v26  ;;  %v12946_v42 = vcombine.low %v4857_v38, %v12852_v21  ;;  %v5181_v21 = vshll.u32 %v12857_v1, 16  ;;  %v5193_v38 = vshll.u32 %v12862_v11, 16 }
 0x316   : > { %v5341_v17 = vsel %vm1496_vm9, %v5339_v45, %v5340_v37  ;;  %v5166_v6 = vrot.slane %v5164_v63, 1  ;;  %v12951_v63 = vld [vmem:[#allocation3 + $0x40] sm:$0xf] }
 0x317   : > { %9867 = vmatmul.mubr.bf16.gmra.mxu1 %v5326_v49  ;;  %v12912_v49 = vcombine.low %v6921_v28, %v12894_v40 }
 0x318   : > { %9870 = vmatprep.mubr.bf16.mxu1 %v5329_v22  ;;  %v5159_v22 = vrot.slane %v5157_v32, 1  ;;  %v5167_v43 = vor.u32 %v5166_v6, %v5162_v54 }
 0x319   : > { %v7142_v53 = vshll.u32 %v12912_v49, 16  ;;  %v7140_v37 = vshrl.u32 %v12912_v49, 16 }
 0x31a   : > { %6677 = vmatmul.mubr.bf16.gmra.mxu0 %v12813_v48  ;;  %v5332_v48 = vsel %vm1496_vm9, %v5330_v7, %v5331_v47  ;;  %v7128_v7 = vshrl.u32 %v12889_v27, 16  ;;  %v7135_v47 = vshll.u32 %v12908_v34, 16  ;;  %v5160_v30 = vsel %vm1239_vm10, %v5155_v10, %v5159_v22  ;;  %v559_v22 = vld [vmem:[#allocation3 + $0xd4] sm:$0x1] }
 0x31b   : > { %6684 = vmatprep.mubr.bf16.mxu0 %v5136_v16  ;;  %v7144_v61 = vrot.slane %v7142_v53, 1  ;;  %v560_v6 = vsel %vm10826_vm4, 0, %v559_v22 }
 0x31c   : > { %v7133_v25 = vor.u32 %v7132_v29, %v7128_v7  ;;  %v5174_v29 = vshrl.u32 %v12922_v50, 16  ;;  %561 = vst [vmem:[#allocation3 + $0xd4] sm:$0x1] %v560_v6 }
 0x31d   : > { %v7145_v26 = vor.u32 %v7144_v61, %v7140_v37 }
 0x31f   : > { %9871 = vmatmul.mubr.bf16.gmra.mxu1 %v5332_v48  ;;  %v12927_v48 = vld [vmem:[#allocation3 + $0x2c] ss:$0 sps:$4 sm:$0x11]  }
 0x320   : > { %9874 = vmatprep.mubr.bf16.mxu1 %v5335_v60  ;;  %v7137_v60 = vrot.slane %v7135_v47, 1  ;;  %v7147_v45 = vshll.u32 %v12927_v48, 16 }
 0x322   : > { %6685 = vmatmul.mubr.bf16.gmra.mxu0 %v12826_v9  ;;  %v8616_v9 = vcombine.low %v4896_v5, %v12899_v3  ;;  %v7138_v59 = vsel %vm1239_vm10, %v7133_v25, %v7137_v60  ;;  %v5171_v5 = vrot.slane %v5169_v0, 1  ;;  %v5183_v25 = vrot.slane %v5181_v21, 1 }
 0x323   : > { %6692 = vmatprep.mubr.bf16.mxu0 %v5148_v35  ;;  %v5176_v35 = vshll.u32 %v12922_v50, 16 }
 0x324   : > { %v5342_v39 = vrot.slane %v8616_v9, 1  ;;  %v5172_v32 = vsel %vm1239_vm10, %v5167_v43, %v5171_v5 }
 0x325   : > { %v5178_v10 = vrot.slane %v5176_v35, 1 }
 0x326   : > { %v9250_v12 = vpop.f32.mrf.mxu1 }
 0x327   : > { %9875 = vmatmul.mubr.bf16.gmra.mxu1 %v5338_v58  ;;  %v12916_v36 = vpop.f32.mrf.mxu0  ;;  %v7154_v58 = vshll.u32 %v12939_v46, 16 }
 0x328   : > { %9878 = vmatprep.mubr.bf16.mxu1 %v5341_v17  ;;  %v9251_v55 = vpop.f32.mrf.mxu1 }
 0x329   : > { %v9252_v16 = vadd.f32 %v9251_v55, %v9250_v12  ;;  %v6325_v56 = vpop.f32.mrf.mxu0  ;;  %v7149_v12 = vrot.slane %v7147_v45, 1  ;;  %v12955_v55 = vld [vmem:[#allocation3 + $0x38] ss:$0 sps:$4 sm:$0x11]   ;;  %v7156_v7 = vrot.slane %v7154_v58, 1  ;;  %v5186_v45 = vshrl.u32 %v12946_v42, 16 }
 0x32a   : > { %6693 = vmatmul.mubr.bf16.gmra.mxu0 %v12844_v31  ;;  %v9253_v14 = vpop.f32.mrf.mxu1  ;;  %v5344_v31 = vsel %vm1496_vm9, %v5342_v39, %v5343_v51  ;;  %v505_v51 = vld [vmem:[#allocation3 + $0xcc] sm:$0x1]  ;;  %v6927_v58 = vld [vmem:[#allocation3 + $0x48] sm:$0xf] }
 0x32b   : > { %6700 = vmatprep.mubr.bf16.mxu0 %v5160_v30  ;;  %v12929_v20 = vadd.f32 %v9252_v16, %v6325_v56  ;;  %v9805_v9 = vpop.f32.mrf.mxu0  ;;  %v7150_v18 = vsel %vm1239_vm10, %v7145_v26, %v7149_v12  ;;  %v5179_v16 = vor.u32 %v5178_v10, %v5174_v29  ;;  %v6925_v56 = vld [vmem:[#allocation3 + $0x3c] sm:$0xf]  ;;  %v5188_v30 = vshll.u32 %v12946_v42, 16 }
 0x32c   : > { %v9254_v57 = vpop.f32.mrf.mxu1  ;;  %v12966_v1 = vcombine.low %v6925_v56, %v12951_v63  ;;  %v5195_v29 = vrot.slane %v5193_v38, 1  ;;  %v4863_v38 = vld [vmem:[#allocation3 + $0xb4] sm:$0xf] }
 0x32d   : > { %v12936_v52 = vadd.f32 %v9254_v57, %v9253_v14  ;;  %v12958_v39 = vpop.f32.mrf.mxu0  ;;  %v506_v14 = vsel %vm10820_vm2, 0, %v505_v51  ;;  %v7159_v57 = vshll.u32 %v12955_v55, 16  ;;  %v5184_v15 = vsel %vm1239_vm10, %v5179_v16, %v5183_v25  ;;  %v4861_v51 = vld [vmem:[#allocation3 + $0xa8] sm:$0xf] }
 0x32e   : > { %507 = vst [vmem:[#allocation3 + $0xcc] sm:$0x1] %v506_v14  ;;  %v5190_v62 = vrot.slane %v5188_v30, 1  ;;  %v7166_v35 = vshll.u32 %v12966_v1, 16  ;;  %v7164_v22 = vshrl.u32 %v12966_v1, 16  ;;  %v5205_v25 = vshll.u32 %v12880_v33, 16 }
 0x32f   : > { %9879 = vmatmul.mubr.bf16.gmra.mxu1 %v5344_v31  ;;  %v7161_v5 = vrot.slane %v7159_v57, 1 }
 0x330   : > { %7672 = vmatprep.mubr.bf16.mxu1 %v7138_v59  ;;  %v7168_v12 = vrot.slane %v7166_v35, 1 }
 0x332   : > { %6701 = vmatmul.mubr.bf16.gmra.mxu0 %v12865_v8  ;;  %v9256_v28 = vpop.f32.mrf.mxu1  ;;  %v7169_v56 = vor.u32 %v7168_v12, %v7164_v22  ;;  %v13037_v22 = vld [vmem:[#allocation3 + $0x64] sm:$0xf] }
 0x333   : > { %6708 = vmatprep.mubr.bf16.mxu0 %v5172_v32 }
 0x334   : > { %v9257_v17 = vpop.f32.mrf.mxu1 }
 0x335   : > { %v9258_v8 = vadd.f32 %v9257_v17, %v9256_v28  ;;  %v5191_v28 = vor.u32 %v5190_v62, %v5186_v45 }
 0x336   : > { %v9259_v47 = vpop.f32.mrf.mxu1 }
 0x337   : > { %7673 = vmatmul.mubr.bf16.vlgmr.msra.gmra.mxu1 %v12889_v27  ;;  %v12963_v53 = vadd.f32 %v12916_v36, %v9258_v8  ;;  %v4859_v27 = vld [vmem:[#allocation3 + $0x9c] sm:$0xf]  ;;  %v7152_v36 = vshrl.u32 %v12939_v46, 16 }
 0x338   : > { %7680 = vmatprep.mubr.bf16.mxu1 %v7150_v18  ;;  %v9260_v54 = vpop.f32.mrf.mxu1  ;;  %v12977_v60 = vcombine.low %v4859_v27, %v12871_v44  ;;  %v12986_v44 = vld [vmem:[#allocation3 + $0x4c] sm:$0xf] }
 0x339   : > { %v12972_v0 = vpop.f32.mrf.mxu0  ;;  %v9261_v31 = vadd.f32 %v9260_v54, %v9259_v47  ;;  %v7157_v61 = vor.u32 %v7156_v7, %v7152_v36  ;;  %v12996_v11 = vcombine.low %v6927_v58, %v12986_v44  ;;  %v5196_v7 = vsel %vm1239_vm10, %v5191_v28, %v5195_v29  ;;  %v13010_v54 = vld [vmem:[#allocation3 + $0x58] sm:$0xf] }
 0x33a   : > { %6709 = vmatmul.mubr.bf16.gmra.mxu0 %v12892_v23  ;;  %v9262_v19 = vpop.f32.mrf.mxu1  ;;  %v12988_v23 = vld [vmem:[#allocation3 + $0x44] ss:$0 sps:$4 sm:$0x11]   ;;  %v5198_v6 = vshrl.u32 %v12977_v60, 16 }
 0x33b   : > { %6716 = vmatprep.mubr.bf16.mxu0 %v5184_v15  ;;  %v12981_v43 = vadd.f32 %v9805_v9, %v9261_v31  ;;  %v6341_v37 = vpop.f32.mrf.mxu0  ;;  %v5200_v9 = vshll.u32 %v12977_v60, 16  ;;  %v7162_v10 = vsel %vm1239_vm10, %v7157_v61, %v7161_v5  ;;  %v7171_v8 = vshll.u32 %v12988_v23, 16  ;;  %v6929_v15 = vld [vmem:[#allocation3 + $0x54] sm:$0xf] }
 0x33c   : > { %v9263_v59 = vpop.f32.mrf.mxu1  ;;  %v7178_v30 = vshll.u32 %v12996_v11, 16  ;;  %v13021_v33 = vcombine.low %v6929_v15, %v13010_v54 }
 0x33d   : > { %v9264_v26 = vadd.f32 %v9263_v59, %v9262_v19  ;;  %v5202_v16 = vrot.slane %v5200_v9, 1  ;;  %v7173_v27 = vrot.slane %v7171_v8, 1  ;;  %v5207_v59 = vrot.slane %v5205_v25, 1 }
 0x33e   : > { %v9265_v32 = vpop.f32.mrf.mxu1  ;;  %v7180_v61 = vrot.slane %v7178_v30, 1  ;;  %v7190_v12 = vshll.u32 %v13021_v33, 16  ;;  %v6931_v30 = vld [vmem:[#allocation3 + $0x60] sm:$0xf] }
 0x33f   : > { %7681 = vmatmul.mubr.bf16.gmra.mxu1 %v12912_v49  ;;  %v12993_v17 = vadd.f32 %v9264_v26, %v6341_v37  ;;  %v13003_v49 = vcombine.low %v4861_v51, %v12873_v41  ;;  %v13012_v41 = vld [vmem:[#allocation3 + $0x50] ss:$0 sps:$4 sm:$0x11]   ;;  %v5203_v31 = vor.u32 %v5202_v16, %v5198_v6  ;;  %v7174_v62 = vsel %vm1239_vm10, %v7169_v56, %v7173_v27 }
 0x340   : > { %7688 = vmatprep.mubr.bf16.mxu1 %v7162_v10  ;;  %v9266_v21 = vpop.f32.mrf.mxu1  ;;  %v7176_v37 = vshrl.u32 %v12996_v11, 16  ;;  %v7183_v5 = vshll.u32 %v13012_v41, 16  ;;  %v7192_v25 = vrot.slane %v7190_v12, 1 }
 0x341   : > { %v13000_v18 = vadd.f32 %v9266_v21, %v9265_v32  ;;  %v5212_v19 = vshll.u32 %v13003_v49, 16  ;;  %v5210_v51 = vshrl.u32 %v13003_v49, 16 }
 0x342   : > { %6717 = vmatmul.mubr.bf16.gmra.mxu0 %v12922_v50  ;;  %v9268_v47 = vpop.f32.mrf.mxu1  ;;  %v9809_v50 = vpop.f32.mrf.mxu0  ;;  %v7181_v9 = vor.u32 %v7180_v61, %v7176_v37  ;;  %v7185_v8 = vrot.slane %v7183_v5, 1  ;;  %v13058_v37 = vld [vmem:[#allocation3 + $0x70] sm:$0xf] }
 0x343   : > { %6724 = vmatprep.mubr.bf16.mxu0 %v5196_v7  ;;  %v5214_v58 = vrot.slane %v5212_v19, 1 }
 0x344   : > { %v9269_v14 = vpop.f32.mrf.mxu1  ;;  %v13028_v32 = vpop.f32.mrf.mxu0  ;;  %v7186_v6 = vsel %vm1239_vm10, %v7181_v9, %v7185_v8 }
 0x345   : > { %v9270_v36 = vadd.f32 %v9269_v14, %v9268_v47  ;;  %v5215_v16 = vor.u32 %v5214_v58, %v5210_v51  ;;  %v6933_v58 = vld [vmem:[#allocation3 + $0x6c] sm:$0xf] }
 0x346   : > { %v9271_v57 = vpop.f32.mrf.mxu1  ;;  %v13065_v51 = vcombine.low %v6933_v58, %v13058_v37  ;;  %v6969_v58 = vld [vmem:[#allocation3 + $0x30] sm:$0xe] }
 0x347   : > { %7689 = vmatmul.mubr.bf16.gmra.mxu1 %v12939_v46  ;;  %v13018_v35 = vadd.f32 %v12972_v0, %v9270_v36  ;;  %v13026_v46 = vcombine.low %v4863_v38, %v12899_v3  ;;  %v5208_v0 = vsel %vm1239_vm10, %v5203_v31, %v5207_v59  ;;  %v5217_v3 = vshll.u32 %v12885_v24, 16 }
 0x348   : > { %7696 = vmatprep.mubr.bf16.mxu1 %v7174_v62  ;;  %v9272_v45 = vpop.f32.mrf.mxu1  ;;  %v13047_v24 = vcombine.low %v6931_v30, %v13037_v22  ;;  %v5229_v38 = vshll.u32 %v12903_v2, 16 }
 0x349   : > { %v9273_v26 = vadd.f32 %v9272_v45, %v9271_v57  ;;  %v5224_v14 = vshll.u32 %v13026_v46, 16  ;;  %v5219_v36 = vrot.slane %v5217_v3, 1  ;;  %v7188_v57 = vshrl.u32 %v13021_v33, 16 }
 0x34a   : > { %6725 = vmatmul.mubr.bf16.gmra.mxu0 %v12946_v42  ;;  %v13039_v42 = vld [vmem:[#allocation3 + $0x5c] ss:$0 sps:$4 sm:$0x11]   ;;  %v7202_v59 = vshll.u32 %v13047_v24, 16  ;;  %v5222_v45 = vshrl.u32 %v13026_v46, 16  ;;  %v5231_v3 = vrot.slane %v5229_v38, 1 }
 0x34b   : > { %v9274_v28 = vpop.f32.mrf.mxu1  ;;  %6732 = vmatprep.mubr.bf16.mxu0 %v5208_v0  ;;  %v13032_v10 = vadd.f32 %v9809_v50, %v9273_v26  ;;  %v7195_v31 = vshll.u32 %v13039_v42, 16  ;;  %v5226_v19 = vrot.slane %v5224_v14, 1  ;;  %v7193_v62 = vor.u32 %v7192_v25, %v7188_v57  ;;  %v13060_v26 = vld [vmem:[#allocation3 + $0x68] ss:$0 sps:$4 sm:$0x11]  }
 0x34c   : > { %v7204_v12 = vrot.slane %v7202_v59, 1  ;;  %v7200_v8 = vshrl.u32 %v13047_v24, 16  ;;  %v13079_v57 = vld [vmem:[#allocation3 + $0x74] ss:$0 sps:$4 sm:$0x11]  }
 0x34d   : > { %v9275_v29 = vpop.f32.mrf.mxu1  ;;  %v9812_v21 = vpop.f32.mrf.mxu0  ;;  %v7197_v5 = vrot.slane %v7195_v31, 1 }
 0x34e   : > { %v9276_v7 = vadd.f32 %v9275_v29, %v9274_v28 }
 0x34f   : > { %v9277_v47 = vpop.f32.mrf.mxu1  ;;  %v6357_v56 = vpop.f32.mrf.mxu0  ;;  %7697 = vmatmul.mubr.bf16.gmra.mxu1 %v12966_v1  ;;  %v5220_v1 = vsel %vm1239_vm10, %v5215_v16, %v5219_v36  ;;  %v7198_v9 = vsel %vm1239_vm10, %v7193_v62, %v7197_v5  ;;  %v6967_v16 = vld [vmem:[#allocation3 + $0x18] sm:$0xe]  ;;  %v13077_v36 = vld [vmem:[#allocation3 + $0x7c] sm:$0xf]  ;;  %v6968_v5 = vld [vmem:[#allocation3 + $0x24] sm:$0xe] }
 0x350   : > { %v13044_v27 = vadd.f32 %v9276_v7, %v6357_v56  ;;  %7704 = vmatprep.mubr.bf16.mxu1 %v7186_v6  ;;  %v7207_v7 = vshll.u32 %v13060_v26, 16  ;;  %v8745_v14 = vcombine.low %v6967_v16, %v12877_v4  ;;  %v7205_v6 = vor.u32 %v7204_v12, %v7200_v8  ;;  %v6935_v62 = vld [vmem:[#allocation3 + $0x78] sm:$0xf] }
 0x351   : > { %v9278_v50 = vpop.f32.mrf.mxu1  ;;  %v9813_v56 = vpop.f32.mrf.mxu0  ;;  %v13087_v59 = vcombine.low %v6935_v62, %v13077_v36 }
 0x352   : > { %v13051_v15 = vadd.f32 %v9278_v50, %v9277_v47  ;;  %6733 = vmatmul.mubr.bf16.gmra.mxu0 %v12977_v60  ;;  %v5227_v60 = vor.u32 %v5226_v19, %v5222_v45  ;;  %v7209_v50 = vrot.slane %v7207_v7, 1  ;;  %v7384_v19 = vrot.slane %v12908_v34, 1 }
 0x353   : > { %6740 = vmatprep.mubr.bf16.mxu0 %v5220_v1  ;;  %v13081_v31 = vpop.f32.mrf.mxu0  ;;  %v8746_v34 = vcombine.low %v6968_v5, %v12894_v40  ;;  %v7226_v7 = vshll.u32 %v13087_v59, 16  ;;  %v7387_v40 = vrot.slane %v12927_v48, 1 }
 0x354   : > { %v9280_v61 = vpop.f32.mrf.mxu1  ;;  %v7210_v4 = vsel %vm1239_vm10, %v7205_v6, %v7209_v50  ;;  %v6937_v50 = vld [vmem:[#allocation3 + $0x84] sm:$0xf] }
 0x355   : > { %v7228_v62 = vrot.slane %v7226_v7, 1 }
 0x356   : > { %v9281_v0 = vpop.f32.mrf.mxu1 }
 0x357   : > { %v9282_v28 = vadd.f32 %v9281_v0, %v9280_v61  ;;  %7705 = vmatmul.mubr.bf16.gmra.mxu1 %v12996_v11  ;;  %v5232_v11 = vsel %vm1239_vm10, %v5227_v60, %v5231_v3  ;;  %v7212_v0 = vshrl.u32 %v13065_v51, 16 }
 0x358   : > { %v9283_v29 = vpop.f32.mrf.mxu1  ;;  %7712 = vmatprep.mubr.bf16.mxu1 %v7198_v9 }
 0x359   : > { %v13067_v2 = vadd.f32 %v9812_v21, %v9282_v28  ;;  %v7214_v21 = vshll.u32 %v13065_v51, 16  ;;  %v7219_v28 = vshll.u32 %v13079_v57, 16 }
 0x35a   : > { %v9284_v47 = vpop.f32.mrf.mxu1  ;;  %6741 = vmatmul.mubr.bf16.gmra.mxu0 %v13003_v49  ;;  %v7383_v49 = vrot.slane %v8745_v14, 1  ;;  %v7386_v14 = vrot.slane %v8746_v34, 1 }
 0x35b   : > { %v9285_v30 = vadd.f32 %v9284_v47, %v9283_v29  ;;  %6748 = vmatprep.mubr.bf16.mxu0 %v5232_v11  ;;  %v7216_v61 = vrot.slane %v7214_v21, 1  ;;  %v8747_v29 = vcombine.low %v6969_v58, %v12931_v13  ;;  %v7221_v11 = vrot.slane %v7219_v28, 1 }
 0x35c   : > { %v7385_v9 = vsel %vm1496_vm9, %v7383_v49, %v7384_v19  ;;  %v7390_v13 = vrot.slane %v12955_v55, 1  ;;  %v7388_v55 = vsel %vm1496_vm9, %v7386_v14, %v7387_v40  ;;  %v7393_v40 = vrot.slane %v12988_v23, 1  ;;  %v6939_v14 = vld [vmem:[#allocation3 + $0x90] sm:$0xf] }
 0x35d   : > { %v13075_v25 = vadd.f32 %v9813_v56, %v9285_v30  ;;  %v7217_v3 = vor.u32 %v7216_v61, %v7212_v0  ;;  %v13098_v56 = vld [vmem:[#allocation3 + $0x88] sm:$0xf]  ;;  %v13101_v30 = vld [vmem:[#allocation3 + $0x80] ss:$0 sps:$4 sm:$0x11]   ;;  %v7389_v21 = vrot.slane %v8747_v29, 1 }
 0x35e   : > { %v13109_v48 = vcombine.low %v6937_v50, %v13098_v56  ;;  %v7224_v61 = vshrl.u32 %v13087_v59, 16  ;;  %v6971_v0 = vld [vmem:[#allocation3 + $0x48] sm:$0xe]  ;;  %v13120_v29 = vld [vmem:[#allocation3 + $0x94] sm:$0xf] }
 0x35f   : > { %v9286_v1 = vpop.f32.mrf.mxu1  ;;  %7713 = vmatmul.mubr.bf16.gmra.mxu1 %v13021_v33  ;;  %v8749_v34 = vcombine.low %v6971_v0, %v12986_v44  ;;  %v7396_v44 = vrot.slane %v13012_v41, 1 }
 0x360   : > { %7720 = vmatprep.mubr.bf16.mxu1 %v7210_v4  ;;  %v6970_v4 = vld [vmem:[#allocation3 + $0x3c] sm:$0xe]  ;;  %v7229_v58 = vor.u32 %v7228_v62, %v7224_v61  ;;  %v7236_v23 = vshrl.u32 %v13109_v48, 16 }
 0x361   : > { %v9287_v45 = vpop.f32.mrf.mxu1  ;;  %v9816_v38 = vpop.f32.mrf.mxu0 }
 0x362   : > { %v9288_v60 = vadd.f32 %v9287_v45, %v9286_v1  ;;  %6749 = vmatmul.mubr.bf16.gmra.mxu0 %v13026_v46  ;;  %v7222_v1 = vsel %vm1239_vm10, %v7217_v3, %v7221_v11  ;;  %v7231_v45 = vshll.u32 %v13101_v30, 16 }
 0x363   : > { %v9289_v33 = vpop.f32.mrf.mxu1  ;;  %v6373_v12 = vpop.f32.mrf.mxu0  ;;  %9898 = vmatprep.mubr.bf16.mxu0 %v7385_v9  ;;  %v7238_v9 = vshll.u32 %v13109_v48, 16 }
 0x364   : > { %v13095_v8 = vadd.f32 %v9288_v60, %v6373_v12  ;;  %v7391_v60 = vsel %vm1496_vm9, %v7389_v21, %v7390_v13  ;;  %v7233_v3 = vrot.slane %v7231_v45, 1  ;;  %v13129_v21 = vcombine.low %v6939_v14, %v13120_v29 }
 0x365   : > { %v9290_v47 = vpop.f32.mrf.mxu1  ;;  %v9817_v16 = vpop.f32.mrf.mxu0 }
 0x366   : > { %v9291_v46 = vadd.f32 %v9290_v47, %v9289_v33  ;;  %v13122_v47 = vld [vmem:[#allocation3 + $0x8c] ss:$0 sps:$4 sm:$0x11]  }
 0x367   : > { %v6376_v6 = vpop.f32.mrf.mxu0  ;;  %7721 = vmatmul.mubr.bf16.gmra.mxu1 %v13047_v24  ;;  %v8748_v24 = vcombine.low %v6970_v4, %v12951_v63 }
 0x368   : > { %v9292_v49 = vpop.f32.mrf.mxu1  ;;  %v13106_v19 = vadd.f32 %v9291_v46, %v6376_v6  ;;  %7728 = vmatprep.mubr.bf16.mxu1 %v7222_v1  ;;  %v7395_v46 = vrot.slane %v8749_v34, 1  ;;  %v7234_v6 = vsel %vm1239_vm10, %v7229_v58, %v7233_v3  ;;  %v6972_v1 = vld [vmem:[#allocation3 + $0x54] sm:$0xe]  ;;  %v13142_v58 = vld [vmem:[#allocation3 + $0x98] ss:$0 sps:$4 sm:$0x11]  }
 0x369   : > { %v7392_v63 = vrot.slane %v8748_v24, 1  ;;  %v8750_v62 = vcombine.low %v6972_v1, %v13010_v54  ;;  %v7250_v24 = vshll.u32 %v13129_v21, 16 }
 0x36a   : > { %v9293_v5 = vpop.f32.mrf.mxu1  ;;  %9899 = vmatmul.mubr.bf16.vlgmr.msra.gmra.mxu0 %v7388_v55  ;;  %v7397_v61 = vsel %vm1496_vm9, %v7395_v46, %v7396_v44 }
 0x36b   : > { %v9294_v28 = vadd.f32 %v9293_v5, %v9292_v49  ;;  %9902 = vmatprep.mubr.bf16.mxu0 %v7391_v60  ;;  %v7243_v49 = vshll.u32 %v13122_v47, 16  ;;  %v7394_v41 = vsel %vm1496_vm9, %v7392_v63, %v7393_v40  ;;  %v7398_v54 = vrot.slane %v8750_v62, 1  ;;  %v6941_v63 = vld [vmem:[#allocation3 + $0x9c] sm:$0xf] }
 0x36c   : > { %v9295_v33 = vpop.f32.mrf.mxu1  ;;  %v7252_v44 = vrot.slane %v7250_v24, 1  ;;  %v7405_v24 = vrot.slane %v13079_v57, 1 }
 0x36d   : > { %v13118_v12 = vadd.f32 %v9816_v38, %v9294_v28  ;;  %v7240_v38 = vrot.slane %v7238_v9, 1  ;;  %v13140_v28 = vld [vmem:[#allocation3 + $0xa0] sm:$0xf]  ;;  %v7245_v60 = vrot.slane %v7243_v49, 1 }
 0x36e   : > { %v9296_v7 = vpop.f32.mrf.mxu1  ;;  %v13151_v14 = vcombine.low %v6941_v63, %v13140_v28  ;;  %v6976_v63 = vld [vmem:[#allocation3 + $0x84] sm:$0xe] }
 0x36f   : > { %v9297_v11 = vadd.f32 %v9296_v7, %v9295_v33  ;;  %7729 = vmatmul.mubr.bf16.gmra.mxu1 %v13065_v51  ;;  %v6973_v51 = vld [vmem:[#allocation3 + $0x60] sm:$0xe]  ;;  %v7241_v5 = vor.u32 %v7240_v38, %v7236_v23  ;;  %v7399_v33 = vrot.slane %v13039_v42, 1  ;;  %v7402_v7 = vrot.slane %v13060_v26, 1 }
 0x370   : > { %7736 = vmatprep.mubr.bf16.mxu1 %v7234_v6  ;;  %v8751_v45 = vcombine.low %v6973_v51, %v13037_v22  ;;  %v6974_v6 = vld [vmem:[#allocation3 + $0x6c] sm:$0xe]  ;;  %v7248_v38 = vshrl.u32 %v13129_v21, 16  ;;  %v7260_v57 = vshrl.u32 %v13151_v14, 16 }
 0x371   : > { %v13131_v13 = vadd.f32 %v9817_v16, %v9297_v11  ;;  %v9298_v50 = vpop.f32.mrf.mxu1  ;;  %v7246_v40 = vsel %vm1239_vm10, %v7241_v5, %v7245_v60  ;;  %v7400_v26 = vsel %vm1496_vm9, %v7398_v54, %v7399_v33  ;;  %v8752_v1 = vcombine.low %v6974_v6, %v13058_v37  ;;  %v6943_v54 = vld [vmem:[#allocation3 + $0xa8] sm:$0xf] }
 0x372   : > { %9903 = vmatmul.mubr.bf16.gmra.mxu0 %v7394_v41  ;;  %v7401_v22 = vrot.slane %v8751_v45, 1  ;;  %v7253_v51 = vor.u32 %v7252_v44, %v7248_v38  ;;  %v6977_v44 = vld [vmem:[#allocation3 + $0x90] sm:$0xe] }
 0x373   : > { %v9299_v4 = vpop.f32.mrf.mxu1  ;;  %9906 = vmatprep.mubr.bf16.mxu0 %v7397_v61  ;;  %v13162_v61 = vld [vmem:[#allocation3 + $0xac] sm:$0xf]  ;;  %v7404_v37 = vrot.slane %v8752_v1, 1  ;;  %v8755_v38 = vcombine.low %v6977_v44, %v13120_v29  ;;  %v13184_v1 = vld [vmem:[#allocation3 + $0xb8] sm:$0xf] }
 0x374   : > { %v9300_v16 = vadd.f32 %v9299_v4, %v9298_v50  ;;  %v9820_v55 = vpop.f32.mrf.mxu0  ;;  %v7255_v50 = vshll.u32 %v13142_v58, 16  ;;  %v7403_v49 = vsel %vm1496_vm9, %v7401_v22, %v7402_v7  ;;  %v7262_v4 = vshll.u32 %v13151_v14, 16 }
 0x375   : > { %v9301_v0 = vpop.f32.mrf.mxu1  ;;  %v13171_v22 = vcombine.low %v6943_v54, %v13162_v61 }
 0x376   : > { %v6389_v34 = vpop.f32.mrf.mxu0  ;;  %v7257_v45 = vrot.slane %v7255_v50, 1 }
 0x377   : > { %v13145_v9 = vadd.f32 %v9300_v16, %v6389_v34  ;;  %v9302_v3 = vpop.f32.mrf.mxu1  ;;  %7737 = vmatmul.mubr.bf16.gmra.mxu1 %v13087_v59  ;;  %v6975_v59 = vld [vmem:[#allocation3 + $0x78] sm:$0xe]  ;;  %v13164_v16 = vld [vmem:[#allocation3 + $0xa4] ss:$0 sps:$4 sm:$0x11]   ;;  %v7408_v34 = vrot.slane %v13101_v30, 1  ;;  %v7406_v30 = vsel %vm1496_vm9, %v7404_v37, %v7405_v24 }
 0x378   : > { %v9303_v11 = vadd.f32 %v9302_v3, %v9301_v0  ;;  %v9821_v46 = vpop.f32.mrf.mxu0  ;;  %7744 = vmatprep.mubr.bf16.mxu1 %v7246_v40  ;;  %v8753_v41 = vcombine.low %v6975_v59, %v13077_v36  ;;  %v7258_v36 = vsel %vm1239_vm10, %v7253_v51, %v7257_v45  ;;  %v7264_v3 = vrot.slane %v7262_v4, 1  ;;  %v6945_v4 = vld [vmem:[#allocation3 + $0xb4] sm:$0xf]  ;;  %v6978_v24 = vld [vmem:[#allocation3 + $0x9c] sm:$0xe] }
 0x379   : > { %v7414_v51 = vrot.slane %v13142_v58, 1  ;;  %v8756_v54 = vcombine.low %v6978_v24, %v13140_v28  ;;  %v10424_v28 = vld [vmem:[#allocation3 + $0xbc] ss:$0 sps:$4 sm:$0x11]  }
 0x37a   : > { %v6392_v42 = vpop.f32.mrf.mxu0  ;;  %9907 = vmatmul.mubr.bf16.gmra.mxu0 %v7400_v26  ;;  %v7407_v60 = vrot.slane %v8753_v41, 1  ;;  %v7265_v50 = vor.u32 %v7264_v3, %v7260_v57 }
 0x37b   : > { %v13157_v23 = vadd.f32 %v9303_v11, %v6392_v42  ;;  %9910 = vmatprep.mubr.bf16.mxu0 %v7403_v49  ;;  %v7267_v11 = vshll.u32 %v13164_v16, 16  ;;  %v10420_v49 = vld [vmem:[#allocation3 + $0xb0] ss:$0 sps:$4 sm:$0x11]  }
 0x37c   : > { %v9304_v62 = vpop.f32.mrf.mxu1  ;;  %v7409_v42 = vsel %vm1496_vm9, %v7407_v60, %v7408_v34  ;;  %v7279_v34 = vshll.u32 %v10420_v49, 16 }
 0x37d   : > { %v7269_v59 = vrot.slane %v7267_v11, 1 }
 0x37e   : > { %v9305_v5 = vpop.f32.mrf.mxu1 }
 0x37f   : > { %v9306_v0 = vadd.f32 %v9305_v5, %v9304_v62  ;;  %7745 = vmatmul.mubr.bf16.gmra.mxu1 %v13109_v48  ;;  %v8754_v48 = vcombine.low %v6976_v63, %v13098_v56  ;;  %v7411_v56 = vrot.slane %v13122_v47, 1  ;;  %v7413_v62 = vrot.slane %v8755_v38, 1 }
 0x380   : > { %v9307_v33 = vpop.f32.mrf.mxu1  ;;  %7752 = vmatprep.mubr.bf16.mxu1 %v7258_v36  ;;  %v7270_v29 = vsel %vm1239_vm10, %v7265_v50, %v7269_v59  ;;  %v7272_v47 = vshrl.u32 %v13171_v22, 16  ;;  %v6979_v36 = vld [vmem:[#allocation3 + $0xa8] sm:$0xe]  ;;  %v7416_v38 = vrot.slane %v8756_v54, 1  ;;  %v7417_v50 = vrot.slane %v13164_v16, 1 }
 0x381   : > { %v13173_v7 = vadd.f32 %v9820_v55, %v9306_v0  ;;  %v7274_v55 = vshll.u32 %v13171_v22, 16  ;;  %v7410_v41 = vrot.slane %v8754_v48, 1  ;;  %v8757_v3 = vcombine.low %v6979_v36, %v13162_v61  ;;  %v6948_v48 = vld [vmem:[#allocation3 + $0xc4] sm:$0xf]  ;;  %v6947_v61 = vld [vmem:[#allocation3 + $0xc0] sm:$0xf] }
 0x382   : > { %v9308_v40 = vpop.f32.mrf.mxu1  ;;  %9911 = vmatmul.mubr.bf16.gmra.mxu0 %v7406_v30  ;;  %v6949_v54 = vld [vmem:[#allocation3 + $0xcc] sm:$0xf]  ;;  %v6950_v36 = vld [vmem:[#allocation3 + $0xd0] sm:$0xf] }
 0x383   : > { %v9309_v6 = vadd.f32 %v9308_v40, %v9307_v33  ;;  %9914 = vmatprep.mubr.bf16.mxu0 %v7409_v42  ;;  %v7276_v37 = vrot.slane %v7274_v55, 1  ;;  %v7412_v58 = vsel %vm1496_vm9, %v7410_v41, %v7411_v56  ;;  %v7415_v33 = vsel %vm1496_vm9, %v7413_v62, %v7414_v51 }
 0x384   : > { %v7281_v42 = vrot.slane %v7279_v34, 1  ;;  %v7419_v59 = vrot.slane %v8757_v3, 1  ;;  %v7420_v41 = vrot.slane %v10420_v49, 1  ;;  %v7418_v49 = vsel %vm1496_vm9, %v7416_v38, %v7417_v50 }
 0x385   : > { %v13182_v26 = vadd.f32 %v9821_v46, %v9309_v6  ;;  %v13191_v46 = vcombine.low %v6945_v4, %v13184_v1  ;;  %v7277_v57 = vor.u32 %v7276_v37, %v7272_v47  ;;  %v13204_v4 = vcombine.low %v6947_v61, %v6948_v48  ;;  %v6981_v37 = vld [vmem:[#allocation3 + $0xc0] sm:$0xe] }
 0x386   : > { %v7421_v34 = vsel %vm1496_vm9, %v7419_v59, %v7420_v41  ;;  %v7423_v38 = vrot.slane %v10424_v28, 1  ;;  %v13215_v50 = vcombine.low %v6949_v54, %v6950_v36 }
 0x387   : > { %v9310_v45 = vpop.f32.mrf.mxu1  ;;  %7753 = vmatmul.mubr.bf16.gmra.mxu1 %v13129_v21  ;;  %v7286_v11 = vshll.u32 %v13191_v46, 16  ;;  %v7282_v62 = vsel %vm1239_vm10, %v7277_v57, %v7281_v42  ;;  %v7284_v16 = vshrl.u32 %v13191_v46, 16 }
 0x388   : > { %v9824_v5 = vpop.f32.mrf.mxu0  ;;  %7760 = vmatprep.mubr.bf16.mxu1 %v7270_v29  ;;  %v6980_v29 = vld [vmem:[#allocation3 + $0xb4] sm:$0xe] }
 0x389   : > { %v9311_v0 = vpop.f32.mrf.mxu1  ;;  %v7288_v51 = vrot.slane %v7286_v11, 1  ;;  %v8758_v47 = vcombine.low %v6980_v29, %v13184_v1  ;;  %v6982_v11 = vld [vmem:[#allocation3 + $0xcc] sm:$0xe] }
 0x38a   : > { %v6405_v60 = vpop.f32.mrf.mxu0  ;;  %v9312_v21 = vadd.f32 %v9311_v0, %v9310_v45  ;;  %9915 = vmatmul.mubr.bf16.gmra.mxu0 %v7412_v58  ;;  %v7291_v0 = vshll.u32 %v10424_v28, 16  ;;  %v8759_v58 = vcombine.low %v6981_v37, %v6948_v48  ;;  %v7296_v28 = vshrl.u32 %v13204_v4, 16 }
 0x38b   : > { %v9313_v63 = vpop.f32.mrf.mxu1  ;;  %9918 = vmatprep.mubr.bf16.mxu0 %v7415_v33  ;;  %v7289_v33 = vor.u32 %v7288_v51, %v7284_v16  ;;  %v7422_v1 = vrot.slane %v8758_v47, 1 }
 0x38c   : > { %v9825_v40 = vpop.f32.mrf.mxu0  ;;  %v13199_v30 = vadd.f32 %v9312_v21, %v6405_v60  ;;  %v10428_v60 = vld [vmem:[#allocation3 + $0xc8] ss:$0 sps:$4 sm:$0x11]   ;;  %v7425_v48 = vrot.slane %v8759_v58, 1 }
 0x38d   : > { %v9314_v44 = vpop.f32.mrf.mxu1  ;;  %v7426_v59 = vrot.slane %v10428_v60, 1  ;;  %v7424_v16 = vsel %vm1496_vm9, %v7422_v1, %v7423_v38 }
 0x38e   : > { %v6408_v6 = vpop.f32.mrf.mxu0  ;;  %v9315_v55 = vadd.f32 %v9314_v44, %v9313_v63  ;;  %v7298_v63 = vshll.u32 %v13204_v4, 16 }
 0x38f   : > { %v9316_v56 = vpop.f32.mrf.mxu1  ;;  %7761 = vmatmul.mubr.bf16.gmra.mxu1 %v13151_v14 }
 0x390   : > { %v13206_v45 = vadd.f32 %v9315_v55, %v6408_v6  ;;  %7768 = vmatprep.mubr.bf16.mxu1 %v7282_v62  ;;  %v7293_v6 = vrot.slane %v7291_v0, 1  ;;  %v10432_v62 = vld [vmem:[#allocation3 + $0xd4] ss:$0 sps:$4 sm:$0x11]   ;;  %v7310_v0 = vshll.u32 %v13215_v50, 16 }
 0x391   : > { %v9317_v24 = vpop.f32.mrf.mxu1 }
 0x392   : > { %v9318_v14 = vadd.f32 %v9317_v24, %v9316_v56  ;;  %9919 = vmatmul.mubr.bf16.gmra.mxu0 %v7418_v49  ;;  %v7294_v61 = vsel %vm1239_vm10, %v7289_v33, %v7293_v6  ;;  %v7300_v56 = vrot.slane %v7298_v63, 1  ;;  %v7303_v24 = vshll.u32 %v10428_v60, 16 }
 0x393   : > { %v9319_v21 = vpop.f32.mrf.mxu1  ;;  %9922 = vmatprep.mubr.bf16.mxu0 %v7421_v34  ;;  %v7308_v60 = vshrl.u32 %v13215_v50, 16  ;;  %v7312_v33 = vrot.slane %v7310_v0, 1  ;;  %v7315_v63 = vshll.u32 %v10432_v62, 16 }
 0x394   : > { %v9828_v3 = vpop.f32.mrf.mxu0  ;;  %v13213_v57 = vadd.f32 %v9824_v5, %v9318_v14  ;;  %v8760_v5 = vcombine.low %v6982_v11, %v6950_v36  ;;  %v7301_v14 = vor.u32 %v7300_v56, %v7296_v28 }
 0x395   : > { %v9320_v44 = vpop.f32.mrf.mxu1 }
 0x396   : > { %v6421_v42 = vpop.f32.mrf.mxu0  ;;  %v9321_v55 = vadd.f32 %v9320_v44, %v9319_v21  ;;  %v7428_v34 = vrot.slane %v8760_v5, 1  ;;  %v7305_v21 = vrot.slane %v7303_v24, 1 }
 0x397   : > { %v9322_v41 = vpop.f32.mrf.mxu1  ;;  %7769 = vmatmul.mubr.bf16.gmra.mxu1 %v13171_v22  ;;  %v7427_v22 = vsel %vm1496_vm9, %v7425_v48, %v7426_v59  ;;  %v7317_v48 = vrot.slane %v7315_v63, 1  ;;  %v6329_v63 = vadd.f32 %v12936_v52, %v12958_v39 }
 0x398   : > { %v13219_v51 = vadd.f32 %v9825_v40, %v9321_v55  ;;  %7776 = vmatprep.mubr.bf16.mxu1 %v7294_v61  ;;  %v9829_v37 = vpop.f32.mrf.mxu0  ;;  %v7429_v40 = vrot.slane %v10432_v62, 1  ;;  %v7306_v6 = vsel %vm1239_vm10, %v7301_v14, %v7305_v21  ;;  %v7313_v55 = vor.u32 %v7312_v33, %v7308_v60 }
 0x399   : > { %v9323_v29 = vpop.f32.mrf.mxu1 }
 0x39a   : > { %v9324_v49 = vadd.f32 %v9323_v29, %v9322_v41  ;;  %9923 = vmatmul.mubr.bf16.gmra.mxu0 %v7424_v16  ;;  %v6424_v36 = vpop.f32.mrf.mxu0  ;;  %v7430_v1 = vsel %vm1496_vm9, %v7428_v34, %v7429_v40 }
 0x39b   : > { %v9325_v47 = vpop.f32.mrf.mxu1  ;;  %9926 = vmatprep.mubr.bf16.mxu0 %v7427_v22 }
 0x39c   : > { %v13225_v58 = vadd.f32 %v9324_v49, %v6421_v42 }
 0x39d   : > { %v9326_v54 = vpop.f32.mrf.mxu1 }
 0x39e   : > { %v9327_v11 = vadd.f32 %v9326_v54, %v9325_v47 }
 0x39f   : > { %v9328_v44 = vpop.f32.mrf.mxu1  ;;  %7777 = vmatmul.mubr.bf16.gmra.mxu1 %v13191_v46  ;;  %v7318_v46 = vsel %vm1239_vm10, %v7313_v55, %v7317_v48 }
 0x3a0   : > { %v13231_v38 = vadd.f32 %v9327_v11, %v6424_v36  ;;  %7784 = vmatprep.mubr.bf16.mxu1 %v7306_v6 }
 0x3a1   : > { %v9329_v42 = vpop.f32.mrf.mxu1 }
 0x3a2   : > { %v9330_v59 = vadd.f32 %v9329_v42, %v9328_v44  ;;  %v9832_v41 = vpop.f32.mrf.mxu0  ;;  %9927 = vmatmul.mubr.bf16.gmra.mxu0 %v7430_v1 }
 0x3a3   : > { %v9331_v61 = vpop.f32.mrf.mxu1 }
 0x3a4   : > { %v13233_v56 = vadd.f32 %v9828_v3, %v9330_v59  ;;  %v6437_v62 = vpop.f32.mrf.mxu0 }
 0x3a5   : > { %v9332_v5 = vpop.f32.mrf.mxu1 }
 0x3a6   : > { %v9333_v29 = vadd.f32 %v9332_v5, %v9331_v61  ;;  %v9833_v28 = vpop.f32.mrf.mxu0 }
 0x3a7   : > { %v9334_v24 = vpop.f32.mrf.mxu1  ;;  %7785 = vmatmul.mubr.bf16.gmra.mxu1 %v13204_v4 }
 0x3a8   : > { %v13237_v16 = vadd.f32 %v9829_v37, %v9333_v29  ;;  %7792 = vmatprep.mubr.bf16.mxu1 %v7318_v46  ;;  %v6440_v0 = vpop.f32.mrf.mxu0 }
 0x3a9   : > { %v9335_v49 = vpop.f32.mrf.mxu1 }
 0x3aa   : > { %v9336_v22 = vadd.f32 %v9335_v49, %v9334_v24  ;;  %v9386_v47 = vpop.f32.mrf.mxu0 }
 0x3ab   : > { %v9337_v14 = vpop.f32.mrf.mxu1 }
 0x3ac   : > { %v13239_v34 = vadd.f32 %v9336_v22, %v6437_v62  ;;  %v9387_v3 = vpop.f32.mrf.mxu0 }
 0x3ad   : > { %v9338_v40 = vpop.f32.mrf.mxu1  ;;  %v9388_v54 = vadd.f32 %v9387_v3, %v9386_v47 }
 0x3ae   : > { %v9339_v36 = vadd.f32 %v9338_v40, %v9337_v14  ;;  %v9389_v21 = vpop.f32.mrf.mxu0 }
 0x3af   : > { %v9340_v60 = vpop.f32.mrf.mxu1  ;;  %7793 = vmatmul.mubr.bf16.gmra.mxu1 %v13215_v50  ;;  %v6631_v4 = vadd.f32 %v9388_v54, %v12929_v20 }
 0x3b0   : > { %v13243_v37 = vadd.f32 %v9339_v36, %v6440_v0  ;;  %v9390_v33 = vpop.f32.mrf.mxu0 }
 0x3b1   : > { %v9341_v11 = vpop.f32.mrf.mxu1  ;;  %v9391_v44 = vadd.f32 %v9390_v33, %v9389_v21 }
 0x3b2   : > { %v9342_v6 = vadd.f32 %v9341_v11, %v9340_v60  ;;  %v9392_v1 = vpop.f32.mrf.mxu0 }
 0x3b3   : > { %v9343_v42 = vpop.f32.mrf.mxu1  ;;  %v6634_v55 = vadd.f32 %v9391_v44, %v6329_v63 }
 0x3b4   : > { %v13247_v48 = vadd.f32 %v9832_v41, %v9342_v6  ;;  %v9393_v59 = vpop.f32.mrf.mxu0 }
 0x3b5   : > { %v9344_v61 = vpop.f32.mrf.mxu1  ;;  %v9394_v62 = vadd.f32 %v9393_v59, %v9392_v1 }
 0x3b6   : > { %v9345_v50 = vadd.f32 %v9344_v61, %v9343_v42  ;;  %v9395_v5 = vpop.f32.mrf.mxu0 }
 0x3b7   : > { %v9852_v20 = vpop.f32.mrf.mxu1  ;;  %v6639_v46 = vadd.f32 %v9394_v62, %v12963_v53 }
 0x3b8   : > { %v13250_v29 = vadd.f32 %v9833_v28, %v9345_v50  ;;  %v9396_v24 = vpop.f32.mrf.mxu0 }
 0x3b9   : > { %v6791_v52 = vpop.f32.mrf.mxu1  ;;  %v9397_v39 = vadd.f32 %v9396_v24, %v9395_v5  ;;  %v13252_v0 = vadd.f32 %v9852_v20, %v6639_v46 }
 0x3ba   : > { %v13254_v49 = vadd.f32 %v6791_v52, %v6631_v4  ;;  %v9398_v22 = vpop.f32.mrf.mxu0  ;;  %v6345_v4 = vadd.f32 %v13000_v18, %v13028_v32 }
 0x3bb   : > { %v9853_v41 = vpop.f32.mrf.mxu1  ;;  %v6642_v47 = vadd.f32 %v9397_v39, %v12981_v43 }
 0x3bc   : > { %v9399_v14 = vpop.f32.mrf.mxu0 }
 0x3bd   : > { %v6794_v3 = vpop.f32.mrf.mxu1  ;;  %v9400_v40 = vadd.f32 %v9399_v14, %v9398_v22  ;;  %v13257_v54 = vadd.f32 %v9853_v41, %v6642_v47 }
 0x3be   : > { %v13259_v36 = vadd.f32 %v6794_v3, %v6634_v55  ;;  %v9401_v53 = vpop.f32.mrf.mxu0 }
 0x3bf   : > { %v9856_v28 = vpop.f32.mrf.mxu1  ;;  %v6647_v21 = vadd.f32 %v9400_v40, %v12993_v17 }
 0x3c0   : > { %v9402_v60 = vpop.f32.mrf.mxu0 }
 0x3c1   : > { %v6807_v33 = vpop.f32.mrf.mxu1  ;;  %v9403_v63 = vadd.f32 %v9402_v60, %v9401_v53 }
 0x3c2   : > { %v9404_v11 = vpop.f32.mrf.mxu0  ;;  %v13264_v44 = vadd.f32 %v6807_v33, %v6647_v21 }
 0x3c3   : > { %v9857_v43 = vpop.f32.mrf.mxu1  ;;  %v6650_v6 = vadd.f32 %v9403_v63, %v6345_v4 }
 0x3c4   : > { %v9405_v1 = vpop.f32.mrf.mxu0 }
 0x3c5   : > { %v6810_v42 = vpop.f32.mrf.mxu1  ;;  %v9406_v59 = vadd.f32 %v9405_v1, %v9404_v11 }
 0x3c6   : > { %v9407_v55 = vpop.f32.mrf.mxu0  ;;  %v13266_v61 = vadd.f32 %v6810_v42, %v6650_v6 }
 0x3c7   : > { %v9860_v62 = vpop.f32.mrf.mxu1  ;;  %v6655_v17 = vadd.f32 %v9406_v59, %v13018_v35  ;;  %v6361_v35 = vadd.f32 %v13051_v15, %v13081_v31 }
 0x3c8   : > { %v9408_v50 = vpop.f32.mrf.mxu0 }
 0x3c9   : > { %v6823_v5 = vpop.f32.mrf.mxu1  ;;  %v9409_v20 = vadd.f32 %v9408_v50, %v9407_v55  ;;  %v13269_v18 = vadd.f32 %v9856_v28, %v6655_v17 }
 0x3ca   : > { %v9410_v32 = vpop.f32.mrf.mxu0 }
 0x3cb   : > { %v9861_v46 = vpop.f32.mrf.mxu1  ;;  %v6658_v24 = vadd.f32 %v9409_v20, %v13032_v10 }
 0x3cc   : > { %v9411_v52 = vpop.f32.mrf.mxu0 }
 0x3cd   : > { %v6826_v39 = vpop.f32.mrf.mxu1  ;;  %v9412_v22 = vadd.f32 %v9411_v52, %v9410_v32  ;;  %v13272_v41 = vadd.f32 %v9857_v43, %v6658_v24 }
 0x3ce   : > { %v9413_v47 = vpop.f32.mrf.mxu0 }
 0x3cf   : > { %v9864_v14 = vpop.f32.mrf.mxu1  ;;  %v6663_v3 = vadd.f32 %v9412_v22, %v13044_v27 }
 0x3d0   : > { %v9414_v40 = vpop.f32.mrf.mxu0 }
 0x3d1   : > { %v6839_v53 = vpop.f32.mrf.mxu1  ;;  %v9415_v28 = vadd.f32 %v9414_v40, %v9413_v47  ;;  %v13277_v21 = vadd.f32 %v6823_v5, %v6663_v3 }
 0x3d2   : > { %v9416_v60 = vpop.f32.mrf.mxu0 }
 0x3d3   : > { %v9865_v4 = vpop.f32.mrf.mxu1  ;;  %v6666_v10 = vadd.f32 %v9415_v28, %v6361_v35 }
 0x3d4   : > { %v9417_v33 = vpop.f32.mrf.mxu0 }
 0x3d5   : > { %v6842_v63 = vpop.f32.mrf.mxu1  ;;  %v9418_v11 = vadd.f32 %v9417_v33, %v9416_v60  ;;  %v13279_v43 = vadd.f32 %v6826_v39, %v6666_v10 }
 0x3d6   : > { %v9419_v6 = vpop.f32.mrf.mxu0 }
 0x3d7   : > { %v9868_v1 = vpop.f32.mrf.mxu1  ;;  %v6671_v27 = vadd.f32 %v9418_v11, %v13067_v2 }
 0x3d8   : > { %v9420_v42 = vpop.f32.mrf.mxu0 }
 0x3d9   : > { %v6855_v59 = vpop.f32.mrf.mxu1  ;;  %v9421_v55 = vadd.f32 %v9420_v42, %v9419_v6  ;;  %v13282_v15 = vadd.f32 %v9860_v62, %v6671_v27 }
 0x3da   : > { %v9422_v31 = vpop.f32.mrf.mxu0 }
 0x3db   : > { %v9869_v17 = vpop.f32.mrf.mxu1  ;;  %v6674_v50 = vadd.f32 %v9421_v55, %v13075_v25 }
 0x3dc   : > { %v9423_v5 = vpop.f32.mrf.mxu0 }
 0x3dd   : > { %v6858_v20 = vpop.f32.mrf.mxu1  ;;  %v9424_v32 = vadd.f32 %v9423_v5, %v9422_v31  ;;  %v13285_v24 = vadd.f32 %v9861_v46, %v6674_v50 }
 0x3de   : > { %v9425_v52 = vpop.f32.mrf.mxu0 }
 0x3df   : > { %v13287_v39 = vpop.f32.mrf.mxu1  ;;  %v6679_v22 = vadd.f32 %v9424_v32, %v13095_v8 }
 0x3e0   : > { %v9426_v2 = vpop.f32.mrf.mxu0 }
 0x3e1   : > { %v6871_v47 = vpop.f32.mrf.mxu1  ;;  %v9427_v3 = vadd.f32 %v9426_v2, %v9425_v52  ;;  %v13290_v40 = vadd.f32 %v6839_v53, %v6679_v22 }
 0x3e2   : > { %v9428_v62 = vpop.f32.mrf.mxu0 }
 0x3e3   : > { %v13292_v35 = vpop.f32.mrf.mxu1  ;;  %v6682_v25 = vadd.f32 %v9427_v3, %v13106_v19 }
 0x3e4   : > { %v9429_v28 = vpop.f32.mrf.mxu0 }
 0x3e5   : > { %v6874_v60 = vpop.f32.mrf.mxu1  ;;  %v9430_v10 = vadd.f32 %v9429_v28, %v9428_v62  ;;  %v13295_v46 = vadd.f32 %v6842_v63, %v6682_v25 }
 0x3e6   : > { %v9431_v33 = vpop.f32.mrf.mxu0 }
 0x3e7   : > { %v13297_v11 = vpop.f32.mrf.mxu1  ;;  %v6687_v8 = vadd.f32 %v9430_v10, %v13118_v12 }
 0x3e8   : > { %v9432_v6 = vpop.f32.mrf.mxu0 }
 0x3e9   : > { %v13300_v27 = vpop.f32.mrf.mxu1  ;;  %v9433_v53 = vadd.f32 %v9432_v6, %v9431_v33  ;;  %v13302_v42 = vadd.f32 %v9864_v14, %v6687_v8 }
 0x3ea   : > { %v9434_v55 = vpop.f32.mrf.mxu0 }
 0x3eb   : > { %v13304_v31 = vpop.f32.mrf.mxu1  ;;  %v6690_v19 = vadd.f32 %v9433_v53, %v13131_v13 }
 0x3ec   : > { %v9435_v50 = vpop.f32.mrf.mxu0 }
 0x3ed   : > { %v13307_v5 = vpop.f32.mrf.mxu1  ;;  %v9436_v63 = vadd.f32 %v9435_v50, %v9434_v55  ;;  %v13309_v32 = vadd.f32 %v9865_v4, %v6690_v19 }
 0x3ee   : > { %v9437_v52 = vpop.f32.mrf.mxu0 }
 0x3ef   : > { %v13311_v22 = vpop.f32.mrf.mxu1  ;;  %v6695_v12 = vadd.f32 %v9436_v63, %v13145_v9 }
 0x3f0   : > { %v9438_v2 = vpop.f32.mrf.mxu0 }
 0x3f1   : > { %v13314_v3 = vpop.f32.mrf.mxu1  ;;  %v9439_v14 = vadd.f32 %v9438_v2, %v9437_v52  ;;  %v13316_v62 = vadd.f32 %v6855_v59, %v6695_v12 }
 0x3f2   : > { %v9440_v25 = vpop.f32.mrf.mxu0 }
 0x3f3   : > { %v13318_v28 = vpop.f32.mrf.mxu1  ;;  %v6698_v13 = vadd.f32 %v9439_v14, %v13157_v23 }
 0x3f4   : > { %v9441_v10 = vpop.f32.mrf.mxu0 }
 0x3f5   : > { %v13321_v33 = vpop.f32.mrf.mxu1  ;;  %v9442_v4 = vadd.f32 %v9441_v10, %v9440_v25  ;;  %v13323_v8 = vadd.f32 %v6858_v20, %v6698_v13 }
 0x3f6   : > { %v9443_v6 = vpop.f32.mrf.mxu0 }
 0x3f7   : > { %13813 = vst [vmem:[#allocation15_spill] sm:$0xff] %v13323_v8  ;;  %v13325_v53 = vpop.f32.mrf.mxu1  ;;  %v6703_v9 = vadd.f32 %v9442_v4, %v13173_v7 }
 0x3f8   : > { %v9444_v55 = vpop.f32.mrf.mxu0 }
 0x3f9   : > { %v13328_v19 = vpop.f32.mrf.mxu1  ;;  %v9445_v59 = vadd.f32 %v9444_v55, %v9443_v6  ;;  %v13330_v50 = vadd.f32 %v9868_v1, %v6703_v9 }
 0x3fa   : > { %v9446_v63 = vpop.f32.mrf.mxu0 }
 0x3fb   : > { %v13332_v52 = vpop.f32.mrf.mxu1  ;;  %v6706_v23 = vadd.f32 %v9445_v59, %v13182_v26 }
 0x3fc   : > { %v9447_v12 = vpop.f32.mrf.mxu0 }
 0x3fd   : > { %v13335_v2 = vpop.f32.mrf.mxu1  ;;  %v9448_v20 = vadd.f32 %v9447_v12, %v9446_v63  ;;  %v13337_v14 = vadd.f32 %v9869_v17, %v6706_v23 }
 0x3fe   : > { %v9449_v25 = vpop.f32.mrf.mxu0 }
 0x3ff   : > { %v13339_v13 = vpop.f32.mrf.mxu1  ;;  %v6711_v7 = vadd.f32 %v9448_v20, %v13199_v30 }
 0x400   : > { %v9450_v10 = vpop.f32.mrf.mxu0 }
 0x401   : > { %v13342_v4 = vpop.f32.mrf.mxu1  ;;  %v9451_v1 = vadd.f32 %v9450_v10, %v9449_v25  ;;  %v13344_v6 = vadd.f32 %v6871_v47, %v6711_v7 }
 0x402   : > { %v9452_v9 = vpop.f32.mrf.mxu0 }
 0x403   : > { %v13346_v55 = vpop.f32.mrf.mxu1  ;;  %v6714_v26 = vadd.f32 %v9451_v1, %v13206_v45 }
 0x404   : > { %v9453_v59 = vpop.f32.mrf.mxu0 }
 0x405   : > { %v13349_v63 = vpop.f32.mrf.mxu1  ;;  %v9454_v17 = vadd.f32 %v9453_v59, %v9452_v9  ;;  %v13351_v23 = vadd.f32 %v6874_v60, %v6714_v26 }
 0x406   : > { %v9455_v12 = vpop.f32.mrf.mxu0 }
 0x407   : > { %13814 = vst [vmem:[#allocation14_spill] sm:$0xff] %v13351_v23  ;;  %v13353_v8 = vpop.f32.mrf.mxu1  ;;  %v6719_v30 = vadd.f32 %v9454_v17, %v13213_v57 }
 0x408   : > { %v9456_v20 = vpop.f32.mrf.mxu0 }
 0x409   : > { %v13356_v25 = vpop.f32.mrf.mxu1  ;;  %v9457_v47 = vadd.f32 %v9456_v20, %v9455_v12  ;;  %v13359_v7 = vadd.f32 %v13287_v39, %v6719_v30 }
 0x40a   : > { %v9458_v10 = vpop.f32.mrf.mxu0 }
 0x40b   : > { %v13361_v45 = vpop.f32.mrf.mxu1  ;;  %v6722_v1 = vadd.f32 %v9457_v47, %v13219_v51 }
 0x40c   : > { %v9459_v9 = vpop.f32.mrf.mxu0 }
 0x40d   : > { %v13364_v60 = vpop.f32.mrf.mxu1  ;;  %v9460_v26 = vadd.f32 %v9459_v9, %v9458_v10  ;;  %v13367_v59 = vadd.f32 %v13292_v35, %v6722_v1 }
 0x40e   : > { %v9461_v57 = vpop.f32.mrf.mxu0 }
 0x40f   : > { %13815 = vst [vmem:[#allocation16_spill] sm:$0xff] %v13367_v59  ;;  %v13369_v17 = vpop.f32.mrf.mxu1  ;;  %v6727_v12 = vadd.f32 %v9460_v26, %v13225_v58 }
 0x410   : > { %v9462_v20 = vpop.f32.mrf.mxu0 }
 0x411   : > { %v13372_v39 = vpop.f32.mrf.mxu1  ;;  %v9463_v30 = vadd.f32 %v9462_v20, %v9461_v57  ;;  %v13375_v23 = vadd.f32 %v13300_v27, %v6727_v12 }
 0x412   : > { %v9464_v51 = vpop.f32.mrf.mxu0 }
 0x413   : > { %13816 = vst [vmem:[#allocation18_spill] sm:$0xff] %v13375_v23  ;;  %v13377_v47 = vpop.f32.mrf.mxu1  ;;  %v6730_v10 = vadd.f32 %v9463_v30, %v13231_v38 }
 0x414   : > { %v9465_v9 = vpop.f32.mrf.mxu0 }
 0x415   : > { %v13380_v35 = vpop.f32.mrf.mxu1  ;;  %v9466_v1 = vadd.f32 %v9465_v9, %v9464_v51  ;;  %v13383_v59 = vadd.f32 %v13307_v5, %v6730_v10 }
 0x416   : > { %v9467_v58 = vpop.f32.mrf.mxu0 }
 0x417   : > { %13817 = vst [vmem:[#allocation17_spill] sm:$0xff] %v13383_v59  ;;  %v13385_v26 = vpop.f32.mrf.mxu1  ;;  %v6735_v57 = vadd.f32 %v9466_v1, %v13233_v56 }
 0x418   : > { %v9468_v20 = vpop.f32.mrf.mxu0 }
 0x419   : > { %v13388_v27 = vpop.f32.mrf.mxu1  ;;  %v9469_v12 = vadd.f32 %v9468_v20, %v9467_v58  ;;  %v13391_v23 = vadd.f32 %v13297_v11, %v6735_v57 }
 0x41a   : > { %v9470_v38 = vpop.f32.mrf.mxu0 }
 0x41b   : > { %13818 = vst [vmem:[#allocation19_spill] sm:$0xff] %v13391_v23  ;;  %v13393_v30 = vpop.f32.mrf.mxu1  ;;  %v6738_v51 = vadd.f32 %v9469_v12, %v13237_v16 }
 0x41c   : > { %v9471_v9 = vpop.f32.mrf.mxu0 }
 0x41d   : > { %v13396_v5 = vpop.f32.mrf.mxu1  ;;  %v9472_v10 = vadd.f32 %v9471_v9, %v9470_v38  ;;  %v13399_v59 = vadd.f32 %v13304_v31, %v6738_v51 }
 0x41e   : > { %v9473_v56 = vpop.f32.mrf.mxu0 }
 0x41f   : > { %13819 = vst [vmem:[#allocation20_spill] sm:$0xff] %v13399_v59  ;;  %v13401_v1 = vpop.f32.mrf.mxu1  ;;  %v6743_v58 = vadd.f32 %v9472_v10, %v13239_v34 }
 0x420   : > { %v9474_v20 = vpop.f32.mrf.mxu0 }
 0x421   : > { %v13404_v11 = vpop.f32.mrf.mxu1  ;;  %v9475_v57 = vadd.f32 %v9474_v20, %v9473_v56  ;;  %v13407_v23 = vadd.f32 %v13314_v3, %v6743_v58  ;;  %v9530_v3 = vadd.f32 %v13342_v4, %v13339_v13  ;;  %v13435_v13 = vld [vmem:[%s13724_s5] ss:$0 sm:$0xff] }
 0x422   : > { %v9476_v16 = vpop.f32.mrf.mxu0 }
 0x423   : > { %v13409_v12 = vpop.f32.mrf.mxu1  ;;  %v6746_v38 = vadd.f32 %v9475_v57, %v13243_v37 }
 0x424   : > { %v9477_v9 = vpop.f32.mrf.mxu0 }
 0x425   : > { %v13412_v31 = vpop.f32.mrf.mxu1  ;;  %v9478_v51 = vadd.f32 %v9477_v9, %v9476_v16  ;;  %v13415_v59 = vadd.f32 %v13321_v33, %v6746_v38  ;;  %v9524_v33 = vadd.f32 %v13328_v19, %v13325_v53  ;;  %v13448_v19 = vld [vmem:[%s13725_s6] ss:$0 sm:$0xff] }
 0x426   : > { %v9479_v34 = vpop.f32.mrf.mxu0 }
 0x427   : > { %v13417_v10 = vpop.f32.mrf.mxu1  ;;  %v6751_v56 = vadd.f32 %v9478_v51, %v13247_v48 }
 0x428   : > { %v9480_v20 = vpop.f32.mrf.mxu0 }
 0x429   : > { %v13422_v58 = vpop.f32.mrf.mxu1  ;;  %v13425_v37 = vadd.f32 %v13311_v22, %v6751_v56  ;;  %v9481_v57 = vadd.f32 %v9480_v20, %v9479_v34  ;;  %v9533_v22 = vadd.f32 %v13349_v63, %v13346_v55  ;;  %v10437_v56 = vld [vmem:[%s10808_s19 + $0x8] sm:$0xf]  ;;  %v9527_v55 = vadd.f32 %v13335_v2, %v13332_v52 }
 0x42a   : > { %v9900_v16 = vpop.f32.mrf.mxu0  ;;  %v8074_v20 = vunpack.c.l.bf16 %v10437_v56 }
 0x42b   : > { %13820 = vst [vmem:[#allocation21_spill] sm:$0xff] %v13425_v37  ;;  %v13429_v38 = vpop.f32.mrf.mxu1  ;;  %v6754_v9 = vadd.f32 %v9481_v57, %v13250_v29  ;;  %v7844_v48 = vadd.f32 %v9900_v16, %v9530_v3  ;;  %v10438_v16 = vld [vmem:[%s10808_s19] sm:$0xf] }
 0x42c   : > { %v7835_v4 = vpop.f32.mrf.mxu0 }
 0x42d   : > { %v13439_v51 = vpop.f32.mrf.mxu1  ;;  %v13442_v34 = vadd.f32 %v13318_v28, %v6754_v9  ;;  %v7964_v53 = vadd.f32 %v7844_v48, %v13252_v0  ;;  %v7836_v29 = vadd.f32 %v9524_v33, %v7835_v4  ;;  %v8072_v33 = vunpack.c.l.bf16 %v10438_v16 }
 0x42e   : > { %v9901_v3 = vpop.f32.mrf.mxu0 }
 0x42f   : > { %13821 = vst [vmem:[#allocation22_spill] sm:$0xff] %v13442_v34  ;;  %v13453_v63 = vpop.f32.mrf.mxu1  ;;  %v8003_v28 = vmul.f32 %v13435_v13, %v7964_v53  ;;  %v7962_v57 = vadd.f32 %v7836_v29, %v13254_v49  ;;  %v7847_v0 = vadd.f32 %v9901_v3, %v9533_v22  ;;  %v9542_v53 = vadd.f32 %v13372_v39, %v13369_v17  ;;  %v10439_v34 = vld [vmem:[%s10808_s19 + $0xc] sm:$0xf]  ;;  %v10440_v17 = vld [vmem:[%s10808_s19 + $0x4] sm:$0xf] }
 0x430   : > { %v7838_v9 = vpop.f32.mrf.mxu0  ;;  %v8075_v49 = vunpack.c.l.bf16 %v10439_v34  ;;  %v8073_v39 = vunpack.c.l.bf16 %v10440_v17 }
 0x431   : > { %v13458_v48 = vpop.f32.mrf.mxu1  ;;  %v8042_v4 = vadd.f32 %v13448_v19, %v8003_v28  ;;  %v8001_v56 = vmul.f32 %v13435_v13, %v7962_v57  ;;  %v7965_v52 = vadd.f32 %v7847_v0, %v13257_v54  ;;  %v7839_v2 = vadd.f32 %v9527_v55, %v7838_v9 }
 0x432   : > { %v9904_v22 = vpop.f32.mrf.mxu0  ;;  %v9536_v54 = vadd.f32 %v13356_v25, %v13353_v8  ;;  %v9545_v55 = vadd.f32 %v13380_v35, %v13377_v47  ;;  %v10441_v25 = vld [vmem:[%s10808_s19 + $0x18] sm:$0xf] }
 0x433   : > { %v8106_v29 = vadd.f32 %v8074_v20, %v8042_v4  ;;  %v13467_v3 = vpop.f32.mrf.mxu1  ;;  %v8040_v16 = vadd.f32 %v13448_v19, %v8001_v56  ;;  %v8004_v37 = vmul.f32 %v13435_v13, %v7965_v52  ;;  %v7963_v28 = vadd.f32 %v7839_v2, %v13259_v36 }
 0x434   : > { %v7860_v34 = vadd.f32 %v9904_v22, %v9542_v53  ;;  %v7851_v20 = vpop.f32.mrf.mxu0  ;;  %v9539_v36 = vadd.f32 %v13364_v60, %v13361_v45  ;;  %v8078_v47 = vunpack.c.l.bf16 %v10441_v25 }
 0x435   : > { %v8138_v57 = vmax.f32 %v8106_v29, 0.0  ;;  %v8104_v0 = vadd.f32 %v8072_v33, %v8040_v16  ;;  %v13477_v9 = vpop.f32.mrf.mxu1  ;;  %v8043_v4 = vadd.f32 %v13448_v19, %v8004_v37  ;;  %v8002_v56 = vmul.f32 %v13435_v13, %v7963_v28  ;;  %v10442_v29 = vld [vmem:[%s10808_s19 + $0x10] sm:$0xf] }
 0x436   : > { %v7968_v8 = vadd.f32 %v7860_v34, %v13269_v18  ;;  %v7852_v35 = vadd.f32 %v9536_v54, %v7851_v20  ;;  %v9905_v52 = vpop.f32.mrf.mxu0  ;;  %v9554_v18 = vadd.f32 %v13404_v11, %v13401_v1  ;;  %v8076_v16 = vunpack.c.l.bf16 %v10442_v29  ;;  %v10443_v20 = vld [vmem:[%s10808_s19 + $0x1c] sm:$0xf]  ;;  %v10446_v29 = vld [vmem:[%s10808_s19 + $0x20] sm:$0xf] }
 0x437   : > { %8170 = vst [vmem:[%s13487_s30 + $0x10] sm:$0xff] %v8138_v57  ;;  %v8136_v33 = vmax.f32 %v8104_v0, 0.0  ;;  %v8107_v37 = vadd.f32 %v8075_v49, %v8043_v4  ;;  %v13490_v2 = vpop.f32.mrf.mxu1  ;;  %v8041_v53 = vadd.f32 %v13448_v19, %v8002_v56  ;;  %v7863_v45 = vadd.f32 %v9905_v52, %v9545_v55 }
 0x438   : > { %v8007_v60 = vmul.f32 %v13435_v13, %v7968_v8  ;;  %v7966_v22 = vadd.f32 %v7852_v35, %v13264_v44  ;;  %v7854_v28 = vpop.f32.mrf.mxu0  ;;  %v9548_v1 = vadd.f32 %v13388_v27, %v13385_v26  ;;  %v8079_v57 = vunpack.c.l.bf16 %v10443_v20  ;;  %v10444_v27 = vld [vmem:[%s10808_s19 + $0x14] sm:$0xf]  ;;  %v10445_v35 = vld [vmem:[%s10808_s19 + $0x28] sm:$0xf] }
 0x439   : > { %8168 = vst [vmem:[%s13487_s30] sm:$0xff] %v8136_v33  ;;  %v8139_v54 = vmax.f32 %v8107_v37, 0.0  ;;  %v8105_v49 = vadd.f32 %v8073_v39, %v8041_v53  ;;  %v13499_v17 = vpop.f32.mrf.mxu1  ;;  %v7969_v34 = vadd.f32 %v7863_v45, %v13272_v41  ;;  %v7855_v55 = vadd.f32 %v9539_v36, %v7854_v28 }
 0x43a   : > { %v8046_v11 = vadd.f32 %v13448_v19, %v8007_v60  ;;  %v8005_v44 = vmul.f32 %v13435_v13, %v7966_v22  ;;  %v9908_v0 = vpop.f32.mrf.mxu0  ;;  %v8077_v25 = vunpack.c.l.bf16 %v10444_v27  ;;  %v8082_v52 = vunpack.c.l.bf16 %v10445_v35  ;;  %v10448_v35 = vld [vmem:[%s10808_s19 + $0x24] sm:$0xf] }
 0x43b   : > { %8171 = vst [vmem:[%s13487_s30 + $0x18] sm:$0xff] %v8139_v54  ;;  %v8137_v39 = vmax.f32 %v8105_v49, 0.0  ;;  %v13508_v4 = vpop.f32.mrf.mxu1  ;;  %v8008_v41 = vmul.f32 %v13435_v13, %v7969_v34  ;;  %v7967_v56 = vadd.f32 %v7855_v55, %v13266_v61  ;;  %v7876_v36 = vadd.f32 %v9908_v0, %v9554_v18 }
 0x43c   : > { %v8110_v8 = vadd.f32 %v8078_v47, %v8046_v11  ;;  %v8044_v26 = vadd.f32 %v13448_v19, %v8005_v44  ;;  %v7867_v33 = vpop.f32.mrf.mxu0  ;;  %v9557_v47 = vadd.f32 %v13412_v31, %v13409_v12  ;;  %v8080_v28 = vunpack.c.l.bf16 %v10446_v29 }
 0x43d   : > { %8169 = vst [vmem:[%s13487_s30 + $0x8] sm:$0xff] %v8137_v39  ;;  %v13516_v37 = vpop.f32.mrf.mxu1  ;;  %v8047_v53 = vadd.f32 %v13448_v19, %v8008_v41  ;;  %v8006_v45 = vmul.f32 %v13435_v13, %v7967_v56  ;;  %v7972_v61 = vadd.f32 %v7876_v36, %v13282_v15  ;;  %v7868_v18 = vadd.f32 %v9548_v1, %v7867_v33 }
 0x43e   : > { %v8142_v60 = vmax.f32 %v8110_v8, 0.0  ;;  %v8108_v22 = vadd.f32 %v8076_v16, %v8044_v26  ;;  %v9909_v54 = vpop.f32.mrf.mxu0  ;;  %v9551_v1 = vadd.f32 %v13396_v5, %v13393_v30  ;;  %v9566_v12 = vadd.f32 %v13458_v48, %v13453_v63  ;;  %v10447_v5 = vld [vmem:[%s10808_s19 + $0x2c] sm:$0xf] }
 0x43f   : > { %v8111_v49 = vadd.f32 %v8079_v57, %v8047_v53  ;;  %v13524_v34 = vpop.f32.mrf.mxu1  ;;  %v8045_v55 = vadd.f32 %v13448_v19, %v8006_v45  ;;  %v8011_v11 = vmul.f32 %v13435_v13, %v7972_v61  ;;  %v7970_v15 = vadd.f32 %v7868_v18, %v13277_v21 }
 0x440   : > { %8174 = vst [vmem:[%s13487_s30 + $0x30] sm:$0xff] %v8142_v60  ;;  %v8140_v31 = vmax.f32 %v8108_v22, 0.0  ;;  %v7879_v16 = vadd.f32 %v9909_v54, %v9557_v47  ;;  %v7870_v44 = vpop.f32.mrf.mxu0  ;;  %v9560_v21 = vadd.f32 %v13422_v58, %v13417_v10  ;;  %v8083_v63 = vunpack.c.l.bf16 %v10447_v5 }
 0x441   : > { %v8143_v20 = vmax.f32 %v8111_v49, 0.0  ;;  %v8109_v57 = vadd.f32 %v8077_v25, %v8045_v55  ;;  %v9577_v0 = vpop.f32.mrf.mxu1  ;;  %v8050_v39 = vadd.f32 %v13448_v19, %v8011_v11  ;;  %v8009_v41 = vmul.f32 %v13435_v13, %v7970_v15 }
 0x442   : > { %8172 = vst [vmem:[%s13487_s30 + $0x20] sm:$0xff] %v8140_v31  ;;  %v7973_v30 = vadd.f32 %v7879_v16, %v13285_v24  ;;  %v7871_v48 = vadd.f32 %v9551_v1, %v7870_v44  ;;  %v9912_v56 = vpop.f32.mrf.mxu0  ;;  %v9569_v10 = vadd.f32 %v13477_v9, %v13467_v3  ;;  %v8081_v33 = vunpack.c.l.bf16 %v10448_v35  ;;  %v10449_v9 = vld [vmem:[%s10808_s19 + $0x38] sm:$0xf]  ;;  %v10451_v1 = vld [vmem:[%s10808_s19 + $0x3c] sm:$0xf] }
 0x443   : > { %8175 = vst [vmem:[%s13487_s30 + $0x38] sm:$0xff] %v8143_v20  ;;  %v8141_v36 = vmax.f32 %v8109_v57, 0.0  ;;  %v8114_v8 = vadd.f32 %v8082_v52, %v8050_v39  ;;  %v9579_v26 = vpop.f32.mrf.mxu1  ;;  %v8048_v27 = vadd.f32 %v13448_v19, %v8009_v41  ;;  %v7892_v25 = vadd.f32 %v9912_v56, %v9566_v12 }
 0x444   : > { %v8012_v58 = vmul.f32 %v13435_v13, %v7973_v30  ;;  %v7971_v24 = vadd.f32 %v7871_v48, %v13279_v43  ;;  %v7883_v53 = vpop.f32.mrf.mxu0  ;;  %v9563_v60 = vadd.f32 %v13439_v51, %v13429_v38  ;;  %v8086_v22 = vunpack.c.l.bf16 %v10449_v9  ;;  %v10450_v51 = vld [vmem:[%s10808_s19 + $0x30] sm:$0xf]  ;;  %v10452_v30 = vld [vmem:[%s10808_s19 + $0x34] sm:$0xf] }
 0x445   : > { %8173 = vst [vmem:[%s13487_s30 + $0x28] sm:$0xff] %v8141_v36  ;;  %v8146_v45 = vmax.f32 %v8114_v8, 0.0  ;;  %v8112_v61 = vadd.f32 %v8080_v28, %v8048_v27  ;;  %v9580_v52 = vpop.f32.mrf.mxu1  ;;  %v7976_v18 = vadd.f32 %v7892_v25, %v13302_v42  ;;  %v7884_v47 = vadd.f32 %v9560_v21, %v7883_v53 }
 0x446   : > { %v8051_v3 = vadd.f32 %v13448_v19, %v8012_v58  ;;  %v8010_v43 = vmul.f32 %v13435_v13, %v7971_v24  ;;  %v9913_v29 = vpop.f32.mrf.mxu0  ;;  %v8084_v15 = vunpack.c.l.bf16 %v10450_v51  ;;  %v8087_v12 = vunpack.c.l.bf16 %v10451_v1  ;;  %v10455_v51 = vld [vmem:[%s10808_s19 + $0x4c] sm:$0xf] }
 0x447   : > { %8178 = vst [vmem:[%s13487_s30 + $0x50] sm:$0xff] %v8146_v45  ;;  %v8144_v54 = vmax.f32 %v8112_v61, 0.0  ;;  %v13556_v28 = vpop.f32.mrf.mxu1  ;;  %v8015_v42 = vmul.f32 %v13435_v13, %v7976_v18  ;;  %v7974_v49 = vadd.f32 %v7884_v47, %v13290_v40  ;;  %v7895_v55 = vadd.f32 %v9913_v29, %v9569_v10 }
 0x448   : > { %v8115_v11 = vadd.f32 %v8083_v63, %v8051_v3  ;;  %v8049_v38 = vadd.f32 %v13448_v19, %v8010_v43  ;;  %v7886_v31 = vpop.f32.mrf.mxu0  ;;  %v9578_v39 = vadd.f32 %v9577_v0, %v13524_v34  ;;  %v8085_v5 = vunpack.c.l.bf16 %v10452_v30  ;;  %v10453_v3 = vld [vmem:[%s10808_s19 + $0x48] sm:$0xf] }
 0x449   : > { %8176 = vst [vmem:[%s13487_s30 + $0x40] sm:$0xff] %v8144_v54  ;;  %v9583_v16 = vpop.f32.mrf.mxu1  ;;  %v8054_v44 = vadd.f32 %v13448_v19, %v8015_v42  ;;  %v8013_v20 = vmul.f32 %v13435_v13, %v7974_v49  ;;  %v7977_v57 = vadd.f32 %v7895_v55, %v13309_v32  ;;  %v7887_v40 = vadd.f32 %v9563_v60, %v7886_v31 }
 0x44a   : > { %v8147_v41 = vmax.f32 %v8115_v11, 0.0  ;;  %v8113_v21 = vadd.f32 %v8081_v33, %v8049_v38  ;;  %v9916_v63 = vpop.f32.mrf.mxu0  ;;  %v9572_v32 = vadd.f32 %v13499_v17, %v13490_v2  ;;  %v9581_v34 = vadd.f32 %v9580_v52, %v9579_v26 }
 0x44b   : > { %v8118_v48 = vadd.f32 %v8086_v22, %v8054_v44  ;;  %v13569_v56 = vpop.f32.mrf.mxu1  ;;  %v8052_v36 = vadd.f32 %v13448_v19, %v8013_v20  ;;  %v8016_v8 = vmul.f32 %v13435_v13, %v7977_v57  ;;  %v7975_v27 = vadd.f32 %v7887_v40, %v13295_v46 }
 0x44c   : > { %8179 = vst [vmem:[%s13487_s30 + $0x58] sm:$0xff] %v8147_v41  ;;  %v8145_v0 = vmax.f32 %v8113_v21, 0.0  ;;  %v7908_v25 = vadd.f32 %v9916_v63, %v9578_v39  ;;  %v7899_v10 = vpop.f32.mrf.mxu0  ;;  %v9575_v46 = vadd.f32 %v13516_v37, %v13508_v4  ;;  %v8090_v43 = vunpack.c.l.bf16 %v10453_v3  ;;  %v10454_v37 = vld [vmem:[%s10808_s19 + $0x40] sm:$0xf]  ;;  %v10456_v39 = vld [vmem:[%s10808_s19 + $0x44] sm:$0xf] }
 0x44d   : > { %v8150_v58 = vmax.f32 %v8118_v48, 0.0  ;;  %v8116_v24 = vadd.f32 %v8084_v15, %v8052_v36  ;;  %v9586_v35 = vpop.f32.mrf.mxu1  ;;  %v8055_v33 = vadd.f32 %v13448_v19, %v8016_v8  ;;  %v8014_v53 = vmul.f32 %v13435_v13, %v7975_v27  ;;  %v10457_v63 = vld [vmem:[%s10808_s19 + $0x58] sm:$0xf] }
 0x44e   : > { %8177 = vst [vmem:[%s13487_s30 + $0x48] sm:$0xff] %v8145_v0  ;;  %v7980_v2 = vadd.f32 %v7908_v25, %v13330_v50  ;;  %v7900_v17 = vadd.f32 %v9572_v32, %v7899_v10  ;;  %v9917_v26 = vpop.f32.mrf.mxu0  ;;  %v8088_v50 = vunpack.c.l.bf16 %v10454_v37  ;;  %v9584_v1 = vadd.f32 %v9583_v16, %v13556_v28 }
 0x44f   : > { %8182 = vst [vmem:[%s13487_s30 + $0x70] sm:$0xff] %v8150_v58  ;;  %v8148_v45 = vmax.f32 %v8116_v24, 0.0  ;;  %v8119_v61 = vadd.f32 %v8087_v12, %v8055_v33  ;;  %v9588_v52 = vpop.f32.mrf.mxu1  ;;  %v8053_v18 = vadd.f32 %v13448_v19, %v8014_v53  ;;  %v7911_v47 = vadd.f32 %v9917_v26, %v9581_v34 }
 0x450   : > { %v8019_v60 = vmul.f32 %v13435_v13, %v7980_v2  ;;  %v7978_v4 = vadd.f32 %v7900_v17, %v13316_v62  ;;  %v7902_v9 = vpop.f32.mrf.mxu0  ;;  %v8091_v62 = vunpack.c.l.bf16 %v10455_v51  ;;  %v8089_v41 = vunpack.c.l.bf16 %v10456_v39  ;;  %v10458_v2 = vld [vmem:[%s10808_s19 + $0x50] sm:$0xf]  ;;  %v10460_v51 = vld [vmem:[%s10808_s19 + $0x54] sm:$0xf] }
 0x451   : > { %8180 = vst [vmem:[%s13487_s30 + $0x60] sm:$0xff] %v8148_v45  ;;  %v8151_v22 = vmax.f32 %v8119_v61, 0.0  ;;  %v8117_v29 = vadd.f32 %v8085_v5, %v8053_v18  ;;  %v9589_v54 = vpop.f32.mrf.mxu1  ;;  %v7981_v42 = vadd.f32 %v7911_v47, %v13337_v14  ;;  %v7903_v49 = vadd.f32 %v9575_v46, %v7902_v9  ;;  %v13822_v14 = vld [vmem:[#allocation15_spill] sm:$0xff]  ;;  %v13823_v18 = vld [vmem:[#allocation16_spill] sm:$0xff] }
 0x452   : > { %v9590_v55 = vadd.f32 %v9589_v54, %v9588_v52  ;;  %v8058_v11 = vadd.f32 %v13448_v19, %v8019_v60  ;;  %v8017_v38 = vmul.f32 %v13435_v13, %v7978_v4  ;;  %v9920_v15 = vpop.f32.mrf.mxu0  ;;  %v8094_v48 = vunpack.c.l.bf16 %v10457_v63  ;;  %v10459_v54 = vld [vmem:[%s10808_s19 + $0x5c] sm:$0xf] }
 0x453   : > { %8183 = vst [vmem:[%s13487_s30 + $0x78] sm:$0xff] %v8151_v22  ;;  %v8149_v12 = vmax.f32 %v8117_v29, 0.0  ;;  %v9591_v31 = vpop.f32.mrf.mxu1  ;;  %v8020_v44 = vmul.f32 %v13435_v13, %v7981_v42  ;;  %v7979_v20 = vadd.f32 %v7903_v49, %v13822_v14  ;;  %v9587_v25 = vadd.f32 %v9586_v35, %v13569_v56 }
 0x454   : > { %v8122_v57 = vadd.f32 %v8090_v43, %v8058_v11  ;;  %v8056_v40 = vadd.f32 %v13448_v19, %v8017_v38  ;;  %v7924_v21 = vadd.f32 %v9920_v15, %v9590_v55  ;;  %v7915_v30 = vpop.f32.mrf.mxu0  ;;  %v8092_v17 = vunpack.c.l.bf16 %v10458_v2 }
 0x455   : > { %8181 = vst [vmem:[%s13487_s30 + $0x68] sm:$0xff] %v8149_v12  ;;  %v9592_v5 = vpop.f32.mrf.mxu1  ;;  %v8059_v28 = vadd.f32 %v13448_v19, %v8020_v44  ;;  %v8018_v16 = vmul.f32 %v13435_v13, %v7979_v20  ;;  %v7916_v36 = vadd.f32 %v9584_v1, %v7915_v30  ;;  %v8095_v42 = vunpack.c.l.bf16 %v10459_v54 }
 0x456   : > { %v8154_v8 = vmax.f32 %v8122_v57, 0.0  ;;  %v8120_v27 = vadd.f32 %v8088_v50, %v8056_v40  ;;  %v9593_v32 = vadd.f32 %v9592_v5, %v9591_v31  ;;  %v7984_v34 = vadd.f32 %v7924_v21, %v13359_v7  ;;  %v9921_v0 = vpop.f32.mrf.mxu0  ;;  %v13824_v50 = vld [vmem:[#allocation14_spill] sm:$0xff] }
 0x457   : > { %v8123_v10 = vadd.f32 %v8091_v62, %v8059_v28  ;;  %v9594_v58 = vpop.f32.mrf.mxu1  ;;  %v8057_v24 = vadd.f32 %v13448_v19, %v8018_v16  ;;  %v7982_v33 = vadd.f32 %v7916_v36, %v13344_v6  ;;  %v8093_v62 = vunpack.c.l.bf16 %v10460_v51  ;;  %v13825_v40 = vld [vmem:[#allocation18_spill] sm:$0xff] }
 0x458   : > { %8186 = vst [vmem:[%s13487_s30 + $0x90] sm:$0xff] %v8154_v8  ;;  %v8152_v53 = vmax.f32 %v8120_v27, 0.0  ;;  %v8023_v46 = vmul.f32 %v13435_v13, %v7984_v34  ;;  %v7927_v26 = vadd.f32 %v9921_v0, %v9593_v32  ;;  %v7918_v45 = vpop.f32.mrf.mxu0  ;;  %v10461_v16 = vld [vmem:[%s10808_s19 + $0x60] sm:$0xf] }
 0x459   : > { %v8155_v7 = vmax.f32 %v8123_v10, 0.0  ;;  %v8121_v61 = vadd.f32 %v8089_v41, %v8057_v24  ;;  %v9595_v56 = vpop.f32.mrf.mxu1  ;;  %v8021_v35 = vmul.f32 %v13435_v13, %v7982_v33  ;;  %v7919_v52 = vadd.f32 %v9587_v25, %v7918_v45  ;;  %v13826_v25 = vld [vmem:[#allocation17_spill] sm:$0xff] }
 0x45a   : > { %8184 = vst [vmem:[%s13487_s30 + $0x80] sm:$0xff] %v8152_v53  ;;  %v8062_v6 = vadd.f32 %v13448_v19, %v8023_v46  ;;  %v7985_v47 = vadd.f32 %v7927_v26, %v13823_v18  ;;  %v9924_v60 = vpop.f32.mrf.mxu0  ;;  %v9596_v43 = vadd.f32 %v9595_v56, %v9594_v58  ;;  %v8096_v63 = vunpack.c.l.bf16 %v10461_v16  ;;  %v10462_v46 = vld [vmem:[%s10808_s19 + $0x64] sm:$0xf]  ;;  %v13827_v26 = vld [vmem:[#allocation19_spill] sm:$0xff] }
 0x45b   : > { %8187 = vst [vmem:[%s13487_s30 + $0x98] sm:$0xff] %v8155_v7  ;;  %v8153_v3 = vmax.f32 %v8121_v61, 0.0  ;;  %v9597_v4 = vpop.f32.mrf.mxu1  ;;  %v8060_v37 = vadd.f32 %v13448_v19, %v8021_v35  ;;  %v7983_v9 = vadd.f32 %v7919_v52, %v13824_v50  ;;  %v8097_v2 = vunpack.c.l.bf16 %v10462_v46 }
 0x45c   : > { %v8126_v22 = vadd.f32 %v8094_v48, %v8062_v6  ;;  %v8024_v29 = vmul.f32 %v13435_v13, %v7985_v47  ;;  %v7931_v49 = vpop.f32.mrf.mxu0  ;;  %v10463_v6 = vld [vmem:[%s10808_s19 + $0x68] sm:$0xf] }
 0x45d   : > { %8185 = vst [vmem:[%s13487_s30 + $0x88] sm:$0xff] %v8153_v3  ;;  %v8124_v55 = vadd.f32 %v8092_v17, %v8060_v37  ;;  %v9598_v11 = vpop.f32.mrf.mxu1  ;;  %v8022_v38 = vmul.f32 %v13435_v13, %v7983_v9  ;;  %v7932_v15 = vadd.f32 %v9596_v43, %v7931_v49  ;;  %v8098_v18 = vunpack.c.l.bf16 %v10463_v6  ;;  %v13828_v37 = vld [vmem:[#allocation20_spill] sm:$0xff]  ;;  %v10464_v49 = vld [vmem:[%s10808_s19 + $0x6c] sm:$0xf] }
 0x45e   : > { %v8158_v1 = vmax.f32 %v8126_v22, 0.0  ;;  %v8063_v12 = vadd.f32 %v13448_v19, %v8024_v29  ;;  %v9925_v31 = vpop.f32.mrf.mxu0  ;;  %v9599_v14 = vadd.f32 %v9598_v11, %v9597_v4 }
 0x45f   : > { %v8156_v44 = vmax.f32 %v8124_v55, 0.0  ;;  %v9600_v20 = vpop.f32.mrf.mxu1  ;;  %v8061_v57 = vadd.f32 %v13448_v19, %v8022_v38  ;;  %v7986_v39 = vadd.f32 %v7932_v15, %v13825_v40  ;;  %v8099_v55 = vunpack.c.l.bf16 %v10464_v49 }
 0x460   : > { %8190 = vst [vmem:[%s13487_s30 + $0xb0] sm:$0xff] %v8158_v1  ;;  %v8127_v41 = vadd.f32 %v8095_v42, %v8063_v12  ;;  %v7934_v21 = vpop.f32.mrf.mxu0 }
 0x461   : > { %8188 = vst [vmem:[%s13487_s30 + $0xa0] sm:$0xff] %v8156_v44  ;;  %v8125_v30 = vadd.f32 %v8093_v62, %v8061_v57  ;;  %v9601_v5 = vpop.f32.mrf.mxu1  ;;  %v8025_v28 = vmul.f32 %v13435_v13, %v7986_v39  ;;  %v7935_v48 = vadd.f32 %v9599_v14, %v7934_v21 }
 0x462   : > { %v8159_v36 = vmax.f32 %v8127_v41, 0.0  ;;  %v9602_v8 = vadd.f32 %v9601_v5, %v9600_v20  ;;  %v9928_v27 = vpop.f32.mrf.mxu0  ;;  %v10465_v20 = vld [vmem:[%s10808_s19 + $0x70] sm:$0xf] }
 0x463   : > { %v8157_v32 = vmax.f32 %v8125_v30, 0.0  ;;  %v9603_v34 = vpop.f32.mrf.mxu1  ;;  %v8064_v0 = vadd.f32 %v13448_v19, %v8025_v28  ;;  %v7987_v10 = vadd.f32 %v7935_v48, %v13826_v25  ;;  %v8100_v57 = vunpack.c.l.bf16 %v10465_v20 }
 0x464   : > { %8191 = vst [vmem:[%s13487_s30 + $0xb8] sm:$0xff] %v8159_v36  ;;  %v7940_v58 = vadd.f32 %v9924_v60, %v9602_v8  ;;  %v7947_v17 = vpop.f32.mrf.mxu0 }
 0x465   : > { %8189 = vst [vmem:[%s13487_s30 + $0xa8] sm:$0xff] %v8157_v32  ;;  %v8128_v24 = vadd.f32 %v8096_v63, %v8064_v0  ;;  %v9604_v33 = vpop.f32.mrf.mxu1  ;;  %v8026_v53 = vmul.f32 %v13435_v13, %v7987_v10  ;;  %v10466_v63 = vld [vmem:[%s10808_s19 + $0x74] sm:$0xf]  ;;  %v13829_v0 = vld [vmem:[#allocation21_spill] sm:$0xff] }
 0x466   : > { %v7988_v45 = vadd.f32 %v7940_v58, %v13827_v26  ;;  %v9605_v7 = vadd.f32 %v9604_v33, %v9603_v34  ;;  %v9929_v43 = vpop.f32.mrf.mxu0  ;;  %v8101_v48 = vunpack.c.l.bf16 %v10466_v63 }
 0x467   : > { %v8160_v61 = vmax.f32 %v8128_v24, 0.0  ;;  %v9606_v56 = vpop.f32.mrf.mxu1  ;;  %v8065_v35 = vadd.f32 %v13448_v19, %v8026_v53  ;;  %v10467_v24 = vld [vmem:[%s10808_s19 + $0x78] sm:$0xf] }
 0x468   : > { %v8027_v52 = vmul.f32 %v13435_v13, %v7988_v45  ;;  %v7943_v47 = vadd.f32 %v9925_v31, %v9605_v7  ;;  %v7950_v51 = vpop.f32.mrf.mxu0  ;;  %v8102_v33 = vunpack.c.l.bf16 %v10467_v24  ;;  %v10468_v7 = vld [vmem:[%s10808_s19 + $0x7c] sm:$0xf]  ;;  %s8201_s19 = scalar_lea.sflag [#allocation6], %s10804_s17 }
 0x469   : > { %8192 = vst [vmem:[%s13487_s30 + $0xc0] sm:$0xff] %v8160_v61  ;;  %v8129_v60 = vadd.f32 %v8097_v2, %v8065_v35  ;;  %v9607_v3 = vpop.f32.mrf.mxu1  ;;  %v13830_v2 = vld [vmem:[#allocation22_spill] sm:$0xff]  ;;  %v8103_v61 = vunpack.c.l.bf16 %v10468_v7 }
 0x46a   : > { %v8066_v4 = vadd.f32 %v13448_v19, %v8027_v52  ;;  %v7989_v50 = vadd.f32 %v7943_v47, %v13828_v37  ;;  %v9608_v9 = vadd.f32 %v9607_v3, %v9606_v56 }
 0x46b   : > { %v8161_v22 = vmax.f32 %v8129_v60, 0.0  ;;  %v9609_v29 = vpop.f32.mrf.mxu1 }
 0x46c   : > { %v8130_v54 = vadd.f32 %v8098_v18, %v8066_v4  ;;  %v8028_v42 = vmul.f32 %v13435_v13, %v7989_v50  ;;  %v7948_v11 = vadd.f32 %v9608_v9, %v7947_v17 }
 0x46d   : > { %8193 = vst [vmem:[%s13487_s30 + $0xc8] sm:$0xff] %v8161_v22  ;;  %v9610_v38 = vpop.f32.mrf.mxu1 }
 0x46e   : > { %v8162_v62 = vmax.f32 %v8130_v54, 0.0  ;;  %v8067_v15 = vadd.f32 %v13448_v19, %v8028_v42  ;;  %v7990_v1 = vadd.f32 %v7948_v11, %v13407_v23  ;;  %v9611_v12 = vadd.f32 %v9610_v38, %v9609_v29 }
 0x46f   : > { %v9612_v31 = vpop.f32.mrf.mxu1 }
 0x470   : > { %8194 = vst [vmem:[%s13487_s30 + $0xd0] sm:$0xff] %v8162_v62  ;;  %v8131_v44 = vadd.f32 %v8099_v55, %v8067_v15  ;;  %v8029_v14 = vmul.f32 %v13435_v13, %v7990_v1  ;;  %v7951_v40 = vadd.f32 %v9611_v12, %v7950_v51 }
 0x471   : > { %v9613_v39 = vpop.f32.mrf.mxu1 }
 0x472   : > { %v8163_v41 = vmax.f32 %v8131_v44, 0.0  ;;  %v8068_v21 = vadd.f32 %v13448_v19, %v8029_v14  ;;  %v7991_v30 = vadd.f32 %v7951_v40, %v13415_v59  ;;  %v9614_v5 = vadd.f32 %v9613_v39, %v9612_v31 }
 0x473   : > { %v9615_v23 = vpop.f32.mrf.mxu1 }
 0x474   : > { %8195 = vst [vmem:[%s13487_s30 + $0xd8] sm:$0xff] %v8163_v41  ;;  %v8132_v28 = vadd.f32 %v8100_v57, %v8068_v21  ;;  %v8030_v16 = vmul.f32 %v13435_v13, %v7991_v30  ;;  %v7956_v36 = vadd.f32 %v9928_v27, %v9614_v5 }
 0x475   : > { %v9616_v8 = vpop.f32.mrf.mxu1 }
 0x476   : > { %v8164_v32 = vmax.f32 %v8132_v28, 0.0  ;;  %v8069_v34 = vadd.f32 %v13448_v19, %v8030_v16  ;;  %v7992_v25 = vadd.f32 %v7956_v36, %v13829_v0  ;;  %v9617_v10 = vadd.f32 %v9616_v8, %v9615_v23 }
 0x478   : > { %8196 = vst [vmem:[%s13487_s30 + $0xe0] sm:$0xff] %v8164_v32  ;;  %v8133_v59 = vadd.f32 %v8101_v48, %v8069_v34  ;;  %v8031_v58 = vmul.f32 %v13435_v13, %v7992_v25  ;;  %v7959_v53 = vadd.f32 %v9929_v43, %v9617_v10 }
 0x47a   : > { %v8165_v46 = vmax.f32 %v8133_v59, 0.0  ;;  %v8070_v27 = vadd.f32 %v13448_v19, %v8031_v58  ;;  %v7993_v17 = vadd.f32 %v7959_v53, %v13830_v2 }
 0x47c   : > { %8197 = vst [vmem:[%s13487_s30 + $0xe8] sm:$0xff] %v8165_v46  ;;  %v8134_v26 = vadd.f32 %v8102_v33, %v8070_v27  ;;  %v8032_v45 = vmul.f32 %v13435_v13, %v7993_v17 }
 0x47e   : > { %v8166_v56 = vmax.f32 %v8134_v26, 0.0  ;;  %v8071_v35 = vadd.f32 %v13448_v19, %v8032_v45 }
 0x480   : > { %8198 = vst [vmem:[%s13487_s30 + $0xf0] sm:$0xff] %v8166_v56  ;;  %v8135_v52 = vadd.f32 %v8103_v61, %v8071_v35 }
 0x482   : > { %v8167_v13 = vmax.f32 %v8135_v52, 0.0 }
 0x484   : > { %8199 = vst [vmem:[%s13487_s30 + $0xf8] sm:$0xff] %v8167_v13 }
 0x485   : > { %10562 = shalt.err (!%p10559_p3)
}
 0x486   : > { %s10563_s16 = scalar_lea.hbm %s13673_s29, 4096  ;;  %s10567_s15 = scalar_lea.hbm %s13726_s7, 8192 }
 0x487   : > { %p10564_p11 = scmp.ne.s32.totalorder %s13673_s29, %s10563_s16  ;;  %p10568_p4 = scmp.lt.s32.totalorder %s13673_s29, %s13726_s7 }
 0x488   : > { %p10569_p6 = scmp.lt.s32.totalorder %s10567_s15, %s10563_s16 }
 0x489   : > { %p10565_p9 = pnand %p10564_p11, %p13831_p2 }
 0x48a   : > { %p10570_p8 = por %p10569_p6, %p10568_p4 }
 0x48b   : > { %p10566_p1 = pneg %p10565_p9 }
 0x48d   : > { %p10571_p5 = pnand %p10570_p8, %p10566_p1 }
 0x48f   : > { %10574 = shalt.err (!%p10571_p5)
}
 0x490   : > { %s10626_s22 = smov 128   ;;  %s10627_s10 = smov 8  }
 0x491   : > { %9940 = dma.vmem_to_hbm [thread:$0]  (%p13831_p2), %s13675_s20, 4096, %s13673_s29, %s8201_s19, %s10626_s22, %s10626_s22, %s10627_s10  }
 0x492 PF: > { %s8229_s21 = sand.u32 1, %s10605_s24   ;;  %p13832_p7 = scmp.ne.s32.totalorder %s13739_s8, 0 }
 0x493   : > { %p13833_p12 = scmp.ge.s32.totalorder %s10617_s27, 2  ;;  %s8230_s28 = scalar_lea.sflag [#allocation6], %s8229_s21 }
 0x495   : > { %p9954_p13 = pnand %p13833_p12, %p13832_p7 }
 0x497   : > { %p9955_p0 = pneg %p9954_p13 }
 0x499   : > { %10600 = dma.done.wait (%p9955_p0), %s8230_s28, 4096  }
 0x49a   : > { %10602 = vsyncadd (%p9955_p0), %s8230_s28, 4294963200  ;;  %p21_p10 = scmp.ge.s32.totalorder %s10746_s23, 4   ;;  %s13834_s24 = smov %s10609_s25 }
 0x49b   : > { %s13835_s25 = smov %s10613_s26  ;;  %s13836_s26 = smov %s10762_s12 }
 0x49c   : > { %s13837_s27 = smov %s10746_s23  ;;  %23 = sbr.rel (!%p21_p10) target bundleno = 8 (0x8), region = 111 }
 0x4a1   :  { %8235 = vsyncpa [#allocation5], 1 }
 0x4a2   :  { %8237 = vsyncpa [#allocation5 + $0x1], 1 }
 0x4a3   :  { %8238 = vsyncpa [#allocation8], 1 }
 0x4a4   :  { %8239 = vsyncpa [#allocation6], 1 }
 0x4a5   :  { %8241 = vsyncpa [#allocation6 + $0x1], 1 }

</bundles_post_ra>
